<compile_context>
chip_gen: v6e
topology: v6e:2x2x1
jax: 0.10.0
libtpu: 0.0.40
codegen_flags: <defaults>
</compile_context>

<pallas_src>
import functools
import numpy as np
import jax
import jax.numpy as jnp
from jax import lax
from jax.experimental import pallas as pl
from jax.experimental.pallas import tpu as pltpu


# ----------------------------------------------------------------------------
# Pallas kernel: one grid step == WB windows that share the same shift mask.
# ----------------------------------------------------------------------------
def _window_attn_kernel(x_ref, wqkv_ref, wp_ref, bp_ref, bias_ref, mask_ref,
                        o_ref, qkv_ref, acc_ref, *, num_heads, head_dim,
                        windows_per_block, seq_len):
    WB, N, hd, H = windows_per_block, seq_len, head_dim, num_heads
    C = H * hd
    M = WB * N

    x = x_ref[0, 0]                                  # (M, C) in compute dtype
    cdt = x.dtype

    # Fused QKV projection: one (M, C) x (C, 3C) MXU pass (scale pre-folded into
    # the Q columns).  Parked in VMEM scratch so the full slab is not kept live.
    qkv_ref[...] = jnp.dot(x, wqkv_ref[...],
                           preferred_element_type=jnp.float32).astype(cdt)
    acc_ref[...] = jnp.zeros_like(acc_ref)           # f32 projection accumulator

    # Static unroll over heads (H is small); every per-head intermediate dies at
    # the end of its iteration — only the VMEM scratch refs persist.
    for h in range(H):
        lo = h * hd
        q_h = qkv_ref[:, lo:lo + hd].reshape(WB, N, hd)
        k_h = qkv_ref[:, C + lo:C + lo + hd].reshape(WB, N, hd)
        v_h = qkv_ref[:, 2 * C + lo:2 * C + lo + hd].reshape(WB, N, hd)

        # scores: (WB, N, N), batched over the WB windows sharing this shift mask
        s = lax.dot_general(q_h, k_h,
                            dimension_numbers=(((2,), (2,)), ((0,), (0,))),
                            preferred_element_type=jnp.float32)
        s = s + (bias_ref[h] + mask_ref[0])[None]     # rel-pos bias + shift mask (f32)

        # numerically-stable softmax; divide replaced by EUP approx reciprocal
        m = jnp.max(s, axis=-1, keepdims=True)
        p = jnp.exp(s - m)
        denom = jnp.sum(p, axis=-1, keepdims=True)
        p = p * pl.reciprocal(denom, approx=True)

        o_h = lax.dot_general(p.astype(cdt), v_h,
                              dimension_numbers=(((2,), (1,)), ((0,), (0,))),
                              preferred_element_type=jnp.float32)   # (WB, N, hd)

        # Fold this head's output directly into the output projection
        # (no narrow masked stores, no concat, no scratch re-read).
        acc_ref[...] += jnp.dot(o_h.reshape(M, hd).astype(cdt),
                                wp_ref[lo:lo + hd, :],
                                preferred_element_type=jnp.float32)

    o_ref[0, 0] = (acc_ref[...] + bp_ref[...]).astype(o_ref.dtype)


# ----------------------------------------------------------------------------
# Wrapper: window-major reorder, constant folding, device-aware tiling.
# ----------------------------------------------------------------------------
def _vmem_capacity_bytes():
    try:
        return int(pltpu.get_tpu_info().vmem_capacity_bytes)
    except Exception:
        return 64 * 1024 * 1024          # conservative (v7x-sized) fallback


def _pick_windows_per_block(batch, n, max_rows):
    """Largest divisor of `batch` whose row-count WB*N stays <= max_rows."""
    wb = 1
    for cand in range(1, batch + 1):
        if batch % cand == 0 and cand * n <= max(max_rows, n):
            wb = cand
    return wb


def window_attention_3d(x, wqkv, wp, bp, rel_bias, mask, num_heads, scale,
                        *, compute_dtype=jnp.bfloat16, out_dtype=None,
                        windows_per_block=None):
    """x: (B_, N, C); wqkv: (3C, C); wp: (C, C); bp: (C,);
       rel_bias: (H, N, N); mask: (nW, N, N) or None.  Returns (B_, N, C)."""
    B_, N, C = x.shape
    H = num_heads
    assert C % H == 0, "dim must be divisible by num_heads"
    hd = C // H
    out_dtype = out_dtype or x.dtype      # set out_dtype=bf16 when downstream allows

    if mask is None:
        mask = jnp.zeros((1, N, N), dtype=jnp.float32)
    mask = mask.astype(jnp.float32)
    nW = mask.shape[0]
    assert B_ % nW == 0, "B_ must be a multiple of nW"
    batch = B_ // nW

    # ---- device-aware slab sizing --------------------------------------------
    itemsize = jnp.dtype(compute_dtype).itemsize
    out_itemsize = jnp.dtype(out_dtype).itemsize
    vmem_cap = _vmem_capacity_bytes()                            # 128 MiB v5e/v6e, 64 MiB v7x
    vmem_limit = int(min(max(32 * 2**20, 0.75 * vmem_cap), 96 * 2**20))
    # Per-step VMEM: double-buffered x/out blocks + (double-buffered) weights,
    # bias, mask + the qkv / accumulator scratch.
    # NOTE: weights/bias are grid-invariant (index_map constant), so they are not
    # re-DMA'd each step; pl.Buffered(1) would also halve their buffer footprint,
    # but the budget below simply accounts for the default double buffering.
    fixed = 2 * ((3 * C * C + C * C) * itemsize + C * 4
                 + H * N * N * 4 + N * N * 4)
    per_row = (2 * C * itemsize          # x block (double-buffered)
               + 2 * C * out_itemsize    # out block (double-buffered)
               + 3 * C * itemsize        # fused qkv scratch
               + C * 4)                  # f32 projection accumulator
    budget = int(0.6 * vmem_limit) - fixed
    max_rows = max(N, budget // per_row) if budget > 0 else N
    max_rows = min(max_rows, 2048)

    WB = windows_per_block or _pick_windows_per_block(batch, N, max_rows)
    assert batch % WB == 0
    # Keep at least 2 parallel grid steps so both v7x TensorCores get work.
    while WB > 1 and nW * (batch // WB) < 2:
        WB = max(d for d in range(1, WB) if batch % d == 0)
    GB = batch // WB                     # grid blocks along the batch axis
    M = WB * N                           # rows per block

    # ---- one-time constant folding (outside the hot loop) --------------------
    col_scale = jnp.concatenate([jnp.full((C,), scale, jnp.float32),
                                 jnp.ones((2 * C,), jnp.float32)])
    wqkv_t = (wqkv.T.astype(jnp.float32) * col_scale[None, :]).astype(compute_dtype)
    wp_t = wp.T.astype(compute_dtype)
    bp2 = bp.reshape(1, C).astype(jnp.float32)
    rel_bias = rel_bias.astype(jnp.float32)                      # (H, N, N), shared by all windows

    # ---- reorder so each block's WB windows share a single shift mask --------
    xr = (x.astype(compute_dtype)
            .reshape(batch, nW, N, C)
            .transpose(1, 0, 2, 3)                 # (nW, batch, N, C): window-major
            .reshape(nW, GB, M, C))

    kernel = functools.partial(_window_attn_kernel,
                               num_heads=H, head_dim=hd,
                               windows_per_block=WB, seq_len=N)

    cost = pl.CostEstimate(
        flops=B_ * (8 * N * C * C + 4 * N * N * C),
        transcendentals=B_ * H * N * N,
        bytes_accessed=(B_ * N * C * (itemsize + out_itemsize)
                        + 4 * C * C * itemsize
                        + H * N * N * 4 + nW * N * N * 4 + 4 * C),
    )

    # TODO(synk): for C < 128 a lane-dense packed output (…, M*C/128, 128) would
    # avoid masked stores; production Swin-3D dims are multiples of 128 so the
    # natural (M, C) layout is kept here.
    out = pl.pallas_call(
        kernel,
        out_shape=jax.ShapeDtypeStruct((nW, GB, M, C), out_dtype),
        grid_spec=pltpu.PrefetchScalarGridSpec(
            num_scalar_prefetch=0,
            grid=(nW, GB),
            in_specs=[
                pl.BlockSpec((1, 1, M, C), lambda w, b: (w, b, 0, 0)),    # x slab
                pl.BlockSpec((C, 3 * C), lambda w, b: (0, 0)),            # fused Wqkv^T (scale folded)
                pl.BlockSpec((C, C), lambda w, b: (0, 0)),                # Wproj^T
                pl.BlockSpec((1, C), lambda w, b: (0, 0)),                # proj bias
                pl.BlockSpec((H, N, N), lambda w, b: (0, 0, 0)),          # rel-pos bias (grid-invariant)
                pl.BlockSpec((1, N, N), lambda w, b: (w, 0, 0)),          # per-window shift mask
            ],
            out_specs=pl.BlockSpec((1, 1, M, C), lambda w, b: (w, b, 0, 0)),
            scratch_shapes=[
                pltpu.VMEM((M, 3 * C), compute_dtype),    # fused qkv slab
                pltpu.VMEM((M, C), jnp.float32),          # output-projection accumulator
            ],
        ),
        compiler_params=pltpu.CompilerParams(
            dimension_semantics=("parallel", "parallel"),
            vmem_limit_bytes=vmem_limit,
        ),
        cost_estimate=cost,
    )(xr, wqkv_t, wp_t, bp2, rel_bias, mask)

    # undo the window-major reorder
    return (out.reshape(nW, batch, N, C)
               .transpose(1, 0, 2, 3)
               .reshape(B_, N, C))


# ----------------------------------------------------------------------------
# Pure-JAX reference (mirrors the PyTorch forward exactly) for verification.
# ----------------------------------------------------------------------------
def ref_forward(x, wqkv, wp, bp, bias_table, rel_index, mask, num_heads, scale):
    B_, N, C = x.shape
    qkv = x @ wqkv.T                                                 # (B_, N, 3C)
    qkv = qkv.reshape(B_, N, 3, num_heads, C // num_heads).transpose(2, 0, 3, 1, 4)
    q, k, v = qkv[0], qkv[1], qkv[2]
    q = q * scale
    attn = q @ jnp.swapaxes(k, -2, -1)                               # (B_, H, N, N)
    rpb = bias_table[rel_index.reshape(-1)].reshape(N, N, -1).transpose(2, 0, 1)
    attn = attn + rpb[None]
    nW = mask.shape[0]
    attn = attn.reshape(B_ // nW, nW, num_heads, N, N) + mask[None, :, None]
    attn = attn.reshape(-1, num_heads, N, N)
    attn = jax.nn.softmax(attn, axis=-1)
    out = (attn @ v).transpose(0, 2, 1, 3).reshape(B_, N, C)
    return out @ wp.T + bp


# ----------------------------------------------------------------------------
# Relative-position index, identical to the PyTorch __init__ construction.
# ----------------------------------------------------------------------------
def make_relative_position_index(window_size):
    d, h, w = window_size
    coords = np.stack(np.meshgrid(np.arange(d), np.arange(h), np.arange(w),
                                  indexing="ij"))                     # (3, d, h, w)
    coords_flatten = coords.reshape(3, -1)                            # (3, N)
    rel = coords_flatten[:, :, None] - coords_flatten[:, None, :]     # (3, N, N)
    rel = rel.transpose(1, 2, 0).astype(np.int64)                     # (N, N, 3)
    rel[:, :, 0] += d - 1
    rel[:, :, 1] += h - 1
    rel[:, :, 2] += w - 1
    rel[:, :, 0] *= (2 * h - 1) * (2 * w - 1)
    rel[:, :, 1] *= 2 * w - 1
    return rel.sum(-1)                                                # (N, N)


if __name__ == "__main__":
    # Small but representative config.
    window_size = (2, 4, 4)                    # N = 32
    dim = 32                                   # C
    num_heads = 4
    head_dim = dim // num_heads
    scale = head_dim ** (-0.5)
    nW = 4                                     # number of windows per image
    batch = 8
    B_ = batch * nW
    N = window_size[0] * window_size[1] * window_size[2]

    key = jax.random.PRNGKey(0)
    k1, k2, k3, k4, k5, k6 = jax.random.split(key, 6)

    # Deterministic synthetic parameters (trunc_normal std=0.02 approximated
    # by a plain normal * 0.02; no checkpoint loading).
    x = jax.random.normal(k1, (B_, N, dim), dtype=jnp.float32)
    wqkv = jax.random.normal(k2, (3 * dim, dim), dtype=jnp.float32) * 0.02
    wp = jax.random.normal(k3, (dim, dim), dtype=jnp.float32) * 0.02
    bp = jax.random.normal(k4, (dim,), dtype=jnp.float32) * 0.02
    table_len = ((2 * window_size[0] - 1) * (2 * window_size[1] - 1)
                 * (2 * window_size[2] - 1))
    bias_table = jax.random.normal(k5, (table_len, num_heads), dtype=jnp.float32) * 0.02

    # Shift-window style 0 / -100 mask, deterministic.
    mask = jnp.where(jax.random.uniform(k6, (nW, N, N)) > 0.7, -100.0, 0.0).astype(jnp.float32)

    # Precompute gathered relative-position bias (H, N, N) outside the kernel.
    rel_index = jnp.asarray(make_relative_position_index(window_size))   # (N, N)
    rel_bias = bias_table[rel_index.reshape(-1)].reshape(N, N, num_heads)
    rel_bias = jnp.transpose(rel_bias, (2, 0, 1)).astype(jnp.float32)    # (H, N, N)

    ref = ref_forward(x, wqkv, wp, bp, bias_table, rel_index, mask, num_heads, scale)
    ref = jax.block_until_ready(ref)

    # f32 compute path: tight check (approx reciprocal adds ~1e-3 relative noise).
    out_f32 = window_attention_3d(x, wqkv, wp, bp, rel_bias, mask, num_heads, scale,
                                  compute_dtype=jnp.float32)
    out_f32 = jax.block_until_ready(out_f32)
    if not np.allclose(np.asarray(out_f32), np.asarray(ref), rtol=1e-2, atol=2e-3):
        raise AssertionError("Pallas kernel (f32) output mismatch vs. reference")

    # bf16 compute + bf16 writeback path (recommended on v6e/v7x): looser tolerance.
    out_bf16 = window_attention_3d(x, wqkv, wp, bp, rel_bias, mask, num_heads, scale,
                                   compute_dtype=jnp.bfloat16, out_dtype=jnp.bfloat16)
    out_bf16 = jax.block_until_ready(out_bf16)
    if not np.allclose(np.asarray(out_bf16.astype(jnp.float32)), np.asarray(ref),
                       rtol=5e-2, atol=1e-2):
        raise AssertionError("Pallas kernel (bf16) output mismatch vs. reference")

    # TODO(synk): attn_drop / proj_drop are identity in eval mode (p=0.0), so dropout is omitted.
    # TODO(synk): qkv_bias=False (module default); a fused qkv bias row could be added analogously to bp.
    print("KERNEL_OK")
</pallas_src>

<mosaic_0001>
module attributes {stable_mosaic.version = 11 : i64} {
  func.func @_window_attn_kernel(%arg0: i32, %arg1: i32, %arg2: memref<1x1x256x32xf32, #tpu.memory_space<vmem>>, %arg3: memref<32x96xf32, #tpu.memory_space<vmem>>, %arg4: memref<32x32xf32, #tpu.memory_space<vmem>>, %arg5: memref<1x32xf32, #tpu.memory_space<vmem>>, %arg6: memref<4x32x32xf32, #tpu.memory_space<vmem>>, %arg7: memref<1x32x32xf32, #tpu.memory_space<vmem>>, %arg8: memref<1x1x256x32xf32, #tpu.memory_space<vmem>>, %arg9: memref<256x96xf32, #tpu.memory_space<vmem>>, %arg10: memref<256x32xf32, #tpu.memory_space<vmem>>) attributes {dimension_semantics = [#tpu.dimension_semantics<parallel>, #tpu.dimension_semantics<parallel>], iteration_bounds = array<i64: 4, 1>, scalar_prefetch = 0 : i64, scratch_operands = 2 : i64, tpu.core_type = #tpu.core_type<tc>, window_params = [{transform_indices = @transform_0, window_bounds = array<i64: 1, 1, 256, 32>}, {pipeline_mode = #tpu.pipeline_mode<synchronous>, transform_indices = @transform_1, window_bounds = array<i64: 32, 96>}, {pipeline_mode = #tpu.pipeline_mode<synchronous>, transform_indices = @transform_2, window_bounds = array<i64: 32, 32>}, {pipeline_mode = #tpu.pipeline_mode<synchronous>, transform_indices = @transform_3, window_bounds = array<i64: 1, 32>}, {pipeline_mode = #tpu.pipeline_mode<synchronous>, transform_indices = @transform_4, window_bounds = array<i64: 4, 32, 32>}, {transform_indices = @transform_5, window_bounds = array<i64: 1, 32, 32>}, {transform_indices = @transform_6, window_bounds = array<i64: 1, 1, 256, 32>}]} {
    %c0 = arith.constant 0 : index
    %c0_0 = arith.constant 0 : index
    %c0_1 = arith.constant 0 : index
    %c0_2 = arith.constant 0 : index
    %0 = vector.load %arg2[%c0, %c0_0, %c0_1, %c0_2] : memref<1x1x256x32xf32, #tpu.memory_space<vmem>>, vector<1x1x256x32xf32>
    %1 = vector.shape_cast %0 : vector<1x1x256x32xf32> to vector<256x32xf32>
    %c0_3 = arith.constant 0 : index
    %c0_4 = arith.constant 0 : index
    %2 = vector.load %arg3[%c0_3, %c0_4] : memref<32x96xf32, #tpu.memory_space<vmem>>, vector<32x96xf32>
    %cst = arith.constant dense<0.000000e+00> : vector<256x96xf32>
    %3 = tpu.matmul %1, %2, %cst {dimension_numbers = #tpu.dot_dimension_numbers<[1], [0], [0], [1], [0, 0, 1, 1], [], []>} : vector<256x32xf32>, vector<32x96xf32>, vector<256x96xf32> -> vector<256x96xf32>
    %c0_5 = arith.constant 0 : index
    %c0_6 = arith.constant 0 : index
    %4 = vector.load %arg9[%c0_5, %c0_6] : memref<256x96xf32, #tpu.memory_space<vmem>>, vector<256x96xf32>
    tpu.vector_store %arg9[%c0_5, %c0_6], %3 {strides = array<i32>} : memref<256x96xf32, #tpu.memory_space<vmem>>, vector<256x96xf32>,
    %cst_7 = arith.constant 0.000000e+00 : f32
    %5 = vector.broadcast %cst_7 : f32 to vector<256x32xf32>
    %c0_8 = arith.constant 0 : index
    %c0_9 = arith.constant 0 : index
    %6 = vector.load %arg10[%c0_8, %c0_9] : memref<256x32xf32, #tpu.memory_space<vmem>>, vector<256x32xf32>
    tpu.vector_store %arg10[%c0_8, %c0_9], %5 {strides = array<i32>} : memref<256x32xf32, #tpu.memory_space<vmem>>, vector<256x32xf32>,
    %c0_10 = arith.constant 0 : index
    %c0_11 = arith.constant 0 : index
    %7 = vector.load %arg9[%c0_10, %c0_11] : memref<256x96xf32, #tpu.memory_space<vmem>>, vector<256x8xf32>
    %8 = vector.shape_cast %7 : vector<256x8xf32> to vector<8x32x8xf32>
    %c0_12 = arith.constant 0 : index
    %c32 = arith.constant 32 : index
    %9 = vector.load %arg9[%c0_12, %c32] : memref<256x96xf32, #tpu.memory_space<vmem>>, vector<256x8xf32>
    %10 = vector.shape_cast %9 : vector<256x8xf32> to vector<8x32x8xf32>
    %c0_13 = arith.constant 0 : index
    %c64 = arith.constant 64 : index
    %11 = vector.load %arg9[%c0_13, %c64] : memref<256x96xf32, #tpu.memory_space<vmem>>, vector<256x8xf32>
    %12 = vector.shape_cast %11 : vector<256x8xf32> to vector<8x32x8xf32>
    %cst_14 = arith.constant dense<0.000000e+00> : vector<8x32x32xf32>
    %13 = tpu.matmul %8, %10, %cst_14 {dimension_numbers = #tpu.dot_dimension_numbers<[2], [2], [1], [1], [0, 0, 0, 1, 1, 1], [0], [0]>} : vector<8x32x8xf32>, vector<8x32x8xf32>, vector<8x32x32xf32> -> vector<8x32x32xf32>
    %c0_15 = arith.constant 0 : index
    %c0_16 = arith.constant 0 : index
    %c0_17 = arith.constant 0 : index
    %14 = vector.load %arg6[%c0_15, %c0_16, %c0_17] : memref<4x32x32xf32, #tpu.memory_space<vmem>>, vector<1x32x32xf32>
    %15 = vector.shape_cast %14 : vector<1x32x32xf32> to vector<32x32xf32>
    %c0_18 = arith.constant 0 : index
    %c0_19 = arith.constant 0 : index
    %c0_20 = arith.constant 0 : index
    %16 = vector.load %arg7[%c0_18, %c0_19, %c0_20] : memref<1x32x32xf32, #tpu.memory_space<vmem>>, vector<1x32x32xf32>
    %17 = vector.shape_cast %16 : vector<1x32x32xf32> to vector<32x32xf32>
    %18 = arith.addf %15, %17 : vector<32x32xf32>
    %19 = vector.shape_cast %18 : vector<32x32xf32> to vector<1x32x32xf32>
    %20 = vector.broadcast %19 : vector<1x32x32xf32> to vector<8x32x32xf32>
    %21 = arith.addf %13, %20 : vector<8x32x32xf32>
    %cst_21 = arith.constant dense<0xFF800000> : vector<8x32xf32>
    %22 = vector.multi_reduction <maximumf>, %21, %cst_21 [2] : vector<8x32x32xf32> to vector<8x32xf32>
    %23 = vector.shape_cast %22 : vector<8x32xf32> to vector<8x32x1xf32>
    %24 = vector.broadcast %23 : vector<8x32x1xf32> to vector<8x32x32xf32>
    %25 = arith.subf %21, %24 : vector<8x32x32xf32>
    %26 = math.exp %25 : vector<8x32x32xf32>
    %cst_22 = arith.constant dense<0.000000e+00> : vector<8x32xf32>
    %27 = vector.multi_reduction <add>, %26, %cst_22 [2] : vector<8x32x32xf32> to vector<8x32xf32>
    %28 = vector.shape_cast %27 : vector<8x32xf32> to vector<8x32x1xf32>
    %29 = tpu.reciprocal %28 {approx = true} : vector<8x32x1xf32> -> vector<8x32x1xf32>
    %30 = vector.broadcast %29 : vector<8x32x1xf32> to vector<8x32x32xf32>
    %31 = arith.mulf %26, %30 : vector<8x32x32xf32>
    %cst_23 = arith.constant dense<0.000000e+00> : vector<8x32x8xf32>
    %32 = tpu.matmul %31, %12, %cst_23 {dimension_numbers = #tpu.dot_dimension_numbers<[2], [1], [1], [2], [0, 0, 0, 1, 1, 2], [0], [0]>} : vector<8x32x32xf32>, vector<8x32x8xf32>, vector<8x32x8xf32> -> vector<8x32x8xf32>
    %c0_24 = arith.constant 0 : index
    %c0_25 = arith.constant 0 : index
    %33 = vector.load %arg10[%c0_24, %c0_25] : memref<256x32xf32, #tpu.memory_space<vmem>>, vector<256x32xf32>
    %34 = vector.shape_cast %32 : vector<8x32x8xf32> to vector<256x8xf32>
    %c0_26 = arith.constant 0 : index
    %c0_27 = arith.constant 0 : index
    %35 = vector.load %arg4[%c0_26, %c0_27] : memref<32x32xf32, #tpu.memory_space<vmem>>, vector<8x32xf32>
    %cst_28 = arith.constant dense<0.000000e+00> : vector<256x32xf32>
    %36 = tpu.matmul %34, %35, %cst_28 {dimension_numbers = #tpu.dot_dimension_numbers<[1], [0], [0], [1], [0, 0, 1, 1], [], []>} : vector<256x8xf32>, vector<8x32xf32>, vector<256x32xf32> -> vector<256x32xf32>
    %37 = arith.addf %33, %36 : vector<256x32xf32>
    %c0_29 = arith.constant 0 : index
    %c0_30 = arith.constant 0 : index
    %38 = vector.load %arg10[%c0_29, %c0_30] : memref<256x32xf32, #tpu.memory_space<vmem>>, vector<256x32xf32>
    tpu.vector_store %arg10[%c0_29, %c0_30], %37 {strides = array<i32>} : memref<256x32xf32, #tpu.memory_space<vmem>>, vector<256x32xf32>,
    %c0_31 = arith.constant 0 : index
    %c8 = arith.constant 8 : index
    %39 = vector.load %arg9[%c0_31, %c8] : memref<256x96xf32, #tpu.memory_space<vmem>>, vector<256x8xf32>
    %40 = vector.shape_cast %39 : vector<256x8xf32> to vector<8x32x8xf32>
    %c0_32 = arith.constant 0 : index
    %c40 = arith.constant 40 : index
    %41 = vector.load %arg9[%c0_32, %c40] : memref<256x96xf32, #tpu.memory_space<vmem>>, vector<256x8xf32>
    %42 = vector.shape_cast %41 : vector<256x8xf32> to vector<8x32x8xf32>
    %c0_33 = arith.constant 0 : index
    %c72 = arith.constant 72 : index
    %43 = vector.load %arg9[%c0_33, %c72] : memref<256x96xf32, #tpu.memory_space<vmem>>, vector<256x8xf32>
    %44 = vector.shape_cast %43 : vector<256x8xf32> to vector<8x32x8xf32>
    %cst_34 = arith.constant dense<0.000000e+00> : vector<8x32x32xf32>
    %45 = tpu.matmul %40, %42, %cst_34 {dimension_numbers = #tpu.dot_dimension_numbers<[2], [2], [1], [1], [0, 0, 0, 1, 1, 1], [0], [0]>} : vector<8x32x8xf32>, vector<8x32x8xf32>, vector<8x32x32xf32> -> vector<8x32x32xf32>
    %c1 = arith.constant 1 : index
    %c0_35 = arith.constant 0 : index
    %c0_36 = arith.constant 0 : index
    %46 = vector.load %arg6[%c1, %c0_35, %c0_36] : memref<4x32x32xf32, #tpu.memory_space<vmem>>, vector<1x32x32xf32>
    %47 = vector.shape_cast %46 : vector<1x32x32xf32> to vector<32x32xf32>
    %c0_37 = arith.constant 0 : index
    %c0_38 = arith.constant 0 : index
    %c0_39 = arith.constant 0 : index
    %48 = vector.load %arg7[%c0_37, %c0_38, %c0_39] : memref<1x32x32xf32, #tpu.memory_space<vmem>>, vector<1x32x32xf32>
    %49 = vector.shape_cast %48 : vector<1x32x32xf32> to vector<32x32xf32>
    %50 = arith.addf %47, %49 : vector<32x32xf32>
    %51 = vector.shape_cast %50 : vector<32x32xf32> to vector<1x32x32xf32>
    %52 = vector.broadcast %51 : vector<1x32x32xf32> to vector<8x32x32xf32>
    %53 = arith.addf %45, %52 : vector<8x32x32xf32>
    %cst_40 = arith.constant dense<0xFF800000> : vector<8x32xf32>
    %54 = vector.multi_reduction <maximumf>, %53, %cst_40 [2] : vector<8x32x32xf32> to vector<8x32xf32>
    %55 = vector.shape_cast %54 : vector<8x32xf32> to vector<8x32x1xf32>
    %56 = vector.broadcast %55 : vector<8x32x1xf32> to vector<8x32x32xf32>
    %57 = arith.subf %53, %56 : vector<8x32x32xf32>
    %58 = math.exp %57 : vector<8x32x32xf32>
    %cst_41 = arith.constant dense<0.000000e+00> : vector<8x32xf32>
    %59 = vector.multi_reduction <add>, %58, %cst_41 [2] : vector<8x32x32xf32> to vector<8x32xf32>
    %60 = vector.shape_cast %59 : vector<8x32xf32> to vector<8x32x1xf32>
    %61 = tpu.reciprocal %60 {approx = true} : vector<8x32x1xf32> -> vector<8x32x1xf32>
    %62 = vector.broadcast %61 : vector<8x32x1xf32> to vector<8x32x32xf32>
    %63 = arith.mulf %58, %62 : vector<8x32x32xf32>
    %cst_42 = arith.constant dense<0.000000e+00> : vector<8x32x8xf32>
    %64 = tpu.matmul %63, %44, %cst_42 {dimension_numbers = #tpu.dot_dimension_numbers<[2], [1], [1], [2], [0, 0, 0, 1, 1, 2], [0], [0]>} : vector<8x32x32xf32>, vector<8x32x8xf32>, vector<8x32x8xf32> -> vector<8x32x8xf32>
    %c0_43 = arith.constant 0 : index
    %c0_44 = arith.constant 0 : index
    %65 = vector.load %arg10[%c0_43, %c0_44] : memref<256x32xf32, #tpu.memory_space<vmem>>, vector<256x32xf32>
    %66 = vector.shape_cast %64 : vector<8x32x8xf32> to vector<256x8xf32>
    %c8_45 = arith.constant 8 : index
    %c0_46 = arith.constant 0 : index
    %67 = vector.load %arg4[%c8_45, %c0_46] : memref<32x32xf32, #tpu.memory_space<vmem>>, vector<8x32xf32>
    %cst_47 = arith.constant dense<0.000000e+00> : vector<256x32xf32>
    %68 = tpu.matmul %66, %67, %cst_47 {dimension_numbers = #tpu.dot_dimension_numbers<[1], [0], [0], [1], [0, 0, 1, 1], [], []>} : vector<256x8xf32>, vector<8x32xf32>, vector<256x32xf32> -> vector<256x32xf32>
    %69 = arith.addf %65, %68 : vector<256x32xf32>
    %c0_48 = arith.constant 0 : index
    %c0_49 = arith.constant 0 : index
    %70 = vector.load %arg10[%c0_48, %c0_49] : memref<256x32xf32, #tpu.memory_space<vmem>>, vector<256x32xf32>
    tpu.vector_store %arg10[%c0_48, %c0_49], %69 {strides = array<i32>} : memref<256x32xf32, #tpu.memory_space<vmem>>, vector<256x32xf32>,
    %c0_50 = arith.constant 0 : index
    %c16 = arith.constant 16 : index
    %71 = vector.load %arg9[%c0_50, %c16] : memref<256x96xf32, #tpu.memory_space<vmem>>, vector<256x8xf32>
    %72 = vector.shape_cast %71 : vector<256x8xf32> to vector<8x32x8xf32>
    %c0_51 = arith.constant 0 : index
    %c48 = arith.constant 48 : index
    %73 = vector.load %arg9[%c0_51, %c48] : memref<256x96xf32, #tpu.memory_space<vmem>>, vector<256x8xf32>
    %74 = vector.shape_cast %73 : vector<256x8xf32> to vector<8x32x8xf32>
    %c0_52 = arith.constant 0 : index
    %c80 = arith.constant 80 : index
    %75 = vector.load %arg9[%c0_52, %c80] : memref<256x96xf32, #tpu.memory_space<vmem>>, vector<256x8xf32>
    %76 = vector.shape_cast %75 : vector<256x8xf32> to vector<8x32x8xf32>
    %cst_53 = arith.constant dense<0.000000e+00> : vector<8x32x32xf32>
    %77 = tpu.matmul %72, %74, %cst_53 {dimension_numbers = #tpu.dot_dimension_numbers<[2], [2], [1], [1], [0, 0, 0, 1, 1, 1], [0], [0]>} : vector<8x32x8xf32>, vector<8x32x8xf32>, vector<8x32x32xf32> -> vector<8x32x32xf32>
    %c2 = arith.constant 2 : index
    %c0_54 = arith.constant 0 : index
    %c0_55 = arith.constant 0 : index
    %78 = vector.load %arg6[%c2, %c0_54, %c0_55] : memref<4x32x32xf32, #tpu.memory_space<vmem>>, vector<1x32x32xf32>
    %79 = vector.shape_cast %78 : vector<1x32x32xf32> to vector<32x32xf32>
    %c0_56 = arith.constant 0 : index
    %c0_57 = arith.constant 0 : index
    %c0_58 = arith.constant 0 : index
    %80 = vector.load %arg7[%c0_56, %c0_57, %c0_58] : memref<1x32x32xf32, #tpu.memory_space<vmem>>, vector<1x32x32xf32>
    %81 = vector.shape_cast %80 : vector<1x32x32xf32> to vector<32x32xf32>
    %82 = arith.addf %79, %81 : vector<32x32xf32>
    %83 = vector.shape_cast %82 : vector<32x32xf32> to vector<1x32x32xf32>
    %84 = vector.broadcast %83 : vector<1x32x32xf32> to vector<8x32x32xf32>
    %85 = arith.addf %77, %84 : vector<8x32x32xf32>
    %cst_59 = arith.constant dense<0xFF800000> : vector<8x32xf32>
    %86 = vector.multi_reduction <maximumf>, %85, %cst_59 [2] : vector<8x32x32xf32> to vector<8x32xf32>
    %87 = vector.shape_cast %86 : vector<8x32xf32> to vector<8x32x1xf32>
    %88 = vector.broadcast %87 : vector<8x32x1xf32> to vector<8x32x32xf32>
    %89 = arith.subf %85, %88 : vector<8x32x32xf32>
    %90 = math.exp %89 : vector<8x32x32xf32>
    %cst_60 = arith.constant dense<0.000000e+00> : vector<8x32xf32>
    %91 = vector.multi_reduction <add>, %90, %cst_60 [2] : vector<8x32x32xf32> to vector<8x32xf32>
    %92 = vector.shape_cast %91 : vector<8x32xf32> to vector<8x32x1xf32>
    %93 = tpu.reciprocal %92 {approx = true} : vector<8x32x1xf32> -> vector<8x32x1xf32>
    %94 = vector.broadcast %93 : vector<8x32x1xf32> to vector<8x32x32xf32>
    %95 = arith.mulf %90, %94 : vector<8x32x32xf32>
    %cst_61 = arith.constant dense<0.000000e+00> : vector<8x32x8xf32>
    %96 = tpu.matmul %95, %76, %cst_61 {dimension_numbers = #tpu.dot_dimension_numbers<[2], [1], [1], [2], [0, 0, 0, 1, 1, 2], [0], [0]>} : vector<8x32x32xf32>, vector<8x32x8xf32>, vector<8x32x8xf32> -> vector<8x32x8xf32>
    %c0_62 = arith.constant 0 : index
    %c0_63 = arith.constant 0 : index
    %97 = vector.load %arg10[%c0_62, %c0_63] : memref<256x32xf32, #tpu.memory_space<vmem>>, vector<256x32xf32>
    %98 = vector.shape_cast %96 : vector<8x32x8xf32> to vector<256x8xf32>
    %c16_64 = arith.constant 16 : index
    %c0_65 = arith.constant 0 : index
    %99 = vector.load %arg4[%c16_64, %c0_65] : memref<32x32xf32, #tpu.memory_space<vmem>>, vector<8x32xf32>
    %cst_66 = arith.constant dense<0.000000e+00> : vector<256x32xf32>
    %100 = tpu.matmul %98, %99, %cst_66 {dimension_numbers = #tpu.dot_dimension_numbers<[1], [0], [0], [1], [0, 0, 1, 1], [], []>} : vector<256x8xf32>, vector<8x32xf32>, vector<256x32xf32> -> vector<256x32xf32>
    %101 = arith.addf %97, %100 : vector<256x32xf32>
    %c0_67 = arith.constant 0 : index
    %c0_68 = arith.constant 0 : index
    %102 = vector.load %arg10[%c0_67, %c0_68] : memref<256x32xf32, #tpu.memory_space<vmem>>, vector<256x32xf32>
    tpu.vector_store %arg10[%c0_67, %c0_68], %101 {strides = array<i32>} : memref<256x32xf32, #tpu.memory_space<vmem>>, vector<256x32xf32>,
    %c0_69 = arith.constant 0 : index
    %c24 = arith.constant 24 : index
    %103 = vector.load %arg9[%c0_69, %c24] : memref<256x96xf32, #tpu.memory_space<vmem>>, vector<256x8xf32>
    %104 = vector.shape_cast %103 : vector<256x8xf32> to vector<8x32x8xf32>
    %c0_70 = arith.constant 0 : index
    %c56 = arith.constant 56 : index
    %105 = vector.load %arg9[%c0_70, %c56] : memref<256x96xf32, #tpu.memory_space<vmem>>, vector<256x8xf32>
    %106 = vector.shape_cast %105 : vector<256x8xf32> to vector<8x32x8xf32>
    %c0_71 = arith.constant 0 : index
    %c88 = arith.constant 88 : index
    %107 = vector.load %arg9[%c0_71, %c88] : memref<256x96xf32, #tpu.memory_space<vmem>>, vector<256x8xf32>
    %108 = vector.shape_cast %107 : vector<256x8xf32> to vector<8x32x8xf32>
    %cst_72 = arith.constant dense<0.000000e+00> : vector<8x32x32xf32>
    %109 = tpu.matmul %104, %106, %cst_72 {dimension_numbers = #tpu.dot_dimension_numbers<[2], [2], [1], [1], [0, 0, 0, 1, 1, 1], [0], [0]>} : vector<8x32x8xf32>, vector<8x32x8xf32>, vector<8x32x32xf32> -> vector<8x32x32xf32>
    %c3 = arith.constant 3 : index
    %c0_73 = arith.constant 0 : index
    %c0_74 = arith.constant 0 : index
    %110 = vector.load %arg6[%c3, %c0_73, %c0_74] : memref<4x32x32xf32, #tpu.memory_space<vmem>>, vector<1x32x32xf32>
    %111 = vector.shape_cast %110 : vector<1x32x32xf32> to vector<32x32xf32>
    %c0_75 = arith.constant 0 : index
    %c0_76 = arith.constant 0 : index
    %c0_77 = arith.constant 0 : index
    %112 = vector.load %arg7[%c0_75, %c0_76, %c0_77] : memref<1x32x32xf32, #tpu.memory_space<vmem>>, vector<1x32x32xf32>
    %113 = vector.shape_cast %112 : vector<1x32x32xf32> to vector<32x32xf32>
    %114 = arith.addf %111, %113 : vector<32x32xf32>
    %115 = vector.shape_cast %114 : vector<32x32xf32> to vector<1x32x32xf32>
    %116 = vector.broadcast %115 : vector<1x32x32xf32> to vector<8x32x32xf32>
    %117 = arith.addf %109, %116 : vector<8x32x32xf32>
    %cst_78 = arith.constant dense<0xFF800000> : vector<8x32xf32>
    %118 = vector.multi_reduction <maximumf>, %117, %cst_78 [2] : vector<8x32x32xf32> to vector<8x32xf32>
    %119 = vector.shape_cast %118 : vector<8x32xf32> to vector<8x32x1xf32>
    %120 = vector.broadcast %119 : vector<8x32x1xf32> to vector<8x32x32xf32>
    %121 = arith.subf %117, %120 : vector<8x32x32xf32>
    %122 = math.exp %121 : vector<8x32x32xf32>
    %cst_79 = arith.constant dense<0.000000e+00> : vector<8x32xf32>
    %123 = vector.multi_reduction <add>, %122, %cst_79 [2] : vector<8x32x32xf32> to vector<8x32xf32>
    %124 = vector.shape_cast %123 : vector<8x32xf32> to vector<8x32x1xf32>
    %125 = tpu.reciprocal %124 {approx = true} : vector<8x32x1xf32> -> vector<8x32x1xf32>
    %126 = vector.broadcast %125 : vector<8x32x1xf32> to vector<8x32x32xf32>
    %127 = arith.mulf %122, %126 : vector<8x32x32xf32>
    %cst_80 = arith.constant dense<0.000000e+00> : vector<8x32x8xf32>
    %128 = tpu.matmul %127, %108, %cst_80 {dimension_numbers = #tpu.dot_dimension_numbers<[2], [1], [1], [2], [0, 0, 0, 1, 1, 2], [0], [0]>} : vector<8x32x32xf32>, vector<8x32x8xf32>, vector<8x32x8xf32> -> vector<8x32x8xf32>
    %c0_81 = arith.constant 0 : index
    %c0_82 = arith.constant 0 : index
    %129 = vector.load %arg10[%c0_81, %c0_82] : memref<256x32xf32, #tpu.memory_space<vmem>>, vector<256x32xf32>
    %130 = vector.shape_cast %128 : vector<8x32x8xf32> to vector<256x8xf32>
    %c24_83 = arith.constant 24 : index
    %c0_84 = arith.constant 0 : index
    %131 = vector.load %arg4[%c24_83, %c0_84] : memref<32x32xf32, #tpu.memory_space<vmem>>, vector<8x32xf32>
    %cst_85 = arith.constant dense<0.000000e+00> : vector<256x32xf32>
    %132 = tpu.matmul %130, %131, %cst_85 {dimension_numbers = #tpu.dot_dimension_numbers<[1], [0], [0], [1], [0, 0, 1, 1], [], []>} : vector<256x8xf32>, vector<8x32xf32>, vector<256x32xf32> -> vector<256x32xf32>
    %133 = arith.addf %129, %132 : vector<256x32xf32>
    %c0_86 = arith.constant 0 : index
    %c0_87 = arith.constant 0 : index
    %134 = vector.load %arg10[%c0_86, %c0_87] : memref<256x32xf32, #tpu.memory_space<vmem>>, vector<256x32xf32>
    tpu.vector_store %arg10[%c0_86, %c0_87], %133 {strides = array<i32>} : memref<256x32xf32, #tpu.memory_space<vmem>>, vector<256x32xf32>,
    %c0_88 = arith.constant 0 : index
    %c0_89 = arith.constant 0 : index
    %135 = vector.load %arg10[%c0_88, %c0_89] : memref<256x32xf32, #tpu.memory_space<vmem>>, vector<256x32xf32>
    %c0_90 = arith.constant 0 : index
    %c0_91 = arith.constant 0 : index
    %136 = vector.load %arg5[%c0_90, %c0_91] : memref<1x32xf32, #tpu.memory_space<vmem>>, vector<1x32xf32>
    %137 = vector.broadcast %136 : vector<1x32xf32> to vector<256x32xf32>
    %138 = arith.addf %135, %137 : vector<256x32xf32>
    %c0_92 = arith.constant 0 : index
    %c0_93 = arith.constant 0 : index
    %c0_94 = arith.constant 0 : index
    %c0_95 = arith.constant 0 : index
    %139 = vector.load %arg8[%c0_92, %c0_93, %c0_94, %c0_95] : memref<1x1x256x32xf32, #tpu.memory_space<vmem>>, vector<1x1x256x32xf32>
    %140 = vector.shape_cast %139 : vector<1x1x256x32xf32> to vector<256x32xf32>
    %141 = vector.shape_cast %138 : vector<256x32xf32> to vector<1x1x256x32xf32>
    tpu.vector_store %arg8[%c0_92, %c0_93, %c0_94, %c0_95], %141 {strides = array<i32>} : memref<1x1x256x32xf32, #tpu.memory_space<vmem>>, vector<1x1x256x32xf32>,
    return
  }
  func.func @transform_0(%arg0: i32, %arg1: i32) -> (i32, i32, i32, i32) {
    %c0_i32 = arith.constant 0 : i32
    %c0_i32_0 = arith.constant 0 : i32
    %c0_i32_1 = arith.constant 0 : i32
    return %arg0, %arg1, %c0_i32, %c0_i32_0 : i32, i32, i32, i32
  }
  func.func @transform_1(%arg0: i32, %arg1: i32) -> (i32, i32) {
    %c0_i32 = arith.constant 0 : i32
    %c0_i32_0 = arith.constant 0 : i32
    %c0_i32_1 = arith.constant 0 : i32
    return %c0_i32, %c0_i32_0 : i32, i32
  }
  func.func @transform_2(%arg0: i32, %arg1: i32) -> (i32, i32) {
    %c0_i32 = arith.constant 0 : i32
    %c0_i32_0 = arith.constant 0 : i32
    %c0_i32_1 = arith.constant 0 : i32
    return %c0_i32, %c0_i32_0 : i32, i32
  }
  func.func @transform_3(%arg0: i32, %arg1: i32) -> (i32, i32) {
    %c0_i32 = arith.constant 0 : i32
    %c0_i32_0 = arith.constant 0 : i32
    %c0_i32_1 = arith.constant 0 : i32
    return %c0_i32, %c0_i32_0 : i32, i32
  }
  func.func @transform_4(%arg0: i32, %arg1: i32) -> (i32, i32, i32) {
    %c0_i32 = arith.constant 0 : i32
    %c0_i32_0 = arith.constant 0 : i32
    %c0_i32_1 = arith.constant 0 : i32
    %c0_i32_2 = arith.constant 0 : i32
    return %c0_i32, %c0_i32_0, %c0_i32_1 : i32, i32, i32
  }
  func.func @transform_5(%arg0: i32, %arg1: i32) -> (i32, i32, i32) {
    %c0_i32 = arith.constant 0 : i32
    %c0_i32_0 = arith.constant 0 : i32
    %c0_i32_1 = arith.constant 0 : i32
    return %arg0, %c0_i32, %c0_i32_0 : i32, i32, i32
  }
  func.func @transform_6(%arg0: i32, %arg1: i32) -> (i32, i32, i32, i32) {
    %c0_i32 = arith.constant 0 : i32
    %c0_i32_0 = arith.constant 0 : i32
    %c0_i32_1 = arith.constant 0 : i32
    return %arg0, %arg1, %c0_i32, %c0_i32_0 : i32, i32, i32, i32
  }
}

</mosaic_0001>

<bundles_post_ra>
// kernel: tpu_custom_call.1
= control target key start
LH: loop header
LB: loop body
LE: loop exit
PB: predicated region body
PF: predicated region fallthrough
CT: control target
= control target key end

     0   :  { %s14610_s21 = smov 0   ;;  %s14612_s22 = smov 0   ;;  %s18444_s0 = inlined_call_operand.vmem [shape: f32[4,1,256,32], index: 0, kind: input, shape index: {}]   ;;  %s18445_s1 = inlined_call_operand.vmem [shape: f32[32,96], index: 1, kind: input, shape index: {}]   ;;  %s18446_s2 = inlined_call_operand.vmem [shape: f32[32,32], index: 2, kind: input, shape index: {}]   ;;  %s18447_s3 = inlined_call_operand.vmem [shape: f32[1,32], index: 3, kind: input, shape index: {}]   ;;  %s18448_s4 = inlined_call_operand.vmem [shape: f32[4,32,32], index: 4, kind: input, shape index: {}]   ;;  %s18449_s5 = inlined_call_operand.vmem [shape: f32[4,32,32], index: 5, kind: input, shape index: {}]   ;;  %s18450_s6 = inlined_call_operand.vmem [shape: f32[4,1,256,32], index: 6, kind: output, shape index: {}]  }
   0x1   :  { %s14614_s23 = smov 0  }
   0x2 LB: > { %s28_s24 = sadd.s32 1, %s14557_s22  ;;  %p11498_p0 = scmp.ge.s32.totalorder %s14561_s23, 1  ;;  %s14561_s23 = sphi %s14614_s23, %s16_s23   ;;  %s14557_s22 = sphi %s14612_s22, %s18527_s22   ;;  %s14553_s21 = sphi %s14610_s21, %s18526_s21  }
   0x3   : > { %p30_p1 = scmp.ge.s32.totalorder %s28_s24, 4  ;;  %p242_p2 = scmp.lt.s32.totalorder %s14561_s23, 5 }
   0x5   : > { %s18529_s24 = smov (%p30_p1, %s28_s24), 0  ;;  %p243_p3 = pnand %p11498_p0, %p242_p2 }
   0x7   : > { %246 = sbr.rel (%p243_p3) target bundleno = 4391 (0x1127), region = 44 }
   0xc   : > { %v343_v0 = vld [vmem:[%s18445_s1 + $0x18] sm:$0xff]  ;;  %v342_v1 = vld [vmem:[%s18445_s1 + $0x10] sm:$0xff]  ;;  %p285_p4 = scmp.lt.s32.totalorder %s14553_s21, 3  ;;  %v341_v2 = vld [vmem:[%s18445_s1 + $0x8] sm:$0xff]  ;;  %vm344_vm0 = vcmask 261120   ;;  %vm666_vm1 = vcmask 785408  }
   0xd   : > { %12747 = vmatprep.subr.mxu0 %v343_v0  ;;  %13899 = vmatprep.subr.mxu1 %v343_v0  ;;  %v340_v3 = vld [vmem:[%s18445_s1] sm:$0xff]  ;;  %vm787_vm2 = vcmask 64512   ;;  %s14563_s13 = smov 96   ;;  %s14564_s14 = smov 64  }
   0xe   : > { %12748 = vmatpush3.msra.mxu0 %v343_v0  ;;  %s18531_s21 = smov (!%p285_p4, %s14553_s21), 3  ;;  %13903 = vmatpush3.msra.mxu1 %v343_v0  ;;  %s14565_s15 = smov 88  }
   0xf   : > { %12749 = vmatprep.subr.mxu0 %v342_v1  ;;  %13900 = vmatprep.subr.mxu1 %v342_v1  ;;  %s12064_s9 = sshll.u32 %s18531_s21, 8  ;;  %s14566_s16 = smov 120  }
  0x10   : > { %12750 = vmatpush3.msra.mxu0 %v342_v1  ;;  %13904 = vmatpush3.msra.mxu1 %v342_v1  ;;  %s14648_s12 = scalar_lea.vmem %s18444_s0, %s12064_s9  ;;  %s12065_s17 = sshll.u32 %s18531_s21, 5 }
  0x11   : > { %12751 = vmatprep.subr.mxu0 %v341_v2  ;;  %13901 = vmatprep.subr.mxu1 %v341_v2  ;;  %v308_v4 = vld [vmem:[%s14648_s12] sm:$0xff]  ;;  %v309_v5 = vld [vmem:[%s14648_s12 + $0x8] sm:$0xff]  ;;  %v310_v6 = vld [vmem:[%s14648_s12 + $0x10] sm:$0xff]  ;;  %s15118_s20 = scalar_lea.vmem %s18449_s5, %s12065_s17  ;;  %s14569_s26 = smov 80  }
  0x12   : > { %12752 = vmatpush3.msra.mxu0 %v341_v2  ;;  %13905 = vmatpush3.msra.mxu1 %v341_v2  ;;  %v311_v7 = vld [vmem:[%s14648_s12 + $0x18] sm:$0xff]  ;;  %v322_v8 = vld [vmem:[%s14648_s12 + $0x70] sm:$0xff]  ;;  %v324_v10 = vld [vmem:[%s14648_s12 + $0x80] sm:$0xff]  ;;  %s14570_s27 = smov 112   ;;  %s14571_s30 = smov 48  }
  0x13   : > { %12753 = vmatprep.subr.mxu0 %v340_v3  ;;  %12755 = vmatprep.mubr.msk.f32.mxu0 %vm344_vm0, %v308_v4  ;;  %v323_v9 = vld [vmem:[%s14648_s12 + $0x78] sm:$0xff]  ;;  %v312_v11 = vld [vmem:[%s14648_s12 + $0x20] sm:$0xff]  ;;  %v325_v12 = vld [vmem:[%s14648_s12 + $0x88] sm:$0xff]  ;;  %s14573_s17 = smov 104  }
  0x14   : > { %12754 = vmatpush3.msra.mxu0 %v340_v3  ;;  %13902 = vmatprep.subr.mxu1 %v340_v3  ;;  %v313_v13 = vld [vmem:[%s14648_s12 + $0x28] sm:$0xff]  ;;  %v326_v14 = vld [vmem:[%s14648_s12 + $0x90] sm:$0xff]  ;;  %v327_v16 = vld [vmem:[%s14648_s12 + $0x98] sm:$0xff] }
  0x15   : > { %12756 = vmatmul.mubr.msk.f32.vlgmr.msra.gmra.mxu0 %vm344_vm0, %v309_v5  ;;  %13906 = vmatpush3.msra.mxu1 %v340_v3  ;;  %v314_v15 = vld [vmem:[%s14648_s12 + $0x30] sm:$0xff]  ;;  %v315_v17 = vld [vmem:[%s14648_s12 + $0x38] sm:$0xff]  ;;  %v328_v18 = vld [vmem:[%s14648_s12 + $0xa0] sm:$0xff] }
  0x16   : > { %12758 = vmatprep.mubr.msk.f32.mxu0 %vm344_vm0, %v310_v6  ;;  %12776 = vmatprep.mubr.msk.f32.mxu1 %vm344_vm0, %v322_v8  ;;  %v316_v19 = vld [vmem:[%s14648_s12 + $0x40] sm:$0xff]  ;;  %v329_v20 = vld [vmem:[%s14648_s12 + $0xa8] sm:$0xff]  ;;  %v330_v22 = vld [vmem:[%s14648_s12 + $0xb0] sm:$0xff] }
  0x17   : > { %12777 = vmatmul.mubr.msk.f32.vlgmr.msra.gmra.mxu1 %vm344_vm0, %v323_v9  ;;  %v317_v21 = vld [vmem:[%s14648_s12 + $0x48] sm:$0xff]  ;;  %v318_v23 = vld [vmem:[%s14648_s12 + $0x50] sm:$0xff]  ;;  %v331_v24 = vld [vmem:[%s14648_s12 + $0xb8] sm:$0xff] }
  0x18   : > { %12779 = vmatprep.mubr.msk.f32.mxu1 %vm344_vm0, %v324_v10  ;;  %v319_v25 = vld [vmem:[%s14648_s12 + $0x58] sm:$0xff]  ;;  %v332_v26 = vld [vmem:[%s14648_s12 + $0xc0] sm:$0xff]  ;;  %v333_v28 = vld [vmem:[%s14648_s12 + $0xc8] sm:$0xff] }
  0x19   : > { %12759 = vmatmul.mubr.msk.f32.gmra.mxu0 %vm344_vm0, %v311_v7  ;;  %v320_v27 = vld [vmem:[%s14648_s12 + $0x60] sm:$0xff]  ;;  %v321_v29 = vld [vmem:[%s14648_s12 + $0x68] sm:$0xff]  ;;  %v334_v30 = vld [vmem:[%s14648_s12 + $0xd0] sm:$0xff] }
  0x1a   : > { %12761 = vmatprep.mubr.msk.f32.mxu0 %vm344_vm0, %v312_v11  ;;  %v335_v31 = vld [vmem:[%s14648_s12 + $0xd8] sm:$0xff]  ;;  %v336_v32 = vld [vmem:[%s14648_s12 + $0xe0] sm:$0xff]  ;;  %v337_v33 = vld [vmem:[%s14648_s12 + $0xe8] sm:$0xff] }
  0x1b   : > { %12780 = vmatmul.mubr.msk.f32.gmra.mxu1 %vm344_vm0, %v325_v12  ;;  %v338_v34 = vld [vmem:[%s14648_s12 + $0xf0] sm:$0xff]  ;;  %v339_v35 = vld [vmem:[%s14648_s12 + $0xf8] sm:$0xff]  ;;  %s14567_s12 = smov 56  }
  0x1c   : > { %12782 = vmatprep.mubr.msk.f32.mxu1 %vm344_vm0, %v326_v14 }
  0x1d   : > { %12762 = vmatmul.mubr.msk.f32.gmra.mxu0 %vm344_vm0, %v313_v13 }
  0x1e   : > { %12764 = vmatprep.mubr.msk.f32.mxu0 %vm344_vm0, %v314_v15 }
  0x1f   : > { %12783 = vmatmul.mubr.msk.f32.gmra.mxu1 %vm344_vm0, %v327_v16 }
  0x20   : > { %12785 = vmatprep.mubr.msk.f32.mxu1 %vm344_vm0, %v328_v18 }
  0x21   : > { %12765 = vmatmul.mubr.msk.f32.gmra.mxu0 %vm344_vm0, %v315_v17 }
  0x22   : > { %12767 = vmatprep.mubr.msk.f32.mxu0 %vm344_vm0, %v316_v19 }
  0x23   : > { %12786 = vmatmul.mubr.msk.f32.gmra.mxu1 %vm344_vm0, %v329_v20 }
  0x24   : > { %12788 = vmatprep.mubr.msk.f32.mxu1 %vm344_vm0, %v330_v22 }
  0x25   : > { %12768 = vmatmul.mubr.msk.f32.gmra.mxu0 %vm344_vm0, %v317_v21 }
  0x26   : > { %12770 = vmatprep.mubr.msk.f32.mxu0 %vm344_vm0, %v318_v23 }
  0x27   : > { %12789 = vmatmul.mubr.msk.f32.gmra.mxu1 %vm344_vm0, %v331_v24 }
  0x28   : > { %12791 = vmatprep.mubr.msk.f32.mxu1 %vm344_vm0, %v332_v26 }
  0x29   : > { %12771 = vmatmul.mubr.msk.f32.gmra.mxu0 %vm344_vm0, %v319_v25 }
  0x2a   : > { %12773 = vmatprep.mubr.msk.f32.mxu0 %vm344_vm0, %v320_v27 }
  0x2b   : > { %12792 = vmatmul.mubr.msk.f32.gmra.mxu1 %vm344_vm0, %v333_v28 }
  0x2c   : > { %12794 = vmatprep.mubr.msk.f32.mxu1 %vm344_vm0, %v334_v30 }
  0x2d   : > { %12774 = vmatmul.mubr.msk.f32.gmra.mxu0 %vm344_vm0, %v321_v29 }
  0x2f   : > { %12795 = vmatmul.mubr.msk.f32.gmra.mxu1 %vm344_vm0, %v335_v31 }
  0x30   : > { %12797 = vmatprep.mubr.msk.f32.mxu1 %vm344_vm0, %v336_v32 }
  0x33   : > { %12798 = vmatmul.mubr.msk.f32.gmra.mxu1 %vm344_vm0, %v337_v33 }
  0x34   : > { %12800 = vmatprep.mubr.msk.f32.mxu1 %vm344_vm0, %v338_v34 }
  0x37   : > { %12801 = vmatmul.mubr.msk.f32.gmra.mxu1 %vm344_vm0, %v339_v35 }
  0xd5   : > { %v12757_v36 = vpop.f32.mrf.mxu0 }
  0xd6   : > { %668 = vst.msk [vmem:[#allocation2 + $0x8] sm:$0xff] %vm666_vm1, %v12757_v36 }
  0xd7   : > { %v507_v37 = vpop.f32.mrf.mxu0  ;;  %v12778_v38 = vpop.f32.mrf.mxu1 }
  0xd8   : > { %667 = vst.msk [vmem:[#allocation2] sm:$0xff] %vm666_vm1, %v507_v37  ;;  %682 = vst.msk [vmem:[#allocation2 + $0x78] sm:$0xff] %vm666_vm1, %v12778_v38 }
  0xd9   : > { %v12760_v39 = vpop.f32.mrf.mxu0  ;;  %v577_v40 = vpop.f32.mrf.mxu1 }
  0xda   : > { %670 = vst.msk [vmem:[#allocation2 + $0x18] sm:$0xff] %vm666_vm1, %v12760_v39  ;;  %681 = vst.msk [vmem:[#allocation2 + $0x70] sm:$0xff] %vm666_vm1, %v577_v40 }
  0xdb   : > { %v517_v41 = vpop.f32.mrf.mxu0  ;;  %v12781_v42 = vpop.f32.mrf.mxu1 }
  0xdc   : > { %669 = vst.msk [vmem:[#allocation2 + $0x10] sm:$0xff] %vm666_vm1, %v517_v41  ;;  %684 = vst.msk [vmem:[#allocation2 + $0x88] sm:$0xff] %vm666_vm1, %v12781_v42 }
  0xdd   : > { %v12763_v43 = vpop.f32.mrf.mxu0  ;;  %v14720_v44 = vld [vmem:[#allocation2 + $0x8] sm:$0xff]  ;;  %v587_v45 = vpop.f32.mrf.mxu1 }
  0xde   : > { %672 = vst.msk [vmem:[#allocation2 + $0x28] sm:$0xff] %vm666_vm1, %v12763_v43  ;;  %781 = vrot.lane.b32.xlu1 %v14720_v44, %s14563_s13  ;;  %683 = vst.msk [vmem:[#allocation2 + $0x80] sm:$0xff] %vm666_vm1, %v587_v45 }
  0xdf   : > { %v527_v46 = vpop.f32.mrf.mxu0  ;;  %v14726_v47 = vld [vmem:[#allocation2] sm:$0xff]  ;;  %v12784_v48 = vpop.f32.mrf.mxu1  ;;  %v14798_v16 = vld [vmem:[#allocation2 + $0x78] sm:$0xff] }
  0xe0   : > { %671 = vst.msk [vmem:[#allocation2 + $0x20] sm:$0xff] %vm666_vm1, %v527_v46  ;;  %12811 = vmatprep.mubr.msk.f32.mxu1 %vm787_vm2, %v14726_v47  ;;  %686 = vst.msk [vmem:[#allocation2 + $0x98] sm:$0xff] %vm666_vm1, %v12784_v48 }
  0xe1   : > { %v12766_v49 = vpop.f32.mrf.mxu0  ;;  %v14732_v50 = vld [vmem:[#allocation2 + $0x18] sm:$0xff]  ;;  %v597_v51 = vpop.f32.mrf.mxu1  ;;  %v14803_v18 = vld [vmem:[#allocation2 + $0x70] sm:$0xff] }
  0xe2   : > { %674 = vst.msk [vmem:[#allocation2 + $0x38] sm:$0xff] %vm666_vm1, %v12766_v49  ;;  %779 = vrot.lane.b32.xlu1 %v14726_v47, %s14563_s13  ;;  %785 = vrot.lane.b32.xlu0 %v14732_v50, %s14563_s13  ;;  %685 = vst.msk [vmem:[#allocation2 + $0x90] sm:$0xff] %vm666_vm1, %v597_v51 }
  0xe3   : > { %v537_v52 = vpop.f32.mrf.mxu0  ;;  %v12787_v53 = vpop.f32.mrf.mxu1  ;;  %v14742_v55 = vld [vmem:[#allocation2 + $0x10] sm:$0xff]  ;;  %v14824_v23 = vld [vmem:[#allocation2 + $0x88] sm:$0xff] }
  0xe4   : > { %673 = vst.msk [vmem:[#allocation2 + $0x30] sm:$0xff] %vm666_vm1, %v537_v52  ;;  %688 = vst.msk [vmem:[#allocation2 + $0xa8] sm:$0xff] %vm666_vm1, %v12787_v53 }
  0xe5   : > { %v12769_v54 = vpop.f32.mrf.mxu0  ;;  %v607_v56 = vpop.f32.mrf.mxu1  ;;  %v14748_v57 = vld [vmem:[#allocation2 + $0x80] sm:$0xff]  ;;  %v14766_v2 = vld [vmem:[#allocation2 + $0x28] sm:$0xff] }
  0xe6   : > { %676 = vst.msk [vmem:[#allocation2 + $0x48] sm:$0xff] %vm666_vm1, %v12769_v54  ;;  %783 = vrot.lane.b32.xlu0 %v14742_v55, %s14563_s13  ;;  %687 = vst.msk [vmem:[#allocation2 + $0xa0] sm:$0xff] %vm666_vm1, %v607_v56  ;;  %12867 = vmatprep.mubr.msk.f32.mxu0 %vm787_vm2, %v14748_v57 }
  0xe7   : > { %v547_v58 = vpop.f32.mrf.mxu0  ;;  %v12790_v59 = vpop.f32.mrf.mxu1  ;;  %v14772_v5 = vld [vmem:[#allocation2 + $0x20] sm:$0xff]  ;;  %v14810_v20 = vld [vmem:[#allocation2 + $0x98] sm:$0xff] }
  0xe8   : > { %675 = vst.msk [vmem:[#allocation2 + $0x40] sm:$0xff] %vm666_vm1, %v547_v58  ;;  %690 = vst.msk [vmem:[#allocation2 + $0xb8] sm:$0xff] %vm666_vm1, %v12790_v59 }
  0xe9   : > { %v12772_v60 = vpop.f32.mrf.mxu0  ;;  %v14754_v61 = vld [vmem:[#allocation2 + $0x38] sm:$0xff]  ;;  %v617_v62 = vpop.f32.mrf.mxu1  ;;  %v14820_v22 = vld [vmem:[#allocation2 + $0x90] sm:$0xff] }
  0xea   : > { %678 = vst.msk [vmem:[#allocation2 + $0x58] sm:$0xff] %vm666_vm1, %v12772_v60  ;;  %899 = vrot.lane.b32.xlu0 %v14754_v61, %s14563_s13  ;;  %689 = vst.msk [vmem:[#allocation2 + $0xb0] sm:$0xff] %vm666_vm1, %v617_v62 }
  0xeb   : > { %v557_v63 = vpop.f32.mrf.mxu0  ;;  %v14760_v0 = vld [vmem:[#allocation2 + $0x30] sm:$0xff]  ;;  %v12793_v1 = vpop.f32.mrf.mxu1  ;;  %v14838_v26 = vld [vmem:[#allocation2 + $0xa8] sm:$0xff] }
  0xec   : > { %677 = vst.msk [vmem:[#allocation2 + $0x50] sm:$0xff] %vm666_vm1, %v557_v63  ;;  %897 = vrot.lane.b32.xlu1 %v14760_v0, %s14563_s13  ;;  %692 = vst.msk [vmem:[#allocation2 + $0xc8] sm:$0xff] %vm666_vm1, %v12793_v1 }
  0xed   : > { %v12775_v3 = vpop.f32.mrf.mxu0  ;;  %v627_v4 = vpop.f32.mrf.mxu1  ;;  %v14788_v12 = vld [vmem:[#allocation2 + $0x48] sm:$0xff]  ;;  %v14846_v28 = vld [vmem:[#allocation2 + $0xa0] sm:$0xff] }
  0xee   : > { %895 = vrot.lane.b32.xlu0 %v14766_v2, %s14563_s13  ;;  %680 = vst.msk [vmem:[#allocation2 + $0x68] sm:$0xff] %vm666_vm1, %v12775_v3  ;;  %691 = vst.msk [vmem:[#allocation2 + $0xc0] sm:$0xff] %vm666_vm1, %v627_v4 }
  0xef   : > { %v567_v6 = vpop.f32.mrf.mxu0  ;;  %v12796_v7 = vpop.f32.mrf.mxu1  ;;  %v14793_v14 = vld [vmem:[#allocation2 + $0x40] sm:$0xff]  ;;  %v14826_v24 = vld [vmem:[#allocation2 + $0xb8] sm:$0xff] }
  0xf0   : > { %893 = vrot.lane.b32.xlu1 %v14772_v5, %s14563_s13  ;;  %679 = vst.msk [vmem:[#allocation2 + $0x60] sm:$0xff] %vm666_vm1, %v567_v6  ;;  %694 = vst.msk [vmem:[#allocation2 + $0xd8] sm:$0xff] %vm666_vm1, %v12796_v7 }
  0xf1   : > { %v14778_v8 = vld [vmem:[#allocation2 + $0x58] sm:$0xff]  ;;  %v637_v9 = vpop.f32.mrf.mxu1  ;;  %v14834_v25 = vld [vmem:[#allocation2 + $0xb0] sm:$0xff] }
  0xf2   : > { %1012 = vrot.lane.b32.xlu0 %v14778_v8, %s14563_s13  ;;  %693 = vst.msk [vmem:[#allocation2 + $0xd0] sm:$0xff] %vm666_vm1, %v637_v9 }
  0xf3   : > { %v14783_v10 = vld [vmem:[#allocation2 + $0x50] sm:$0xff]  ;;  %v12799_v11 = vpop.f32.mrf.mxu1  ;;  %v14854_v30 = vld [vmem:[#allocation2 + $0xc8] sm:$0xff] }
  0xf4   : > { %1010 = vrot.lane.b32.xlu1 %v14783_v10, %s14563_s13  ;;  %696 = vst.msk [vmem:[#allocation2 + $0xe8] sm:$0xff] %vm666_vm1, %v12799_v11 }
  0xf5   : > { %v647_v13 = vpop.f32.mrf.mxu1  ;;  %v14805_v19 = vld [vmem:[#allocation2 + $0x68] sm:$0xff]  ;;  %v14862_v32 = vld [vmem:[#allocation2 + $0xc0] sm:$0xff] }
  0xf6   : > { %1008 = vrot.lane.b32.xlu0 %v14788_v12, %s14563_s13  ;;  %695 = vst.msk [vmem:[#allocation2 + $0xe0] sm:$0xff] %vm666_vm1, %v647_v13 }
  0xf7   : > { %v12802_v15 = vpop.f32.mrf.mxu1  ;;  %v14816_v21 = vld [vmem:[#allocation2 + $0x60] sm:$0xff]  ;;  %v14840_v27 = vld [vmem:[#allocation2 + $0xd8] sm:$0xff] }
  0xf8   : > { %1006 = vrot.lane.b32.xlu1 %v14793_v14, %s14563_s13  ;;  %698 = vst.msk [vmem:[#allocation2 + $0xf8] sm:$0xff] %vm666_vm1, %v12802_v15 }
  0xf9   : > { %v657_v17 = vpop.f32.mrf.mxu1  ;;  %v14850_v29 = vld [vmem:[#allocation2 + $0xd0] sm:$0xff] }
  0xfa   : > { %1125 = vrot.lane.b32.xlu0 %v14798_v16, %s14563_s13  ;;  %697 = vst.msk [vmem:[#allocation2 + $0xf0] sm:$0xff] %vm666_vm1, %v657_v17 }
  0xfb   : > { %v14868_v34 = vld [vmem:[#allocation2 + $0xe8] sm:$0xff] }
  0xfc   : > { %1123 = vrot.lane.b32.xlu1 %v14803_v18, %s14563_s13 }
  0xfd   : > { %v14872_v35 = vld [vmem:[#allocation2 + $0xe0] sm:$0xff] }
  0xfe   : > { %1121 = vrot.lane.b32.xlu0 %v14805_v19, %s14563_s13 }
  0xff   : > { %v14856_v31 = vld [vmem:[#allocation2 + $0xf8] sm:$0xff] }
 0x100   : > { %1238 = vrot.lane.b32.xlu1 %v14810_v20, %s14563_s13 }
 0x101   : > { %v14864_v33 = vld [vmem:[#allocation2 + $0xf0] sm:$0xff] }
 0x102   : > { %1119 = vrot.lane.b32.xlu0 %v14816_v21, %s14563_s13 }
 0x104   : > { %1236 = vrot.lane.b32.xlu1 %v14820_v22, %s14563_s13 }
 0x106   : > { %1234 = vrot.lane.b32.xlu0 %v14824_v23, %s14563_s13 }
 0x108   : > { %1351 = vrot.lane.b32.xlu1 %v14826_v24, %s14563_s13 }
 0x10a   : > { %1232 = vrot.lane.b32.xlu0 %v14748_v57, %s14563_s13 }
 0x10c   : > { %1349 = vrot.lane.b32.xlu1 %v14834_v25, %s14563_s13 }
 0x10e   : > { %1347 = vrot.lane.b32.xlu0 %v14838_v26, %s14563_s13 }
 0x110   : > { %1464 = vrot.lane.b32.xlu1 %v14840_v27, %s14563_s13 }
 0x112   : > { %1345 = vrot.lane.b32.xlu0 %v14846_v28, %s14563_s13 }
 0x114   : > { %1462 = vrot.lane.b32.xlu1 %v14850_v29, %s14563_s13 }
 0x116   : > { %1460 = vrot.lane.b32.xlu0 %v14854_v30, %s14563_s13 }
 0x118   : > { %1577 = vrot.lane.b32.xlu1 %v14856_v31, %s14563_s13 }
 0x11a   : > { %1458 = vrot.lane.b32.xlu0 %v14862_v32, %s14563_s13 }
 0x11c   : > { %1575 = vrot.lane.b32.xlu1 %v14864_v33, %s14563_s13 }
 0x11e   : > { %1573 = vrot.lane.b32.xlu0 %v14868_v34, %s14563_s13 }
 0x120   : > { %1571 = vrot.lane.b32.xlu1 %v14872_v35, %s14563_s13 }
 0x122   : > { %2036 = vrot.lane.b32.xlu0 %v14742_v55, %s14564_s14 }
 0x124   : > { %2038 = vrot.lane.b32.xlu1 %v14732_v50, %s14564_s14 }
 0x126   : > { %2032 = vrot.lane.b32.xlu0 %v14726_v47, %s14564_s14 }
 0x128   : > { %2034 = vrot.lane.b32.xlu1 %v14720_v44, %s14564_s14 }
 0x12a   : > { %2145 = vrot.lane.b32.xlu0 %v14760_v0, %s14564_s14 }
 0x12c   : > { %2147 = vrot.lane.b32.xlu1 %v14754_v61, %s14564_s14 }
 0x12e   : > { %2141 = vrot.lane.b32.xlu0 %v14772_v5, %s14564_s14 }
 0x130   : > { %2143 = vrot.lane.b32.xlu1 %v14766_v2, %s14564_s14 }
 0x132   : > { %2254 = vrot.lane.b32.xlu0 %v14783_v10, %s14564_s14 }
 0x134   : > { %2256 = vrot.lane.b32.xlu1 %v14778_v8, %s14564_s14 }
 0x136   : > { %2250 = vrot.lane.b32.xlu0 %v14793_v14, %s14564_s14 }
 0x138   : > { %2252 = vrot.lane.b32.xlu1 %v14788_v12, %s14564_s14 }
 0x13a   : > { %2363 = vrot.lane.b32.xlu0 %v14803_v18, %s14564_s14 }
 0x13c   : > { %2365 = vrot.lane.b32.xlu1 %v14798_v16, %s14564_s14 }
 0x13e   : > { %2359 = vrot.lane.b32.xlu0 %v14816_v21, %s14564_s14 }
 0x140   : > { %2361 = vrot.lane.b32.xlu1 %v14805_v19, %s14564_s14 }
 0x142   : > { %2472 = vrot.lane.b32.xlu0 %v14820_v22, %s14564_s14 }
 0x144   : > { %2474 = vrot.lane.b32.xlu1 %v14810_v20, %s14564_s14 }
 0x146   : > { %2468 = vrot.lane.b32.xlu0 %v14748_v57, %s14564_s14 }
 0x148   : > { %2470 = vrot.lane.b32.xlu1 %v14824_v23, %s14564_s14 }
 0x14a   : > { %2581 = vrot.lane.b32.xlu0 %v14834_v25, %s14564_s14 }
 0x14c   : > { %2583 = vrot.lane.b32.xlu1 %v14826_v24, %s14564_s14 }
 0x14e   : > { %2692 = vrot.lane.b32.xlu0 %v14840_v27, %s14564_s14 }
 0x150   : > { %2579 = vrot.lane.b32.xlu1 %v14838_v26, %s14564_s14  ;;  %v782_v36 = vpop.permute.xlu1 %781 }
 0x152   : > { %2688 = vrot.lane.b32.xlu0 %v14854_v30, %s14564_s14 }
 0x154   : > { %v786_v37 = vpop.permute.xlu0 %785  ;;  %2577 = vrot.lane.b32.xlu1 %v14846_v28, %s14564_s14  ;;  %v780_v39 = vpop.permute.xlu1 %779 }
 0x155   : > { %12803 = vmatprep.subr.msk.mxu1 %vm787_vm2, %v786_v37 }
 0x156   : > { %12804 = vmatpush3.xpose.msk.msra.mxu1 %vm787_vm2, %v786_v37  ;;  %2801 = vrot.lane.b32.xlu0 %v14856_v31, %s14564_s14 }
 0x158   : > { %v784_v38 = vpop.permute.xlu0 %783  ;;  %2690 = vrot.lane.b32.xlu1 %v14850_v29, %s14564_s14 }
 0x159   : > { %12805 = vmatprep.subr.msk.mxu1 %vm787_vm2, %v784_v38 }
 0x15a   : > { %12806 = vmatpush3.xpose.msk.msra.mxu1 %vm787_vm2, %v784_v38  ;;  %2797 = vrot.lane.b32.xlu0 %v14868_v34, %s14564_s14 }
 0x15b   : > { %12807 = vmatprep.subr.msk.mxu1 %vm787_vm2, %v782_v36 }
 0x15c   : > { %v900_v40 = vpop.permute.xlu0 %899  ;;  %2686 = vrot.lane.b32.xlu1 %v14862_v32, %s14564_s14 }
 0x15e   : > { %12808 = vmatpush3.xpose.msk.msra.mxu1 %vm787_vm2, %v782_v36  ;;  %v898_v41 = vpop.permute.xlu1 %897  ;;  %3385 = vrot.lane.b32.xlu0 %v14732_v50, %s14565_s15 }
 0x15f   : > { %12809 = vmatprep.subr.msk.mxu1 %vm787_vm2, %v780_v39 }
 0x160   : > { %v896_v42 = vpop.permute.xlu0 %895  ;;  %2799 = vrot.lane.b32.xlu1 %v14864_v33, %s14564_s14 }
 0x162   : > { %12810 = vmatpush3.xpose.msk.msra.mxu1 %vm787_vm2, %v780_v39  ;;  %v894_v43 = vpop.permute.xlu1 %893  ;;  %3381 = vrot.lane.b32.xlu0 %v14720_v44, %s14565_s15 }
 0x163   : > { %12817 = vmatprep.subr.msk.mxu1 %vm787_vm2, %v900_v40 }
 0x164   : > { %v1013_v45 = vpop.permute.xlu0 %1012  ;;  %2795 = vrot.lane.b32.xlu1 %v14872_v35, %s14564_s14 }
 0x165   : > { %12812 = vmatmul.mubr.msk.f32.vlgmr.msra.gmra.mxu1 %vm787_vm2, %v14720_v44 }
 0x166   : > { %12814 = vmatprep.mubr.msk.f32.mxu1 %vm787_vm2, %v14742_v55  ;;  %12818 = vmatpush3.xpose.msk.msra.mxu1 %vm787_vm2, %v900_v40  ;;  %v1011_v46 = vpop.permute.xlu1 %1010 }
 0x167   : > { %3371 = vrot.lane.b32.xlu0 %v14726_v47, %s14566_s16  ;;  %12819 = vmatprep.subr.msk.mxu1 %vm787_vm2, %v898_v41 }
 0x168   : > { %v1009_v48 = vpop.permute.xlu0 %1008  ;;  %3383 = vrot.lane.b32.xlu1 %v14742_v55, %s14565_s15 }
 0x169   : > { %12815 = vmatmul.mubr.msk.f32.gmra.mxu1 %vm787_vm2, %v14732_v50 }
 0x16a   : > { %12820 = vmatpush3.xpose.msk.msra.mxu1 %vm787_vm2, %v898_v41  ;;  %12825 = vmatprep.mubr.msk.f32.mxu1 %vm787_vm2, %v14772_v5  ;;  %v1007_v49 = vpop.permute.xlu1 %1006  ;;  %v765_v41 = vld [vmem:[%s18448_s4 + $0x10] sm:$0xff] }
 0x16b   : > { %3373 = vrot.lane.b32.xlu0 %v14720_v44, %s14566_s16  ;;  %12821 = vmatprep.subr.msk.mxu1 %vm787_vm2, %v896_v42 }
 0x16c   : > { %v1126_v51 = vpop.permute.xlu0 %1125  ;;  %3379 = vrot.lane.b32.xlu1 %v14726_v47, %s14565_s15 }
 0x16e   : > { %12822 = vmatpush3.xpose.msk.msra.mxu1 %vm787_vm2, %v896_v42  ;;  %v1124_v52 = vpop.permute.xlu1 %1123  ;;  %v769_v42 = vld [vmem:[%s15118_s20 + $0x10] sm:$0xff] }
 0x16f   : > { %3502 = vrot.lane.b32.xlu0 %v14766_v2, %s14565_s15  ;;  %12823 = vmatprep.subr.msk.mxu1 %vm787_vm2, %v894_v43 }
 0x170   : > { %3506 = vrot.lane.b32.xlu1 %v14754_v61, %s14565_s15  ;;  %v14981_v53 = vpop.permute.xlu0 %1121 }
 0x172   : > { %12824 = vmatpush3.xpose.msk.msra.mxu1 %vm787_vm2, %v894_v43  ;;  %v1239_v44 = vpop.permute.xlu1 %1238 }
 0x173   : > { %3500 = vrot.lane.b32.xlu0 %v14772_v5, %s14565_s15  ;;  %12831 = vmatprep.subr.msk.mxu1 %vm787_vm2, %v1013_v45 }
 0x174   : > { %12859 = vmatprep.subr.msk.mxu0 %vm787_vm2, %v1239_v44  ;;  %3504 = vrot.lane.b32.xlu1 %v14760_v0, %s14565_s15  ;;  %v1120_v47 = vpop.permute.xlu0 %1119 }
 0x175   : > { %12860 = vmatpush3.xpose.msk.msra.mxu0 %vm787_vm2, %v1239_v44  ;;  %12826 = vmatmul.mubr.msk.f32.vlgmr.msra.gmra.mxu1 %vm787_vm2, %v14766_v2 }
 0x176   : > { %12828 = vmatprep.mubr.msk.f32.mxu1 %vm787_vm2, %v14760_v0  ;;  %12832 = vmatpush3.xpose.msk.msra.mxu1 %vm787_vm2, %v1013_v45  ;;  %v1237_v54 = vpop.permute.xlu1 %1236  ;;  %v15157_v45 = vadd.f32 %v769_v42, %v765_v41 }
 0x177   : > { %3492 = vrot.lane.b32.xlu0 %v14772_v5, %s14566_s16  ;;  %12833 = vmatprep.subr.msk.mxu1 %vm787_vm2, %v1011_v46 }
 0x178   : > { %12861 = vmatprep.subr.msk.mxu0 %vm787_vm2, %v1237_v54  ;;  %3375 = vrot.lane.b32.xlu1 %v14742_v55, %s14566_s16  ;;  %v1235_v56 = vpop.permute.xlu0 %1234 }
 0x179   : > { %12862 = vmatpush3.xpose.msk.msra.mxu0 %vm787_vm2, %v1237_v54  ;;  %12829 = vmatmul.mubr.msk.f32.gmra.mxu1 %vm787_vm2, %v14754_v61 }
 0x17a   : > { %12863 = vmatprep.subr.msk.mxu0 %vm787_vm2, %v1235_v56  ;;  %12834 = vmatpush3.xpose.msk.msra.mxu1 %vm787_vm2, %v1011_v46  ;;  %v1352_v57 = vpop.permute.xlu1 %1351 }
 0x17b   : > { %12839 = vmatprep.mubr.msk.f32.mxu1 %vm787_vm2, %v14793_v14  ;;  %12835 = vmatprep.subr.msk.mxu1 %vm787_vm2, %v1009_v48 }
 0x17c   : > { %3377 = vrot.lane.b32.xlu1 %v14732_v50, %s14566_s16  ;;  %v1233_v55 = vpop.permute.xlu0 %1232 }
 0x17d   : > { %12864 = vmatpush3.xpose.msk.msra.mxu0 %vm787_vm2, %v1235_v56 }
 0x17e   : > { %12865 = vmatprep.subr.msk.mxu0 %vm787_vm2, %v1233_v55  ;;  %12836 = vmatpush3.xpose.msk.msra.mxu1 %vm787_vm2, %v1009_v48  ;;  %v1350_v58 = vpop.permute.xlu1 %1349 }
 0x17f   : > { %12837 = vmatprep.subr.msk.mxu1 %vm787_vm2, %v1007_v49 }
 0x180   : > { %3627 = vrot.lane.b32.xlu1 %v14778_v8, %s14565_s15  ;;  %v1348_v59 = vpop.permute.xlu0 %1347 }
 0x181   : > { %12866 = vmatpush3.xpose.msk.msra.mxu0 %vm787_vm2, %v1233_v55 }
 0x182   : > { %12838 = vmatpush3.xpose.msk.msra.mxu1 %vm787_vm2, %v1007_v49  ;;  %v1465_v60 = vpop.permute.xlu1 %1464 }
 0x183   : > { %12845 = vmatprep.subr.msk.mxu1 %vm787_vm2, %v1126_v51  ;;  %12887 = vmatprep.subr.msk.mxu0 %vm787_vm2, %v1465_v60 }
 0x184   : > { %12868 = vmatmul.mubr.msk.f32.vlgmr.msra.gmra.mxu0 %vm787_vm2, %v14824_v23  ;;  %v1346_v50 = vpop.permute.xlu0 %1345  ;;  %v763_v23 = vld [vmem:[%s18448_s4] sm:$0xff] }
 0x185   : > { %12870 = vmatprep.mubr.msk.f32.mxu0 %vm787_vm2, %v14820_v22  ;;  %12888 = vmatpush3.xpose.msk.msra.mxu0 %vm787_vm2, %v1465_v60  ;;  %v768_v22 = vld [vmem:[%s15118_s20 + $0x8] sm:$0xff] }
 0x186   : > { %12840 = vmatmul.mubr.msk.f32.vlgmr.msra.gmra.mxu1 %vm787_vm2, %v14788_v12  ;;  %v1463_v61 = vpop.permute.xlu1 %1462 }
 0x187   : > { %12842 = vmatprep.mubr.msk.f32.mxu1 %vm787_vm2, %v14783_v10  ;;  %12846 = vmatpush3.xpose.msk.msra.mxu1 %vm787_vm2, %v1126_v51 }
 0x188   : > { %12847 = vmatprep.subr.msk.mxu1 %vm787_vm2, %v1124_v52  ;;  %12871 = vmatmul.mubr.msk.f32.gmra.mxu0 %vm787_vm2, %v14810_v20  ;;  %v1461_v62 = vpop.permute.xlu0 %1460 }
 0x189   : > { %12889 = vmatprep.subr.msk.mxu0 %vm787_vm2, %v1463_v61  ;;  %12895 = vmatprep.mubr.msk.f32.mxu0 %vm787_vm2, %v14862_v32 }
 0x18a   : > { %12890 = vmatpush3.xpose.msk.msra.mxu0 %vm787_vm2, %v1463_v61  ;;  %12843 = vmatmul.mubr.msk.f32.gmra.mxu1 %vm787_vm2, %v14778_v8  ;;  %v1578_v63 = vpop.permute.xlu1 %1577 }
 0x18b   : > { %12848 = vmatpush3.xpose.msk.msra.mxu1 %vm787_vm2, %v1124_v52  ;;  %12853 = vmatprep.mubr.msk.f32.mxu1 %vm787_vm2, %v14816_v21  ;;  %v764_v21 = vld [vmem:[%s18448_s4 + $0x8] sm:$0xff] }
 0x18c   : > { %12849 = vmatprep.subr.msk.mxu1 %vm787_vm2, %v14981_v53  ;;  %12891 = vmatprep.subr.msk.mxu0 %vm787_vm2, %v1461_v62  ;;  %v1459_v0 = vpop.permute.xlu0 %1458 }
 0x18e   : > { %12892 = vmatpush3.xpose.msk.msra.mxu0 %vm787_vm2, %v1461_v62  ;;  %v1576_v1 = vpop.permute.xlu1 %1575 }
 0x18f   : > { %12893 = vmatprep.subr.msk.mxu0 %vm787_vm2, %v1459_v0  ;;  %12850 = vmatpush3.xpose.msk.msra.mxu1 %vm787_vm2, %v14981_v53 }
 0x190   : > { %12851 = vmatprep.subr.msk.mxu1 %vm787_vm2, %v1120_v47  ;;  %v1574_v3 = vpop.permute.xlu0 %1573 }
 0x192   : > { %12894 = vmatpush3.xpose.msk.msra.mxu0 %vm787_vm2, %v1459_v0  ;;  %v1572_v4 = vpop.permute.xlu1 %1571 }
 0x193   : > { %12852 = vmatpush3.xpose.msk.msra.mxu1 %vm787_vm2, %v1120_v47 }
 0x194   : > { %12873 = vmatprep.subr.msk.mxu1 %vm787_vm2, %v1352_v57  ;;  %v2037_v6 = vpop.permute.xlu0 %2036 }
 0x195   : > { %12896 = vmatmul.mubr.msk.f32.vlgmr.msra.gmra.mxu0 %vm787_vm2, %v14854_v30 }
 0x196   : > { %12898 = vmatprep.mubr.msk.f32.mxu0 %vm787_vm2, %v14850_v29  ;;  %12854 = vmatmul.mubr.msk.f32.vlgmr.msra.gmra.mxu1 %vm787_vm2, %v14805_v19  ;;  %v2039_v5 = vpop.permute.xlu1 %2038 }
 0x197   : > { %12856 = vmatprep.mubr.msk.f32.mxu1 %vm787_vm2, %v14803_v18  ;;  %12874 = vmatpush3.xpose.msk.msra.mxu1 %vm787_vm2, %v1352_v57 }
 0x198   : > { %12875 = vmatprep.subr.msk.mxu1 %vm787_vm2, %v1350_v58  ;;  %12915 = vmatprep.subr.mxu0 %v2039_v5  ;;  %v2033_v8 = vpop.permute.xlu0 %2032 }
 0x199   : > { %12899 = vmatmul.mubr.msk.f32.gmra.mxu0 %vm787_vm2, %v14840_v27  ;;  %v770_v27 = vld [vmem:[%s15118_s20 + $0x18] sm:$0xff] }
 0x19a   : > { %12916 = vmatpush3.msra.mxu0 %v2039_v5  ;;  %12857 = vmatmul.mubr.msk.f32.gmra.mxu1 %vm787_vm2, %v14798_v16  ;;  %v2035_v7 = vpop.permute.xlu1 %2034 }
 0x19b   : > { %12917 = vmatprep.subr.mxu0 %v2037_v6  ;;  %12876 = vmatpush3.xpose.msk.msra.mxu1 %vm787_vm2, %v1350_v58 }
 0x19c   : > { %12881 = vmatprep.mubr.msk.f32.mxu1 %vm787_vm2, %v14846_v28  ;;  %12918 = vmatpush3.msra.mxu0 %v2037_v6  ;;  %v15088_v13 = vpop.permute.xlu0 %2145 }
 0x19d   : > { %12877 = vmatprep.subr.msk.mxu1 %vm787_vm2, %v1348_v59  ;;  %12919 = vmatprep.subr.mxu0 %v2035_v7 }
 0x19e   : > { %12920 = vmatpush3.msra.mxu0 %v2035_v7  ;;  %v15073_v9 = vpop.permute.xlu1 %2147 }
 0x19f   : > { %12921 = vmatprep.subr.mxu0 %v2033_v8  ;;  %12878 = vmatpush3.xpose.msk.msra.mxu1 %vm787_vm2, %v1348_v59 }
 0x1a0   : > { %12922 = vmatpush3.msra.mxu0 %v2033_v8  ;;  %12879 = vmatprep.subr.msk.mxu1 %vm787_vm2, %v1346_v50  ;;  %v15096_v15 = vpop.permute.xlu0 %2141 }
 0x1a1   : > { %12929 = vmatprep.subr.mxu0 %v15073_v9 }
 0x1a2   : > { %v15078_v11 = vpop.permute.xlu1 %2143 }
 0x1a3   : > { %12880 = vmatpush3.xpose.msk.msra.mxu1 %vm787_vm2, %v1346_v50 }
 0x1a4   : > { %12901 = vmatprep.subr.msk.mxu1 %vm787_vm2, %v1578_v63  ;;  %v2255_v17 = vpop.permute.xlu0 %2254 }
 0x1a6   : > { %12882 = vmatmul.mubr.msk.f32.vlgmr.msra.gmra.mxu1 %vm787_vm2, %v14838_v26  ;;  %v2257_v12 = vpop.permute.xlu1 %2256  ;;  %v766_v26 = vld [vmem:[%s18448_s4 + $0x18] sm:$0xff] }
 0x1a7   : > { %12884 = vmatprep.mubr.msk.f32.mxu1 %vm787_vm2, %v14834_v25  ;;  %12902 = vmatpush3.xpose.msk.msra.mxu1 %vm787_vm2, %v1578_v63  ;;  %v15128_v25 = vadd.f32 %v768_v22, %v764_v21 }
 0x1a8   : > { %12903 = vmatprep.subr.msk.mxu1 %vm787_vm2, %v1576_v1  ;;  %v2251_v19 = vpop.permute.xlu0 %2250 }
 0x1aa   : > { %12885 = vmatmul.mubr.msk.f32.gmra.mxu1 %vm787_vm2, %v14826_v24  ;;  %v2253_v14 = vpop.permute.xlu1 %2252  ;;  %v767_v24 = vld [vmem:[%s15118_s20] sm:$0xff] }
 0x1ab   : > { %12904 = vmatpush3.xpose.msk.msra.mxu1 %vm787_vm2, %v1576_v1  ;;  %12909 = vmatprep.mubr.msk.f32.mxu1 %vm787_vm2, %v14872_v35  ;;  %v15134_v28 = vadd.f32 %v767_v24, %v763_v23 }
 0x1ac   : > { %12905 = vmatprep.subr.msk.mxu1 %vm787_vm2, %v1574_v3 }
 0x1ae   : > { %v15100_v16 = vpop.permute.xlu1 %2365 }
 0x1af   : > { %12906 = vmatpush3.xpose.msk.msra.mxu1 %vm787_vm2, %v1574_v3 }
 0x1b0   : > { %12907 = vmatprep.subr.msk.mxu1 %vm787_vm2, %v1572_v4 }
 0x1b2   : > { %v15105_v18 = vpop.permute.xlu1 %2361 }
 0x1b3   : > { %12908 = vmatpush3.xpose.msk.msra.mxu1 %vm787_vm2, %v1572_v4 }
 0x1b4   : > { %12943 = vmatprep.subr.mxu1 %v2257_v12 }
 0x1b6   : > { %12910 = vmatmul.mubr.msk.f32.vlgmr.msra.gmra.mxu1 %vm787_vm2, %v14868_v34  ;;  %v15111_v20 = vpop.permute.xlu1 %2474 }
 0x1b7   : > { %12912 = vmatprep.mubr.msk.f32.mxu1 %vm787_vm2, %v14864_v33  ;;  %12944 = vmatpush3.msra.mxu1 %v2257_v12  ;;  %v15202_v12 = vpop.permute.xlu0 %2363 }
 0x1b8   : > { %12945 = vmatprep.subr.mxu1 %v2255_v17 }
 0x1b9   : > { %12946 = vmatpush3.msra.mxu1 %v2255_v17 }
 0x1ba   : > { %12913 = vmatmul.mubr.msk.f32.gmra.mxu1 %vm787_vm2, %v14856_v31  ;;  %12947 = vmatprep.subr.mxu1 %v2253_v14  ;;  %v15139_v31 = vadd.f32 %v770_v27, %v766_v26  ;;  %v15212_v26 = vpop.permute.xlu1 %2470 }
 0x1bb   : > { %12948 = vmatpush3.msra.mxu1 %v2253_v14 }
 0x1bc   : > { %12949 = vmatprep.subr.mxu1 %v2251_v19 }
 0x1bd   : > { %12950 = vmatpush3.msra.mxu1 %v2251_v19 }
 0x1be   : > { %12971 = vmatprep.subr.mxu1 %v15111_v20 }
 0x225   : > { %v12813_v29 = vpop.f32.mrf.mxu1 }
 0x226   : > { %v15137_v30 = vadd.f32 %v12813_v29, %v15128_v25 }
 0x227   : > { %v870_v32 = vpop.f32.mrf.mxu1 }
 0x228   : > { %v15142_v33 = vadd.f32 %v870_v32, %v15134_v28  ;;  %v1683_v34 = vsel %vm344_vm0, %v15137_v30, -inf }
 0x229   : > { %v12816_v35 = vpop.f32.mrf.mxu1  ;;  %1684 = vmax.xlane.f32.xlu1 %v1683_v34 }
 0x22a   : > { %v15147_v36 = vadd.f32 %v12816_v35, %v15139_v31  ;;  %v1680_v37 = vsel %vm344_vm0, %v15142_v33, -inf  ;;  %v15221_v35 = vpop.permute.xlu0 %2359 }
 0x22b   : > { %1681 = vmax.xlane.f32.xlu0 %v1680_v37  ;;  %v880_v39 = vpop.f32.mrf.mxu1 }
 0x22c   : > { %v1689_v38 = vsel %vm344_vm0, %v15147_v36, -inf  ;;  %v15163_v52 = vadd.f32 %v880_v39, %v15157_v45 }
 0x22e   : > { %v1686_v60 = vsel %vm344_vm0, %v15163_v52, -inf }
 0x22f   : > { %1690 = vmax.xlane.f32.xlu0 %v1689_v38 }
 0x235   : > { %v12827_v40 = vpop.f32.mrf.mxu1 }
 0x236   : > { %v15186_v62 = vadd.f32 %v12827_v40, %v15128_v25 }
 0x237   : > { %v983_v43 = vpop.f32.mrf.mxu1 }
 0x238   : > { %v15181_v50 = vadd.f32 %v983_v43, %v15134_v28  ;;  %v1695_v6 = vsel %vm344_vm0, %v15186_v62, -inf  ;;  %v15236_v43 = vpop.permute.xlu1 %2583 }
 0x239   : > { %v12830_v48 = vpop.f32.mrf.mxu1 }
 0x23a   : > { %v1692_v3 = vsel %vm344_vm0, %v15181_v50, -inf  ;;  %v15196_v4 = vadd.f32 %v12830_v48, %v15139_v31  ;;  %v15238_v48 = vpop.permute.xlu0 %2472 }
 0x23b   : > { %v993_v54 = vpop.f32.mrf.mxu1 }
 0x23c   : > { %v15191_v1 = vadd.f32 %v993_v54, %v15157_v45  ;;  %v1701_v21 = vsel %vm344_vm0, %v15196_v4, -inf }
 0x23e   : > { %v1698_v8 = vsel %vm344_vm0, %v15191_v1, -inf }
 0x244   : > { %v12869_v46 = vpop.f32.mrf.mxu0 }
 0x245   : > { %v15160_v49 = vadd.f32 %v12869_v46, %v15128_v25 }
 0x246   : > { %v1322_v51 = vpop.f32.mrf.mxu0  ;;  %v12841_v55 = vpop.f32.mrf.mxu1 }
 0x247   : > { %v15166_v53 = vadd.f32 %v1322_v51, %v15134_v28  ;;  %v1731_v44 = vsel %vm344_vm0, %v15160_v49, -inf  ;;  %v15232_v41 = vadd.f32 %v12841_v55, %v15128_v25 }
 0x248   : > { %1732 = vmax.xlane.f32.xlu0 %v1731_v44  ;;  %v12872_v47 = vpop.f32.mrf.mxu0  ;;  %v1096_v63 = vpop.f32.mrf.mxu1 }
 0x249   : > { %v1728_v56 = vsel %vm344_vm0, %v15166_v53, -inf  ;;  %v15173_v58 = vadd.f32 %v12872_v47, %v15139_v31  ;;  %v15227_v39 = vadd.f32 %v1096_v63, %v15134_v28  ;;  %v1707_v54 = vsel %vm344_vm0, %v15232_v41, -inf }
 0x24a   : > { %v1332_v57 = vpop.f32.mrf.mxu0  ;;  %1729 = vmax.xlane.f32.xlu1 %v1728_v56  ;;  %v12844_v5 = vpop.f32.mrf.mxu1 }
 0x24b   : > { %v15176_v59 = vadd.f32 %v1332_v57, %v15157_v45  ;;  %v1737_v0 = vsel %vm344_vm0, %v15173_v58, -inf  ;;  %v1704_v44 = vsel %vm344_vm0, %v15227_v39, -inf  ;;  %v15246_v47 = vadd.f32 %v12844_v5, %v15139_v31  ;;  %v15250_v57 = vpop.permute.xlu1 %2579 }
 0x24c   : > { %1687 = vmax.xlane.f32.xlu0 %v1686_v60  ;;  %v1106_v14 = vpop.f32.mrf.mxu1 }
 0x24d   : > { %v1734_v61 = vsel %vm344_vm0, %v15176_v59, -inf  ;;  %v15241_v51 = vadd.f32 %v1106_v14, %v15157_v45 }
 0x24e   : > { %1735 = vmax.xlane.f32.xlu1 %v1734_v61 }
 0x24f   : > { %v1710_v60 = vsel %vm344_vm0, %v15241_v51, -inf }
 0x250   : > { %1738 = vmax.xlane.f32.xlu0 %v1737_v0  ;;  %v1713_v0 = vsel %vm344_vm0, %v15246_v47, -inf }
 0x252   : > { %1693 = vmax.xlane.f32.xlu1 %v1692_v3  ;;  %v15262_v3 = vpop.permute.xlu0 %2468 }
 0x254   : > { %1696 = vmax.xlane.f32.xlu0 %v1695_v6 }
 0x255   : > { %v12897_v7 = vpop.f32.mrf.mxu0 }
 0x256   : > { %1699 = vmax.xlane.f32.xlu1 %v1698_v8  ;;  %v15205_v17 = vadd.f32 %v12897_v7, %v15128_v25  ;;  %v12855_v23 = vpop.f32.mrf.mxu1 }
 0x257   : > { %v1548_v19 = vpop.f32.mrf.mxu0  ;;  %v15258_v61 = vadd.f32 %v12855_v23, %v15128_v25 }
 0x258   : > { %v15210_v22 = vadd.f32 %v1548_v19, %v15134_v28  ;;  %1702 = vmax.xlane.f32.xlu0 %v1701_v21  ;;  %v1755_v34 = vsel %vm344_vm0, %v15205_v17, -inf  ;;  %v1209_v38 = vpop.f32.mrf.mxu1  ;;  %v15274_v19 = vpop.permute.xlu1 %2577 }
 0x259   : > { %v12900_v24 = vpop.f32.mrf.mxu0  ;;  %v15253_v55 = vadd.f32 %v1209_v38, %v15134_v28  ;;  %v1719_v14 = vsel %vm344_vm0, %v15258_v61, -inf  ;;  %18472 = vst [vmem:[#allocation4_spill] sm:$0xff] %v15274_v19  ;;  %v15276_v21 = vpop.permute.xlu0 %2581 }
 0x25a   : > { %v1752_v27 = vsel %vm344_vm0, %v15210_v22, -inf  ;;  %v15217_v29 = vadd.f32 %v12900_v24, %v15139_v31  ;;  %v12858_v46 = vpop.f32.mrf.mxu1 }
 0x25b   : > { %v1558_v32 = vpop.f32.mrf.mxu0  ;;  %1753 = vmax.xlane.f32.xlu1 %v1752_v27  ;;  %v1716_v6 = vsel %vm344_vm0, %v15253_v55, -inf  ;;  %v15270_v7 = vadd.f32 %v12858_v46, %v15139_v31 }
 0x25c   : > { %v15224_v37 = vadd.f32 %v1558_v32, %v15157_v45  ;;  %1756 = vmax.xlane.f32.xlu0 %v1755_v34  ;;  %v1761_v42 = vsel %vm344_vm0, %v15217_v29, -inf  ;;  %v1219_v56 = vpop.f32.mrf.mxu1  ;;  %v15288_v38 = vpop.permute.xlu1 %2690 }
 0x25d   : > { %v15265_v5 = vadd.f32 %v1219_v56, %v15157_v45  ;;  %v1725_v32 = vsel %vm344_vm0, %v15270_v7, -inf }
 0x25e   : > { %v1758_v40 = vsel %vm344_vm0, %v15224_v37, -inf }
 0x25f   : > { %1759 = vmax.xlane.f32.xlu1 %v1758_v40  ;;  %v1722_v24 = vsel %vm344_vm0, %v15265_v5, -inf }
 0x260   : > { %1762 = vmax.xlane.f32.xlu0 %v1761_v42  ;;  %v15301_v56 = vpop.permute.xlu1 %2686 }
 0x261   : > { %18473 = vst [vmem:[#allocation5_spill] sm:$0xff] %v15301_v56 }
 0x263   : > { %1705 = vmax.xlane.f32.xlu1 %v1704_v44  ;;  %v15297_v44 = vpop.permute.xlu0 %2692 }
 0x264   : > { %1708 = vmax.xlane.f32.xlu0 %v1707_v54 }
 0x266   : > { %v12883_v63 = vpop.f32.mrf.mxu1 }
 0x267   : > { %1711 = vmax.xlane.f32.xlu1 %v1710_v60  ;;  %v15284_v27 = vadd.f32 %v12883_v63, %v15128_v25  ;;  %v15303_v60 = vpop.permute.xlu0 %2688  ;;  %v15305_v63 = vpop.permute.xlu1 %2799 }
 0x268   : > { %1714 = vmax.xlane.f32.xlu0 %v1713_v0  ;;  %v1435_v8 = vpop.f32.mrf.mxu1  ;;  %18474 = vst [vmem:[#allocation6_spill] sm:$0xff] %v15305_v63 }
 0x269   : > { %v15279_v23 = vadd.f32 %v1435_v8, %v15134_v28  ;;  %v1743_v46 = vsel %vm344_vm0, %v15284_v27, -inf }
 0x26a   : > { %v12886_v34 = vpop.f32.mrf.mxu1 }
 0x26b   : > { %1717 = vmax.xlane.f32.xlu1 %v1716_v6  ;;  %v1740_v40 = vsel %vm344_vm0, %v15279_v23, -inf  ;;  %v15293_v42 = vadd.f32 %v12886_v34, %v15139_v31  ;;  %v15307_v0 = vpop.permute.xlu0 %2801  ;;  %v15309_v6 = vpop.permute.xlu1 %2795 }
 0x26c   : > { %1720 = vmax.xlane.f32.xlu0 %v1719_v14  ;;  %18475 = vst [vmem:[#allocation7_spill] sm:$0xff] %v15307_v0  ;;  %18476 = vst [vmem:[#allocation8_spill] sm:$0xff] %v15309_v6 }
 0x26d   : > { %v1749_v54 = vsel %vm344_vm0, %v15293_v42, -inf }
 0x26f   : > { %1723 = vmax.xlane.f32.xlu1 %v1722_v24  ;;  %v15313_v8 = vpop.permute.xlu0 %2797  ;;  %v15315_v14 = vpop.permute.xlu1 %3383 }
 0x270   : > { %1726 = vmax.xlane.f32.xlu0 %v1725_v32  ;;  %18477 = vst [vmem:[#allocation9_spill] sm:$0xff] %v15313_v8  ;;  %18478 = vst [vmem:[#allocation10_spill] sm:$0xff] %v15315_v14 }
 0x273   : > { %1741 = vmax.xlane.f32.xlu1 %v1740_v40  ;;  %v15317_v24 = vpop.permute.xlu0 %3385  ;;  %v15321_v32 = vpop.permute.xlu1 %3379 }
 0x274   : > { %1744 = vmax.xlane.f32.xlu0 %v1743_v46  ;;  %18479 = vst [vmem:[#allocation11_spill] sm:$0xff] %v15317_v24  ;;  %18480 = vst [vmem:[#allocation12_spill] sm:$0xff] %v15321_v32 }
 0x277   : > { %v15323_v34 = vpop.permute.xlu0 %3381  ;;  %v15325_v40 = vpop.permute.xlu1 %3506 }
 0x278   : > { %1750 = vmax.xlane.f32.xlu0 %v1749_v54  ;;  %18481 = vst [vmem:[#allocation13_spill] sm:$0xff] %v15323_v34  ;;  %18482 = vst [vmem:[#allocation14_spill] sm:$0xff] %v15325_v40  ;;  %v1445_v54 = vpop.f32.mrf.mxu1 }
 0x279   : > { %v15336_v24 = vadd.f32 %v1445_v54, %v15157_v45 }
 0x27b   : > { %v15327_v46 = vpop.permute.xlu0 %3371  ;;  %v15329_v6 = vpop.permute.xlu1 %3504 }
 0x27c   : > { %18483 = vst [vmem:[#allocation15_spill] sm:$0xff] %v15327_v46  ;;  %18484 = vst [vmem:[#allocation16_spill] sm:$0xff] %v15329_v6  ;;  %v1746_v46 = vsel %vm344_vm0, %v15336_v24, -inf }
 0x27f   : > { %v15331_v8 = vpop.permute.xlu0 %3373  ;;  %v15333_v63 = vpop.permute.xlu1 %3375 }
 0x280   : > { %18485 = vst [vmem:[#allocation17_spill] sm:$0xff] %v15331_v8  ;;  %18486 = vst [vmem:[#allocation18_spill] sm:$0xff] %v15333_v63 }
 0x283   : > { %v15345_v40 = vpop.permute.xlu1 %3377 }
 0x284   : > { %3625 = vrot.lane.b32.xlu1 %v14783_v10, %s14565_s15  ;;  %v12911_v10 = vpop.f32.mrf.mxu1  ;;  %18488 = vst [vmem:[#allocation20_spill] sm:$0xff] %v15345_v40 }
 0x285   : > { %v15348_v6 = vadd.f32 %v12911_v10, %v15128_v25 }
 0x286   : > { %v1661_v14 = vpop.f32.mrf.mxu1 }
 0x287   : > { %v15341_v34 = vadd.f32 %v1661_v14, %v15134_v28  ;;  %v1767_v14 = vsel %vm344_vm0, %v15348_v6, -inf  ;;  %v15362_v25 = vpop.permute.xlu1 %3627 }
 0x288   : > { %v12914_v32 = vpop.f32.mrf.mxu1  ;;  %18490 = vst [vmem:[#allocation22_spill] sm:$0xff] %v15362_v25 }
 0x289   : > { %v15358_v28 = vadd.f32 %v12914_v32, %v15139_v31 }
 0x28a   : > { %v1671_v8 = vpop.f32.mrf.mxu1 }
 0x28b   : > { %v15353_v54 = vadd.f32 %v1671_v8, %v15157_v45  ;;  %v1773_v45 = vsel %vm344_vm0, %v15358_v28, -inf }
 0x28e   : > { %3494 = vrot.lane.b32.xlu0 %v14766_v2, %s14566_s16  ;;  %v15338_v2 = vpop.permute.xlu0 %3502 }
 0x28f   : > { %18487 = vst [vmem:[#allocation19_spill] sm:$0xff] %v15338_v2  ;;  %v1764_v2 = vsel %vm344_vm0, %v15341_v34, -inf }
 0x292   : > { %v15350_v63 = vpop.permute.xlu0 %3500 }
 0x293   : > { %18489 = vst [vmem:[#allocation21_spill] sm:$0xff] %v15350_v63 }
 0x296   : > { %v15366_v10 = vpop.permute.xlu0 %3492 }
 0x297   : > { %18491 = vst [vmem:[#allocation23_spill] sm:$0xff] %v15366_v10 }
 0x2a8   : > { %1747 = vmax.xlane.f32.xlu1 %v1746_v46  ;;  %v1770_v46 = vsel %vm344_vm0, %v15353_v54, -inf }
 0x2ac   : > { %1765 = vmax.xlane.f32.xlu1 %v1764_v2 }
 0x2ad   : > { %1768 = vmax.xlane.f32.xlu0 %v1767_v14 }
 0x2b0   : > { %1771 = vmax.xlane.f32.xlu1 %v1770_v46 }
 0x2b1   : > { %1774 = vmax.xlane.f32.xlu0 %v1773_v45 }
 0x2b2   : > { %v1685_v8 = vpop.xlane.xlu1 %1684 }
 0x2b3   : > { %v1777_v31 = vsub.f32 %v15137_v30, %v1685_v8 }
 0x2b4   : > { %v1682_v32 = vpop.xlane.xlu0 %1681 }
 0x2b5   : > { %v1810_v2 = vmul.f32 1.442695, %v1777_v31  ;;  %v1776_v63 = vsub.f32 %v15142_v33, %v1682_v32 }
 0x2b7   : > { %13943 = vpow2.f32 %v1810_v2  ;;  %v1808_v14 = vmul.f32 1.442695, %v1776_v63 }
 0x2b8   : > { %v1691_v25 = vpop.xlane.xlu0 %1690 }
 0x2b9   : > { %13945 = vpow2.f32 %v1808_v14  ;;  %v1779_v40 = vsub.f32 %v15147_v36, %v1691_v25 }
 0x2bb   : > { %v1814_v0 = vmul.f32 1.442695, %v1779_v40 }
 0x2bd   : > { %13947 = vpow2.f32 %v1814_v0 }
 0x2c4   : > { %v15373_v46 = vpop.eup %13943 }
 0x2c5   : > { %v1875_v45 = vsel %vm344_vm0, %v15373_v46, 0.0 }
 0x2c6   : > { %v15377_v10 = vpop.eup %13945  ;;  %1876 = vadd.xlane.f32.xlu0 %v1875_v45 }
 0x2c7   : > { %v1872_v30 = vsel %vm344_vm0, %v15377_v10, 0.0 }
 0x2c8   : > { %1873 = vadd.xlane.f32.xlu1 %v1872_v30 }
 0x2ca   : > { %v15381_v33 = vpop.eup %13947 }
 0x2cb   : > { %v1881_v63 = vsel %vm344_vm0, %v15381_v33, 0.0 }
 0x2cc   : > { %1882 = vadd.xlane.f32.xlu0 %v1881_v63 }
 0x2d1   : > { %v1733_v36 = vpop.xlane.xlu0 %1732 }
 0x2d2   : > { %v1793_v0 = vsub.f32 %v15160_v49, %v1733_v36 }
 0x2d3   : > { %v1730_v40 = vpop.xlane.xlu1 %1729 }
 0x2d4   : > { %v1842_v25 = vmul.f32 1.442695, %v1793_v0  ;;  %v1792_v8 = vsub.f32 %v15166_v53, %v1730_v40 }
 0x2d5   : > { %v1688_v31 = vpop.xlane.xlu0 %1687 }
 0x2d6   : > { %13949 = vpow2.f32 %v1842_v25  ;;  %v1778_v32 = vsub.f32 %v15163_v52, %v1688_v31  ;;  %v1840_v14 = vmul.f32 1.442695, %v1792_v8 }
 0x2d7   : > { %v1736_v2 = vpop.xlane.xlu1 %1735 }
 0x2d8   : > { %v1812_v45 = vmul.f32 1.442695, %v1778_v32  ;;  %v1794_v30 = vsub.f32 %v15176_v59, %v1736_v2 }
 0x2d9   : > { %v1739_v56 = vpop.xlane.xlu0 %1738 }
 0x2da   : > { %13951 = vpow2.f32 %v1812_v45  ;;  %v1795_v63 = vsub.f32 %v15173_v58, %v1739_v56  ;;  %v1844_v49 = vmul.f32 1.442695, %v1794_v30 }
 0x2db   : > { %v1694_v19 = vpop.xlane.xlu1 %1693  ;;  %13953 = vpow2.f32 %v1840_v14 }
 0x2dc   : > { %v1846_v36 = vmul.f32 1.442695, %v1795_v63  ;;  %v1780_v0 = vsub.f32 %v15181_v50, %v1694_v19 }
 0x2dd   : > { %v1697_v53 = vpop.xlane.xlu0 %1696 }
 0x2de   : > { %13955 = vpow2.f32 %v1846_v36  ;;  %v1781_v40 = vsub.f32 %v15186_v62, %v1697_v53  ;;  %v1816_v52 = vmul.f32 1.442695, %v1780_v0 }
 0x2df   : > { %v1700_v25 = vpop.xlane.xlu1 %1699  ;;  %13957 = vpow2.f32 %v1844_v49 }
 0x2e0   : > { %v1818_v8 = vmul.f32 1.442695, %v1781_v40  ;;  %v1782_v59 = vsub.f32 %v15191_v1, %v1700_v25 }
 0x2e1   : > { %v1703_v31 = vpop.xlane.xlu0 %1702 }
 0x2e2   : > { %13959 = vpow2.f32 %v1818_v8  ;;  %v1783_v58 = vsub.f32 %v15196_v4, %v1703_v31  ;;  %v1820_v32 = vmul.f32 1.442695, %v1782_v59 }
 0x2e3   : > { %v15394_v56 = vpop.eup %13949  ;;  %13961 = vpow2.f32 %v1816_v52 }
 0x2e4   : > { %v1822_v2 = vmul.f32 1.442695, %v1783_v58  ;;  %v1754_v50 = vpop.xlane.xlu1 %1753  ;;  %v1923_v19 = vsel %vm344_vm0, %v15394_v56, 0.0 }
 0x2e5   : > { %v1800_v62 = vsub.f32 %v15210_v22, %v1754_v50  ;;  %v1757_v14 = vpop.xlane.xlu0 %1756  ;;  %1924 = vadd.xlane.f32.xlu0 %v1923_v19 }
 0x2e6   : > { %13963 = vpow2.f32 %v1822_v2  ;;  %v1801_v1 = vsub.f32 %v15205_v17, %v1757_v14 }
 0x2e7   : > { %v15400_v45 = vpop.eup %13951  ;;  %13965 = vpow2.f32 %v1820_v32  ;;  %v1856_v4 = vmul.f32 1.442695, %v1800_v62 }
 0x2e8   : > { %v1858_v30 = vmul.f32 1.442695, %v1801_v1  ;;  %v1760_v63 = vpop.xlane.xlu1 %1759  ;;  %v1878_v49 = vsel %vm344_vm0, %v15400_v45, 0.0  ;;  %v15404_v36 = vpop.eup %13953 }
 0x2e9   : > { %v1802_v0 = vsub.f32 %v15224_v37, %v1760_v63  ;;  %v1763_v53 = vpop.xlane.xlu0 %1762  ;;  %1879 = vadd.xlane.f32.xlu1 %v1878_v49  ;;  %v1920_v59 = vsel %vm344_vm0, %v15404_v36, 0.0 }
 0x2ea   : > { %13967 = vpow2.f32 %v1858_v30  ;;  %v1803_v22 = vsub.f32 %v15217_v29, %v1763_v53 }
 0x2eb   : > { %v15408_v40 = vpop.eup %13955  ;;  %13969 = vpow2.f32 %v1856_v4  ;;  %v1860_v17 = vmul.f32 1.442695, %v1802_v0 }
 0x2ec   : > { %v1862_v52 = vmul.f32 1.442695, %v1803_v22  ;;  %v1706_v25 = vpop.xlane.xlu1 %1705  ;;  %v1929_v8 = vsel %vm344_vm0, %v15408_v40, 0.0  ;;  %v15414_v31 = vpop.eup %13957 }
 0x2ed   : > { %v1784_v37 = vsub.f32 %v15227_v39, %v1706_v25  ;;  %v1709_v58 = vpop.xlane.xlu0 %1708  ;;  %1930 = vadd.xlane.f32.xlu0 %v1929_v8  ;;  %1921 = vadd.xlane.f32.xlu1 %v1920_v59  ;;  %v1926_v39 = vsel %vm344_vm0, %v15414_v31, 0.0 }
 0x2ee   : > { %13971 = vpow2.f32 %v1862_v52  ;;  %v1785_v29 = vsub.f32 %v15232_v41, %v1709_v58 }
 0x2ef   : > { %v15418_v32 = vpop.eup %13959  ;;  %13973 = vpow2.f32 %v1860_v17  ;;  %v1824_v50 = vmul.f32 1.442695, %v1784_v37 }
 0x2f0   : > { %v15420_v2 = vpop.eup %13961  ;;  %v1826_v19 = vmul.f32 1.442695, %v1785_v29  ;;  %v1712_v62 = vpop.xlane.xlu1 %1711  ;;  %v1887_v14 = vsel %vm344_vm0, %v15418_v32, 0.0 }
 0x2f1   : > { %v1786_v1 = vsub.f32 %v15241_v51, %v1712_v62  ;;  %v1715_v4 = vpop.xlane.xlu0 %1714  ;;  %1888 = vadd.xlane.f32.xlu0 %v1887_v14  ;;  %1927 = vadd.xlane.f32.xlu1 %v1926_v39  ;;  %v1884_v63 = vsel %vm344_vm0, %v15420_v2, 0.0 }
 0x2f2   : > { %13975 = vpow2.f32 %v1826_v19  ;;  %v1787_v41 = vsub.f32 %v15246_v47, %v1715_v4 }
 0x2f3   : > { %v15428_v30 = vpop.eup %13963  ;;  %13977 = vpow2.f32 %v1824_v50  ;;  %v1828_v0 = vmul.f32 1.442695, %v1786_v1 }
 0x2f4   : > { %v15432_v49 = vpop.eup %13965  ;;  %v1830_v53 = vmul.f32 1.442695, %v1787_v41  ;;  %v1718_v22 = vpop.xlane.xlu1 %1717  ;;  %v1893_v51 = vsel %vm344_vm0, %v15428_v30, 0.0 }
 0x2f5   : > { %v1788_v17 = vsub.f32 %v15253_v55, %v1718_v22  ;;  %v1721_v52 = vpop.xlane.xlu0 %1720  ;;  %1894 = vadd.xlane.f32.xlu0 %v1893_v51  ;;  %1885 = vadd.xlane.f32.xlu1 %v1884_v63  ;;  %v1890_v8 = vsel %vm344_vm0, %v15432_v49, 0.0 }
 0x2f6   : > { %13979 = vpow2.f32 %v1830_v53  ;;  %v1789_v47 = vsub.f32 %v15258_v61, %v1721_v52 }
 0x2f7   : > { %v15438_v25 = vpop.eup %13967  ;;  %13981 = vpow2.f32 %v1828_v0  ;;  %v1832_v37 = vmul.f32 1.442695, %v1788_v17 }
 0x2f8   : > { %v15442_v59 = vpop.eup %13969  ;;  %v1834_v58 = vmul.f32 1.442695, %v1789_v47  ;;  %v1724_v29 = vpop.xlane.xlu1 %1723  ;;  %v1947_v55 = vsel %vm344_vm0, %v15438_v25, 0.0 }
 0x2f9   : > { %v1790_v50 = vsub.f32 %v15265_v5, %v1724_v29  ;;  %v1727_v19 = vpop.xlane.xlu0 %1726  ;;  %1948 = vadd.xlane.f32.xlu0 %v1947_v55  ;;  %1891 = vadd.xlane.f32.xlu1 %v1890_v8  ;;  %v1944_v14 = vsel %vm344_vm0, %v15442_v59, 0.0 }
 0x2fa   : > { %13983 = vpow2.f32 %v1834_v58  ;;  %v1791_v61 = vsub.f32 %v15270_v7, %v1727_v19 }
 0x2fb   : > { %v15448_v62 = vpop.eup %13971  ;;  %13985 = vpow2.f32 %v1832_v37  ;;  %v1836_v1 = vmul.f32 1.442695, %v1790_v50 }
 0x2fc   : > { %v15452_v39 = vpop.eup %13973  ;;  %v1838_v4 = vmul.f32 1.442695, %v1791_v61  ;;  %v1742_v41 = vpop.xlane.xlu1 %1741  ;;  %v1953_v5 = vsel %vm344_vm0, %v15448_v62, 0.0 }
 0x2fd   : > { %v1796_v63 = vsub.f32 %v15279_v23, %v1742_v41  ;;  %v1745_v0 = vpop.xlane.xlu0 %1744  ;;  %1954 = vadd.xlane.f32.xlu0 %v1953_v5  ;;  %1945 = vadd.xlane.f32.xlu1 %v1944_v14  ;;  %v1950_v22 = vsel %vm344_vm0, %v15452_v39, 0.0 }
 0x2fe   : > { %13987 = vpow2.f32 %v1838_v4  ;;  %v1797_v7 = vsub.f32 %v15284_v27, %v1745_v0 }
 0x2ff   : > { %v15458_v53 = vpop.eup %13975  ;;  %13989 = vpow2.f32 %v1836_v1  ;;  %v1848_v51 = vmul.f32 1.442695, %v1796_v63 }
 0x300   : > { %v1850_v17 = vmul.f32 1.442695, %v1797_v7  ;;  %v1899_v52 = vsel %vm344_vm0, %v15458_v53, 0.0  ;;  %v15464_v47 = vpop.eup %13977 }
 0x301   : > { %v1751_v23 = vpop.xlane.xlu0 %1750  ;;  %1900 = vadd.xlane.f32.xlu0 %v1899_v52  ;;  %1951 = vadd.xlane.f32.xlu1 %v1950_v22  ;;  %v1896_v29 = vsel %vm344_vm0, %v15464_v47, 0.0  ;;  %v15505_v52 = vpop.permute.xlu1 %3625 }
 0x302   : > { %13991 = vpow2.f32 %v1850_v17  ;;  %v1799_v8 = vsub.f32 %v15293_v42, %v1751_v23  ;;  %18492 = vst [vmem:[#allocation24_spill] sm:$0xff] %v15505_v52 }
 0x303   : > { %v15467_v27 = vpop.eup %13979  ;;  %13993 = vpow2.f32 %v1848_v51 }
 0x304   : > { %v1854_v37 = vmul.f32 1.442695, %v1799_v8  ;;  %v1905_v58 = vsel %vm344_vm0, %v15467_v27, 0.0  ;;  %v15473_v55 = vpop.eup %13981 }
 0x305   : > { %1906 = vadd.xlane.f32.xlu0 %v1905_v58  ;;  %1897 = vadd.xlane.f32.xlu1 %v1896_v29  ;;  %v1902_v19 = vsel %vm344_vm0, %v15473_v55, 0.0  ;;  %v15507_v8 = vpop.permute.xlu0 %3494 }
 0x306   : > { %13995 = vpow2.f32 %v1854_v37  ;;  %18493 = vst [vmem:[#allocation25_spill] sm:$0xff] %v15507_v8 }
 0x307   : > { %v15475_v50 = vpop.eup %13983 }
 0x308   : > { %v1911_v42 = vsel %vm344_vm0, %v15475_v50, 0.0  ;;  %v15481_v61 = vpop.eup %13985 }
 0x309   : > { %1912 = vadd.xlane.f32.xlu0 %v1911_v42  ;;  %1903 = vadd.xlane.f32.xlu1 %v1902_v19  ;;  %v1908_v4 = vsel %vm344_vm0, %v15481_v61, 0.0 }
 0x30b   : > { %v15483_v14 = vpop.eup %13987 }
 0x30c   : > { %v1917_v1 = vsel %vm344_vm0, %v15483_v14, 0.0  ;;  %v15489_v41 = vpop.eup %13989 }
 0x30d   : > { %1918 = vadd.xlane.f32.xlu0 %v1917_v1  ;;  %1909 = vadd.xlane.f32.xlu1 %v1908_v4  ;;  %v1914_v0 = vsel %vm344_vm0, %v15489_v41, 0.0 }
 0x30f   : > { %v15491_v5 = vpop.eup %13991 }
 0x310   : > { %v1935_v63 = vsel %vm344_vm0, %v15491_v5, 0.0  ;;  %v15497_v7 = vpop.eup %13993 }
 0x311   : > { %1936 = vadd.xlane.f32.xlu0 %v1935_v63  ;;  %1915 = vadd.xlane.f32.xlu1 %v1914_v0  ;;  %v1932_v17 = vsel %vm344_vm0, %v15497_v7, 0.0 }
 0x313   : > { %v15499_v22 = vpop.eup %13995 }
 0x314   : > { %v1941_v51 = vsel %vm344_vm0, %v15499_v22, 0.0 }
 0x315   : > { %1942 = vadd.xlane.f32.xlu0 %v1941_v51  ;;  %1933 = vadd.xlane.f32.xlu1 %v1932_v17 }
 0x331   : > { %v1748_v23 = vpop.xlane.xlu1 %1747 }
 0x332   : > { %v1798_v37 = vsub.f32 %v15336_v24, %v1748_v23 }
 0x334   : > { %v1852_v58 = vmul.f32 1.442695, %v1798_v37 }
 0x335   : > { %v1766_v29 = vpop.xlane.xlu1 %1765 }
 0x336   : > { %13997 = vpow2.f32 %v1852_v58  ;;  %v1804_v42 = vsub.f32 %v15341_v34, %v1766_v29  ;;  %v1769_v19 = vpop.xlane.xlu0 %1768 }
 0x337   : > { %v1805_v1 = vsub.f32 %v15348_v6, %v1769_v19 }
 0x338   : > { %v1864_v4 = vmul.f32 1.442695, %v1804_v42 }
 0x339   : > { %v1866_v63 = vmul.f32 1.442695, %v1805_v1  ;;  %v1772_v58 = vpop.xlane.xlu1 %1771  ;;  %v15529_v1 = vld [vmem:[#allocation2 + $0x30] sm:$0xff] }
 0x33a   : > { %13999 = vpow2.f32 %v1864_v4  ;;  %v1775_v0 = vpop.xlane.xlu0 %1774 }
 0x33b   : > { %14001 = vpow2.f32 %v1866_v63  ;;  %v1807_v51 = vsub.f32 %v15358_v28, %v1775_v0 }
 0x33d   : > { %v1870_v17 = vmul.f32 1.442695, %v1807_v51 }
 0x33f   : > { %14003 = vpow2.f32 %v1870_v17  ;;  %v15536_v17 = vld [vmem:[#allocation2 + $0x48] sm:$0xff] }
 0x340   : > { %18496 = vst [vmem:[#allocation28_spill] sm:$0xff] %v15536_v17 }
 0x343   : > { %v15513_v52 = vpop.eup %13997 }
 0x344   : > { %v1938_v24 = vsel %vm344_vm0, %v15513_v52, 0.0 }
 0x345   : > { %1939 = vadd.xlane.f32.xlu1 %v1938_v24  ;;  %v1806_v24 = vsub.f32 %v15353_v54, %v1772_v58 }
 0x347   : > { %v15517_v23 = vpop.eup %13999 }
 0x348   : > { %v15519_v34 = vpop.eup %14001  ;;  %v1956_v6 = vsel %vm344_vm0, %v15517_v23, 0.0 }
 0x349   : > { %18494 = vst [vmem:[#allocation26_spill] sm:$0xff] %v15519_v34  ;;  %1957 = vadd.xlane.f32.xlu1 %v1956_v6  ;;  %v1959_v37 = vsel %vm344_vm0, %v15519_v34, 0.0 }
 0x34a   : > { %1960 = vadd.xlane.f32.xlu0 %v1959_v37  ;;  %v15566_v37 = vld [vmem:[#allocation2 + $0x50] sm:$0xff] }
 0x34c   : > { %v15525_v28 = vpop.eup %14003 }
 0x34d   : > { %18495 = vst [vmem:[#allocation27_spill] sm:$0xff] %v15525_v28  ;;  %v1965_v29 = vsel %vm344_vm0, %v15525_v28, 0.0 }
 0x34e   : > { %1966 = vadd.xlane.f32.xlu0 %v1965_v29 }
 0x34f   : > { %v1877_v42 = vpop.xlane.xlu0 %1876 }
 0x350   : > { %14005 = vrcp.f32 %v1877_v42 }
 0x351   : > { %v1874_v19 = vpop.xlane.xlu1 %1873 }
 0x352   : > { %14007 = vrcp.f32 %v1874_v19  ;;  %v15574_v19 = vld [vmem:[#allocation2 + $0x60] sm:$0xff] }
 0x353   : > { %18498 = vst [vmem:[#allocation30_spill] sm:$0xff] %v15574_v19 }
 0x35a   : > { %3496 = vrot.lane.b32.xlu1 %v15529_v1, %s14566_s16 }
 0x35d   : > { %v14006_v4 = vpop.eup %14005 }
 0x35e   : > { %v2001_v51 = vmul.f32 %v14006_v4, %v15373_v46  ;;  %v1868_v46 = vmul.f32 1.442695, %v1806_v24 }
 0x35f   : > { %v14008_v63 = vpop.eup %14007 }
 0x360   : > { %v2000_v0 = vmul.f32 %v14008_v63, %v15377_v10  ;;  %v15546_v10 = vld [vmem:[#allocation2 + $0x40] sm:$0xff]  ;;  %14009 = vpow2.f32 %v1868_v46 }
 0x362   : > { %12923 = vmatprep.mubr.msk.f32.mxu0 %vm344_vm0, %v2000_v0 }
 0x363   : > { %12924 = vmatmul.mubr.msk.f32.vlgmr.msra.gmra.mxu0 %vm344_vm0, %v2001_v51 }
 0x364   : > { %3623 = vrot.lane.b32.xlu0 %v15536_v17, %s14565_s15  ;;  %12930 = vmatpush3.msra.mxu0 %v15073_v9  ;;  %v1883_v9 = vpop.xlane.xlu0 %1882 }
 0x365   : > { %12931 = vmatprep.subr.mxu0 %v15088_v13  ;;  %14011 = vrcp.f32 %v1883_v9 }
 0x366   : > { %12932 = vmatpush3.msra.mxu0 %v15088_v13 }
 0x367   : > { %12933 = vmatprep.subr.mxu0 %v15078_v11 }
 0x368   : > { %3621 = vrot.lane.b32.xlu0 %v15546_v10, %s14565_s15  ;;  %12934 = vmatpush3.msra.mxu0 %v15078_v11  ;;  %v15560_v11 = vld [vmem:[#allocation2 + $0x68] sm:$0xff] }
 0x369   : > { %12935 = vmatprep.subr.mxu0 %v15096_v15 }
 0x36a   : > { %12936 = vmatpush3.msra.mxu0 %v15096_v15 }
 0x36b   : > { %12957 = vmatprep.subr.mxu0 %v15100_v16 }
 0x36c   : > { %3613 = vrot.lane.b32.xlu0 %v15546_v10, %s14566_s16 }
 0x36d   : > { %v15570_v58 = vpop.eup %14009 }
 0x36e   : > { %v15558_v13 = vpop.xlane.xlu0 %1924  ;;  %18497 = vst [vmem:[#allocation29_spill] sm:$0xff] %v15570_v58  ;;  %v1962_v4 = vsel %vm344_vm0, %v15570_v58, 0.0  ;;  %v15608_v58 = vld [vmem:[#allocation2 + $0x38] sm:$0xff] }
 0x370   : > { %3615 = vrot.lane.b32.xlu0 %v15536_v17, %s14566_s16 }
 0x372   : > { %v1880_v54 = vpop.xlane.xlu1 %1879  ;;  %v14012_v51 = vpop.eup %14011 }
 0x373   : > { %14013 = vrcp.f32 %v1880_v54  ;;  %v2003_v8 = vmul.f32 %v14012_v51, %v15381_v33  ;;  %v15602_v51 = vld [vmem:[#allocation2 + $0x80] sm:$0xff] }
 0x374   : > { %3744 = vrot.lane.b32.xlu0 %v15560_v11, %s14565_s15 }
 0x376   : > { %v15564_v15 = vpop.xlane.xlu0 %1930  ;;  %v1922_v6 = vpop.xlane.xlu1 %1921 }
 0x378   : > { %3617 = vrot.lane.b32.xlu0 %v15566_v37, %s14566_s16 }
 0x37a   : > { %v1889_v29 = vpop.xlane.xlu0 %1888  ;;  %v15572_v42 = vpop.xlane.xlu1 %1927 }
 0x37b   : > { %14015 = vrcp.f32 %v1889_v29 }
 0x37c   : > { %3742 = vrot.lane.b32.xlu0 %v15574_v19, %s14565_s15 }
 0x37e   : > { %1963 = vadd.xlane.f32.xlu1 %v1962_v4  ;;  %v1895_v63 = vpop.xlane.xlu0 %1894  ;;  %v1886_v0 = vpop.xlane.xlu1 %1885  ;;  %v15587_v4 = vld [vmem:[#allocation2 + $0x88] sm:$0xff] }
 0x37f   : > { %14017 = vrcp.f32 %v1886_v0 }
 0x380   : > { %v14014_v24 = vpop.eup %14013  ;;  %3734 = vrot.lane.b32.xlu0 %v15574_v19, %s14566_s16  ;;  %14019 = vrcp.f32 %v1895_v63 }
 0x381   : > { %v2002_v46 = vmul.f32 %v14014_v24, %v15400_v45  ;;  %v15596_v45 = vld [vmem:[#allocation2 + $0x70] sm:$0xff] }
 0x382   : > { %v15583_v9 = vpop.xlane.xlu0 %1948  ;;  %v1892_v54 = vpop.xlane.xlu1 %1891 }
 0x383   : > { %12926 = vmatprep.mubr.msk.f32.mxu0 %vm344_vm0, %v2002_v46  ;;  %14021 = vrcp.f32 %v1892_v54 }
 0x384   : > { %3865 = vrot.lane.b32.xlu0 %v15587_v4, %s14565_s15  ;;  %12927 = vmatmul.mubr.msk.f32.gmra.mxu0 %vm344_vm0, %v2003_v8 }
 0x386   : > { %v15592_v29 = vpop.xlane.xlu0 %1954  ;;  %v15594_v0 = vpop.xlane.xlu1 %1945 }
 0x388   : > { %3738 = vrot.lane.b32.xlu0 %v15596_v45, %s14566_s16  ;;  %v14016_v24 = vpop.eup %14015 }
 0x389   : > { %v2005_v28 = vmul.f32 %v14016_v24, %v15418_v32  ;;  %v15617_v32 = vld [vmem:[#allocation2 + $0x78] sm:$0xff]  ;;  %v15625_v24 = vld [vmem:[#allocation2 + $0xa8] sm:$0xff] }
 0x38a   : > { %v1901_v33 = vpop.xlane.xlu0 %1900  ;;  %v15600_v63 = vpop.xlane.xlu1 %1951 }
 0x38b   : > { %14023 = vrcp.f32 %v1901_v33 }
 0x38c   : > { %3863 = vrot.lane.b32.xlu0 %v15602_v51, %s14565_s15  ;;  %v14018_v46 = vpop.eup %14017 }
 0x38d   : > { %v2004_v54 = vmul.f32 %v14018_v46, %v15420_v2  ;;  %v14020_v17 = vpop.eup %14019  ;;  %v15652_v46 = vld [vmem:[#allocation2 + $0x58] sm:$0xff] }
 0x38e   : > { %v1898_v8 = vpop.xlane.xlu1 %1897  ;;  %v1907_v19 = vpop.xlane.xlu0 %1906 }
 0x38f   : > { %3498 = vrot.lane.b32.xlu1 %v15608_v58, %s14566_s16  ;;  %14025 = vrcp.f32 %v1898_v8  ;;  %12937 = vmatprep.mubr.msk.f32.mxu0 %vm344_vm0, %v2004_v54 }
 0x390   : > { %3855 = vrot.lane.b32.xlu0 %v15602_v51, %s14566_s16  ;;  %v14022_v34 = vpop.eup %14021  ;;  %12938 = vmatmul.mubr.msk.f32.vlgmr.msra.gmra.mxu0 %vm344_vm0, %v2005_v28  ;;  %14027 = vrcp.f32 %v1907_v19 }
 0x391   : > { %12958 = vmatpush3.msra.mxu0 %v15100_v16  ;;  %v2006_v33 = vmul.f32 %v14022_v34, %v15432_v49  ;;  %v2007_v16 = vmul.f32 %v14020_v17, %v15428_v30  ;;  %v15643_v30 = vld [vmem:[#allocation2 + $0x98] sm:$0xff]  ;;  %v3342_v17 = vld [vmem:[#allocation2 + $0xa0] sm:$0xff] }
 0x392   : > { %v1904_v2 = vpop.xlane.xlu1 %1903  ;;  %12959 = vmatprep.subr.mxu0 %v15202_v12  ;;  %v1913_v49 = vpop.xlane.xlu0 %1912 }
 0x393   : > { %3748 = vrot.lane.b32.xlu1 %v15617_v32, %s14565_s15  ;;  %12960 = vmatpush3.msra.mxu0 %v15202_v12  ;;  %14029 = vrcp.f32 %v1904_v2  ;;  %v15637_v12 = vld [vmem:[#allocation2 + $0x90] sm:$0xff] }
 0x394   : > { %12940 = vmatprep.mubr.msk.f32.mxu0 %vm344_vm0, %v2006_v33  ;;  %14031 = vrcp.f32 %v1922_v6  ;;  %12961 = vmatprep.subr.mxu0 %v15105_v18  ;;  %v15667_v33 = vld [vmem:[#allocation2 + $0xc8] sm:$0xff] }
 0x395   : > { %3986 = vrot.lane.b32.xlu0 %v15625_v24, %s14565_s15  ;;  %12941 = vmatmul.mubr.msk.f32.gmra.mxu0 %vm344_vm0, %v2007_v16  ;;  %14033 = vrcp.f32 %v15558_v13 }
 0x396   : > { %v1910_v34 = vpop.xlane.xlu1 %1909  ;;  %12962 = vmatpush3.msra.mxu0 %v15105_v18  ;;  %v1919_v6 = vpop.xlane.xlu0 %1918 }
 0x397   : > { %3746 = vrot.lane.b32.xlu1 %v15596_v45, %s14565_s15  ;;  %12963 = vmatprep.subr.mxu0 %v15221_v35  ;;  %14035 = vrcp.f32 %v1910_v34 }
 0x398   : > { %14037 = vrcp.f32 %v1913_v49  ;;  %12964 = vmatpush3.msra.mxu0 %v15221_v35  ;;  %v14024_v18 = vpop.eup %14023 }
 0x399   : > { %3859 = vrot.lane.b32.xlu0 %v15637_v12, %s14566_s16  ;;  %12985 = vmatprep.subr.mxu0 %v15236_v43  ;;  %14039 = vrcp.f32 %v15572_v42  ;;  %v2009_v19 = vmul.f32 %v14024_v18, %v15458_v53 }
 0x39a   : > { %v1916_v28 = vpop.xlane.xlu1 %1915 }
 0x39b   : > { %3869 = vrot.lane.b32.xlu1 %v15643_v30, %s14565_s15  ;;  %14041 = vrcp.f32 %v1916_v28  ;;  %v18499_v28 = vld [vmem:[#allocation4_spill] sm:$0xff] }
 0x39c   : > { %v14026_v13 = vpop.eup %14025  ;;  %14043 = vrcp.f32 %v15564_v15  ;;  %v1937_v15 = vpop.xlane.xlu0 %1936 }
 0x39d   : > { %3984 = vrot.lane.b32.xlu0 %v3342_v17, %s14565_s15  ;;  %v2008_v35 = vmul.f32 %v14026_v13, %v15464_v47  ;;  %v14028_v42 = vpop.eup %14027  ;;  %14045 = vrcp.f32 %v1919_v6  ;;  %v18503_v6 = vld [vmem:[#allocation9_spill] sm:$0xff] }
 0x39e   : > { %v1934_v8 = vpop.xlane.xlu1 %1933  ;;  %14047 = vrcp.f32 %v15594_v0  ;;  %v2011_v0 = vmul.f32 %v14028_v42, %v15467_v27  ;;  %v3350_v42 = vld [vmem:[#allocation2 + $0xe0] sm:$0xff] }
 0x39f   : > { %3619 = vrot.lane.b32.xlu1 %v15652_v46, %s14566_s16  ;;  %12951 = vmatprep.mubr.msk.f32.mxu1 %vm344_vm0, %v2008_v35  ;;  %14049 = vrcp.f32 %v1934_v8  ;;  %v18504_v35 = vld [vmem:[#allocation8_spill] sm:$0xff]  ;;  %v3352_v8 = vld [vmem:[#allocation2 + $0xf0] sm:$0xff] }
 0x3a0   : > { %v14030_v54 = vpop.eup %14029  ;;  %12952 = vmatmul.mubr.msk.f32.vlgmr.msra.gmra.mxu1 %vm344_vm0, %v2009_v19  ;;  %14051 = vrcp.f32 %v1937_v15  ;;  %v18505_v19 = vld [vmem:[#allocation11_spill] sm:$0xff] }
 0x3a1   : > { %3976 = vrot.lane.b32.xlu0 %v3342_v17, %s14566_s16  ;;  %v14032_v47 = vpop.eup %14031  ;;  %12972 = vmatpush3.msra.mxu1 %v15111_v20  ;;  %v2010_v53 = vmul.f32 %v14030_v54, %v15473_v55  ;;  %14053 = vrcp.f32 %v15583_v9  ;;  %v15698_v9 = vld [vmem:[#allocation2 + $0xb8] sm:$0xff]  ;;  %v3348_v54 = vld [vmem:[#allocation2 + $0xd0] sm:$0xff] }
 0x3a2   : > { %12973 = vmatprep.subr.mxu1 %v15238_v48  ;;  %v14034_v2 = vpop.eup %14033  ;;  %v2016_v20 = vmul.f32 %v14032_v47, %v15404_v36  ;;  %14055 = vrcp.f32 %v15600_v63  ;;  %v1943_v47 = vpop.xlane.xlu0 %1942 }
 0x3a3   : > { %3867 = vrot.lane.b32.xlu1 %v15637_v12, %s14565_s15  ;;  %12974 = vmatpush3.msra.mxu1 %v15238_v48  ;;  %v2017_v49 = vmul.f32 %v14034_v2, %v15394_v56  ;;  %14057 = vrcp.f32 %v15592_v29  ;;  %v14460_v2 = vld [vmem:[#allocation2] sm:$0xff] }
 0x3a4   : > { %12954 = vmatprep.mubr.msk.f32.mxu1 %vm344_vm0, %v2010_v53  ;;  %v14036_v16 = vpop.eup %14035  ;;  %12975 = vmatprep.subr.mxu1 %v15212_v26  ;;  %v14459_v53 = vld [vmem:[#allocation2 + $0x10] sm:$0xff]  ;;  %14059 = vrcp.f32 %v1943_v47 }
 0x3a5   : > { %4107 = vrot.lane.b32.xlu0 %v15667_v33, %s14565_s15  ;;  %v14038_v55 = vpop.eup %14037  ;;  %12955 = vmatmul.mubr.msk.f32.gmra.mxu1 %vm344_vm0, %v2011_v0  ;;  %v2012_v48 = vmul.f32 %v14036_v16, %v15481_v61  ;;  %v3353_v0 = vld [vmem:[#allocation2 + $0xf8] sm:$0xff] }
 0x3a6   : > { %12976 = vmatpush3.msra.mxu1 %v15212_v26  ;;  %12979 = vmatprep.mubr.msk.f32.mxu1 %vm344_vm0, %v2016_v20  ;;  %v14040_v27 = vpop.eup %14039  ;;  %v2013_v34 = vmul.f32 %v14038_v55, %v15475_v50  ;;  %v3344_v26 = vld [vmem:[#allocation2 + $0xb0] sm:$0xff] }
 0x3a7   : > { %12977 = vmatprep.subr.mxu1 %v15262_v3  ;;  %3736 = vrot.lane.b32.xlu1 %v15560_v11, %s14566_s16  ;;  %v2018_v61 = vmul.f32 %v14040_v27, %v15414_v31 }
 0x3a8   : > { %v14042_v36 = vpop.eup %14041  ;;  %12978 = vmatpush3.msra.mxu1 %v15262_v3  ;;  %12965 = vmatprep.mubr.msk.f32.mxu0 %vm344_vm0, %v2012_v48  ;;  %v14461_v48 = vld [vmem:[#allocation2 + $0x20] sm:$0xff] }
 0x3a9   : > { %12999 = vmatprep.subr.mxu1 %v15297_v44  ;;  %3980 = vrot.lane.b32.xlu0 %v3344_v26, %s14566_s16  ;;  %v14044_v56 = vpop.eup %14043  ;;  %v2014_v3 = vmul.f32 %v14042_v36, %v15489_v41 }
 0x3aa   : > { %12966 = vmatmul.mubr.msk.f32.vlgmr.msra.gmra.mxu0 %vm344_vm0, %v2013_v34  ;;  %12980 = vmatmul.mubr.msk.f32.vlgmr.msra.gmra.mxu1 %vm344_vm0, %v2017_v49  ;;  %v14046_v50 = vpop.eup %14045  ;;  %v2019_v29 = vmul.f32 %v14044_v56, %v15408_v40  ;;  %v18500_v40 = vld [vmem:[#allocation5_spill] sm:$0xff]  ;;  %v18506_v56 = vld [vmem:[#allocation26_spill] sm:$0xff] }
 0x3ab   : > { %12986 = vmatpush3.msra.mxu0 %v15236_v43  ;;  %13000 = vmatpush3.msra.mxu1 %v15297_v44  ;;  %v14048_v31 = vpop.eup %14047  ;;  %v3346_v44 = vld [vmem:[#allocation2 + $0xc0] sm:$0xff]  ;;  %v2015_v41 = vmul.f32 %v14046_v50, %v15483_v14 }
 0x3ac   : > { %12982 = vmatprep.mubr.msk.f32.mxu1 %vm344_vm0, %v2018_v61  ;;  %12987 = vmatprep.subr.mxu0 %v15276_v21  ;;  %v14050_v43 = vpop.eup %14049  ;;  %v18510_v50 = vld [vmem:[#allocation12_spill] sm:$0xff] }
 0x3ad   : > { %13001 = vmatprep.subr.mxu1 %v15288_v38  ;;  %3990 = vrot.lane.b32.xlu1 %v15698_v9, %s14565_s15  ;;  %v2020_v63 = vmul.f32 %v14050_v43, %v15497_v7 }
 0x3ae   : > { %12988 = vmatpush3.msra.mxu0 %v15276_v21  ;;  %13002 = vmatpush3.msra.mxu1 %v15288_v38  ;;  %v14052_v21 = vpop.eup %14051  ;;  %v2024_v38 = vmul.f32 %v14048_v31, %v15442_v59  ;;  %v18511_v31 = vld [vmem:[#allocation14_spill] sm:$0xff] }
 0x3af   : > { %12968 = vmatprep.mubr.msk.f32.mxu0 %vm344_vm0, %v2014_v3  ;;  %12989 = vmatprep.subr.mxu0 %v15250_v57  ;;  %v14054_v14 = vpop.eup %14053  ;;  %v2021_v17 = vmul.f32 %v14052_v21, %v15491_v5  ;;  %v18502_v5 = vld [vmem:[#allocation6_spill] sm:$0xff]  ;;  %v18509_v3 = vld [vmem:[#allocation13_spill] sm:$0xff] }
 0x3b0   : > { %13003 = vmatprep.subr.mxu1 %v15303_v60  ;;  %4105 = vrot.lane.b32.xlu0 %v3346_v44, %s14565_s15  ;;  %v14056_v18 = vpop.eup %14055 }
 0x3b1   : > { %12969 = vmatmul.mubr.msk.f32.gmra.mxu0 %vm344_vm0, %v2015_v41  ;;  %12983 = vmatmul.mubr.msk.f32.gmra.mxu1 %vm344_vm0, %v2019_v29  ;;  %v14058_v59 = vpop.eup %14057  ;;  %v2026_v7 = vmul.f32 %v14056_v18, %v15452_v39  ;;  %v2936_v39 = vld [vmem:[%s18446_s2] sm:$0xff] }
 0x3b2   : > { %12990 = vmatpush3.msra.mxu0 %v15250_v57  ;;  %13004 = vmatpush3.msra.mxu1 %v15303_v60  ;;  %v2025_v57 = vmul.f32 %v14054_v14, %v15438_v25  ;;  %v18501_v60 = vld [vmem:[#allocation7_spill] sm:$0xff]  ;;  %v15737_v25 = vld [vmem:[#allocation2 + $0xe8] sm:$0xff]  ;;  %v2027_v13 = vmul.f32 %v14058_v59, %v15448_v62 }
 0x3b3   : > { %12991 = vmatprep.subr.mxu0 %v18499_v28  ;;  %13005 = vmatprep.subr.mxu1 %v18500_v40  ;;  %v3349_v62 = vld [vmem:[#allocation2 + $0xd8] sm:$0xff] }
 0x3b4   : > { %13007 = vmatprep.mubr.msk.f32.mxu1 %vm344_vm0, %v2024_v38  ;;  %3740 = vrot.lane.b32.xlu1 %v15617_v32, %s14566_s16  ;;  %v18512_v38 = vld [vmem:[#allocation28_spill] sm:$0xff] }
 0x3b5   : > { %12992 = vmatpush3.msra.mxu0 %v18499_v28  ;;  %13006 = vmatpush3.msra.mxu1 %v18500_v40 }
 0x3b6   : > { %12993 = vmatprep.mubr.msk.f32.mxu0 %vm344_vm0, %v2020_v63  ;;  %13013 = vmatprep.subr.mxu0 %v18501_v60 }
 0x3b7   : > { %4097 = vrot.lane.b32.xlu0 %v3346_v44, %s14566_s16  ;;  %12994 = vmatmul.mubr.msk.f32.vlgmr.msra.gmra.mxu0 %vm344_vm0, %v2021_v17  ;;  %v14463_v44 = vld [vmem:[#allocation2 + $0x8] sm:$0xff] }
 0x3b8   : > { %13008 = vmatmul.mubr.msk.f32.vlgmr.msra.gmra.mxu1 %vm344_vm0, %v2025_v57  ;;  %13014 = vmatpush3.msra.mxu0 %v18501_v60  ;;  %v18513_v60 = vld [vmem:[#allocation29_spill] sm:$0xff] }
 0x3b9   : > { %13010 = vmatprep.mubr.msk.f32.mxu1 %vm344_vm0, %v2026_v7  ;;  %13015 = vmatprep.subr.mxu0 %v18502_v5  ;;  %v18514_v7 = vld [vmem:[#allocation27_spill] sm:$0xff] }
 0x3ba   : > { %3988 = vrot.lane.b32.xlu1 %v3344_v26, %s14565_s15  ;;  %13016 = vmatpush3.msra.mxu0 %v18502_v5 }
 0x3bb   : > { %13017 = vmatprep.subr.mxu0 %v18503_v6  ;;  %4228 = vrot.lane.b32.xlu0 %v15737_v25, %s14565_s15 }
 0x3bc   : > { %13011 = vmatmul.mubr.msk.f32.gmra.mxu1 %vm344_vm0, %v2027_v13  ;;  %13018 = vmatpush3.msra.mxu0 %v18503_v6  ;;  %v18516_v13 = vld [vmem:[#allocation17_spill] sm:$0xff]  ;;  %v18518_v6 = vld [vmem:[#allocation16_spill] sm:$0xff] }
 0x3bd   : > { %13019 = vmatprep.subr.mxu0 %v18504_v35  ;;  %13027 = vmatprep.subr.mxu1 %v2936_v39 }
 0x3be   : > { %3857 = vrot.lane.b32.xlu1 %v15587_v4, %s14566_s16  ;;  %13020 = vmatpush3.msra.mxu0 %v18504_v35 }
 0x3bf   : > { %13077 = vmatprep.subr.msk.mxu0 %vm787_vm2, %v18505_v19  ;;  %4103 = vrot.lane.b32.xlu0 %v3349_v62, %s14566_s16 }
 0x3c0   : > { %13028 = vmatpush3.msra.mxu1 %v2936_v39 }
 0x3c2   : > { %4111 = vrot.lane.b32.xlu1 %v3349_v62, %s14565_s15  ;;  %v18519_v62 = vld [vmem:[#allocation20_spill] sm:$0xff] }
 0x3c3   : > { %4218 = vrot.lane.b32.xlu0 %v3350_v42, %s14566_s16 }
 0x3c6   : > { %3861 = vrot.lane.b32.xlu1 %v15643_v30, %s14566_s16 }
 0x3c7   : > { %4222 = vrot.lane.b32.xlu0 %v3352_v8, %s14566_s16 }
 0x3ca   : > { %4109 = vrot.lane.b32.xlu1 %v3348_v54, %s14565_s15 }
 0x3cb   : > { %4691 = vrot.lane.b32.xlu0 %v14459_v53, %s14567_s12 }
 0x3ce   : > { %v1940_v15 = vpop.xlane.xlu1 %1939  ;;  %3978 = vrot.lane.b32.xlu1 %v15625_v24, %s14566_s16  ;;  %v14060_v24 = vpop.eup %14059 }
 0x3cf   : > { %14061 = vrcp.f32 %v1940_v15  ;;  %4687 = vrot.lane.b32.xlu0 %v14460_v2, %s14567_s12  ;;  %v18522_v15 = vld [vmem:[#allocation21_spill] sm:$0xff] }
 0x3d2   : > { %v1958_v16 = vpop.xlane.xlu1 %1957  ;;  %4232 = vrot.lane.b32.xlu1 %v3353_v0, %s14565_s15 }
 0x3d3   : > { %14063 = vrcp.f32 %v1958_v16  ;;  %v1961_v20 = vpop.xlane.xlu0 %1960  ;;  %4800 = vrot.lane.b32.xlu0 %v15529_v1, %s14567_s12  ;;  %v2023_v1 = vmul.f32 %v14060_v24, %v15499_v22  ;;  %v18523_v16 = vld [vmem:[#allocation22_spill] sm:$0xff] }
 0x3d4   : > { %14065 = vrcp.f32 %v1961_v20 }
 0x3d6   : > { %3982 = vrot.lane.b32.xlu1 %v15698_v9, %s14566_s16  ;;  %v3497_v21 = vpop.permute.xlu1 %3496 }
 0x3d7   : > { %v1967_v55 = vpop.xlane.xlu0 %1966  ;;  %4796 = vrot.lane.b32.xlu0 %v14461_v48, %s14567_s12  ;;  %v18525_v48 = vld [vmem:[#allocation24_spill] sm:$0xff] }
 0x3d8   : > { %14067 = vrcp.f32 %v1967_v55  ;;  %v18524_v55 = vld [vmem:[#allocation25_spill] sm:$0xff] }
 0x3da   : > { %4230 = vrot.lane.b32.xlu1 %v3352_v8, %s14565_s15 }
 0x3db   : > { %v15772_v27 = vpop.permute.xlu0 %3623  ;;  %4909 = vrot.lane.b32.xlu0 %v15566_v37, %s14567_s12 }
 0x3dc   : > { %v14062_v36 = vpop.eup %14061 }
 0x3dd   : > { %v2022_v49 = vmul.f32 %v14062_v36, %v15513_v52 }
 0x3de   : > { %4099 = vrot.lane.b32.xlu1 %v15667_v33, %s14566_s16  ;;  %v18508_v33 = vld [vmem:[#allocation30_spill] sm:$0xff] }
 0x3df   : > { %12996 = vmatprep.mubr.msk.f32.mxu0 %vm344_vm0, %v2022_v49  ;;  %v15781_v34 = vpop.permute.xlu0 %3621  ;;  %4905 = vrot.lane.b32.xlu0 %v15546_v10, %s14567_s12  ;;  %v18507_v10 = vld [vmem:[#allocation10_spill] sm:$0xff] }
 0x3e0   : > { %v14064_v26 = vpop.eup %14063  ;;  %12997 = vmatmul.mubr.msk.f32.gmra.mxu0 %vm344_vm0, %v2023_v1 }
 0x3e1   : > { %v14066_v61 = vpop.eup %14065  ;;  %v2028_v37 = vmul.f32 %v14064_v26, %v15517_v23 }
 0x3e2   : > { %v2029_v52 = vmul.f32 %v14066_v61, %v18506_v56  ;;  %4101 = vrot.lane.b32.xlu1 %v3348_v54, %s14566_s16 }
 0x3e3   : > { %13021 = vmatprep.mubr.msk.f32.mxu0 %vm344_vm0, %v2028_v37  ;;  %v15790_v22 = vpop.permute.xlu0 %3613  ;;  %5018 = vrot.lane.b32.xlu0 %v15596_v45, %s14567_s12 }
 0x3e4   : > { %13022 = vmatmul.mubr.msk.f32.vlgmr.msra.gmra.mxu0 %vm344_vm0, %v2029_v52 }
 0x3e5   : > { %13078 = vmatpush3.xpose.msk.msra.mxu0 %vm787_vm2, %v18505_v19  ;;  %v14068_v17 = vpop.eup %14067  ;;  %v18520_v19 = vld [vmem:[#allocation23_spill] sm:$0xff] }
 0x3e6   : > { %13079 = vmatprep.subr.msk.mxu0 %vm787_vm2, %v18507_v10  ;;  %4226 = vrot.lane.b32.xlu1 %v3350_v42, %s14565_s15  ;;  %v2031_v5 = vmul.f32 %v14068_v17, %v18514_v7  ;;  %v18521_v42 = vld [vmem:[#allocation19_spill] sm:$0xff] }
 0x3e7   : > { %v15800_v23 = vpop.permute.xlu0 %3615  ;;  %5014 = vrot.lane.b32.xlu0 %v18508_v33, %s14567_s12 }
 0x3e9   : > { %13080 = vmatpush3.xpose.msk.msra.mxu0 %vm787_vm2, %v18507_v10 }
 0x3ea   : > { %13081 = vmatprep.subr.msk.mxu0 %vm787_vm2, %v18509_v3  ;;  %4220 = vrot.lane.b32.xlu1 %v15737_v25, %s14566_s16 }
 0x3eb   : > { %v15810_v45 = vpop.permute.xlu0 %3744  ;;  %5127 = vrot.lane.b32.xlu0 %v15637_v12, %s14567_s12  ;;  %v14462_v12 = vld [vmem:[#allocation2 + $0x18] sm:$0xff] }
 0x3ed   : > { %13082 = vmatpush3.xpose.msk.msra.mxu0 %vm787_vm2, %v18509_v3 }
 0x3ee   : > { %13083 = vmatprep.subr.msk.mxu0 %vm787_vm2, %v18510_v50  ;;  %4224 = vrot.lane.b32.xlu1 %v3353_v0, %s14566_s16  ;;  %s14572_s16 = smov 72  }
 0x3ef   : > { %v15819_v9 = vpop.permute.xlu0 %3617  ;;  %5123 = vrot.lane.b32.xlu0 %v15602_v51, %s14567_s12  ;;  %v14464_v51 = vld [vmem:[#allocation2 + $0x28] sm:$0xff] }
 0x3f1   : > { %13084 = vmatpush3.xpose.msk.msra.mxu0 %vm787_vm2, %v18510_v50 }
 0x3f2   : > { %13091 = vmatprep.subr.msk.mxu0 %vm787_vm2, %v18511_v31  ;;  %4693 = vrot.lane.b32.xlu1 %v14462_v12, %s14567_s12 }
 0x3f3   : > { %v15828_v43 = vpop.permute.xlu0 %3742 }
 0x3f6   : > { %4689 = vrot.lane.b32.xlu1 %v14463_v44, %s14567_s12 }
 0x3f7   : > { %v15833_v41 = vpop.permute.xlu0 %3734 }
 0x3fa   : > { %4802 = vrot.lane.b32.xlu1 %v15608_v58, %s14567_s12 }
 0x3fb   : > { %v3866_v29 = vpop.permute.xlu0 %3865 }
 0x3fe   : > { %4798 = vrot.lane.b32.xlu1 %v14464_v51, %s14567_s12 }
 0x3ff   : > { %v15840_v63 = vpop.permute.xlu0 %3738 }
 0x402   : > { %4911 = vrot.lane.b32.xlu1 %v15652_v46, %s14567_s12 }
 0x403   : > { %v3864_v28 = vpop.permute.xlu0 %3863 }
 0x406   : > { %4907 = vrot.lane.b32.xlu1 %v18512_v38, %s14567_s12 }
 0x407   : > { %v1964_v14 = vpop.xlane.xlu1 %1963  ;;  %v15848_v18 = vpop.permute.xlu0 %3855 }
 0x408   : > { %14069 = vrcp.f32 %v1964_v14 }
 0x40a   : > { %5020 = vrot.lane.b32.xlu1 %v15617_v32, %s14567_s12 }
 0x40b   : > { %v3499_v58 = vpop.permute.xlu1 %3498 }
 0x40e   : > { %5016 = vrot.lane.b32.xlu1 %v15560_v11, %s14567_s12  ;;  %v15860_v11 = vpop.permute.xlu0 %3986 }
 0x40f   : > { %v15846_v40 = vpop.permute.xlu1 %3748 }
 0x412   : > { %5129 = vrot.lane.b32.xlu1 %v15643_v30, %s14567_s12  ;;  %v18515_v30 = vld [vmem:[#allocation15_spill] sm:$0xff]  ;;  %v15871_v39 = vpop.permute.xlu0 %3859 }
 0x413   : > { %v15852_v46 = vpop.permute.xlu1 %3746 }
 0x415   : > { %v14070_v57 = vpop.eup %14069 }
 0x416   : > { %v2030_v59 = vmul.f32 %v14070_v57, %v18513_v60  ;;  %5125 = vrot.lane.b32.xlu1 %v15587_v4, %s14567_s12  ;;  %v18517_v4 = vld [vmem:[#allocation18_spill] sm:$0xff]  ;;  %v15883_v47 = vpop.permute.xlu0 %3984  ;;  %v14568_v57 = vmov 0.0  }
 0x417   : > { %v3870_v32 = vpop.permute.xlu1 %3869  ;;  %700 = vst.msk [vmem:[#allocation3 + $0x8] sm:$0xff] %vm344_vm0, %v14568_v57  ;;  %699 = vst.msk [vmem:[#allocation3] sm:$0xff] %vm344_vm0, %v14568_v57 }
 0x418   : > { %13024 = vmatprep.mubr.msk.f32.mxu0 %vm344_vm0, %v2030_v59  ;;  %13133 = vmatprep.subr.msk.mxu1 %vm787_vm2, %v3870_v32  ;;  %701 = vst.msk [vmem:[#allocation3 + $0x10] sm:$0xff] %vm344_vm0, %v14568_v57  ;;  %702 = vst.msk [vmem:[#allocation3 + $0x18] sm:$0xff] %vm344_vm0, %v14568_v57 }
 0x419   : > { %13025 = vmatmul.mubr.msk.f32.gmra.mxu0 %vm344_vm0, %v2031_v5  ;;  %703 = vst.msk [vmem:[#allocation3 + $0x20] sm:$0xff] %vm344_vm0, %v14568_v57  ;;  %704 = vst.msk [vmem:[#allocation3 + $0x28] sm:$0xff] %vm344_vm0, %v14568_v57 }
 0x41a   : > { %13085 = vmatprep.mubr.msk.f32.mxu0 %vm787_vm2, %v18515_v30  ;;  %v3977_v0 = vpop.permute.xlu0 %3976  ;;  %705 = vst.msk [vmem:[#allocation3 + $0x30] sm:$0xff] %vm344_vm0, %v14568_v57  ;;  %706 = vst.msk [vmem:[#allocation3 + $0x38] sm:$0xff] %vm344_vm0, %v14568_v57 }
 0x41b   : > { %v3620_v25 = vpop.permute.xlu1 %3619  ;;  %707 = vst.msk [vmem:[#allocation3 + $0x40] sm:$0xff] %vm344_vm0, %v14568_v57  ;;  %708 = vst.msk [vmem:[#allocation3 + $0x48] sm:$0xff] %vm344_vm0, %v14568_v57 }
 0x41c   : > { %709 = vst.msk [vmem:[#allocation3 + $0x50] sm:$0xff] %vm344_vm0, %v14568_v57  ;;  %710 = vst.msk [vmem:[#allocation3 + $0x58] sm:$0xff] %vm344_vm0, %v14568_v57 }
 0x41d   : > { %13086 = vmatmul.mubr.msk.f32.vlgmr.msra.gmra.mxu0 %vm787_vm2, %v18516_v13  ;;  %711 = vst.msk [vmem:[#allocation3 + $0x60] sm:$0xff] %vm344_vm0, %v14568_v57  ;;  %712 = vst.msk [vmem:[#allocation3 + $0x68] sm:$0xff] %vm344_vm0, %v14568_v57 }
 0x41e   : > { %13092 = vmatpush3.xpose.msk.msra.mxu0 %vm787_vm2, %v18511_v31  ;;  %13088 = vmatprep.mubr.msk.f32.mxu0 %vm787_vm2, %v18517_v4  ;;  %v15906_v36 = vpop.permute.xlu0 %4107  ;;  %713 = vst.msk [vmem:[#allocation3 + $0x70] sm:$0xff] %vm344_vm0, %v14568_v57  ;;  %714 = vst.msk [vmem:[#allocation3 + $0x78] sm:$0xff] %vm344_vm0, %v14568_v57 }
 0x41f   : > { %13093 = vmatprep.subr.msk.mxu0 %vm787_vm2, %v18518_v6  ;;  %v3868_v35 = vpop.permute.xlu1 %3867  ;;  %715 = vst.msk [vmem:[#allocation3 + $0x80] sm:$0xff] %vm344_vm0, %v14568_v57  ;;  %716 = vst.msk [vmem:[#allocation3 + $0x88] sm:$0xff] %vm344_vm0, %v14568_v57 }
 0x420   : > { %717 = vst.msk [vmem:[#allocation3 + $0x90] sm:$0xff] %vm344_vm0, %v14568_v57  ;;  %718 = vst.msk [vmem:[#allocation3 + $0x98] sm:$0xff] %vm344_vm0, %v14568_v57 }
 0x421   : > { %13089 = vmatmul.mubr.msk.f32.gmra.mxu0 %vm787_vm2, %v18519_v62  ;;  %719 = vst.msk [vmem:[#allocation3 + $0xa0] sm:$0xff] %vm344_vm0, %v14568_v57  ;;  %720 = vst.msk [vmem:[#allocation3 + $0xa8] sm:$0xff] %vm344_vm0, %v14568_v57 }
 0x422   : > { %13094 = vmatpush3.xpose.msk.msra.mxu0 %vm787_vm2, %v18518_v6  ;;  %13099 = vmatprep.mubr.msk.f32.mxu0 %vm787_vm2, %v18520_v19  ;;  %v3981_v1 = vpop.permute.xlu0 %3980  ;;  %721 = vst.msk [vmem:[#allocation3 + $0xb0] sm:$0xff] %vm344_vm0, %v14568_v57  ;;  %722 = vst.msk [vmem:[#allocation3 + $0xb8] sm:$0xff] %vm344_vm0, %v14568_v57 }
 0x423   : > { %13095 = vmatprep.subr.msk.mxu0 %vm787_vm2, %v18521_v42  ;;  %v3737_v8 = vpop.permute.xlu1 %3736  ;;  %v12925_v54 = vpop.f32.mrf.mxu0  ;;  %723 = vst.msk [vmem:[#allocation3 + $0xc0] sm:$0xff] %vm344_vm0, %v14568_v57  ;;  %724 = vst.msk [vmem:[#allocation3 + $0xc8] sm:$0xff] %vm344_vm0, %v14568_v57 }
 0x424   : > { %725 = vst.msk [vmem:[#allocation3 + $0xd0] sm:$0xff] %vm344_vm0, %v14568_v57  ;;  %726 = vst.msk [vmem:[#allocation3 + $0xd8] sm:$0xff] %vm344_vm0, %v14568_v57 }
 0x425   : > { %v2122_v53 = vpop.f32.mrf.mxu0  ;;  %727 = vst.msk [vmem:[#allocation3 + $0xe0] sm:$0xff] %vm344_vm0, %v14568_v57  ;;  %728 = vst.msk [vmem:[#allocation3 + $0xe8] sm:$0xff] %vm344_vm0, %v14568_v57 }
 0x426   : > { %13096 = vmatpush3.xpose.msk.msra.mxu0 %vm787_vm2, %v18521_v42  ;;  %13029 = vmatprep.mubr.msk.f32.mxu1 %vm787_vm2, %v2122_v53  ;;  %v15934_v37 = vpop.permute.xlu0 %4105  ;;  %729 = vst.msk [vmem:[#allocation3 + $0xf0] sm:$0xff] %vm344_vm0, %v14568_v57  ;;  %730 = vst.msk [vmem:[#allocation3 + $0xf8] sm:$0xff] %vm344_vm0, %v14568_v57 }
 0x427   : > { %13097 = vmatprep.subr.msk.mxu0 %vm787_vm2, %v18522_v15  ;;  %v3991_v2 = vpop.permute.xlu1 %3990  ;;  %13030 = vmatmul.mubr.msk.f32.vlgmr.msra.gmra.mxu1 %vm787_vm2, %v12925_v54 }
 0x428   : > { %13134 = vmatpush3.xpose.msk.msra.mxu1 %vm787_vm2, %v3870_v32 }
 0x429   : > { %13135 = vmatprep.subr.msk.mxu1 %vm787_vm2, %v3868_v35 }
 0x42a   : > { %13098 = vmatpush3.xpose.msk.msra.mxu0 %vm787_vm2, %v18522_v15 }
 0x42b   : > { %13105 = vmatprep.subr.msk.mxu0 %vm787_vm2, %v18523_v16  ;;  %v3741_v20 = vpop.permute.xlu1 %3740 }
 0x42c   : > { %13136 = vmatpush3.xpose.msk.msra.mxu1 %vm787_vm2, %v3868_v35 }
 0x42d   : > { %13100 = vmatmul.mubr.msk.f32.vlgmr.msra.gmra.mxu0 %vm787_vm2, %v18524_v55  ;;  %13137 = vmatprep.subr.msk.mxu1 %vm787_vm2, %v3866_v29 }
 0x42e   : > { %13102 = vmatprep.mubr.msk.f32.mxu0 %vm787_vm2, %v3497_v21  ;;  %13106 = vmatpush3.xpose.msk.msra.mxu0 %vm787_vm2, %v18523_v16 }
 0x42f   : > { %13107 = vmatprep.subr.msk.mxu0 %vm787_vm2, %v18525_v48  ;;  %v3989_v24 = vpop.permute.xlu1 %3988 }
 0x430   : > { %13138 = vmatpush3.xpose.msk.msra.mxu1 %vm787_vm2, %v3866_v29 }
 0x431   : > { %13103 = vmatmul.mubr.msk.f32.gmra.mxu0 %vm787_vm2, %v3499_v58  ;;  %13139 = vmatprep.subr.msk.mxu1 %vm787_vm2, %v3864_v28 }
 0x432   : > { %13108 = vmatpush3.xpose.msk.msra.mxu0 %vm787_vm2, %v18525_v48  ;;  %13113 = vmatprep.mubr.msk.f32.mxu0 %vm787_vm2, %v15790_v22 }
 0x433   : > { %13109 = vmatprep.subr.msk.mxu0 %vm787_vm2, %v15772_v27  ;;  %v15917_v49 = vpop.permute.xlu1 %3857 }
 0x434   : > { %13140 = vmatpush3.xpose.msk.msra.mxu1 %vm787_vm2, %v3864_v28 }
 0x436   : > { %13110 = vmatpush3.xpose.msk.msra.mxu0 %vm787_vm2, %v15772_v27 }
 0x437   : > { %13111 = vmatprep.subr.msk.mxu0 %vm787_vm2, %v15781_v34  ;;  %v15924_v26 = vpop.permute.xlu1 %4111 }
 0x438   : > { %13161 = vmatprep.subr.msk.mxu1 %vm787_vm2, %v15924_v26 }
 0x43a   : > { %13112 = vmatpush3.xpose.msk.msra.mxu0 %vm787_vm2, %v15781_v34  ;;  %v15951_v34 = vpop.permute.xlu0 %4097 }
 0x43b   : > { %13119 = vmatprep.subr.msk.mxu0 %vm787_vm2, %v15846_v40  ;;  %v15932_v61 = vpop.permute.xlu1 %3861 }
 0x43d   : > { %13114 = vmatmul.mubr.msk.f32.vlgmr.msra.gmra.mxu0 %vm787_vm2, %v15800_v23 }
 0x43e   : > { %13116 = vmatprep.mubr.msk.f32.mxu0 %vm787_vm2, %v15819_v9  ;;  %13120 = vmatpush3.xpose.msk.msra.mxu0 %vm787_vm2, %v15846_v40  ;;  %v4229_v23 = vpop.permute.xlu0 %4228 }
 0x43f   : > { %13121 = vmatprep.subr.msk.mxu0 %vm787_vm2, %v15852_v46  ;;  %v15944_v27 = vpop.permute.xlu1 %4109 }
 0x441   : > { %13117 = vmatmul.mubr.msk.f32.gmra.mxu0 %vm787_vm2, %v3620_v25 }
 0x442   : > { %13122 = vmatpush3.xpose.msk.msra.mxu0 %vm787_vm2, %v15852_v46  ;;  %13127 = vmatprep.mubr.msk.f32.mxu0 %vm787_vm2, %v15833_v41  ;;  %v15968_v3 = vpop.permute.xlu0 %4103 }
 0x443   : > { %13123 = vmatprep.subr.msk.mxu0 %vm787_vm2, %v15810_v45  ;;  %v3979_v56 = vpop.permute.xlu1 %3978 }
 0x444   : > { %v12928_v52 = vpop.f32.mrf.mxu0 }
 0x446   : > { %13124 = vmatpush3.xpose.msk.msra.mxu0 %vm787_vm2, %v15810_v45  ;;  %v2132_v22 = vpop.f32.mrf.mxu0  ;;  %v4219_v12 = vpop.permute.xlu0 %4218 }
 0x447   : > { %13125 = vmatprep.subr.msk.mxu0 %vm787_vm2, %v15828_v43  ;;  %v4233_v10 = vpop.permute.xlu1 %4232  ;;  %13032 = vmatprep.mubr.msk.f32.mxu1 %vm787_vm2, %v2132_v22  ;;  %v11666_v22 = vld [vmem:[%s18448_s4 + $0x28] sm:$0xff] }
 0x448   : > { %13033 = vmatmul.mubr.msk.f32.gmra.mxu1 %vm787_vm2, %v12928_v52 }
 0x44a   : > { %13126 = vmatpush3.xpose.msk.msra.mxu0 %vm787_vm2, %v15828_v43  ;;  %v15990_v51 = vpop.permute.xlu0 %4222 }
 0x44b   : > { %13147 = vmatprep.subr.msk.mxu0 %vm787_vm2, %v3991_v2  ;;  %v3983_v33 = vpop.permute.xlu1 %3982 }
 0x44d   : > { %13128 = vmatmul.mubr.msk.f32.vlgmr.msra.gmra.mxu0 %vm787_vm2, %v3737_v8 }
 0x44e   : > { %13130 = vmatprep.mubr.msk.f32.mxu0 %vm787_vm2, %v15840_v63  ;;  %13148 = vmatpush3.xpose.msk.msra.mxu0 %vm787_vm2, %v3991_v2  ;;  %v15997_v38 = vpop.permute.xlu0 %4691 }
 0x44f   : > { %13149 = vmatprep.subr.msk.mxu0 %vm787_vm2, %v3989_v24  ;;  %v4231_v45 = vpop.permute.xlu1 %4230 }
 0x450   : > { %v12939_v50 = vpop.f32.mrf.mxu0 }
 0x451   : > { %13131 = vmatmul.mubr.msk.f32.gmra.mxu0 %vm787_vm2, %v3741_v20 }
 0x452   : > { %13150 = vmatpush3.xpose.msk.msra.mxu0 %vm787_vm2, %v3989_v24  ;;  %13155 = vmatprep.mubr.msk.f32.mxu0 %vm787_vm2, %v3977_v0  ;;  %v2231_v9 = vpop.f32.mrf.mxu0  ;;  %v16006_v40 = vpop.permute.xlu0 %4687 }
 0x453   : > { %13151 = vmatprep.subr.msk.mxu0 %vm787_vm2, %v15860_v11  ;;  %v15976_v31 = vpop.permute.xlu1 %4099  ;;  %13035 = vmatprep.mubr.msk.f32.mxu1 %vm787_vm2, %v2231_v9 }
 0x454   : > { %13036 = vmatmul.mubr.msk.f32.gmra.mxu1 %vm787_vm2, %v12939_v50 }
 0x455   : > { %v12942_v43 = vpop.f32.mrf.mxu0 }
 0x456   : > { %13152 = vmatpush3.xpose.msk.msra.mxu0 %vm787_vm2, %v15860_v11  ;;  %v16048_v32 = vpop.permute.xlu0 %4800 }
 0x457   : > { %13153 = vmatprep.subr.msk.mxu0 %vm787_vm2, %v15883_v47  ;;  %v15984_v44 = vpop.permute.xlu1 %4101  ;;  %v2241_v41 = vpop.f32.mrf.mxu0 }
 0x458   : > { %13038 = vmatprep.mubr.msk.f32.mxu1 %vm787_vm2, %v2241_v41 }
 0x459   : > { %13039 = vmatmul.mubr.msk.f32.gmra.mxu1 %vm787_vm2, %v12942_v43  ;;  %v3362_v43 = vld [vmem:[%s15118_s20 + $0x18] sm:$0xff] }
 0x45a   : > { %13154 = vmatpush3.xpose.msk.msra.mxu0 %vm787_vm2, %v15883_v47  ;;  %v16058_v13 = vpop.permute.xlu0 %4796 }
 0x45b   : > { %13175 = vmatprep.subr.msk.mxu0 %vm787_vm2, %v4233_v10  ;;  %v4227_v29 = vpop.permute.xlu1 %4226 }
 0x45d   : > { %13156 = vmatmul.mubr.msk.f32.vlgmr.msra.gmra.mxu0 %vm787_vm2, %v3979_v56 }
 0x45e   : > { %13158 = vmatprep.mubr.msk.f32.mxu0 %vm787_vm2, %v3981_v1  ;;  %13176 = vmatpush3.xpose.msk.msra.mxu0 %vm787_vm2, %v4233_v10  ;;  %v4910_v62 = vpop.permute.xlu0 %4909  ;;  %v3360_v10 = vld [vmem:[%s15118_s20 + $0x8] sm:$0xff] }
 0x45f   : > { %13177 = vmatprep.subr.msk.mxu0 %vm787_vm2, %v4231_v45  ;;  %v4221_v21 = vpop.permute.xlu1 %4220  ;;  %v16093_v50 = vadd.f32 %v11666_v22, %v3360_v10  ;;  %v2906_v10 = vld [vmem:[#allocation3 + $0x10] sm:$0xff] }
 0x460   : > { %v12953_v63 = vpop.f32.mrf.mxu1 }
 0x461   : > { %13159 = vmatmul.mubr.msk.f32.gmra.mxu0 %vm787_vm2, %v3983_v33  ;;  %v11665_v33 = vld [vmem:[%s18448_s4 + $0x20] sm:$0xff] }
 0x462   : > { %13178 = vmatpush3.xpose.msk.msra.mxu0 %vm787_vm2, %v4231_v45  ;;  %13183 = vmatprep.mubr.msk.f32.mxu0 %vm787_vm2, %v4219_v12  ;;  %v2340_v14 = vpop.f32.mrf.mxu1  ;;  %v4906_v53 = vpop.permute.xlu0 %4905  ;;  %v3359_v45 = vld [vmem:[%s15118_s20] sm:$0xff]  ;;  %v11668_v12 = vld [vmem:[%s18448_s4 + $0x38] sm:$0xff] }
 0x463   : > { %13179 = vmatprep.subr.msk.mxu0 %vm787_vm2, %v4229_v23  ;;  %v4225_v58 = vpop.permute.xlu1 %4224  ;;  %13041 = vmatprep.mubr.msk.f32.mxu1 %vm787_vm2, %v2340_v14  ;;  %v16100_v41 = vadd.f32 %v11665_v33, %v3359_v45  ;;  %v11667_v14 = vld [vmem:[%s18448_s4 + $0x30] sm:$0xff] }
 0x464   : > { %13042 = vmatmul.mubr.msk.f32.gmra.mxu1 %vm787_vm2, %v12953_v63 }
 0x465   : > { %v12956_v28 = vpop.f32.mrf.mxu1 }
 0x466   : > { %13180 = vmatpush3.xpose.msk.msra.mxu0 %vm787_vm2, %v4229_v23 }
 0x467   : > { %13181 = vmatprep.subr.msk.mxu0 %vm787_vm2, %v4227_v29  ;;  %v16009_v46 = vpop.permute.xlu1 %4693  ;;  %v2350_v17 = vpop.f32.mrf.mxu1 }
 0x468   : > { %13044 = vmatprep.mubr.msk.f32.mxu1 %vm787_vm2, %v2350_v17 }
 0x469   : > { %13045 = vmatmul.mubr.msk.f32.gmra.mxu1 %vm787_vm2, %v12956_v28 }
 0x46a   : > { %13182 = vmatpush3.xpose.msk.msra.mxu0 %vm787_vm2, %v4227_v29  ;;  %v12967_v60 = vpop.f32.mrf.mxu0  ;;  %v12981_v5 = vpop.f32.mrf.mxu1 }
 0x46b   : > { %v16046_v59 = vpop.permute.xlu1 %4689 }
 0x46c   : > { %v2449_v7 = vpop.f32.mrf.mxu0  ;;  %v2558_v30 = vpop.f32.mrf.mxu1 }
 0x46d   : > { %13184 = vmatmul.mubr.msk.f32.vlgmr.msra.gmra.mxu0 %vm787_vm2, %v4221_v21  ;;  %13047 = vmatprep.mubr.msk.f32.mxu1 %vm787_vm2, %v2449_v7  ;;  %v16108_v21 = vadd.f32 %v11668_v12, %v3362_v43 }
 0x46e   : > { %13186 = vmatprep.mubr.msk.f32.mxu0 %vm787_vm2, %v15990_v51  ;;  %13048 = vmatmul.mubr.msk.f32.gmra.mxu1 %vm787_vm2, %v12967_v60 }
 0x46f   : > { %v16055_v11 = vpop.permute.xlu1 %4802 }
 0x471   : > { %13187 = vmatmul.mubr.msk.f32.gmra.mxu0 %vm787_vm2, %v4225_v58  ;;  %v12970_v25 = vpop.f32.mrf.mxu0  ;;  %v12984_v35 = vpop.f32.mrf.mxu1  ;;  %v3361_v58 = vld [vmem:[%s15118_s20 + $0x10] sm:$0xff] }
 0x472   : > { %v16128_v60 = vadd.f32 %v11667_v14, %v3361_v58 }
 0x473   : > { %v2459_v4 = vpop.f32.mrf.mxu0  ;;  %v16061_v6 = vpop.permute.xlu1 %4798 }
 0x474   : > { %13050 = vmatprep.mubr.msk.f32.mxu1 %vm787_vm2, %v2459_v4  ;;  %v2568_v42 = vpop.f32.mrf.mxu1 }
 0x475   : > { %13051 = vmatmul.mubr.msk.f32.gmra.mxu1 %vm787_vm2, %v12970_v25  ;;  %v2904_v25 = vld [vmem:[#allocation3] sm:$0xff] }
 0x476   : > { %13053 = vmatprep.mubr.msk.f32.mxu1 %vm787_vm2, %v2558_v30 }
 0x477   : > { %v4912_v19 = vpop.permute.xlu1 %4911  ;;  %v12995_v8 = vpop.f32.mrf.mxu0 }
 0x478   : > { %13217 = vmatprep.subr.mxu0 %v4912_v19  ;;  %v13009_v16 = vpop.f32.mrf.mxu1 }
 0x479   : > { %13054 = vmatmul.mubr.msk.f32.gmra.mxu1 %vm787_vm2, %v12981_v5  ;;  %13218 = vmatpush3.msra.mxu0 %v4912_v19  ;;  %v2667_v47 = vpop.f32.mrf.mxu0 }
 0x47a   : > { %13056 = vmatprep.mubr.msk.f32.mxu1 %vm787_vm2, %v2568_v42  ;;  %13219 = vmatprep.subr.mxu0 %v4910_v62  ;;  %v2776_v20 = vpop.f32.mrf.mxu1 }
 0x47b   : > { %13220 = vmatpush3.msra.mxu0 %v4910_v62  ;;  %v4908_v54 = vpop.permute.xlu1 %4907 }
 0x47c   : > { %13221 = vmatprep.subr.mxu0 %v4908_v54  ;;  %v13012_v24 = vpop.f32.mrf.mxu1 }
 0x47d   : > { %13057 = vmatmul.mubr.msk.f32.gmra.mxu1 %vm787_vm2, %v12984_v35  ;;  %13222 = vmatpush3.msra.mxu0 %v4908_v54 }
 0x47e   : > { %13059 = vmatprep.mubr.msk.f32.mxu1 %vm787_vm2, %v2667_v47  ;;  %13223 = vmatprep.subr.mxu0 %v4906_v53  ;;  %v2786_v1 = vpop.f32.mrf.mxu1 }
 0x47f   : > { %13224 = vmatpush3.msra.mxu0 %v4906_v53  ;;  %v16069_v15 = vpop.permute.xlu1 %5020 }
 0x481   : > { %13060 = vmatmul.mubr.msk.f32.gmra.mxu1 %vm787_vm2, %v12995_v8 }
 0x483   : > { %v16072_v2 = vpop.permute.xlu1 %5016 }
 0x487   : > { %v16074_v0 = vpop.permute.xlu1 %5129 }
 0x488   : > { %13245 = vmatprep.subr.mxu0 %v16074_v0 }
 0x4a0   : > { %v12998_v55 = vpop.f32.mrf.mxu0 }
 0x4a2   : > { %v2677_v48 = vpop.f32.mrf.mxu0 }
 0x4a3   : > { %13062 = vmatprep.mubr.msk.f32.mxu1 %vm787_vm2, %v2677_v48 }
 0x4a4   : > { %13063 = vmatmul.mubr.msk.f32.gmra.mxu1 %vm787_vm2, %v12998_v55  ;;  %v13023_v56 = vpop.f32.mrf.mxu0 }
 0x4a5   : > { %13065 = vmatprep.mubr.msk.f32.mxu1 %vm787_vm2, %v2776_v20 }
 0x4a6   : > { %v2885_v52 = vpop.f32.mrf.mxu0 }
 0x4a8   : > { %13066 = vmatmul.mubr.msk.f32.gmra.mxu1 %vm787_vm2, %v13009_v16 }
 0x4a9   : > { %13068 = vmatprep.mubr.msk.f32.mxu1 %vm787_vm2, %v2786_v1 }
 0x4ac   : > { %13069 = vmatmul.mubr.msk.f32.gmra.mxu1 %vm787_vm2, %v13012_v24 }
 0x4ad   : > { %13071 = vmatprep.mubr.msk.f32.mxu1 %vm787_vm2, %v2885_v52  ;;  %v2907_v52 = vld [vmem:[#allocation3 + $0x18] sm:$0xff] }
 0x4b0   : > { %13072 = vmatmul.mubr.msk.f32.gmra.mxu1 %vm787_vm2, %v13023_v56 }
 0x4d9   : > { %v13026_v23 = vpop.f32.mrf.mxu0 }
 0x4db   : > { %v2895_v9 = vpop.f32.mrf.mxu0 }
 0x4dc   : > { %13074 = vmatprep.mubr.msk.f32.mxu1 %vm787_vm2, %v2895_v9 }
 0x4dd   : > { %13075 = vmatmul.mubr.msk.f32.gmra.mxu1 %vm787_vm2, %v13026_v23  ;;  %v13087_v51 = vpop.f32.mrf.mxu0 }
 0x4de   : > { %v16104_v29 = vadd.f32 %v13087_v51, %v16093_v50  ;;  %13141 = vmatprep.mubr.msk.f32.mxu1 %vm787_vm2, %v15848_v18 }
 0x4df   : > { %v3469_v63 = vpop.f32.mrf.mxu0 }
 0x4e0   : > { %v16115_v28 = vadd.f32 %v3469_v63, %v16100_v41  ;;  %v4338_v17 = vsel %vm344_vm0, %v16104_v29, -inf }
 0x4e1   : > { %4339 = vmax.xlane.f32.xlu1 %v4338_v17  ;;  %v13090_v57 = vpop.f32.mrf.mxu0  ;;  %13142 = vmatmul.mubr.msk.f32.vlgmr.msra.gmra.mxu1 %vm787_vm2, %v15917_v49 }
 0x4e2   : > { %v16122_v18 = vadd.f32 %v13090_v57, %v16108_v21  ;;  %13162 = vmatpush3.xpose.msk.msra.mxu1 %vm787_vm2, %v15924_v26  ;;  %13144 = vmatprep.mubr.msk.f32.mxu1 %vm787_vm2, %v15871_v39  ;;  %v4335_v7 = vsel %vm344_vm0, %v16115_v28, -inf  ;;  %v2905_v26 = vld [vmem:[#allocation3 + $0x8] sm:$0xff] }
 0x4e3   : > { %13163 = vmatprep.subr.msk.mxu1 %vm787_vm2, %v15944_v27  ;;  %v3479_v5 = vpop.f32.mrf.mxu0  ;;  %4336 = vmax.xlane.f32.xlu0 %v4335_v7  ;;  %v2909_v7 = vld [vmem:[#allocation3 + $0x28] sm:$0xff] }
 0x4e4   : > { %v16137_v49 = vadd.f32 %v3479_v5, %v16128_v60  ;;  %v4344_v39 = vsel %vm344_vm0, %v16122_v18, -inf }
 0x4e5   : > { %13145 = vmatmul.mubr.msk.f32.gmra.mxu1 %vm787_vm2, %v15932_v61 }
 0x4e6   : > { %13164 = vmatpush3.xpose.msk.msra.mxu1 %vm787_vm2, %v15944_v27  ;;  %13169 = vmatprep.mubr.msk.f32.mxu1 %vm787_vm2, %v15951_v34  ;;  %v4341_v27 = vsel %vm344_vm0, %v16137_v49, -inf }
 0x4e7   : > { %13165 = vmatprep.subr.msk.mxu1 %vm787_vm2, %v15906_v36  ;;  %4345 = vmax.xlane.f32.xlu0 %v4344_v39  ;;  %v13031_v30 = vpop.f32.mrf.mxu1 }
 0x4e8   : > { %v3259_v61 = vadd.f32 %v13031_v30, %v2905_v26  ;;  %v2908_v30 = vld [vmem:[#allocation3 + $0x20] sm:$0xff] }
 0x4e9   : > { %v3099_v4 = vpop.f32.mrf.mxu1 }
 0x4ea   : > { %13166 = vmatpush3.xpose.msk.msra.mxu1 %vm787_vm2, %v15906_v36  ;;  %3291 = vst.msk [vmem:[#allocation3 + $0x8] sm:$0xff] %vm344_vm0, %v3259_v61  ;;  %v3258_v34 = vadd.f32 %v3099_v4, %v2904_v25 }
 0x4eb   : > { %13167 = vmatprep.subr.msk.mxu1 %vm787_vm2, %v15934_v37  ;;  %4342 = vmax.xlane.f32.xlu0 %v4341_v27 }
 0x4ec   : > { %3290 = vst.msk [vmem:[#allocation3] sm:$0xff] %vm344_vm0, %v3258_v34  ;;  %v2911_v34 = vld [vmem:[#allocation3 + $0x38] sm:$0xff] }
 0x4ed   : > { %v13101_v35 = vpop.f32.mrf.mxu0 }
 0x4ee   : > { %v16156_v62 = vadd.f32 %v13101_v35, %v16093_v50  ;;  %13168 = vmatpush3.xpose.msk.msra.mxu1 %vm787_vm2, %v15934_v37 }
 0x4ef   : > { %v3590_v36 = vpop.f32.mrf.mxu0  ;;  %13189 = vmatprep.subr.mxu1 %v16009_v46 }
 0x4f0   : > { %v16162_v19 = vadd.f32 %v3590_v36, %v16100_v41  ;;  %v4350_v42 = vsel %vm344_vm0, %v16156_v62, -inf  ;;  %v2910_v36 = vld [vmem:[#allocation3 + $0x30] sm:$0xff] }
 0x4f1   : > { %4351 = vmax.xlane.f32.xlu0 %v4350_v42  ;;  %v13104_v8 = vpop.f32.mrf.mxu0  ;;  %13170 = vmatmul.mubr.msk.f32.vlgmr.msra.gmra.mxu1 %vm787_vm2, %v15976_v31 }
 0x4f2   : > { %v16169_v54 = vadd.f32 %v13104_v8, %v16108_v21  ;;  %13172 = vmatprep.mubr.msk.f32.mxu1 %vm787_vm2, %v15984_v44  ;;  %13190 = vmatpush3.msra.mxu1 %v16009_v46  ;;  %v4347_v37 = vsel %vm344_vm0, %v16162_v19, -inf }
 0x4f3   : > { %4348 = vmax.xlane.f32.xlu1 %v4347_v37  ;;  %v3600_v47 = vpop.f32.mrf.mxu0  ;;  %13191 = vmatprep.subr.mxu1 %v15997_v38 }
 0x4f4   : > { %v16178_v53 = vadd.f32 %v3600_v47, %v16128_v60  ;;  %13192 = vmatpush3.msra.mxu1 %v15997_v38  ;;  %v4356_v31 = vsel %vm344_vm0, %v16169_v54, -inf }
 0x4f5   : > { %4357 = vmax.xlane.f32.xlu0 %v4356_v31  ;;  %13173 = vmatmul.mubr.msk.f32.gmra.mxu1 %vm787_vm2, %v15968_v3 }
 0x4f6   : > { %13193 = vmatprep.subr.mxu1 %v16046_v59  ;;  %v4353_v44 = vsel %vm344_vm0, %v16178_v53, -inf }
 0x4f7   : > { %13194 = vmatpush3.msra.mxu1 %v16046_v59  ;;  %4354 = vmax.xlane.f32.xlu1 %v4353_v44 }
 0x4f8   : > { %13195 = vmatprep.subr.mxu1 %v16006_v40 }
 0x4f9   : > { %13196 = vmatpush3.msra.mxu1 %v16006_v40 }
 0x4fa   : > { %13203 = vmatprep.subr.mxu1 %v16055_v11 }
 0x4fd   : > { %v13115_v38 = vpop.f32.mrf.mxu0 }
 0x4fe   : > { %v16193_v46 = vadd.f32 %v13115_v38, %v16093_v50 }
 0x4ff   : > { %v3711_v16 = vpop.f32.mrf.mxu0 }
 0x500   : > { %v16196_v3 = vadd.f32 %v3711_v16, %v16100_v41  ;;  %v4362_v20 = vsel %vm344_vm0, %v16193_v46, -inf }
 0x501   : > { %4363 = vmax.xlane.f32.xlu0 %v4362_v20  ;;  %v13118_v59 = vpop.f32.mrf.mxu0 }
 0x502   : > { %v16201_v55 = vadd.f32 %v13118_v59, %v16108_v21  ;;  %v4359_v40 = vsel %vm344_vm0, %v16196_v3, -inf }
 0x503   : > { %4360 = vmax.xlane.f32.xlu1 %v4359_v40  ;;  %v3721_v48 = vpop.f32.mrf.mxu0 }
 0x504   : > { %v16206_v24 = vadd.f32 %v3721_v48, %v16128_v60  ;;  %v4368_v1 = vsel %vm344_vm0, %v16201_v55, -inf }
 0x505   : > { %4369 = vmax.xlane.f32.xlu0 %v4368_v1  ;;  %v2913_v1 = vld [vmem:[#allocation3 + $0x48] sm:$0xff] }
 0x506   : > { %v4365_v56 = vsel %vm344_vm0, %v16206_v24, -inf }
 0x507   : > { %4366 = vmax.xlane.f32.xlu1 %v4365_v56 }
 0x508   : > { %v13034_v22 = vpop.f32.mrf.mxu1 }
 0x509   : > { %v3261_v23 = vadd.f32 %v13034_v22, %v2907_v52 }
 0x50a   : > { %v3109_v33 = vpop.f32.mrf.mxu1 }
 0x50b   : > { %3293 = vst.msk [vmem:[#allocation3 + $0x18] sm:$0xff] %vm344_vm0, %v3261_v23  ;;  %v3260_v45 = vadd.f32 %v3109_v33, %v2906_v10  ;;  %v2912_v10 = vld [vmem:[#allocation3 + $0x40] sm:$0xff] }
 0x50d   : > { %3292 = vst.msk [vmem:[#allocation3 + $0x10] sm:$0xff] %vm344_vm0, %v3260_v45  ;;  %v13129_v9 = vpop.f32.mrf.mxu0 }
 0x50e   : > { %v16215_v12 = vadd.f32 %v13129_v9, %v16093_v50 }
 0x50f   : > { %v3832_v43 = vpop.f32.mrf.mxu0 }
 0x510   : > { %v16218_v51 = vadd.f32 %v3832_v43, %v16100_v41  ;;  %v4374_v63 = vsel %vm344_vm0, %v16215_v12, -inf  ;;  %v2915_v43 = vld [vmem:[#allocation3 + $0x58] sm:$0xff] }
 0x511   : > { %4375 = vmax.xlane.f32.xlu0 %v4374_v63  ;;  %v13132_v14 = vpop.f32.mrf.mxu0 }
 0x512   : > { %v16223_v58 = vadd.f32 %v13132_v14, %v16108_v21  ;;  %v4371_v17 = vsel %vm344_vm0, %v16218_v51, -inf  ;;  %v2914_v14 = vld [vmem:[#allocation3 + $0x50] sm:$0xff] }
 0x513   : > { %4372 = vmax.xlane.f32.xlu1 %v4371_v17  ;;  %v3842_v57 = vpop.f32.mrf.mxu0 }
 0x514   : > { %v16228_v5 = vadd.f32 %v3842_v57, %v16128_v60  ;;  %v4380_v39 = vsel %vm344_vm0, %v16223_v58, -inf  ;;  %v13037_v26 = vpop.f32.mrf.mxu1 }
 0x515   : > { %4381 = vmax.xlane.f32.xlu0 %v4380_v39  ;;  %v3263_v25 = vadd.f32 %v13037_v26, %v2909_v7  ;;  %v2917_v26 = vld [vmem:[#allocation3 + $0x68] sm:$0xff] }
 0x516   : > { %v4377_v61 = vsel %vm344_vm0, %v16228_v5, -inf  ;;  %v3119_v4 = vpop.f32.mrf.mxu1 }
 0x517   : > { %4378 = vmax.xlane.f32.xlu1 %v4377_v61  ;;  %3295 = vst.msk [vmem:[#allocation3 + $0x28] sm:$0xff] %vm344_vm0, %v3263_v25  ;;  %v3262_v27 = vadd.f32 %v3119_v4, %v2908_v30  ;;  %v2916_v4 = vld [vmem:[#allocation3 + $0x60] sm:$0xff] }
 0x519   : > { %3294 = vst.msk [vmem:[#allocation3 + $0x20] sm:$0xff] %vm344_vm0, %v3262_v27  ;;  %v13040_v35 = vpop.f32.mrf.mxu1 }
 0x51a   : > { %v3265_v42 = vadd.f32 %v13040_v35, %v2911_v34 }
 0x51b   : > { %v3129_v8 = vpop.f32.mrf.mxu1 }
 0x51c   : > { %3297 = vst.msk [vmem:[#allocation3 + $0x38] sm:$0xff] %vm344_vm0, %v3265_v42  ;;  %v3264_v37 = vadd.f32 %v3129_v8, %v2910_v36 }
 0x51d   : > { %v13157_v47 = vpop.f32.mrf.mxu0 }
 0x51e   : > { %v16238_v31 = vadd.f32 %v13157_v47, %v16093_v50  ;;  %3296 = vst.msk [vmem:[#allocation3 + $0x30] sm:$0xff] %vm344_vm0, %v3264_v37 }
 0x51f   : > { %v4074_v44 = vpop.f32.mrf.mxu0 }
 0x520   : > { %v16242_v38 = vadd.f32 %v4074_v44, %v16100_v41  ;;  %v4398_v16 = vsel %vm344_vm0, %v16238_v31, -inf }
 0x521   : > { %4399 = vmax.xlane.f32.xlu0 %v4398_v16  ;;  %v13160_v20 = vpop.f32.mrf.mxu0  ;;  %v2919_v16 = vld [vmem:[#allocation3 + $0x78] sm:$0xff] }
 0x522   : > { %v16247_v59 = vadd.f32 %v13160_v20, %v16108_v21  ;;  %v4395_v40 = vsel %vm344_vm0, %v16242_v38, -inf }
 0x523   : > { %4396 = vmax.xlane.f32.xlu1 %v4395_v40  ;;  %v4084_v48 = vpop.f32.mrf.mxu0 }
 0x524   : > { %v16252_v56 = vadd.f32 %v4084_v48, %v16128_v60  ;;  %v4404_v52 = vsel %vm344_vm0, %v16247_v59, -inf  ;;  %v13043_v22 = vpop.f32.mrf.mxu1 }
 0x525   : > { %4405 = vmax.xlane.f32.xlu0 %v4404_v52  ;;  %v3267_v23 = vadd.f32 %v13043_v22, %v2913_v1  ;;  %v2918_v1 = vld [vmem:[#allocation3 + $0x70] sm:$0xff] }
 0x526   : > { %v4401_v33 = vsel %vm344_vm0, %v16252_v56, -inf  ;;  %v3139_v45 = vpop.f32.mrf.mxu1 }
 0x527   : > { %4402 = vmax.xlane.f32.xlu1 %v4401_v33  ;;  %3299 = vst.msk [vmem:[#allocation3 + $0x48] sm:$0xff] %vm344_vm0, %v3267_v23  ;;  %v3266_v9 = vadd.f32 %v3139_v45, %v2912_v10  ;;  %v2921_v23 = vld [vmem:[#allocation3 + $0x88] sm:$0xff] }
 0x529   : > { %3298 = vst.msk [vmem:[#allocation3 + $0x40] sm:$0xff] %vm344_vm0, %v3266_v9  ;;  %v13046_v63 = vpop.f32.mrf.mxu1  ;;  %v2920_v9 = vld [vmem:[#allocation3 + $0x80] sm:$0xff] }
 0x52a   : > { %v3269_v17 = vadd.f32 %v13046_v63, %v2915_v43 }
 0x52b   : > { %v3149_v57 = vpop.f32.mrf.mxu1 }
 0x52c   : > { %3301 = vst.msk [vmem:[#allocation3 + $0x58] sm:$0xff] %vm344_vm0, %v3269_v17  ;;  %v3268_v7 = vadd.f32 %v3149_v57, %v2914_v14  ;;  %v2923_v14 = vld [vmem:[#allocation3 + $0x98] sm:$0xff] }
 0x52d   : > { %v13185_v39 = vpop.f32.mrf.mxu0 }
 0x52e   : > { %v16262_v30 = vadd.f32 %v13185_v39, %v16093_v50  ;;  %3300 = vst.msk [vmem:[#allocation3 + $0x50] sm:$0xff] %vm344_vm0, %v3268_v7  ;;  %v13049_v25 = vpop.f32.mrf.mxu1  ;;  %v2922_v7 = vld [vmem:[#allocation3 + $0x90] sm:$0xff] }
 0x52f   : > { %v4316_v61 = vpop.f32.mrf.mxu0  ;;  %v3271_v27 = vadd.f32 %v13049_v25, %v2917_v26  ;;  %v2925_v25 = vld [vmem:[#allocation3 + $0xa8] sm:$0xff] }
 0x530   : > { %v16266_v34 = vadd.f32 %v4316_v61, %v16100_v41  ;;  %v4422_v35 = vsel %vm344_vm0, %v16262_v30, -inf  ;;  %v3159_v36 = vpop.f32.mrf.mxu1 }
 0x531   : > { %4423 = vmax.xlane.f32.xlu0 %v4422_v35  ;;  %v13188_v42 = vpop.f32.mrf.mxu0  ;;  %3303 = vst.msk [vmem:[#allocation3 + $0x68] sm:$0xff] %vm344_vm0, %v3271_v27  ;;  %v3270_v8 = vadd.f32 %v3159_v36, %v2916_v4  ;;  %v2924_v27 = vld [vmem:[#allocation3 + $0xa0] sm:$0xff] }
 0x532   : > { %v16272_v37 = vadd.f32 %v13188_v42, %v16108_v21  ;;  %v4419_v47 = vsel %vm344_vm0, %v16266_v34, -inf }
 0x533   : > { %4420 = vmax.xlane.f32.xlu1 %v4419_v47  ;;  %v4326_v44 = vpop.f32.mrf.mxu0  ;;  %3302 = vst.msk [vmem:[#allocation3 + $0x60] sm:$0xff] %vm344_vm0, %v3270_v8  ;;  %v16292_v8 = vpop.permute.xlu0 %5018 }
 0x534   : > { %v16278_v20 = vadd.f32 %v4326_v44, %v16128_v60  ;;  %v4428_v40 = vsel %vm344_vm0, %v16272_v37, -inf }
 0x535   : > { %4429 = vmax.xlane.f32.xlu0 %v4428_v40  ;;  %v13052_v48 = vpop.f32.mrf.mxu1 }
 0x536   : > { %v4425_v52 = vsel %vm344_vm0, %v16278_v20, -inf  ;;  %v3273_v22 = vadd.f32 %v13052_v48, %v2919_v16  ;;  %v2927_v16 = vld [vmem:[#allocation3 + $0xb8] sm:$0xff]  ;;  %v2926_v48 = vld [vmem:[#allocation3 + $0xb0] sm:$0xff] }
 0x537   : > { %4426 = vmax.xlane.f32.xlu1 %v4425_v52  ;;  %v3169_v10 = vpop.f32.mrf.mxu1  ;;  %v16294_v47 = vpop.permute.xlu0 %5014 }
 0x538   : > { %3305 = vst.msk [vmem:[#allocation3 + $0x78] sm:$0xff] %vm344_vm0, %v3273_v22  ;;  %v3272_v33 = vadd.f32 %v3169_v10, %v2918_v1  ;;  %v16298_v52 = vpop.permute.xlu1 %5125  ;;  %v2929_v10 = vld [vmem:[#allocation3 + $0xc8] sm:$0xff] }
 0x539   : > { %v13055_v45 = vpop.f32.mrf.mxu1 }
 0x53a   : > { %3304 = vst.msk [vmem:[#allocation3 + $0x70] sm:$0xff] %vm344_vm0, %v3272_v33  ;;  %v3275_v43 = vadd.f32 %v13055_v45, %v2921_v23 }
 0x53b   : > { %v3179_v63 = vpop.f32.mrf.mxu1  ;;  %v16296_v44 = vpop.permute.xlu0 %5127 }
 0x53c   : > { %3307 = vst.msk [vmem:[#allocation3 + $0x88] sm:$0xff] %vm344_vm0, %v3275_v43  ;;  %v3274_v17 = vadd.f32 %v3179_v63, %v2920_v9  ;;  %v2928_v9 = vld [vmem:[#allocation3 + $0xc0] sm:$0xff] }
 0x53d   : > { %v13058_v57 = vpop.f32.mrf.mxu1 }
 0x53e   : > { %3306 = vst.msk [vmem:[#allocation3 + $0x80] sm:$0xff] %vm344_vm0, %v3274_v17  ;;  %v3277_v39 = vadd.f32 %v13058_v57, %v2923_v14  ;;  %v2931_v17 = vld [vmem:[#allocation3 + $0xd8] sm:$0xff] }
 0x53f   : > { %v3189_v26 = vpop.f32.mrf.mxu1  ;;  %v16301_v33 = vpop.permute.xlu0 %5123 }
 0x540   : > { %3309 = vst.msk [vmem:[#allocation3 + $0x98] sm:$0xff] %vm344_vm0, %v3277_v39  ;;  %v3276_v61 = vadd.f32 %v3189_v26, %v2922_v7 }
 0x541   : > { %v13061_v4 = vpop.f32.mrf.mxu1 }
 0x542   : > { %3308 = vst.msk [vmem:[#allocation3 + $0x90] sm:$0xff] %vm344_vm0, %v3276_v61  ;;  %v3279_v35 = vadd.f32 %v13061_v4, %v2925_v25  ;;  %v2930_v25 = vld [vmem:[#allocation3 + $0xd0] sm:$0xff] }
 0x543   : > { %v3199_v36 = vpop.f32.mrf.mxu1 }
 0x544   : > { %3311 = vst.msk [vmem:[#allocation3 + $0xa8] sm:$0xff] %vm344_vm0, %v3279_v35  ;;  %v3278_v42 = vadd.f32 %v3199_v36, %v2924_v27  ;;  %v2933_v36 = vld [vmem:[#allocation3 + $0xe8] sm:$0xff] }
 0x546   : > { %3310 = vst.msk [vmem:[#allocation3 + $0xa0] sm:$0xff] %vm344_vm0, %v3278_v42 }
 0x564   : > { %v13064_v40 = vpop.f32.mrf.mxu1 }
 0x565   : > { %v3281_v1 = vadd.f32 %v13064_v40, %v2927_v16 }
 0x566   : > { %v3209_v22 = vpop.f32.mrf.mxu1 }
 0x567   : > { %3313 = vst.msk [vmem:[#allocation3 + $0xb8] sm:$0xff] %vm344_vm0, %v3281_v1  ;;  %v3280_v23 = vadd.f32 %v3209_v22, %v2926_v48  ;;  %v2932_v1 = vld [vmem:[#allocation3 + $0xe0] sm:$0xff] }
 0x568   : > { %v13067_v45 = vpop.f32.mrf.mxu1 }
 0x569   : > { %3312 = vst.msk [vmem:[#allocation3 + $0xb0] sm:$0xff] %vm344_vm0, %v3280_v23  ;;  %v3283_v43 = vadd.f32 %v13067_v45, %v2929_v10 }
 0x56a   : > { %v3219_v63 = vpop.f32.mrf.mxu1  ;;  %v4340_v14 = vpop.xlane.xlu1 %4339 }
 0x56b   : > { %3315 = vst.msk [vmem:[#allocation3 + $0xc8] sm:$0xff] %vm344_vm0, %v3283_v43  ;;  %v3282_v57 = vadd.f32 %v3219_v63, %v2928_v9  ;;  %v4432_v7 = vsub.f32 %v16104_v29, %v4340_v14 }
 0x56c   : > { %v13070_v39 = vpop.f32.mrf.mxu1  ;;  %v4337_v26 = vpop.xlane.xlu0 %4336 }
 0x56d   : > { %3314 = vst.msk [vmem:[#allocation3 + $0xc0] sm:$0xff] %vm344_vm0, %v3282_v57  ;;  %v4465_v61 = vmul.f32 1.442695, %v4432_v7  ;;  %v3285_v4 = vadd.f32 %v13070_v39, %v2931_v17  ;;  %v4431_v27 = vsub.f32 %v16115_v28, %v4337_v26 }
 0x56e   : > { %v3229_v35 = vpop.f32.mrf.mxu1 }
 0x56f   : > { %14071 = vpow2.f32 %v4465_v61  ;;  %3317 = vst.msk [vmem:[#allocation3 + $0xd8] sm:$0xff] %vm344_vm0, %v3285_v4  ;;  %v4463_v42 = vmul.f32 1.442695, %v4431_v27  ;;  %v3284_v16 = vadd.f32 %v3229_v35, %v2930_v25 }
 0x570   : > { %v13073_v40 = vpop.f32.mrf.mxu1  ;;  %v4346_v48 = vpop.xlane.xlu0 %4345 }
 0x571   : > { %14073 = vpow2.f32 %v4463_v42  ;;  %3316 = vst.msk [vmem:[#allocation3 + $0xd0] sm:$0xff] %vm344_vm0, %v3284_v16  ;;  %v3287_v29 = vadd.f32 %v13073_v40, %v2933_v36  ;;  %v4434_v22 = vsub.f32 %v16122_v18, %v4346_v48 }
 0x572   : > { %v3239_v10 = vpop.f32.mrf.mxu1 }
 0x573   : > { %3319 = vst.msk [vmem:[#allocation3 + $0xe8] sm:$0xff] %vm344_vm0, %v3287_v29  ;;  %v4469_v28 = vmul.f32 1.442695, %v4434_v22  ;;  %v3286_v23 = vadd.f32 %v3239_v10, %v2932_v1 }
 0x574   : > { %v4343_v45 = vpop.xlane.xlu0 %4342 }
 0x575   : > { %14075 = vpow2.f32 %v4469_v28  ;;  %3318 = vst.msk [vmem:[#allocation3 + $0xe0] sm:$0xff] %vm344_vm0, %v3286_v23  ;;  %v4433_v9 = vsub.f32 %v16137_v49, %v4343_v45 }
 0x577   : > { %v4467_v43 = vmul.f32 1.442695, %v4433_v9 }
 0x579   : > { %14077 = vpow2.f32 %v4467_v43 }
 0x57a   : > { %v4352_v63 = vpop.xlane.xlu0 %4351 }
 0x57b   : > { %v4436_v14 = vsub.f32 %v16156_v62, %v4352_v63 }
 0x57c   : > { %v16315_v17 = vpop.eup %14071  ;;  %v4349_v57 = vpop.xlane.xlu1 %4348 }
 0x57d   : > { %v4473_v18 = vmul.f32 1.442695, %v4436_v14  ;;  %v4435_v7 = vsub.f32 %v16162_v19, %v4349_v57  ;;  %v4530_v39 = vsel %vm344_vm0, %v16315_v17, 0.0 }
 0x57e   : > { %v16320_v26 = vpop.eup %14073  ;;  %v4358_v25 = vpop.xlane.xlu0 %4357  ;;  %4531 = vadd.xlane.f32.xlu0 %v4530_v39  ;;  %v2935_v39 = vld [vmem:[#allocation3 + $0xf8] sm:$0xff] }
 0x57f   : > { %14079 = vpow2.f32 %v4473_v18  ;;  %v4471_v49 = vmul.f32 1.442695, %v4435_v7  ;;  %v4438_v61 = vsub.f32 %v16169_v54, %v4358_v25  ;;  %v4527_v62 = vsel %vm344_vm0, %v16320_v26, 0.0 }
 0x580   : > { %v4355_v4 = vpop.xlane.xlu1 %4354  ;;  %4528 = vadd.xlane.f32.xlu1 %v4527_v62  ;;  %v2934_v62 = vld [vmem:[#allocation3 + $0xf0] sm:$0xff] }
 0x581   : > { %14081 = vpow2.f32 %v4471_v49  ;;  %v4477_v27 = vmul.f32 1.442695, %v4438_v61  ;;  %v4437_v19 = vsub.f32 %v16178_v53, %v4355_v4 }
 0x582   : > { %v16326_v35 = vpop.eup %14075 }
 0x583   : > { %14083 = vpow2.f32 %v4477_v27  ;;  %v4475_v36 = vmul.f32 1.442695, %v4437_v19  ;;  %v4536_v42 = vsel %vm344_vm0, %v16326_v35, 0.0 }
 0x584   : > { %4537 = vadd.xlane.f32.xlu0 %v4536_v42 }
 0x585   : > { %14085 = vpow2.f32 %v4475_v36 }
 0x586   : > { %v16330_v16 = vpop.eup %14077 }
 0x587   : > { %v4533_v54 = vsel %vm344_vm0, %v16330_v16, 0.0 }
 0x588   : > { %4534 = vadd.xlane.f32.xlu1 %v4533_v54 }
 0x58a   : > { %v4364_v48 = vpop.xlane.xlu0 %4363 }
 0x58b   : > { %v4440_v28 = vsub.f32 %v16193_v46, %v4364_v48 }
 0x58c   : > { %v16334_v40 = vpop.eup %14079  ;;  %v4361_v29 = vpop.xlane.xlu1 %4360 }
 0x58d   : > { %v4542_v53 = vsel %vm344_vm0, %v16334_v40, 0.0  ;;  %v4439_v9 = vsub.f32 %v16196_v3, %v4361_v29  ;;  %v4481_v63 = vmul.f32 1.442695, %v4440_v28 }
 0x58e   : > { %v16338_v1 = vpop.eup %14081  ;;  %4543 = vadd.xlane.f32.xlu0 %v4542_v53  ;;  %v4370_v14 = vpop.xlane.xlu0 %4369 }
 0x58f   : > { %v4539_v22 = vsel %vm344_vm0, %v16338_v1, 0.0  ;;  %v4479_v57 = vmul.f32 1.442695, %v4439_v9  ;;  %14087 = vpow2.f32 %v4481_v63  ;;  %v4442_v46 = vsub.f32 %v16201_v55, %v4370_v14 }
 0x590   : > { %v16342_v10 = vpop.eup %14083  ;;  %4540 = vadd.xlane.f32.xlu1 %v4539_v22  ;;  %v4367_v18 = vpop.xlane.xlu1 %4366 }
 0x591   : > { %v4548_v23 = vsel %vm344_vm0, %v16342_v10, 0.0  ;;  %v4441_v7 = vsub.f32 %v16206_v24, %v4367_v18  ;;  %14089 = vpow2.f32 %v4479_v57  ;;  %v4485_v25 = vmul.f32 1.442695, %v4442_v46 }
 0x592   : > { %v16347_v45 = vpop.eup %14085  ;;  %4549 = vadd.xlane.f32.xlu0 %v4548_v23 }
 0x593   : > { %v4545_v43 = vsel %vm344_vm0, %v16347_v45, 0.0  ;;  %v4483_v49 = vmul.f32 1.442695, %v4441_v7  ;;  %14091 = vpow2.f32 %v4485_v25 }
 0x594   : > { %4546 = vadd.xlane.f32.xlu1 %v4545_v43 }
 0x595   : > { %14093 = vpow2.f32 %v4483_v49 }
 0x59a   : > { %v4376_v61 = vpop.xlane.xlu0 %4375 }
 0x59b   : > { %v4444_v36 = vsub.f32 %v16215_v12, %v4376_v61 }
 0x59c   : > { %v4373_v27 = vpop.xlane.xlu1 %4372  ;;  %v16366_v22 = vpop.eup %14087 }
 0x59d   : > { %v13076_v3 = vpop.f32.mrf.mxu1  ;;  %v4443_v24 = vsub.f32 %v16218_v51, %v4373_v27  ;;  %v4489_v53 = vmul.f32 1.442695, %v4444_v36  ;;  %v4554_v46 = vsel %vm344_vm0, %v16366_v22, 0.0 }
 0x59e   : > { %v3289_v4 = vadd.f32 %v13076_v3, %v2935_v39  ;;  %v4382_v28 = vpop.xlane.xlu0 %4381  ;;  %v16370_v43 = vpop.eup %14089 }
 0x59f   : > { %v3249_v19 = vpop.f32.mrf.mxu1  ;;  %v4487_v9 = vmul.f32 1.442695, %v4443_v24  ;;  %14095 = vpow2.f32 %v4489_v53  ;;  %v4446_v57 = vsub.f32 %v16223_v58, %v4382_v28  ;;  %v4551_v49 = vsel %vm344_vm0, %v16370_v43, 0.0 }
 0x5a0   : > { %3321 = vst.msk [vmem:[#allocation3 + $0xf8] sm:$0xff] %vm344_vm0, %v3289_v4  ;;  %v3288_v42 = vadd.f32 %v3249_v19, %v2934_v62  ;;  %v4379_v63 = vpop.xlane.xlu1 %4378  ;;  %v16387_v4 = vpop.eup %14091 }
 0x5a1   : > { %v13143_v55 = vpop.f32.mrf.mxu1  ;;  %14097 = vpow2.f32 %v4487_v9  ;;  %v4445_v7 = vsub.f32 %v16228_v5, %v4379_v63  ;;  %v4493_v61 = vmul.f32 1.442695, %v4446_v57 }
 0x5a2   : > { %3320 = vst.msk [vmem:[#allocation3 + $0xf0] sm:$0xff] %vm344_vm0, %v3288_v42  ;;  %v16359_v54 = vadd.f32 %v13143_v55, %v16093_v50  ;;  %v16389_v27 = vpop.eup %14093 }
 0x5a3   : > { %v3953_v48 = vpop.f32.mrf.mxu1  ;;  %v4491_v5 = vmul.f32 1.442695, %v4445_v7  ;;  %14099 = vpow2.f32 %v4493_v61 }
 0x5a4   : > { %v16362_v29 = vadd.f32 %v3953_v48, %v16100_v41  ;;  %v4386_v12 = vsel %vm344_vm0, %v16359_v54, -inf  ;;  %v4560_v48 = vsel %vm344_vm0, %v16387_v4, 0.0 }
 0x5a5   : > { %v13146_v23 = vpop.f32.mrf.mxu1  ;;  %4387 = vmax.xlane.f32.xlu0 %v4386_v12  ;;  %v4557_v12 = vsel %vm344_vm0, %v16389_v27, 0.0  ;;  %14101 = vpow2.f32 %v4491_v5 }
 0x5a6   : > { %v4383_v51 = vsel %vm344_vm0, %v16362_v29, -inf  ;;  %v16374_v18 = vadd.f32 %v13146_v23, %v16108_v21 }
 0x5a7   : > { %v3963_v14 = vpop.f32.mrf.mxu1  ;;  %4384 = vmax.xlane.f32.xlu1 %v4383_v51 }
 0x5a8   : > { %v16380_v39 = vadd.f32 %v3963_v14, %v16128_v60  ;;  %v4392_v62 = vsel %vm344_vm0, %v16374_v18, -inf }
 0x5a9   : > { %4555 = vadd.xlane.f32.xlu0 %v4554_v46 }
 0x5aa   : > { %v4400_v25 = vpop.xlane.xlu0 %4399  ;;  %v4389_v42 = vsel %vm344_vm0, %v16380_v39, -inf }
 0x5ab   : > { %4552 = vadd.xlane.f32.xlu1 %v4551_v49  ;;  %v4452_v58 = vsub.f32 %v16238_v31, %v4400_v25 }
 0x5ac   : > { %v4397_v3 = vpop.xlane.xlu1 %4396  ;;  %v16408_v14 = vpop.eup %14095 }
 0x5ad   : > { %4393 = vmax.xlane.f32.xlu0 %v4392_v62  ;;  %v4451_v19 = vsub.f32 %v16242_v38, %v4397_v3  ;;  %v4505_v55 = vmul.f32 1.442695, %v4452_v58  ;;  %v4566_v25 = vsel %vm344_vm0, %v16408_v14, 0.0 }
 0x5ae   : > { %v4406_v36 = vpop.xlane.xlu0 %4405 }
 0x5af   : > { %4390 = vmax.xlane.f32.xlu1 %v4389_v42  ;;  %v4454_v31 = vsub.f32 %v16247_v59, %v4406_v36  ;;  %v4503_v38 = vmul.f32 1.442695, %v4451_v19  ;;  %14103 = vpow2.f32 %v4505_v55 }
 0x5b0   : > { %v4403_v24 = vpop.xlane.xlu1 %4402 }
 0x5b1   : > { %v13171_v53 = vpop.f32.mrf.mxu1  ;;  %4561 = vadd.xlane.f32.xlu0 %v4560_v48  ;;  %v4453_v28 = vsub.f32 %v16252_v56, %v4403_v24  ;;  %v4509_v59 = vmul.f32 1.442695, %v4454_v31  ;;  %14105 = vpow2.f32 %v4503_v38  ;;  %v16412_v56 = vpop.eup %14097 }
 0x5b2   : > { %v16401_v23 = vadd.f32 %v13171_v53, %v16093_v50  ;;  %v4563_v58 = vsel %vm344_vm0, %v16412_v56, 0.0  ;;  %v16427_v5 = vpop.eup %14099 }
 0x5b3   : > { %v4195_v9 = vpop.f32.mrf.mxu1  ;;  %4558 = vadd.xlane.f32.xlu1 %v4557_v12  ;;  %v4507_v46 = vmul.f32 1.442695, %v4453_v28  ;;  %14107 = vpow2.f32 %v4509_v59  ;;  %v16432_v42 = vpop.eup %14101 }
 0x5b4   : > { %v16404_v51 = vadd.f32 %v4195_v9, %v16100_v41  ;;  %v4410_v63 = vsel %vm344_vm0, %v16401_v23, -inf  ;;  %v4569_v24 = vsel %vm344_vm0, %v16432_v42, 0.0 }
 0x5b5   : > { %v13174_v57 = vpop.f32.mrf.mxu1  ;;  %4411 = vmax.xlane.f32.xlu0 %v4410_v63  ;;  %14109 = vpow2.f32 %v4507_v46 }
 0x5b6   : > { %v4407_v50 = vsel %vm344_vm0, %v16404_v51, -inf  ;;  %v16415_v41 = vadd.f32 %v13174_v57, %v16108_v21 }
 0x5b7   : > { %v4205_v7 = vpop.f32.mrf.mxu1  ;;  %4408 = vmax.xlane.f32.xlu1 %v4407_v50 }
 0x5b8   : > { %v16420_v49 = vadd.f32 %v4205_v7, %v16128_v60  ;;  %v4416_v21 = vsel %vm344_vm0, %v16415_v41, -inf }
 0x5b9   : > { %4567 = vadd.xlane.f32.xlu0 %v4566_v25 }
 0x5ba   : > { %v4424_v61 = vpop.xlane.xlu0 %4423  ;;  %v4413_v60 = vsel %vm344_vm0, %v16420_v49, -inf }
 0x5bb   : > { %v4460_v3 = vsub.f32 %v16262_v30, %v4424_v61  ;;  %4564 = vadd.xlane.f32.xlu1 %v4563_v58  ;;  %v4572_v30 = vsel %vm344_vm0, %v16427_v5, 0.0 }
 0x5bc   : > { %v4421_v62 = vpop.xlane.xlu1 %4420  ;;  %v16436_v31 = vpop.eup %14103 }
 0x5bd   : > { %v4521_v19 = vmul.f32 1.442695, %v4460_v3  ;;  %v4459_v36 = vsub.f32 %v16266_v34, %v4421_v62  ;;  %4417 = vmax.xlane.f32.xlu0 %v4416_v21  ;;  %v4590_v48 = vsel %vm344_vm0, %v16436_v31, 0.0 }
 0x5be   : > { %v16440_v34 = vpop.eup %14105  ;;  %v16462_v50 = vpop.xlane.xlu0 %4429 }
 0x5bf   : > { %14111 = vpow2.f32 %v4521_v19  ;;  %v4519_v55 = vmul.f32 1.442695, %v4459_v36  ;;  %4414 = vmax.xlane.f32.xlu1 %v4413_v60  ;;  %v4587_v12 = vsel %vm344_vm0, %v16440_v34, 0.0 }
 0x5c0   : > { %v16444_v53 = vpop.eup %14107  ;;  %v16464_v7 = vpop.xlane.xlu1 %4426 }
 0x5c1   : > { %14113 = vpow2.f32 %v4519_v55  ;;  %4573 = vadd.xlane.f32.xlu0 %v4572_v30  ;;  %v4596_v28 = vsel %vm344_vm0, %v16444_v53, 0.0 }
 0x5c2   : > { %v16448_v38 = vpop.eup %14109 }
 0x5c3   : > { %4570 = vadd.xlane.f32.xlu1 %v4569_v24  ;;  %v4593_v9 = vsel %vm344_vm0, %v16448_v38, 0.0 }
 0x5c5   : > { %4591 = vadd.xlane.f32.xlu0 %v4590_v48 }
 0x5c7   : > { %4588 = vadd.xlane.f32.xlu1 %v4587_v12 }
 0x5c9   : > { %4597 = vadd.xlane.f32.xlu0 %v4596_v28 }
 0x5cb   : > { %4594 = vadd.xlane.f32.xlu1 %v4593_v9 }
 0x5cc   : > { %v16454_v59 = vpop.eup %14111 }
 0x5cd   : > { %v4614_v63 = vsel %vm344_vm0, %v16454_v59, 0.0 }
 0x5ce   : > { %v16458_v57 = vpop.eup %14113  ;;  %4615 = vadd.xlane.f32.xlu0 %v4614_v63 }
 0x5cf   : > { %v4611_v46 = vsel %vm344_vm0, %v16458_v57, 0.0 }
 0x5d0   : > { %4612 = vadd.xlane.f32.xlu1 %v4611_v46 }
 0x607   : > { %v4532_v25 = vpop.xlane.xlu0 %4531 }
 0x608   : > { %14115 = vrcp.f32 %v4532_v25 }
 0x609   : > { %v4529_v61 = vpop.xlane.xlu1 %4528 }
 0x60a   : > { %14117 = vrcp.f32 %v4529_v61 }
 0x60d   : > { %v4538_v58 = vpop.xlane.xlu0 %4537 }
 0x60e   : > { %14119 = vrcp.f32 %v4538_v58 }
 0x611   : > { %v4535_v3 = vpop.xlane.xlu1 %4534 }
 0x612   : > { %14121 = vrcp.f32 %v4535_v3 }
 0x615   : > { %v14116_v62 = vpop.eup %14115 }
 0x616   : > { %v4656_v60 = vmul.f32 %v14116_v62, %v16315_v17 }
 0x617   : > { %v14118_v21 = vpop.eup %14117  ;;  %v4544_v19 = vpop.xlane.xlu0 %4543 }
 0x618   : > { %v4655_v36 = vmul.f32 %v14118_v21, %v16320_v26  ;;  %14123 = vrcp.f32 %v4544_v19 }
 0x619   : > { %v4541_v55 = vpop.xlane.xlu1 %4540 }
 0x61a   : > { %14125 = vrcp.f32 %v4541_v55  ;;  %13197 = vmatprep.mubr.msk.f32.mxu1 %vm344_vm0, %v4655_v36 }
 0x61b   : > { %v4550_v30 = vpop.xlane.xlu0 %4549  ;;  %13198 = vmatmul.mubr.msk.f32.vlgmr.msra.gmra.mxu1 %vm344_vm0, %v4656_v60  ;;  %v14120_v48 = vpop.eup %14119 }
 0x61c   : > { %13204 = vmatpush3.msra.mxu1 %v16055_v11  ;;  %14127 = vrcp.f32 %v4550_v30  ;;  %v4658_v12 = vmul.f32 %v14120_v48, %v16326_v35 }
 0x61d   : > { %13205 = vmatprep.subr.mxu1 %v16048_v32  ;;  %v4547_v24 = vpop.xlane.xlu1 %4546 }
 0x61e   : > { %14129 = vrcp.f32 %v4547_v24  ;;  %13206 = vmatpush3.msra.mxu1 %v16048_v32  ;;  %v4462_v24 = vsub.f32 %v16272_v37, %v16462_v50  ;;  %v4461_v50 = vsub.f32 %v16278_v20, %v16464_v7 }
 0x61f   : > { %v14122_v26 = vpop.eup %14121  ;;  %13207 = vmatprep.subr.mxu1 %v16061_v6 }
 0x620   : > { %13208 = vmatpush3.msra.mxu1 %v16061_v6  ;;  %v4657_v17 = vmul.f32 %v14122_v26, %v16330_v16  ;;  %v4523_v7 = vmul.f32 1.442695, %v4461_v50  ;;  %v5982_v50 = vld [vmem:[#allocation2 + $0x28] sm:$0xff] }
 0x621   : > { %13209 = vmatprep.subr.mxu1 %v16058_v13 }
 0x622   : > { %13210 = vmatpush3.msra.mxu1 %v16058_v13  ;;  %13200 = vmatprep.mubr.msk.f32.mxu1 %vm344_vm0, %v4657_v17 }
 0x623   : > { %13231 = vmatprep.subr.mxu1 %v16069_v15  ;;  %13201 = vmatmul.mubr.msk.f32.gmra.mxu1 %vm344_vm0, %v4658_v12 }
 0x625   : > { %v14124_v32 = vpop.eup %14123 }
 0x626   : > { %v4660_v6 = vmul.f32 %v14124_v32, %v16334_v40 }
 0x627   : > { %v14126_v11 = vpop.eup %14125 }
 0x628   : > { %v4659_v28 = vmul.f32 %v14126_v11, %v16338_v1  ;;  %v4525_v11 = vmul.f32 1.442695, %v4462_v24  ;;  %v14472_v24 = vld [vmem:[#allocation2 + $0xf8] sm:$0xff] }
 0x629   : > { %v14128_v9 = vpop.eup %14127 }
 0x62a   : > { %13211 = vmatprep.mubr.msk.f32.mxu1 %vm344_vm0, %v4659_v28  ;;  %v4662_v35 = vmul.f32 %v14128_v9, %v16342_v10 }
 0x62b   : > { %v14130_v16 = vpop.eup %14129  ;;  %13212 = vmatmul.mubr.msk.f32.vlgmr.msra.gmra.mxu1 %vm344_vm0, %v4660_v6 }
 0x62c   : > { %13232 = vmatpush3.msra.mxu1 %v16069_v15  ;;  %v4661_v13 = vmul.f32 %v14130_v16, %v16347_v45 }
 0x62d   : > { %13233 = vmatprep.subr.mxu1 %v16292_v8 }
 0x62e   : > { %13234 = vmatpush3.msra.mxu1 %v16292_v8  ;;  %13214 = vmatprep.mubr.msk.f32.mxu1 %vm344_vm0, %v4661_v13  ;;  %v4388_v1 = vpop.xlane.xlu0 %4387 }
 0x62f   : > { %13235 = vmatprep.subr.mxu1 %v16072_v2  ;;  %v4448_v40 = vsub.f32 %v16359_v54, %v4388_v1  ;;  %13215 = vmatmul.mubr.msk.f32.gmra.mxu1 %vm344_vm0, %v4662_v35 }
 0x630   : > { %13236 = vmatpush3.msra.mxu1 %v16072_v2  ;;  %v4385_v15 = vpop.xlane.xlu1 %4384 }
 0x631   : > { %v4497_v63 = vmul.f32 1.442695, %v4448_v40  ;;  %13237 = vmatprep.subr.mxu1 %v16294_v47  ;;  %v4447_v45 = vsub.f32 %v16362_v29, %v4385_v15 }
 0x632   : > { %13238 = vmatpush3.msra.mxu1 %v16294_v47  ;;  %v4556_v8 = vpop.xlane.xlu0 %4555 }
 0x633   : > { %14131 = vpow2.f32 %v4497_v63  ;;  %v4495_v10 = vmul.f32 1.442695, %v4447_v45 }
 0x634   : > { %14133 = vrcp.f32 %v4556_v8  ;;  %v4553_v46 = vpop.xlane.xlu1 %4552 }
 0x635   : > { %14135 = vpow2.f32 %v4495_v10 }
 0x636   : > { %14137 = vrcp.f32 %v4553_v46  ;;  %v4394_v54 = vpop.xlane.xlu0 %4393 }
 0x637   : > { %v4450_v25 = vsub.f32 %v16374_v18, %v4394_v54 }
 0x638   : > { %v4391_v61 = vpop.xlane.xlu1 %4390 }
 0x639   : > { %v4501_v2 = vmul.f32 1.442695, %v4450_v25  ;;  %v4449_v58 = vsub.f32 %v16380_v39, %v4391_v61 }
 0x63a   : > { %v4562_v3 = vpop.xlane.xlu0 %4561 }
 0x63b   : > { %14139 = vpow2.f32 %v4501_v2  ;;  %v4499_v62 = vmul.f32 1.442695, %v4449_v58 }
 0x63c   : > { %14141 = vrcp.f32 %v4562_v3  ;;  %v4559_v29 = vpop.xlane.xlu1 %4558 }
 0x63d   : > { %14143 = vpow2.f32 %v4499_v62 }
 0x63e   : > { %14145 = vrcp.f32 %v4559_v29  ;;  %v4412_v47 = vpop.xlane.xlu0 %4411 }
 0x63f   : > { %v4456_v21 = vsub.f32 %v16401_v23, %v4412_v47 }
 0x640   : > { %v16502_v19 = vpop.eup %14131  ;;  %v4409_v36 = vpop.xlane.xlu1 %4408 }
 0x641   : > { %v14134_v60 = vpop.eup %14133  ;;  %v4513_v55 = vmul.f32 1.442695, %v4456_v21  ;;  %v4455_v18 = vsub.f32 %v16404_v51, %v4409_v36  ;;  %v4578_v39 = vsel %vm344_vm0, %v16502_v19, 0.0 }
 0x642   : > { %v16507_v30 = vpop.eup %14135  ;;  %4579 = vadd.xlane.f32.xlu0 %v4578_v39  ;;  %v4568_v48 = vpop.xlane.xlu0 %4567  ;;  %v4664_v32 = vmul.f32 %v14134_v60, %v16366_v22  ;;  %v14466_v60 = vld [vmem:[#allocation2 + $0xb0] sm:$0xff]  ;;  %v14470_v39 = vld [vmem:[#allocation2 + $0xc8] sm:$0xff] }
 0x643   : > { %v14138_v26 = vpop.eup %14137  ;;  %14147 = vpow2.f32 %v4513_v55  ;;  %v4511_v23 = vmul.f32 1.442695, %v4455_v18  ;;  %v4575_v17 = vsel %vm344_vm0, %v16507_v30, 0.0  ;;  %v14468_v55 = vld [vmem:[#allocation2 + $0xd8] sm:$0xff]  ;;  %v14469_v18 = vld [vmem:[#allocation2 + $0xa0] sm:$0xff] }
 0x644   : > { %14149 = vrcp.f32 %v4568_v48  ;;  %4576 = vadd.xlane.f32.xlu1 %v4575_v17  ;;  %v4565_v12 = vpop.xlane.xlu1 %4564  ;;  %v4663_v51 = vmul.f32 %v14138_v26, %v16370_v43  ;;  %v14473_v48 = vld [vmem:[#allocation2 + $0xc0] sm:$0xff]  ;;  %v14474_v26 = vld [vmem:[#allocation2 + $0xe8] sm:$0xff]  ;;  %v16585_v17 = vld [vmem:[#allocation2 + $0x18] sm:$0xff] }
 0x645   : > { %14151 = vpow2.f32 %v4511_v23  ;;  %v14475_v23 = vld [vmem:[#allocation2 + $0xf0] sm:$0xff] }
 0x646   : > { %14153 = vrcp.f32 %v4565_v12  ;;  %13225 = vmatprep.mubr.msk.f32.mxu0 %vm344_vm0, %v4663_v51  ;;  %v4418_v37 = vpop.xlane.xlu0 %4417  ;;  %v14476_v12 = vld [vmem:[#allocation2 + $0xe0] sm:$0xff]  ;;  %v5978_v51 = vld [vmem:[#allocation2 + $0x8] sm:$0xff] }
 0x647   : > { %v4458_v28 = vsub.f32 %v16415_v41, %v4418_v37  ;;  %13226 = vmatmul.mubr.msk.f32.vlgmr.msra.gmra.mxu0 %vm344_vm0, %v4664_v32  ;;  %14155 = vpow2.f32 %v4525_v11  ;;  %v16591_v32 = vld [vmem:[#allocation2 + $0x10] sm:$0xff]  ;;  %v5977_v11 = vld [vmem:[#allocation2] sm:$0xff]  ;;  %v5984_v37 = vld [vmem:[#allocation2 + $0x38] sm:$0xff] }
 0x648   : > { %v16520_v6 = vpop.eup %14139  ;;  %13246 = vmatpush3.msra.mxu0 %v16074_v0  ;;  %v4415_v43 = vpop.xlane.xlu1 %4414 }
 0x649   : > { %v14142_v9 = vpop.eup %14141  ;;  %v4517_v22 = vmul.f32 1.442695, %v4458_v28  ;;  %13247 = vmatprep.subr.mxu0 %v16296_v44  ;;  %v4457_v16 = vsub.f32 %v16420_v49, %v4415_v43  ;;  %v4584_v13 = vsel %vm344_vm0, %v16520_v6, 0.0  ;;  %v5983_v28 = vld [vmem:[#allocation2 + $0x30] sm:$0xff]  ;;  %v5981_v43 = vld [vmem:[#allocation2 + $0x20] sm:$0xff] }
 0x64a   : > { %v16527_v35 = vpop.eup %14143  ;;  %13248 = vmatpush3.msra.mxu0 %v16296_v44  ;;  %4585 = vadd.xlane.f32.xlu0 %v4584_v13  ;;  %v4574_v20 = vpop.xlane.xlu0 %4573  ;;  %v4666_v44 = vmul.f32 %v14142_v9, %v16387_v4  ;;  %v5988_v9 = vld [vmem:[#allocation2 + $0x58] sm:$0xff]  ;;  %v5985_v13 = vld [vmem:[#allocation2 + $0x40] sm:$0xff] }
 0x64b   : > { %v14146_v41 = vpop.eup %14145  ;;  %14157 = vpow2.f32 %v4517_v22  ;;  %v4515_v0 = vmul.f32 1.442695, %v4457_v16  ;;  %13249 = vmatprep.subr.mxu0 %v16298_v52  ;;  %v4581_v1 = vsel %vm344_vm0, %v16527_v35, 0.0  ;;  %v5986_v22 = vld [vmem:[#allocation2 + $0x48] sm:$0xff]  ;;  %v5987_v16 = vld [vmem:[#allocation2 + $0x50] sm:$0xff] }
 0x64c   : > { %14159 = vrcp.f32 %v4574_v20  ;;  %13250 = vmatpush3.msra.mxu0 %v16298_v52  ;;  %4582 = vadd.xlane.f32.xlu1 %v4581_v1  ;;  %v4571_v49 = vpop.xlane.xlu1 %4570  ;;  %v4665_v40 = vmul.f32 %v14146_v41, %v16389_v27  ;;  %v5992_v20 = vld [vmem:[#allocation2 + $0x78] sm:$0xff]  ;;  %v5990_v41 = vld [vmem:[#allocation2 + $0x68] sm:$0xff] }
 0x64d   : > { %14161 = vpow2.f32 %v4515_v0  ;;  %13251 = vmatprep.subr.mxu0 %v16301_v33  ;;  %v5996_v1 = vld [vmem:[#allocation2 + $0x98] sm:$0xff] }
 0x64e   : > { %13252 = vmatpush3.msra.mxu0 %v16301_v33  ;;  %14163 = vrcp.f32 %v4571_v49  ;;  %13228 = vmatprep.mubr.msk.f32.mxu0 %vm344_vm0, %v4665_v40  ;;  %v4592_v0 = vpop.xlane.xlu0 %4591  ;;  %v5989_v49 = vld [vmem:[#allocation2 + $0x60] sm:$0xff] }
 0x64f   : > { %14165 = vpow2.f32 %v4523_v7  ;;  %13229 = vmatmul.mubr.msk.f32.gmra.mxu0 %vm344_vm0, %v4666_v44  ;;  %v5991_v7 = vld [vmem:[#allocation2 + $0x70] sm:$0xff] }
 0x650   : > { %v16540_v15 = vpop.eup %14147  ;;  %v4589_v52 = vpop.xlane.xlu1 %4588 }
 0x651   : > { %v14150_v63 = vpop.eup %14149  ;;  %14167 = vrcp.f32 %v4589_v52  ;;  %v4602_v27 = vsel %vm344_vm0, %v16540_v15, 0.0  ;;  %v5995_v52 = vld [vmem:[#allocation2 + $0x90] sm:$0xff] }
 0x652   : > { %v16544_v45 = vpop.eup %14151  ;;  %4603 = vadd.xlane.f32.xlu0 %v4602_v27  ;;  %v4668_v10 = vmul.f32 %v14150_v63, %v16408_v14  ;;  %v16622_v40 = vpop.xlane.xlu0 %4597  ;;  %v5994_v27 = vld [vmem:[#allocation2 + $0x88] sm:$0xff] }
 0x653   : > { %v14154_v4 = vpop.eup %14153  ;;  %v4599_v33 = vsel %vm344_vm0, %v16544_v45, 0.0 }
 0x654   : > { %4600 = vadd.xlane.f32.xlu1 %v4599_v33  ;;  %v4667_v8 = vmul.f32 %v14154_v4, %v16412_v56  ;;  %v16551_v46 = vpop.eup %14155  ;;  %v4595_v44 = vpop.xlane.xlu1 %4594 }
 0x655   : > { %v4620_v62 = vsel %vm344_vm0, %v16551_v46, 0.0 }
 0x656   : > { %13239 = vmatprep.mubr.msk.f32.mxu1 %vm344_vm0, %v4667_v8  ;;  %v16632_v8 = vld [vmem:[#allocation2 + $0xb8] sm:$0xff] }
 0x657   : > { %13240 = vmatmul.mubr.msk.f32.vlgmr.msra.gmra.mxu1 %vm344_vm0, %v4668_v10  ;;  %v16627_v63 = vpop.xlane.xlu0 %4615 }
 0x658   : > { %v16554_v54 = vpop.eup %14157 }
 0x659   : > { %v14160_v25 = vpop.eup %14159  ;;  %v4608_v61 = vsel %vm344_vm0, %v16554_v54, 0.0  ;;  %v4613_v4 = vpop.xlane.xlu1 %4612 }
 0x65a   : > { %v16558_v2 = vpop.eup %14161  ;;  %4609 = vadd.xlane.f32.xlu0 %v4608_v61  ;;  %v4670_v29 = vmul.f32 %v14160_v25, %v16427_v5  ;;  %v14467_v5 = vld [vmem:[#allocation2 + $0xa8] sm:$0xff]  ;;  %v5993_v25 = vld [vmem:[#allocation2 + $0x80] sm:$0xff] }
 0x65b   : > { %v14164_v58 = vpop.eup %14163  ;;  %v4605_v56 = vsel %vm344_vm0, %v16558_v2, 0.0 }
 0x65c   : > { %v16562_v14 = vpop.eup %14165  ;;  %4606 = vadd.xlane.f32.xlu1 %v4605_v56  ;;  %v4669_v3 = vmul.f32 %v14164_v58, %v16432_v42  ;;  %v14465_v42 = vld [vmem:[#allocation2 + $0xb8] sm:$0xff]  ;;  %v5999_v58 = vld [vmem:[#allocation2 + $0xb0] sm:$0xff] }
 0x65d   : > { %v4617_v21 = vsel %vm344_vm0, %v16562_v14, 0.0 }
 0x65e   : > { %v14168_v47 = vpop.eup %14167  ;;  %13242 = vmatprep.mubr.msk.f32.mxu1 %vm344_vm0, %v4669_v3  ;;  %4621 = vadd.xlane.f32.xlu0 %v4620_v62  ;;  %v5998_v3 = vld [vmem:[#allocation2 + $0xa8] sm:$0xff] }
 0x65f   : > { %13243 = vmatmul.mubr.msk.f32.gmra.mxu1 %vm344_vm0, %v4670_v29  ;;  %v4675_v36 = vmul.f32 %v14168_v47, %v16440_v34  ;;  %v14471_v34 = vld [vmem:[#allocation2 + $0xd0] sm:$0xff]  ;;  %v16643_v47 = vld [vmem:[#allocation2 + $0xd8] sm:$0xff] }
 0x660   : > { %4618 = vadd.xlane.f32.xlu1 %v4617_v21 }
 0x661   : > { %13267 = vmatprep.mubr.msk.f32.mxu1 %vm344_vm0, %v4675_v36 }
 0x671   : > { %5238 = vrot.lane.b32.xlu1 %v14465_v42, %s14567_s12 }
 0x674   : > { %5236 = vrot.lane.b32.xlu0 %v14466_v60, %s14567_s12 }
 0x675   : > { %5234 = vrot.lane.b32.xlu1 %v14467_v5, %s14567_s12  ;;  %v5997_v5 = vld [vmem:[#allocation2 + $0xa0] sm:$0xff] }
 0x678   : > { %5347 = vrot.lane.b32.xlu0 %v14468_v55, %s14567_s12 }
 0x679   : > { %5232 = vrot.lane.b32.xlu1 %v14469_v18, %s14567_s12 }
 0x67c   : > { %5343 = vrot.lane.b32.xlu0 %v14470_v39, %s14567_s12 }
 0x67d   : > { %5345 = vrot.lane.b32.xlu1 %v14471_v34, %s14567_s12 }
 0x680   : > { %5456 = vrot.lane.b32.xlu0 %v14472_v24, %s14567_s12 }
 0x681   : > { %5341 = vrot.lane.b32.xlu1 %v14473_v48, %s14567_s12 }
 0x684   : > { %5452 = vrot.lane.b32.xlu0 %v14474_v26, %s14567_s12  ;;  %v6002_v26 = vld [vmem:[#allocation2 + $0xc8] sm:$0xff] }
 0x685   : > { %5454 = vrot.lane.b32.xlu1 %v14475_v23, %s14567_s12 }
 0x688   : > { %6040 = vrot.lane.b32.xlu0 %v16585_v17, %s14569_s26 }
 0x689   : > { %5450 = vrot.lane.b32.xlu1 %v14476_v12, %s14567_s12 }
 0x68c   : > { %6036 = vrot.lane.b32.xlu0 %v5978_v51, %s14569_s26 }
 0x68d   : > { %6038 = vrot.lane.b32.xlu1 %v16591_v32, %s14569_s26 }
 0x690   : > { %6026 = vrot.lane.b32.xlu0 %v5977_v11, %s14570_s27 }
 0x691   : > { %6034 = vrot.lane.b32.xlu1 %v5977_v11, %s14569_s26 }
 0x694   : > { %6028 = vrot.lane.b32.xlu0 %v5978_v51, %s14570_s27 }
 0x695   : > { %6161 = vrot.lane.b32.xlu1 %v5984_v37, %s14569_s26 }
 0x698   : > { %6157 = vrot.lane.b32.xlu0 %v5982_v50, %s14569_s26 }
 0x699   : > { %6159 = vrot.lane.b32.xlu1 %v5983_v28, %s14569_s26 }
 0x69c   : > { %6155 = vrot.lane.b32.xlu0 %v5981_v43, %s14569_s26 }
 0x69d   : > { %6030 = vrot.lane.b32.xlu1 %v16591_v32, %s14570_s27 }
 0x6a0   : > { %6147 = vrot.lane.b32.xlu0 %v5981_v43, %s14570_s27 }
 0x6a1   : > { %6032 = vrot.lane.b32.xlu1 %v16585_v17, %s14570_s27 }
 0x6a4   : > { %6149 = vrot.lane.b32.xlu0 %v5982_v50, %s14570_s27  ;;  %v6001_v50 = vld [vmem:[#allocation2 + $0xc0] sm:$0xff] }
 0x6a5   : > { %6282 = vrot.lane.b32.xlu1 %v5988_v9, %s14569_s26 }
 0x6a8   : > { %6278 = vrot.lane.b32.xlu0 %v5986_v22, %s14569_s26 }
 0x6a9   : > { %6280 = vrot.lane.b32.xlu1 %v5987_v16, %s14569_s26 }
 0x6ac   : > { %6276 = vrot.lane.b32.xlu0 %v5985_v13, %s14569_s26 }
 0x6ad   : > { %6151 = vrot.lane.b32.xlu1 %v5983_v28, %s14570_s27 }
 0x6b0   : > { %6268 = vrot.lane.b32.xlu0 %v5985_v13, %s14570_s27 }
 0x6b1   : > { %6153 = vrot.lane.b32.xlu1 %v5984_v37, %s14570_s27 }
 0x6b4   : > { %6270 = vrot.lane.b32.xlu0 %v5986_v22, %s14570_s27 }
 0x6b5   : > { %6403 = vrot.lane.b32.xlu1 %v5992_v20, %s14569_s26 }
 0x6b8   : > { %6399 = vrot.lane.b32.xlu0 %v5990_v41, %s14569_s26 }
 0x6b9   : > { %6401 = vrot.lane.b32.xlu1 %v5991_v7, %s14569_s26 }
 0x6bc   : > { %6272 = vrot.lane.b32.xlu0 %v5987_v16, %s14570_s27 }
 0x6bd   : > { %6524 = vrot.lane.b32.xlu1 %v5996_v1, %s14569_s26 }
 0x6c0   : > { %6397 = vrot.lane.b32.xlu0 %v5989_v49, %s14569_s26 }
 0x6c1   : > { %6274 = vrot.lane.b32.xlu1 %v5988_v9, %s14570_s27  ;;  %v6007_v9 = vld [vmem:[#allocation2 + $0xf0] sm:$0xff] }
 0x6c4   : > { %6389 = vrot.lane.b32.xlu0 %v5989_v49, %s14570_s27 }
 0x6c5   : > { %6522 = vrot.lane.b32.xlu1 %v5995_v52, %s14569_s26 }
 0x6c8   : > { %6520 = vrot.lane.b32.xlu0 %v5994_v27, %s14569_s26 }
 0x6c9   : > { %6391 = vrot.lane.b32.xlu1 %v5990_v41, %s14570_s27  ;;  %v6006_v41 = vld [vmem:[#allocation2 + $0xe8] sm:$0xff] }
 0x6cb   : > { %v4580_v33 = vpop.xlane.xlu0 %4579 }
 0x6cc   : > { %6393 = vrot.lane.b32.xlu0 %v5991_v7, %s14570_s27  ;;  %14169 = vrcp.f32 %v4580_v33 }
 0x6cd   : > { %6645 = vrot.lane.b32.xlu1 %v16632_v8, %s14569_s26  ;;  %v4577_v10 = vpop.xlane.xlu1 %4576 }
 0x6ce   : > { %14171 = vrcp.f32 %v4577_v10  ;;  %v6005_v10 = vld [vmem:[#allocation2 + $0xe0] sm:$0xff] }
 0x6d0   : > { %6518 = vrot.lane.b32.xlu0 %v5993_v25, %s14569_s26 }
 0x6d1   : > { %6395 = vrot.lane.b32.xlu1 %v5992_v20, %s14570_s27 }
 0x6d3   : > { %v4586_v61 = vpop.xlane.xlu0 %4585 }
 0x6d4   : > { %6510 = vrot.lane.b32.xlu0 %v5993_v25, %s14570_s27  ;;  %14173 = vrcp.f32 %v4586_v61 }
 0x6d5   : > { %6643 = vrot.lane.b32.xlu1 %v5999_v58, %s14569_s26  ;;  %v4583_v56 = vpop.xlane.xlu1 %4582 }
 0x6d6   : > { %14175 = vrcp.f32 %v4583_v56 }
 0x6d8   : > { %6641 = vrot.lane.b32.xlu0 %v5998_v3, %s14569_s26 }
 0x6d9   : > { %6512 = vrot.lane.b32.xlu1 %v5994_v27, %s14570_s27  ;;  %v14170_v62 = vpop.eup %14169 }
 0x6da   : > { %v4672_v36 = vmul.f32 %v14170_v62, %v16502_v19  ;;  %v16654_v19 = vld [vmem:[#allocation2 + $0xd0] sm:$0xff] }
 0x6db   : > { %v14172_v29 = vpop.eup %14171  ;;  %v4604_v60 = vpop.xlane.xlu0 %4603 }
 0x6dc   : > { %6514 = vrot.lane.b32.xlu0 %v5995_v52, %s14570_s27  ;;  %v4671_v21 = vmul.f32 %v14172_v29, %v16507_v30 }
 0x6dd   : > { %6766 = vrot.lane.b32.xlu1 %v16643_v47, %s14569_s26  ;;  %v4601_v42 = vpop.xlane.xlu1 %4600 }
 0x6de   : > { %14177 = vrcp.f32 %v4601_v42  ;;  %13253 = vmatprep.mubr.msk.f32.mxu0 %vm344_vm0, %v4671_v21 }
 0x6df   : > { %13254 = vmatmul.mubr.msk.f32.vlgmr.msra.gmra.mxu0 %vm344_vm0, %v4672_v36  ;;  %14179 = vrcp.f32 %v4592_v0 }
 0x6e0   : > { %6639 = vrot.lane.b32.xlu0 %v5997_v5, %s14569_s26  ;;  %14181 = vrcp.f32 %v4595_v44 }
 0x6e1   : > { %6516 = vrot.lane.b32.xlu1 %v5996_v1, %s14570_s27  ;;  %v14174_v55 = vpop.eup %14173  ;;  %14183 = vrcp.f32 %v16622_v40 }
 0x6e2   : > { %v4674_v24 = vmul.f32 %v14174_v55, %v16520_v6  ;;  %v16666_v6 = vld [vmem:[#allocation2 + $0xf8] sm:$0xff]  ;;  %14185 = vrcp.f32 %v4613_v4 }
 0x6e3   : > { %v14176_v18 = vpop.eup %14175  ;;  %v4610_v30 = vpop.xlane.xlu0 %4609  ;;  %14187 = vrcp.f32 %v4604_v60 }
 0x6e4   : > { %6631 = vrot.lane.b32.xlu0 %v5997_v5, %s14570_s27  ;;  %v4673_v39 = vmul.f32 %v14176_v18, %v16527_v35 }
 0x6e5   : > { %6764 = vrot.lane.b32.xlu1 %v16654_v19, %s14569_s26  ;;  %v4607_v34 = vpop.xlane.xlu1 %4606 }
 0x6e6   : > { %13256 = vmatprep.mubr.msk.f32.mxu0 %vm344_vm0, %v4673_v39  ;;  %14189 = vrcp.f32 %v4607_v34 }
 0x6e7   : > { %v4622_v48 = vpop.xlane.xlu0 %4621  ;;  %13257 = vmatmul.mubr.msk.f32.gmra.mxu0 %vm344_vm0, %v4674_v24  ;;  %14191 = vrcp.f32 %v4610_v30 }
 0x6e8   : > { %6762 = vrot.lane.b32.xlu0 %v6002_v26, %s14569_s26  ;;  %14193 = vrcp.f32 %v16627_v63 }
 0x6e9   : > { %6633 = vrot.lane.b32.xlu1 %v5998_v3, %s14570_s27  ;;  %v4619_v23 = vpop.xlane.xlu1 %4618 }
 0x6ea   : > { %14195 = vrcp.f32 %v4619_v23 }
 0x6eb   : > { %v14178_v35 = vpop.eup %14177  ;;  %v5237_v12 = vpop.permute.xlu0 %5236  ;;  %14197 = vrcp.f32 %v4622_v48 }
 0x6ec   : > { %6635 = vrot.lane.b32.xlu0 %v5999_v58, %s14570_s27  ;;  %v4679_v51 = vmul.f32 %v14178_v35, %v16544_v45  ;;  %v14180_v28 = vpop.eup %14179 }
 0x6ed   : > { %6887 = vrot.lane.b32.xlu1 %v16666_v6, %s14569_s26  ;;  %v5239_v11 = vpop.permute.xlu1 %5238  ;;  %v14182_v22 = vpop.eup %14181  ;;  %v4676_v13 = vmul.f32 %v14180_v28, %v16436_v31 }
 0x6ee   : > { %13259 = vmatprep.subr.mxu1 %v5239_v11  ;;  %13281 = vmatprep.mubr.msk.f32.mxu0 %vm344_vm0, %v4679_v51  ;;  %v14184_v7 = vpop.eup %14183  ;;  %v4677_v0 = vmul.f32 %v14182_v22, %v16448_v38  ;;  %v13199_v31 = vpop.f32.mrf.mxu1 }
 0x6ef   : > { %v5348_v37 = vpop.permute.xlu0 %5347  ;;  %13260 = vmatpush3.msra.mxu1 %v5239_v11  ;;  %v14186_v49 = vpop.eup %14185  ;;  %v4678_v44 = vmul.f32 %v14184_v7, %v16444_v53  ;;  %v5591_v53 = vld [vmem:[%s18446_s2 + $0x8] sm:$0xff] }
 0x6f0   : > { %6760 = vrot.lane.b32.xlu0 %v6001_v50, %s14569_s26  ;;  %13261 = vmatprep.subr.mxu1 %v5237_v12  ;;  %v14188_v52 = vpop.eup %14187  ;;  %v4683_v63 = vmul.f32 %v14186_v49, %v16458_v57  ;;  %v4777_v4 = vpop.f32.mrf.mxu1 }
 0x6f1   : > { %13273 = vmatprep.subr.mxu0 %v5348_v37  ;;  %6637 = vrot.lane.b32.xlu1 %v16632_v8, %s14570_s27  ;;  %v5235_v45 = vpop.permute.xlu1 %5234  ;;  %v4680_v33 = vmul.f32 %v14188_v52, %v16540_v15 }
 0x6f2   : > { %13262 = vmatpush3.msra.mxu1 %v5237_v12  ;;  %13274 = vmatpush3.msra.mxu0 %v5348_v37  ;;  %v13202_v61 = vpop.f32.mrf.mxu1 }
 0x6f3   : > { %13263 = vmatprep.subr.mxu1 %v5235_v45  ;;  %v5344_v43 = vpop.permute.xlu0 %5343  ;;  %v14190_v38 = vpop.eup %14189 }
 0x6f4   : > { %13264 = vmatpush3.msra.mxu1 %v5235_v45  ;;  %6752 = vrot.lane.b32.xlu0 %v6001_v50, %s14570_s27  ;;  %v14192_v25 = vpop.eup %14191  ;;  %v4681_v57 = vmul.f32 %v14190_v38, %v16558_v2  ;;  %v4787_v62 = vpop.f32.mrf.mxu1 }
 0x6f5   : > { %6885 = vrot.lane.b32.xlu1 %v6007_v9, %s14569_s26  ;;  %v5233_v16 = vpop.permute.xlu1 %5232  ;;  %v4682_v56 = vmul.f32 %v14192_v25, %v16554_v54  ;;  %v14194_v3 = vpop.eup %14193 }
 0x6f6   : > { %13265 = vmatprep.subr.mxu1 %v5233_v16  ;;  %v4684_v21 = vmul.f32 %v14194_v3, %v16454_v59 }
 0x6f7   : > { %v5457_v20 = vpop.permute.xlu0 %5456  ;;  %13266 = vmatpush3.msra.mxu1 %v5233_v16  ;;  %v14196_v29 = vpop.eup %14195 }
 0x6f8   : > { %6883 = vrot.lane.b32.xlu0 %v6006_v41, %s14569_s26  ;;  %13268 = vmatmul.mubr.msk.f32.vlgmr.msra.gmra.mxu1 %vm344_vm0, %v4676_v13  ;;  %v14198_v36 = vpop.eup %14197  ;;  %v4685_v42 = vmul.f32 %v14196_v29, %v16562_v14 }
 0x6f9   : > { %13287 = vmatprep.subr.mxu1 %v5457_v20  ;;  %6754 = vrot.lane.b32.xlu1 %v6002_v26, %s14570_s27  ;;  %v5346_v1 = vpop.permute.xlu1 %5345 }
 0x6fa   : > { %13270 = vmatprep.mubr.msk.f32.mxu1 %vm344_vm0, %v4677_v0  ;;  %13288 = vmatpush3.msra.mxu1 %v5457_v20 }
 0x6fb   : > { %13275 = vmatprep.subr.mxu0 %v5346_v1  ;;  %v5453_v40 = vpop.permute.xlu0 %5452 }
 0x6fc   : > { %13276 = vmatpush3.msra.mxu0 %v5346_v1  ;;  %6758 = vrot.lane.b32.xlu0 %v16643_v47, %s14570_s27  ;;  %v13213_v47 = vpop.f32.mrf.mxu1 }
 0x6fd   : > { %13271 = vmatmul.mubr.msk.f32.gmra.mxu1 %vm344_vm0, %v4678_v44  ;;  %13277 = vmatprep.subr.mxu0 %v5344_v43  ;;  %v5342_v27 = vpop.permute.xlu1 %5341 }
 0x6fe   : > { %6756 = vrot.lane.b32.xlu1 %v16654_v19, %s14570_s27  ;;  %13278 = vmatpush3.msra.mxu0 %v5344_v43  ;;  %v4886_v5 = vpop.f32.mrf.mxu1 }
 0x6ff   : > { %13295 = vmatprep.mubr.msk.f32.mxu1 %vm344_vm0, %v4683_v63  ;;  %13279 = vmatprep.subr.mxu0 %v5342_v27  ;;  %v6041_v8 = vpop.permute.xlu0 %6040 }
 0x700   : > { %13280 = vmatpush3.msra.mxu0 %v5342_v27  ;;  %6873 = vrot.lane.b32.xlu0 %v6005_v10, %s14570_s27  ;;  %v13216_v55 = vpop.f32.mrf.mxu1 }
 0x701   : > { %13282 = vmatmul.mubr.msk.f32.vlgmr.msra.gmra.mxu0 %vm344_vm0, %v4680_v33  ;;  %v5455_v58 = vpop.permute.xlu1 %5454  ;;  %13301 = vmatprep.subr.mxu0 %v5591_v53 }
 0x702   : > { %6881 = vrot.lane.b32.xlu1 %v6005_v10, %s14569_s26  ;;  %13284 = vmatprep.mubr.msk.f32.mxu0 %vm344_vm0, %v4681_v57  ;;  %v4896_v19 = vpop.f32.mrf.mxu1 }
 0x703   : > { %13289 = vmatprep.subr.mxu1 %v5455_v58  ;;  %v6037_v15 = vpop.permute.xlu0 %6036  ;;  %13302 = vmatpush3.msra.mxu0 %v5591_v53 }
 0x704   : > { %13290 = vmatpush3.msra.mxu1 %v5455_v58  ;;  %6877 = vrot.lane.b32.xlu0 %v6007_v9, %s14570_s27 }
 0x705   : > { %13285 = vmatmul.mubr.msk.f32.gmra.mxu0 %vm344_vm0, %v4682_v56  ;;  %13291 = vmatprep.subr.mxu1 %v5453_v40  ;;  %v5451_v2 = vpop.permute.xlu1 %5450 }
 0x706   : > { %6875 = vrot.lane.b32.xlu1 %v6006_v41, %s14570_s27  ;;  %13292 = vmatpush3.msra.mxu1 %v5453_v40 }
 0x707   : > { %13303 = vmatprep.mubr.msk.f32.mxu0 %vm787_vm2, %v4777_v4  ;;  %13293 = vmatprep.subr.mxu1 %v5451_v2  ;;  %v6027_v54 = vpop.permute.xlu0 %6026  ;;  %v13227_v30 = vpop.f32.mrf.mxu0 }
 0x708   : > { %13294 = vmatpush3.msra.mxu1 %v5451_v2  ;;  %7346 = vrot.lane.b32.xlu0 %v16591_v32, %s14571_s30  ;;  %v4686_v32 = vmul.f32 %v14198_v36, %v16551_v46 }
 0x709   : > { %13296 = vmatmul.mubr.msk.f32.vlgmr.msra.gmra.mxu1 %vm344_vm0, %v4684_v21  ;;  %13304 = vmatmul.mubr.msk.f32.vlgmr.msra.gmra.mxu0 %vm787_vm2, %v13199_v31  ;;  %v6039_v60 = vpop.permute.xlu1 %6038  ;;  %v4995_v34 = vpop.f32.mrf.mxu0 }
 0x70a   : > { %13351 = vmatprep.subr.msk.mxu1 %vm787_vm2, %v6041_v8  ;;  %6879 = vrot.lane.b32.xlu1 %v16666_v6, %s14570_s27 }
 0x70b   : > { %13298 = vmatprep.mubr.msk.f32.mxu1 %vm344_vm0, %v4685_v42  ;;  %13306 = vmatprep.mubr.msk.f32.mxu0 %vm787_vm2, %v4787_v62  ;;  %v6029_v59 = vpop.permute.xlu0 %6028 }
 0x70c   : > { %13352 = vmatpush3.xpose.msk.msra.mxu1 %vm787_vm2, %v6041_v8 }
 0x70d   : > { %13353 = vmatprep.subr.msk.mxu1 %vm787_vm2, %v6039_v60  ;;  %13299 = vmatmul.mubr.msk.f32.gmra.mxu1 %vm344_vm0, %v4686_v32  ;;  %v6035_v14 = vpop.permute.xlu1 %6034 }
 0x70e   : > { %13307 = vmatmul.mubr.msk.f32.gmra.mxu0 %vm787_vm2, %v13202_v61  ;;  %7348 = vrot.lane.b32.xlu1 %v16585_v17, %s14571_s30 }
 0x70f   : > { %13309 = vmatprep.mubr.msk.f32.mxu0 %vm787_vm2, %v4886_v5  ;;  %13359 = vmatprep.mubr.msk.f32.mxu1 %vm787_vm2, %v6027_v54  ;;  %v6158_v18 = vpop.permute.xlu0 %6157  ;;  %v13230_v24 = vpop.f32.mrf.mxu0 }
 0x710   : > { %13354 = vmatpush3.xpose.msk.msra.mxu1 %vm787_vm2, %v6039_v60 }
 0x711   : > { %13355 = vmatprep.subr.msk.mxu1 %vm787_vm2, %v6037_v15  ;;  %v6162_v46 = vpop.permute.xlu1 %6161  ;;  %v5005_v35 = vpop.f32.mrf.mxu0 }
 0x712   : > { %13310 = vmatmul.mubr.msk.f32.gmra.mxu0 %vm787_vm2, %v13213_v47 }
 0x713   : > { %13312 = vmatprep.mubr.msk.f32.mxu0 %vm787_vm2, %v4896_v19  ;;  %v6156_v39 = vpop.permute.xlu0 %6155 }
 0x714   : > { %13356 = vmatpush3.xpose.msk.msra.mxu1 %vm787_vm2, %v6037_v15 }
 0x715   : > { %13357 = vmatprep.subr.msk.mxu1 %vm787_vm2, %v6035_v14  ;;  %v6160_v17 = vpop.permute.xlu1 %6159 }
 0x716   : > { %13313 = vmatmul.mubr.msk.f32.gmra.mxu0 %vm787_vm2, %v13216_v55 }
 0x717   : > { %13315 = vmatprep.mubr.msk.f32.mxu0 %vm787_vm2, %v4995_v34  ;;  %v6148_v48 = vpop.permute.xlu0 %6147  ;;  %v13241_v26 = vpop.f32.mrf.mxu1 }
 0x718   : > { %13358 = vmatpush3.xpose.msk.msra.mxu1 %vm787_vm2, %v6035_v14 }
 0x719   : > { %13365 = vmatprep.subr.msk.mxu1 %vm787_vm2, %v6162_v46  ;;  %v6031_v23 = vpop.permute.xlu1 %6030  ;;  %v5104_v6 = vpop.f32.mrf.mxu1 }
 0x71a   : > { %13316 = vmatmul.mubr.msk.f32.gmra.mxu0 %vm787_vm2, %v13227_v30 }
 0x71b   : > { %13360 = vmatmul.mubr.msk.f32.vlgmr.msra.gmra.mxu1 %vm787_vm2, %v6029_v59  ;;  %13318 = vmatprep.mubr.msk.f32.mxu0 %vm787_vm2, %v5005_v35  ;;  %v6150_v12 = vpop.permute.xlu0 %6149 }
 0x71c   : > { %13366 = vmatpush3.xpose.msk.msra.mxu1 %vm787_vm2, %v6162_v46  ;;  %13362 = vmatprep.mubr.msk.f32.mxu1 %vm787_vm2, %v6031_v23 }
 0x71d   : > { %13367 = vmatprep.subr.msk.mxu1 %vm787_vm2, %v6160_v17  ;;  %v6033_v51 = vpop.permute.xlu1 %6032 }
 0x71e   : > { %13319 = vmatmul.mubr.msk.f32.gmra.mxu0 %vm787_vm2, %v13230_v24 }
 0x71f   : > { %13321 = vmatprep.mubr.msk.f32.mxu0 %vm787_vm2, %v5104_v6  ;;  %v13244_v11 = vpop.f32.mrf.mxu1  ;;  %13363 = vmatmul.mubr.msk.f32.gmra.mxu1 %vm787_vm2, %v6033_v51  ;;  %v6279_v37 = vpop.permute.xlu0 %6278 }
 0x720   : > { %13368 = vmatpush3.xpose.msk.msra.mxu1 %vm787_vm2, %v6160_v17  ;;  %13373 = vmatprep.mubr.msk.f32.mxu1 %vm787_vm2, %v6148_v48 }
 0x721   : > { %13369 = vmatprep.subr.msk.mxu1 %vm787_vm2, %v6158_v18  ;;  %v5114_v50 = vpop.f32.mrf.mxu1  ;;  %v6283_v45 = vpop.permute.xlu1 %6282 }
 0x722   : > { %13322 = vmatmul.mubr.msk.f32.gmra.mxu0 %vm787_vm2, %v13241_v26 }
 0x723   : > { %13324 = vmatprep.mubr.msk.f32.mxu0 %vm787_vm2, %v5114_v50  ;;  %v6277_v28 = vpop.permute.xlu0 %6276 }
 0x724   : > { %13370 = vmatpush3.xpose.msk.msra.mxu1 %vm787_vm2, %v6158_v18 }
 0x725   : > { %13371 = vmatprep.subr.msk.mxu1 %vm787_vm2, %v6156_v39  ;;  %v6281_v43 = vpop.permute.xlu1 %6280 }
 0x726   : > { %13325 = vmatmul.mubr.msk.f32.gmra.mxu0 %vm787_vm2, %v13244_v11 }
 0x727   : > { %v6269_v9 = vpop.permute.xlu0 %6268 }
 0x728   : > { %13372 = vmatpush3.xpose.msk.msra.mxu1 %vm787_vm2, %v6156_v39 }
 0x729   : > { %13379 = vmatprep.subr.msk.mxu1 %vm787_vm2, %v6283_v45  ;;  %v6152_v22 = vpop.permute.xlu1 %6151 }
 0x72b   : > { %13374 = vmatmul.mubr.msk.f32.vlgmr.msra.gmra.mxu1 %vm787_vm2, %v6150_v12  ;;  %v6271_v16 = vpop.permute.xlu0 %6270 }
 0x72c   : > { %13380 = vmatpush3.xpose.msk.msra.mxu1 %vm787_vm2, %v6283_v45  ;;  %13376 = vmatprep.mubr.msk.f32.mxu1 %vm787_vm2, %v6152_v22 }
 0x72d   : > { %13381 = vmatprep.subr.msk.mxu1 %vm787_vm2, %v6281_v43  ;;  %v6154_v13 = vpop.permute.xlu1 %6153 }
 0x72f   : > { %13377 = vmatmul.mubr.msk.f32.gmra.mxu1 %vm787_vm2, %v6154_v13  ;;  %v6400_v20 = vpop.permute.xlu0 %6399  ;;  %v5562_v13 = vld [vmem:[#allocation3 + $0x18] sm:$0xff] }
 0x730   : > { %13382 = vmatpush3.xpose.msk.msra.mxu1 %vm787_vm2, %v6281_v43  ;;  %13387 = vmatprep.mubr.msk.f32.mxu1 %vm787_vm2, %v6269_v9  ;;  %v5559_v43 = vld [vmem:[#allocation3] sm:$0xff] }
 0x731   : > { %13383 = vmatprep.subr.msk.mxu1 %vm787_vm2, %v6279_v37  ;;  %v6404_v41 = vpop.permute.xlu1 %6403 }
 0x733   : > { %v6273_v7 = vpop.permute.xlu0 %6272 }
 0x734   : > { %13384 = vmatpush3.xpose.msk.msra.mxu1 %vm787_vm2, %v6279_v37  ;;  %v5560_v37 = vld [vmem:[#allocation3 + $0x8] sm:$0xff] }
 0x735   : > { %13385 = vmatprep.subr.msk.mxu1 %vm787_vm2, %v6277_v28  ;;  %v6402_v0 = vpop.permute.xlu1 %6401 }
 0x737   : > { %v6398_v1 = vpop.permute.xlu0 %6397 }
 0x738   : > { %13386 = vmatpush3.xpose.msk.msra.mxu1 %vm787_vm2, %v6277_v28 }
 0x739   : > { %13393 = vmatprep.subr.msk.mxu1 %vm787_vm2, %v6404_v41  ;;  %v6525_v49 = vpop.permute.xlu1 %6524 }
 0x73a   : > { %13407 = vmatprep.subr.msk.mxu0 %vm787_vm2, %v6525_v49 }
 0x73b   : > { %13388 = vmatmul.mubr.msk.f32.vlgmr.msra.gmra.mxu1 %vm787_vm2, %v6271_v16  ;;  %v6390_v31 = vpop.permute.xlu0 %6389  ;;  %13408 = vmatpush3.xpose.msk.msra.mxu0 %vm787_vm2, %v6525_v49 }
 0x73c   : > { %13390 = vmatprep.mubr.msk.f32.mxu1 %vm787_vm2, %v6273_v7  ;;  %13394 = vmatpush3.xpose.msk.msra.mxu1 %vm787_vm2, %v6404_v41 }
 0x73d   : > { %13395 = vmatprep.subr.msk.mxu1 %vm787_vm2, %v6402_v0  ;;  %v6275_v40 = vpop.permute.xlu1 %6274 }
 0x73f   : > { %13391 = vmatmul.mubr.msk.f32.gmra.mxu1 %vm787_vm2, %v6275_v40  ;;  %v6521_v44 = vpop.permute.xlu0 %6520 }
 0x740   : > { %13396 = vmatpush3.xpose.msk.msra.mxu1 %vm787_vm2, %v6402_v0  ;;  %13401 = vmatprep.mubr.msk.f32.mxu1 %vm787_vm2, %v6390_v31  ;;  %v5561_v0 = vld [vmem:[#allocation3 + $0x10] sm:$0xff]  ;;  %v5564_v31 = vld [vmem:[#allocation3 + $0x28] sm:$0xff] }
 0x741   : > { %13397 = vmatprep.subr.msk.mxu1 %vm787_vm2, %v6400_v20  ;;  %v6523_v52 = vpop.permute.xlu1 %6522 }
 0x742   : > { %13409 = vmatprep.subr.msk.mxu0 %vm787_vm2, %v6523_v52 }
 0x743   : > { %v6394_v38 = vpop.permute.xlu0 %6393  ;;  %13410 = vmatpush3.xpose.msk.msra.mxu0 %vm787_vm2, %v6523_v52  ;;  %v5563_v52 = vld [vmem:[#allocation3 + $0x20] sm:$0xff] }
 0x744   : > { %13398 = vmatpush3.xpose.msk.msra.mxu1 %vm787_vm2, %v6400_v20  ;;  %13411 = vmatprep.subr.msk.mxu0 %vm787_vm2, %v6521_v44 }
 0x745   : > { %13399 = vmatprep.subr.msk.mxu1 %vm787_vm2, %v6398_v1  ;;  %v6392_v63 = vpop.permute.xlu1 %6391 }
 0x747   : > { %v6519_v27 = vpop.permute.xlu0 %6518  ;;  %13412 = vmatpush3.xpose.msk.msra.mxu0 %vm787_vm2, %v6521_v44 }
 0x748   : > { %13400 = vmatpush3.xpose.msk.msra.mxu1 %vm787_vm2, %v6398_v1  ;;  %13413 = vmatprep.subr.msk.mxu0 %vm787_vm2, %v6519_v27 }
 0x749   : > { %v6646_v4 = vpop.permute.xlu1 %6645 }
 0x74a   : > { %13421 = vmatprep.subr.msk.mxu1 %vm787_vm2, %v6646_v4 }
 0x74b   : > { %13402 = vmatmul.mubr.msk.f32.vlgmr.msra.gmra.mxu1 %vm787_vm2, %v6392_v63  ;;  %v16787_v53 = vpop.permute.xlu0 %6510  ;;  %13414 = vmatpush3.xpose.msk.msra.mxu0 %vm787_vm2, %v6519_v27  ;;  %v11798_v27 = vld [vmem:[%s18448_s4 + $0x48] sm:$0xff] }
 0x74c   : > { %13404 = vmatprep.mubr.msk.f32.mxu1 %vm787_vm2, %v6394_v38  ;;  %13422 = vmatpush3.xpose.msk.msra.mxu1 %vm787_vm2, %v6646_v4  ;;  %v6015_v4 = vld [vmem:[%s15118_s20 + $0x8] sm:$0xff] }
 0x74d   : > { %v6396_v33 = vpop.permute.xlu1 %6395 }
 0x74f   : > { %13405 = vmatmul.mubr.msk.f32.gmra.mxu1 %vm787_vm2, %v6396_v33  ;;  %v6642_v8 = vpop.permute.xlu0 %6641  ;;  %v5566_v33 = vld [vmem:[#allocation3 + $0x38] sm:$0xff] }
 0x751   : > { %v6644_v10 = vpop.permute.xlu1 %6643 }
 0x752   : > { %13423 = vmatprep.subr.msk.mxu1 %vm787_vm2, %v6644_v10 }
 0x753   : > { %v16794_v25 = vpop.permute.xlu0 %6514  ;;  %13424 = vmatpush3.xpose.msk.msra.mxu1 %vm787_vm2, %v6644_v10  ;;  %v11797_v10 = vld [vmem:[%s18448_s4 + $0x40] sm:$0xff] }
 0x754   : > { %13425 = vmatprep.subr.msk.mxu1 %vm787_vm2, %v6642_v8 }
 0x755   : > { %v16798_v61 = vpop.permute.xlu1 %6512 }
 0x757   : > { %v6640_v57 = vpop.permute.xlu0 %6639  ;;  %13426 = vmatpush3.xpose.msk.msra.mxu1 %vm787_vm2, %v6642_v8 }
 0x758   : > { %13427 = vmatprep.subr.msk.mxu1 %vm787_vm2, %v6640_v57 }
 0x759   : > { %v16802_v58 = vpop.permute.xlu1 %6766 }
 0x75a   : > { %13435 = vmatprep.subr.msk.mxu0 %vm787_vm2, %v16802_v58 }
 0x75b   : > { %v6632_v15 = vpop.permute.xlu0 %6631  ;;  %13428 = vmatpush3.xpose.msk.msra.mxu1 %vm787_vm2, %v6640_v57  ;;  %v5565_v57 = vld [vmem:[#allocation3 + $0x30] sm:$0xff] }
 0x75c   : > { %13429 = vmatprep.mubr.msk.f32.mxu1 %vm787_vm2, %v6632_v15 }
 0x75d   : > { %v16808_v56 = vpop.permute.xlu1 %6516 }
 0x75f   : > { %v16810_v3 = vpop.permute.xlu0 %6762 }
 0x761   : > { %v16812_v62 = vpop.permute.xlu1 %6764 }
 0x763   : > { %v6636_v2 = vpop.permute.xlu0 %6635 }
 0x765   : > { %v6634_v29 = vpop.permute.xlu1 %6633 }
 0x766   : > { %13430 = vmatmul.mubr.msk.f32.vlgmr.msra.gmra.mxu1 %vm787_vm2, %v6634_v29  ;;  %v6017_v29 = vld [vmem:[%s15118_s20 + $0x18] sm:$0xff] }
 0x767   : > { %v16815_v47 = vpop.permute.xlu0 %6760  ;;  %13432 = vmatprep.mubr.msk.f32.mxu1 %vm787_vm2, %v6636_v2  ;;  %v16879_v2 = vadd.f32 %v11798_v27, %v6015_v4 }
 0x769   : > { %v6888_v21 = vpop.permute.xlu1 %6887 }
 0x76a   : > { %13449 = vmatprep.subr.msk.mxu1 %vm787_vm2, %v6888_v21 }
 0x76b   : > { %v16819_v54 = vpop.permute.xlu0 %6752  ;;  %13450 = vmatpush3.xpose.msk.msra.mxu1 %vm787_vm2, %v6888_v21  ;;  %v5568_v21 = vld [vmem:[#allocation3 + $0x48] sm:$0xff] }
 0x76d   : > { %v6638_v36 = vpop.permute.xlu1 %6637 }
 0x76e   : > { %13433 = vmatmul.mubr.msk.f32.gmra.mxu1 %vm787_vm2, %v6638_v36 }
 0x76f   : > { %v6884_v42 = vpop.permute.xlu0 %6883 }
 0x771   : > { %v6886_v60 = vpop.permute.xlu1 %6885 }
 0x772   : > { %13451 = vmatprep.subr.msk.mxu1 %vm787_vm2, %v6886_v60 }
 0x773   : > { %v16824_v5 = vpop.permute.xlu0 %6758  ;;  %13452 = vmatpush3.xpose.msk.msra.mxu1 %vm787_vm2, %v6886_v60 }
 0x774   : > { %13453 = vmatprep.subr.msk.mxu1 %vm787_vm2, %v6884_v42 }
 0x775   : > { %v16828_v59 = vpop.permute.xlu1 %6754 }
 0x777   : > { %v6874_v32 = vpop.permute.xlu0 %6873  ;;  %13454 = vmatpush3.xpose.msk.msra.mxu1 %vm787_vm2, %v6884_v42 }
 0x778   : > { %13457 = vmatprep.mubr.msk.f32.mxu1 %vm787_vm2, %v6874_v32 }
 0x779   : > { %v16832_v14 = vpop.permute.xlu1 %6756 }
 0x77b   : > { %v6878_v30 = vpop.permute.xlu0 %6877 }
 0x77d   : > { %v6882_v55 = vpop.permute.xlu1 %6881 }
 0x77e   : > { %13455 = vmatprep.subr.msk.mxu1 %vm787_vm2, %v6882_v55 }
 0x77f   : > { %13456 = vmatpush3.xpose.msk.msra.mxu1 %vm787_vm2, %v6882_v55  ;;  %v5567_v55 = vld [vmem:[#allocation3 + $0x40] sm:$0xff] }
 0x781   : > { %v6876_v18 = vpop.permute.xlu1 %6875 }
 0x782   : > { %13458 = vmatmul.mubr.msk.f32.vlgmr.msra.gmra.mxu1 %vm787_vm2, %v6876_v18 }
 0x783   : > { %13460 = vmatprep.mubr.msk.f32.mxu1 %vm787_vm2, %v6878_v30 }
 0x785   : > { %v6880_v46 = vpop.permute.xlu1 %6879 }
 0x786   : > { %13461 = vmatmul.mubr.msk.f32.gmra.mxu1 %vm787_vm2, %v6880_v46  ;;  %v11799_v46 = vld [vmem:[%s18448_s4 + $0x50] sm:$0xff] }
 0x79f   : > { %v13255_v19 = vpop.f32.mrf.mxu0 }
 0x7a1   : > { %v5213_v39 = vpop.f32.mrf.mxu0 }
 0x7a2   : > { %13327 = vmatprep.mubr.msk.f32.mxu0 %vm787_vm2, %v5213_v39 }
 0x7a3   : > { %13328 = vmatmul.mubr.msk.f32.gmra.mxu0 %vm787_vm2, %v13255_v19  ;;  %v6016_v19 = vld [vmem:[%s15118_s20 + $0x10] sm:$0xff] }
 0x7a7   : > { %v13258_v34 = vpop.f32.mrf.mxu0 }
 0x7a9   : > { %v5223_v17 = vpop.f32.mrf.mxu0 }
 0x7aa   : > { %13330 = vmatprep.mubr.msk.f32.mxu0 %vm787_vm2, %v5223_v17 }
 0x7ab   : > { %13331 = vmatmul.mubr.msk.f32.gmra.mxu0 %vm787_vm2, %v13258_v34  ;;  %v5570_v34 = vld [vmem:[#allocation3 + $0x58] sm:$0xff] }
 0x7b8   : > { %v13269_v24 = vpop.f32.mrf.mxu1 }
 0x7ba   : > { %v5322_v48 = vpop.f32.mrf.mxu1 }
 0x7bb   : > { %13333 = vmatprep.mubr.msk.f32.mxu0 %vm787_vm2, %v5322_v48 }
 0x7bc   : > { %13334 = vmatmul.mubr.msk.f32.gmra.mxu0 %vm787_vm2, %v13269_v24 }
 0x7bd   : > { %v13272_v26 = vpop.f32.mrf.mxu1 }
 0x7bf   : > { %v5332_v23 = vpop.f32.mrf.mxu1 }
 0x7c0   : > { %13336 = vmatprep.mubr.msk.f32.mxu0 %vm787_vm2, %v5332_v23  ;;  %v5569_v23 = vld [vmem:[#allocation3 + $0x50] sm:$0xff] }
 0x7c1   : > { %v13283_v35 = vpop.f32.mrf.mxu0  ;;  %13337 = vmatmul.mubr.msk.f32.gmra.mxu0 %vm787_vm2, %v13272_v26 }
 0x7c3   : > { %v5431_v12 = vpop.f32.mrf.mxu0 }
 0x7c4   : > { %13339 = vmatprep.mubr.msk.f32.mxu0 %vm787_vm2, %v5431_v12 }
 0x7c5   : > { %v13286_v6 = vpop.f32.mrf.mxu0  ;;  %13340 = vmatmul.mubr.msk.f32.gmra.mxu0 %vm787_vm2, %v13283_v35 }
 0x7c7   : > { %v5441_v51 = vpop.f32.mrf.mxu0 }
 0x7c8   : > { %13342 = vmatprep.mubr.msk.f32.mxu0 %vm787_vm2, %v5441_v51  ;;  %v16922_v51 = vadd.f32 %v11799_v46, %v6016_v19  ;;  %v14479_v19 = vld [vmem:[#allocation2 + $0x38] sm:$0xff] }
 0x7c9   : > { %v13297_v11 = vpop.f32.mrf.mxu1  ;;  %v13305_v50 = vpop.f32.mrf.mxu0  ;;  %13343 = vmatmul.mubr.msk.f32.gmra.mxu0 %vm787_vm2, %v13286_v6 }
 0x7ca   : > { %v5914_v45 = vadd.f32 %v13305_v50, %v5560_v37  ;;  %v7349_v37 = vpop.permute.xlu1 %7348  ;;  %v5572_v50 = vld [vmem:[#allocation3 + $0x68] sm:$0xff] }
 0x7cb   : > { %v5540_v28 = vpop.f32.mrf.mxu1  ;;  %v5754_v9 = vpop.f32.mrf.mxu0 }
 0x7cc   : > { %5946 = vst.msk [vmem:[#allocation3 + $0x8] sm:$0xff] %vm344_vm0, %v5914_v45  ;;  %v5913_v22 = vadd.f32 %v5754_v9, %v5559_v43  ;;  %13345 = vmatprep.mubr.msk.f32.mxu0 %vm787_vm2, %v5540_v28 }
 0x7cd   : > { %v13300_v16 = vpop.f32.mrf.mxu1  ;;  %13346 = vmatmul.mubr.msk.f32.gmra.mxu0 %vm787_vm2, %v13297_v11 }
 0x7ce   : > { %5945 = vst.msk [vmem:[#allocation3] sm:$0xff] %vm344_vm0, %v5913_v22  ;;  %v13308_v20 = vpop.f32.mrf.mxu0  ;;  %v5571_v22 = vld [vmem:[#allocation3 + $0x60] sm:$0xff] }
 0x7cf   : > { %v5916_v41 = vadd.f32 %v13308_v20, %v5562_v13  ;;  %v5550_v7 = vpop.f32.mrf.mxu1  ;;  %v5574_v20 = vld [vmem:[#allocation3 + $0x78] sm:$0xff] }
 0x7d0   : > { %v5764_v1 = vpop.f32.mrf.mxu0  ;;  %13348 = vmatprep.mubr.msk.f32.mxu0 %vm787_vm2, %v5550_v7 }
 0x7d1   : > { %5948 = vst.msk [vmem:[#allocation3 + $0x18] sm:$0xff] %vm344_vm0, %v5916_v41  ;;  %v5915_v49 = vadd.f32 %v5764_v1, %v5561_v0  ;;  %13349 = vmatmul.mubr.msk.f32.gmra.mxu0 %vm787_vm2, %v13300_v16  ;;  %v5573_v0 = vld [vmem:[#allocation3 + $0x70] sm:$0xff] }
 0x7d2   : > { %v13311_v40 = vpop.f32.mrf.mxu0  ;;  %13415 = vmatprep.mubr.msk.f32.mxu0 %vm787_vm2, %v16787_v53 }
 0x7d3   : > { %5947 = vst.msk [vmem:[#allocation3 + $0x10] sm:$0xff] %vm344_vm0, %v5915_v49  ;;  %v5918_v44 = vadd.f32 %v13311_v40, %v5564_v31 }
 0x7d4   : > { %v5774_v38 = vpop.f32.mrf.mxu0 }
 0x7d5   : > { %5950 = vst.msk [vmem:[#allocation3 + $0x28] sm:$0xff] %vm344_vm0, %v5918_v44  ;;  %v5917_v63 = vadd.f32 %v5774_v38, %v5563_v52  ;;  %13416 = vmatmul.mubr.msk.f32.vlgmr.msra.gmra.mxu0 %vm787_vm2, %v16798_v61  ;;  %v6014_v61 = vld [vmem:[%s15118_s20] sm:$0xff]  ;;  %v14477_v38 = vld [vmem:[#allocation2 + $0x8] sm:$0xff] }
 0x7d6   : > { %v13314_v53 = vpop.f32.mrf.mxu0  ;;  %13436 = vmatpush3.xpose.msk.msra.mxu0 %vm787_vm2, %v16802_v58  ;;  %13418 = vmatprep.mubr.msk.f32.mxu0 %vm787_vm2, %v16794_v25  ;;  %v11800_v25 = vld [vmem:[%s18448_s4 + $0x58] sm:$0xff]  ;;  %v16892_v42 = vadd.f32 %v11797_v10, %v6014_v61 }
 0x7d7   : > { %5949 = vst.msk [vmem:[#allocation3 + $0x20] sm:$0xff] %vm344_vm0, %v5917_v63  ;;  %v5920_v8 = vadd.f32 %v13314_v53, %v5566_v33  ;;  %13437 = vmatprep.subr.msk.mxu0 %vm787_vm2, %v16812_v62  ;;  %v16900_v30 = vadd.f32 %v11800_v25, %v6017_v29 }
 0x7d8   : > { %v5784_v15 = vpop.f32.mrf.mxu0 }
 0x7d9   : > { %5952 = vst.msk [vmem:[#allocation3 + $0x38] sm:$0xff] %vm344_vm0, %v5920_v8  ;;  %v5919_v58 = vadd.f32 %v5784_v15, %v5565_v57  ;;  %13419 = vmatmul.mubr.msk.f32.gmra.mxu0 %vm787_vm2, %v16808_v56 }
 0x7da   : > { %v13317_v36 = vpop.f32.mrf.mxu0  ;;  %13438 = vmatpush3.xpose.msk.msra.mxu0 %vm787_vm2, %v16812_v62  ;;  %13443 = vmatprep.mubr.msk.f32.mxu0 %vm787_vm2, %v16819_v54 }
 0x7db   : > { %5951 = vst.msk [vmem:[#allocation3 + $0x30] sm:$0xff] %vm344_vm0, %v5919_v58  ;;  %v5922_v60 = vadd.f32 %v13317_v36, %v5568_v21  ;;  %v13361_v56 = vpop.f32.mrf.mxu1  ;;  %13439 = vmatprep.subr.msk.mxu0 %vm787_vm2, %v16810_v3 }
 0x7dc   : > { %v16898_v32 = vadd.f32 %v13361_v56, %v16879_v2  ;;  %v5794_v18 = vpop.f32.mrf.mxu0 }
 0x7dd   : > { %5954 = vst.msk [vmem:[#allocation3 + $0x48] sm:$0xff] %vm344_vm0, %v5922_v60  ;;  %v5921_v62 = vadd.f32 %v5794_v18, %v5567_v55  ;;  %v6124_v54 = vpop.f32.mrf.mxu1  ;;  %v14478_v60 = vld [vmem:[#allocation2] sm:$0xff] }
 0x7de   : > { %v16908_v39 = vadd.f32 %v6124_v54, %v16892_v42  ;;  %v13320_v17 = vpop.f32.mrf.mxu0  ;;  %v6993_v24 = vsel %vm344_vm0, %v16898_v32, -inf  ;;  %13440 = vmatpush3.xpose.msk.msra.mxu0 %vm787_vm2, %v16810_v3 }
 0x7df   : > { %5953 = vst.msk [vmem:[#allocation3 + $0x40] sm:$0xff] %vm344_vm0, %v5921_v62  ;;  %v5924_v48 = vadd.f32 %v13320_v17, %v5570_v34  ;;  %6994 = vmax.xlane.f32.xlu1 %v6993_v24  ;;  %13441 = vmatprep.subr.msk.mxu0 %vm787_vm2, %v16815_v47  ;;  %v13364_v26 = vpop.f32.mrf.mxu1 }
 0x7e0   : > { %v5804_v35 = vpop.f32.mrf.mxu0  ;;  %v6990_v12 = vsel %vm344_vm0, %v16908_v39, -inf  ;;  %v16920_v6 = vadd.f32 %v13364_v26, %v16900_v30 }
 0x7e1   : > { %5956 = vst.msk [vmem:[#allocation3 + $0x58] sm:$0xff] %vm344_vm0, %v5924_v48  ;;  %v5923_v3 = vadd.f32 %v5804_v35, %v5569_v23  ;;  %6991 = vmax.xlane.f32.xlu0 %v6990_v12  ;;  %v6134_v11 = vpop.f32.mrf.mxu1 }
 0x7e2   : > { %v13323_v45 = vpop.f32.mrf.mxu0  ;;  %13442 = vmatpush3.xpose.msk.msra.mxu0 %vm787_vm2, %v16815_v47  ;;  %v6999_v28 = vsel %vm344_vm0, %v16920_v6, -inf  ;;  %v16931_v9 = vadd.f32 %v6134_v11, %v16922_v51  ;;  %v7347_v47 = vpop.permute.xlu0 %7346 }
 0x7e3   : > { %5955 = vst.msk [vmem:[#allocation3 + $0x50] sm:$0xff] %vm344_vm0, %v5923_v3  ;;  %v5926_v43 = vadd.f32 %v13323_v45, %v5572_v50  ;;  %13463 = vmatprep.subr.mxu0 %v7349_v37 }
 0x7e4   : > { %v5814_v16 = vpop.f32.mrf.mxu0  ;;  %v6996_v49 = vsel %vm344_vm0, %v16931_v9, -inf }
 0x7e5   : > { %5958 = vst.msk [vmem:[#allocation3 + $0x68] sm:$0xff] %vm344_vm0, %v5926_v43  ;;  %v5925_v13 = vadd.f32 %v5814_v16, %v5571_v22  ;;  %7000 = vmax.xlane.f32.xlu0 %v6999_v28  ;;  %13444 = vmatmul.mubr.msk.f32.vlgmr.msra.gmra.mxu0 %vm787_vm2, %v16828_v59 }
 0x7e6   : > { %v13326_v41 = vpop.f32.mrf.mxu0  ;;  %13446 = vmatprep.mubr.msk.f32.mxu0 %vm787_vm2, %v16832_v14  ;;  %13464 = vmatpush3.msra.mxu0 %v7349_v37 }
 0x7e7   : > { %5957 = vst.msk [vmem:[#allocation3 + $0x60] sm:$0xff] %vm344_vm0, %v5925_v13  ;;  %v5928_v7 = vadd.f32 %v13326_v41, %v5574_v20  ;;  %13465 = vmatprep.subr.mxu0 %v7347_v47 }
 0x7e8   : > { %v5824_v1 = vpop.f32.mrf.mxu0  ;;  %13466 = vmatpush3.msra.mxu0 %v7347_v47  ;;  %v14480_v47 = vld [vmem:[#allocation2 + $0x30] sm:$0xff] }
 0x7e9   : > { %5960 = vst.msk [vmem:[#allocation3 + $0x78] sm:$0xff] %vm344_vm0, %v5928_v7  ;;  %v5927_v59 = vadd.f32 %v5824_v1, %v5573_v0  ;;  %6997 = vmax.xlane.f32.xlu0 %v6996_v49  ;;  %13447 = vmatmul.mubr.msk.f32.gmra.mxu0 %vm787_vm2, %v16824_v5  ;;  %v5576_v0 = vld [vmem:[#allocation3 + $0x88] sm:$0xff] }
 0x7eb   : > { %5959 = vst.msk [vmem:[#allocation3 + $0x70] sm:$0xff] %vm344_vm0, %v5927_v59  ;;  %v13375_v14 = vpop.f32.mrf.mxu1  ;;  %v5575_v59 = vld [vmem:[#allocation3 + $0x80] sm:$0xff] }
 0x7ec   : > { %v16946_v31 = vadd.f32 %v13375_v14, %v16879_v2 }
 0x7ed   : > { %v6245_v40 = vpop.f32.mrf.mxu1 }
 0x7ee   : > { %v7005_v44 = vsel %vm344_vm0, %v16946_v31, -inf  ;;  %v16967_v15 = vadd.f32 %v6245_v40, %v16892_v42 }
 0x7ef   : > { %7006 = vmax.xlane.f32.xlu0 %v7005_v44  ;;  %v13378_v52 = vpop.f32.mrf.mxu1 }
 0x7f0   : > { %7344 = vrot.lane.b32.xlu1 %v14477_v38, %s14571_s30  ;;  %v16952_v63 = vadd.f32 %v13378_v52, %v16900_v30  ;;  %v7002_v25 = vsel %vm344_vm0, %v16967_v15, -inf  ;;  %v5578_v52 = vld [vmem:[#allocation3 + $0x98] sm:$0xff] }
 0x7f1   : > { %v6255_v27 = vpop.f32.mrf.mxu1 }
 0x7f2   : > { %v7011_v5 = vsel %vm344_vm0, %v16952_v63, -inf  ;;  %v16970_v58 = vadd.f32 %v6255_v27, %v16922_v51 }
 0x7f3   : > { %7012 = vmax.xlane.f32.xlu0 %v7011_v5 }
 0x7f4   : > { %v7008_v21 = vsel %vm344_vm0, %v16970_v58, -inf }
 0x7fb   : > { %v13389_v4 = vpop.f32.mrf.mxu1 }
 0x7fc   : > { %v16957_v33 = vadd.f32 %v13389_v4, %v16879_v2 }
 0x7fd   : > { %v6366_v53 = vpop.f32.mrf.mxu1 }
 0x7fe   : > { %v7017_v8 = vsel %vm344_vm0, %v16957_v33, -inf  ;;  %v16975_v29 = vadd.f32 %v6366_v53, %v16892_v42  ;;  %v5577_v53 = vld [vmem:[#allocation3 + $0x90] sm:$0xff] }
 0x7ff   : > { %7018 = vmax.xlane.f32.xlu0 %v7017_v8  ;;  %v13392_v10 = vpop.f32.mrf.mxu1 }
 0x800   : > { %v16962_v61 = vadd.f32 %v13392_v10, %v16900_v30  ;;  %v7014_v55 = vsel %vm344_vm0, %v16975_v29, -inf }
 0x801   : > { %v6376_v36 = vpop.f32.mrf.mxu1 }
 0x802   : > { %v7023_v57 = vsel %vm344_vm0, %v16962_v61, -inf  ;;  %v16981_v56 = vadd.f32 %v6376_v36, %v16922_v51 }
 0x803   : > { %7024 = vmax.xlane.f32.xlu0 %v7023_v57 }
 0x804   : > { %v7020_v18 = vsel %vm344_vm0, %v16981_v56, -inf }
 0x80b   : > { %v13403_v62 = vpop.f32.mrf.mxu1 }
 0x80c   : > { %v16989_v34 = vadd.f32 %v13403_v62, %v16879_v2 }
 0x80d   : > { %v6487_v54 = vpop.f32.mrf.mxu1 }
 0x80e   : > { %v7029_v26 = vsel %vm344_vm0, %v16989_v34, -inf  ;;  %v17009_v45 = vadd.f32 %v6487_v54, %v16892_v42 }
 0x80f   : > { %v13406_v46 = vpop.f32.mrf.mxu1 }
 0x810   : > { %v16992_v48 = vadd.f32 %v13406_v46, %v16900_v30  ;;  %v7026_v43 = vsel %vm344_vm0, %v17009_v45, -inf  ;;  %v5580_v46 = vld [vmem:[#allocation3 + $0xa8] sm:$0xff] }
 0x811   : > { %v6497_v17 = vpop.f32.mrf.mxu1 }
 0x812   : > { %v7035_v12 = vsel %vm344_vm0, %v16992_v48, -inf  ;;  %v17012_v28 = vadd.f32 %v6497_v17, %v16922_v51 }
 0x814   : > { %7003 = vmax.xlane.f32.xlu1 %v7002_v25  ;;  %v7032_v16 = vsel %vm344_vm0, %v17012_v28, -inf }
 0x818   : > { %7009 = vmax.xlane.f32.xlu1 %v7008_v21  ;;  %v14481_v21 = vld [vmem:[#allocation2 + $0x28] sm:$0xff] }
 0x819   : > { %7342 = vrot.lane.b32.xlu0 %v14478_v60, %s14571_s30 }
 0x81c   : > { %7015 = vmax.xlane.f32.xlu1 %v7014_v55 }
 0x820   : > { %7021 = vmax.xlane.f32.xlu1 %v7020_v18 }
 0x826   : > { %v13431_v24 = vpop.f32.mrf.mxu1 }
 0x827   : > { %v16997_v35 = vadd.f32 %v13431_v24, %v16879_v2 }
 0x828   : > { %v6729_v23 = vpop.f32.mrf.mxu1 }
 0x829   : > { %v7053_v37 = vsel %vm344_vm0, %v16997_v35, -inf  ;;  %v17017_v22 = vadd.f32 %v6729_v23, %v16892_v42 }
 0x82b   : > { %v7050_v41 = vsel %vm344_vm0, %v17017_v22, -inf }
 0x82e   : > { %v13434_v3 = vpop.f32.mrf.mxu1 }
 0x82f   : > { %v17002_v11 = vadd.f32 %v13434_v3, %v16900_v30 }
 0x830   : > { %v6739_v13 = vpop.f32.mrf.mxu1 }
 0x831   : > { %7457 = vrot.lane.b32.xlu1 %v14479_v19, %s14571_s30  ;;  %v7059_v50 = vsel %vm344_vm0, %v17002_v11, -inf  ;;  %v17023_v20 = vadd.f32 %v6739_v13, %v16922_v51 }
 0x833   : > { %v7056_v7 = vsel %vm344_vm0, %v17023_v20, -inf }
 0x838   : > { %7030 = vmax.xlane.f32.xlu0 %v7029_v26  ;;  %v5579_v26 = vld [vmem:[#allocation3 + $0xa0] sm:$0xff] }
 0x83c   : > { %7036 = vmax.xlane.f32.xlu0 %v7035_v12 }
 0x840   : > { %7054 = vmax.xlane.f32.xlu0 %v7053_v37  ;;  %v5582_v37 = vld [vmem:[#allocation3 + $0xb8] sm:$0xff] }
 0x842   : > { %v13459_v4 = vpop.f32.mrf.mxu1 }
 0x843   : > { %v17039_v36 = vadd.f32 %v13459_v4, %v16879_v2 }
 0x844   : > { %7060 = vmax.xlane.f32.xlu0 %v7059_v50  ;;  %v6971_v25 = vpop.f32.mrf.mxu1 }
 0x845   : > { %v7077_v62 = vsel %vm344_vm0, %v17039_v36, -inf }
 0x846   : > { %v13462_v60 = vpop.f32.mrf.mxu1 }
 0x847   : > { %v17044_v18 = vadd.f32 %v13462_v60, %v16900_v30 }
 0x849   : > { %v7083_v17 = vsel %vm344_vm0, %v17044_v18, -inf }
 0x855   : > { %7027 = vmax.xlane.f32.xlu1 %v7026_v43 }
 0x859   : > { %7033 = vmax.xlane.f32.xlu1 %v7032_v16  ;;  %v5581_v16 = vld [vmem:[#allocation3 + $0xb0] sm:$0xff] }
 0x85a   : > { %7455 = vrot.lane.b32.xlu0 %v14480_v47, %s14571_s30 }
 0x85d   : > { %7051 = vmax.xlane.f32.xlu1 %v7050_v41 }
 0x861   : > { %7057 = vmax.xlane.f32.xlu1 %v7056_v7  ;;  %v5584_v7 = vld [vmem:[#allocation3 + $0xc8] sm:$0xff] }
 0x863   : > { %v13329_v1 = vpop.f32.mrf.mxu0 }
 0x864   : > { %v5930_v49 = vadd.f32 %v13329_v1, %v5576_v0 }
 0x865   : > { %v5834_v14 = vpop.f32.mrf.mxu0 }
 0x866   : > { %5962 = vst.msk [vmem:[#allocation3 + $0x88] sm:$0xff] %vm344_vm0, %v5930_v49  ;;  %v5929_v40 = vadd.f32 %v5834_v14, %v5575_v59  ;;  %v5583_v49 = vld [vmem:[#allocation3 + $0xc0] sm:$0xff] }
 0x868   : > { %5961 = vst.msk [vmem:[#allocation3 + $0x80] sm:$0xff] %vm344_vm0, %v5929_v40  ;;  %v17031_v44 = vpop.xlane.xlu1 %6994 }
 0x86a   : > { %v17034_v57 = vpop.xlane.xlu0 %6991 }
 0x86b   : > { %v13332_v38 = vpop.f32.mrf.mxu0 }
 0x86c   : > { %v7345_v5 = vpop.permute.xlu1 %7344  ;;  %v5932_v27 = vadd.f32 %v13332_v38, %v5578_v52  ;;  %v5586_v52 = vld [vmem:[#allocation3 + $0xd8] sm:$0xff] }
 0x86d   : > { %13467 = vmatprep.subr.mxu0 %v7345_v5  ;;  %v5844_v8 = vpop.f32.mrf.mxu0 }
 0x86e   : > { %5964 = vst.msk [vmem:[#allocation3 + $0x98] sm:$0xff] %vm344_vm0, %v5932_v27  ;;  %13468 = vmatpush3.msra.mxu0 %v7345_v5  ;;  %v5931_v10 = vadd.f32 %v5844_v8, %v5577_v53  ;;  %v17041_v55 = vpop.xlane.xlu0 %7000  ;;  %v5585_v27 = vld [vmem:[#allocation3 + $0xd0] sm:$0xff] }
 0x870   : > { %5963 = vst.msk [vmem:[#allocation3 + $0x90] sm:$0xff] %vm344_vm0, %v5931_v10  ;;  %v5588_v10 = vld [vmem:[#allocation3 + $0xe8] sm:$0xff] }
 0x872   : > { %7453 = vrot.lane.b32.xlu1 %v14481_v21, %s14571_s30  ;;  %v17048_v54 = vpop.xlane.xlu0 %6997 }
 0x878   : > { %v17053_v3 = vpop.xlane.xlu0 %7006 }
 0x879   : > { %7078 = vmax.xlane.f32.xlu0 %v7077_v62  ;;  %v5587_v62 = vld [vmem:[#allocation3 + $0xe0] sm:$0xff] }
 0x87c   : > { %v13335_v19 = vpop.f32.mrf.mxu0  ;;  %v17056_v47 = vpop.xlane.xlu0 %7012 }
 0x87d   : > { %v5934_v24 = vadd.f32 %v13335_v19, %v5580_v46  ;;  %7084 = vmax.xlane.f32.xlu0 %v7083_v17 }
 0x87e   : > { %v5854_v23 = vpop.f32.mrf.mxu0 }
 0x87f   : > { %5966 = vst.msk [vmem:[#allocation3 + $0xa8] sm:$0xff] %vm344_vm0, %v5934_v24  ;;  %v5933_v12 = vadd.f32 %v5854_v23, %v5579_v26  ;;  %v17066_v24 = vadd.f32 %v6971_v25, %v16892_v42  ;;  %v5590_v26 = vld [vmem:[#allocation3 + $0xf8] sm:$0xff] }
 0x881   : > { %5965 = vst.msk [vmem:[#allocation3 + $0xa0] sm:$0xff] %vm344_vm0, %v5933_v12  ;;  %v13338_v50 = vpop.f32.mrf.mxu0  ;;  %v6981_v12 = vpop.f32.mrf.mxu1  ;;  %v7074_v25 = vsel %vm344_vm0, %v17066_v24, -inf }
 0x882   : > { %v5936_v43 = vadd.f32 %v13338_v50, %v5582_v37  ;;  %v5589_v50 = vld [vmem:[#allocation3 + $0xf0] sm:$0xff] }
 0x883   : > { %v5864_v13 = vpop.f32.mrf.mxu0 }
 0x884   : > { %5968 = vst.msk [vmem:[#allocation3 + $0xb8] sm:$0xff] %vm344_vm0, %v5936_v43  ;;  %v5935_v41 = vadd.f32 %v5864_v13, %v5581_v16  ;;  %v14482_v16 = vld [vmem:[#allocation2 + $0x20] sm:$0xff] }
 0x885   : > { %v13341_v0 = vpop.f32.mrf.mxu0 }
 0x886   : > { %5967 = vst.msk [vmem:[#allocation3 + $0xb0] sm:$0xff] %vm344_vm0, %v5935_v41  ;;  %v5938_v1 = vadd.f32 %v13341_v0, %v5584_v7  ;;  %v17072_v41 = vadd.f32 %v6981_v12, %v16922_v51  ;;  %v7087_v7 = vsub.f32 %v16898_v32, %v17031_v44  ;;  %v7093_v32 = vsub.f32 %v16952_v63, %v17056_v47 }
 0x887   : > { %v5874_v59 = vpop.f32.mrf.mxu0 }
 0x888   : > { %5970 = vst.msk [vmem:[#allocation3 + $0xc8] sm:$0xff] %vm344_vm0, %v5938_v1  ;;  %v7019_v14 = vpop.xlane.xlu0 %7018  ;;  %v5937_v40 = vadd.f32 %v5874_v59, %v5583_v49  ;;  %v7080_v0 = vsel %vm344_vm0, %v17072_v41, -inf  ;;  %v7120_v1 = vmul.f32 1.442695, %v7087_v7  ;;  %v7089_v49 = vsub.f32 %v16920_v6, %v17041_v55 }
 0x889   : > { %v13344_v38 = vpop.f32.mrf.mxu0 }
 0x88a   : > { %5969 = vst.msk [vmem:[#allocation3 + $0xc0] sm:$0xff] %vm344_vm0, %v5937_v40  ;;  %v5940_v5 = vadd.f32 %v13344_v38, %v5586_v52  ;;  %14199 = vpow2.f32 %v7120_v1  ;;  %v7124_v40 = vmul.f32 1.442695, %v7089_v49  ;;  %v7091_v52 = vsub.f32 %v16946_v31, %v17053_v3 }
 0x88b   : > { %v5884_v4 = vpop.f32.mrf.mxu0 }
 0x88c   : > { %5972 = vst.msk [vmem:[#allocation3 + $0xd8] sm:$0xff] %vm344_vm0, %v5940_v5  ;;  %v5939_v53 = vadd.f32 %v5884_v4, %v5585_v27  ;;  %v7025_v8 = vpop.xlane.xlu0 %7024  ;;  %14201 = vpow2.f32 %v7124_v40  ;;  %v7128_v5 = vmul.f32 1.442695, %v7091_v52  ;;  %v7132_v27 = vmul.f32 1.442695, %v7093_v32 }
 0x88d   : > { %v13347_v21 = vpop.f32.mrf.mxu0  ;;  %v7095_v4 = vsub.f32 %v16957_v33, %v7019_v14  ;;  %v7097_v55 = vsub.f32 %v16962_v61, %v7025_v8  ;;  %v7086_v61 = vsub.f32 %v16908_v39, %v17034_v57 }
 0x88e   : > { %5971 = vst.msk [vmem:[#allocation3 + $0xd0] sm:$0xff] %vm344_vm0, %v5939_v53  ;;  %v5942_v60 = vadd.f32 %v13347_v21, %v5588_v10  ;;  %14203 = vpow2.f32 %v7128_v5  ;;  %v14483_v10 = vld [vmem:[#allocation2 + $0x58] sm:$0xff] }
 0x88f   : > { %v5894_v46 = vpop.f32.mrf.mxu0  ;;  %14205 = vpow2.f32 %v7132_v27  ;;  %v7136_v6 = vmul.f32 1.442695, %v7095_v4  ;;  %v7140_v63 = vmul.f32 1.442695, %v7097_v55 }
 0x890   : > { %5974 = vst.msk [vmem:[#allocation3 + $0xe8] sm:$0xff] %vm344_vm0, %v5942_v60  ;;  %v5941_v19 = vadd.f32 %v5894_v46, %v5587_v62  ;;  %v7343_v17 = vpop.permute.xlu0 %7342  ;;  %v7118_v62 = vmul.f32 1.442695, %v7086_v61  ;;  %v7088_v46 = vsub.f32 %v16931_v9, %v17048_v54 }
 0x891   : > { %v13350_v23 = vpop.f32.mrf.mxu0  ;;  %13469 = vmatprep.subr.mxu0 %v7343_v17  ;;  %14207 = vpow2.f32 %v7136_v6 }
 0x892   : > { %5973 = vst.msk [vmem:[#allocation3 + $0xe0] sm:$0xff] %vm344_vm0, %v5941_v19  ;;  %v5944_v37 = vadd.f32 %v13350_v23, %v5590_v26  ;;  %13470 = vmatpush3.msra.mxu0 %v7343_v17  ;;  %14209 = vpow2.f32 %v7140_v63  ;;  %v7122_v39 = vmul.f32 1.442695, %v7088_v46 }
 0x893   : > { %v5904_v43 = vpop.f32.mrf.mxu0  ;;  %7451 = vrot.lane.b32.xlu0 %v14482_v16, %s14571_s30  ;;  %14211 = vpow2.f32 %v7118_v62 }
 0x894   : > { %5976 = vst.msk [vmem:[#allocation3 + $0xf8] sm:$0xff] %vm344_vm0, %v5944_v37  ;;  %v5943_v13 = vadd.f32 %v5904_v43, %v5589_v50  ;;  %14213 = vpow2.f32 %v7122_v39 }
 0x896   : > { %5975 = vst.msk [vmem:[#allocation3 + $0xf0] sm:$0xff] %vm344_vm0, %v5943_v13  ;;  %7075 = vmax.xlane.f32.xlu1 %v7074_v25 }
 0x897   : > { %v17092_v3 = vpop.eup %14199 }
 0x898   : > { %v7185_v47 = vsel %vm344_vm0, %v17092_v3, 0.0 }
 0x899   : > { %v17097_v33 = vpop.eup %14201 }
 0x89a   : > { %7081 = vmax.xlane.f32.xlu1 %v7080_v0  ;;  %v7191_v14 = vsel %vm344_vm0, %v17097_v33, 0.0 }
 0x89b   : > { %v17101_v21 = vpop.eup %14203 }
 0x89c   : > { %v7197_v8 = vsel %vm344_vm0, %v17101_v21, 0.0  ;;  %v17107_v60 = vpop.eup %14205 }
 0x89d   : > { %v7004_v59 = vpop.xlane.xlu1 %7003  ;;  %v7203_v17 = vsel %vm344_vm0, %v17107_v60, 0.0 }
 0x89e   : > { %v7090_v19 = vsub.f32 %v16967_v15, %v7004_v59  ;;  %v17114_v26 = vpop.eup %14207 }
 0x89f   : > { %v7209_v37 = vsel %vm344_vm0, %v17114_v26, 0.0  ;;  %v17119_v50 = vpop.eup %14209 }
 0x8a0   : > { %v7126_v57 = vmul.f32 1.442695, %v7090_v19  ;;  %v7215_v16 = vsel %vm344_vm0, %v17119_v50, 0.0  ;;  %v14484_v19 = vld [vmem:[#allocation2 + $0x50] sm:$0xff] }
 0x8a1   : > { %v7010_v38 = vpop.xlane.xlu1 %7009 }
 0x8a2   : > { %v7092_v23 = vsub.f32 %v16970_v58, %v7010_v38  ;;  %14215 = vpow2.f32 %v7126_v57 }
 0x8a4   : > { %v7130_v54 = vmul.f32 1.442695, %v7092_v23 }
 0x8a5   : > { %v7016_v44 = vpop.xlane.xlu1 %7015 }
 0x8a6   : > { %v7094_v13 = vsub.f32 %v16975_v29, %v7016_v44 }
 0x8a8   : > { %v7134_v7 = vmul.f32 1.442695, %v7094_v13 }
 0x8a9   : > { %v7022_v53 = vpop.xlane.xlu1 %7021 }
 0x8aa   : > { %v7096_v0 = vsub.f32 %v16981_v56, %v7022_v53 }
 0x8ab   : > { %7566 = vrot.lane.b32.xlu1 %v14483_v10, %s14571_s30 }
 0x8ac   : > { %v7138_v1 = vmul.f32 1.442695, %v7096_v0  ;;  %v14486_v0 = vld [vmem:[#allocation2 + $0x40] sm:$0xff] }
 0x8ad   : > { %v17090_v31 = vpop.permute.xlu1 %7457 }
 0x8ae   : > { %13477 = vmatprep.subr.mxu0 %v17090_v31 }
 0x8b2   : > { %7186 = vadd.xlane.f32.xlu0 %v7185_v47 }
 0x8b6   : > { %7192 = vadd.xlane.f32.xlu0 %v7191_v14 }
 0x8ba   : > { %7198 = vadd.xlane.f32.xlu0 %v7197_v8 }
 0x8be   : > { %7204 = vadd.xlane.f32.xlu0 %v7203_v17 }
 0x8c1   : > { %v7031_v12 = vpop.xlane.xlu0 %7030 }
 0x8c2   : > { %v7099_v9 = vsub.f32 %v16989_v34, %v7031_v12  ;;  %7210 = vadd.xlane.f32.xlu0 %v7209_v37  ;;  %v17127_v34 = vpop.eup %14211 }
 0x8c3   : > { %v7182_v49 = vsel %vm344_vm0, %v17127_v34, 0.0  ;;  %v17131_v59 = vpop.eup %14213 }
 0x8c4   : > { %v7144_v15 = vmul.f32 1.442695, %v7099_v9  ;;  %v17133_v29 = vpop.eup %14215 }
 0x8c5   : > { %v7037_v43 = vpop.xlane.xlu0 %7036  ;;  %v7194_v38 = vsel %vm344_vm0, %v17133_v29, 0.0 }
 0x8c6   : > { %14217 = vpow2.f32 %v7144_v15  ;;  %v7101_v58 = vsub.f32 %v16992_v48, %v7037_v43  ;;  %7216 = vadd.xlane.f32.xlu0 %v7215_v16  ;;  %v7188_v48 = vsel %vm344_vm0, %v17131_v59, 0.0  ;;  %v14485_v15 = vld [vmem:[#allocation2 + $0x48] sm:$0xff] }
 0x8c7   : > { %14219 = vpow2.f32 %v7130_v54 }
 0x8c8   : > { %v7148_v25 = vmul.f32 1.442695, %v7101_v58 }
 0x8c9   : > { %v7055_v39 = vpop.xlane.xlu0 %7054 }
 0x8ca   : > { %14221 = vpow2.f32 %v7148_v25 }
 0x8cb   : > { %14223 = vpow2.f32 %v7134_v7 }
 0x8cc   : > { %14225 = vpow2.f32 %v7138_v1 }
 0x8cd   : > { %v7061_v25 = vpop.xlane.xlu0 %7060 }
 0x8cf   : > { %7183 = vadd.xlane.f32.xlu1 %v7182_v49 }
 0x8d1   : > { %v17189_v49 = vpop.permute.xlu0 %7455 }
 0x8d3   : > { %v17137_v40 = vpop.eup %14217  ;;  %7189 = vadd.xlane.f32.xlu1 %v7188_v48  ;;  %v7109_v48 = vsub.f32 %v17002_v11, %v7061_v25  ;;  %v14487_v11 = vld [vmem:[#allocation2 + $0x78] sm:$0xff] }
 0x8d4   : > { %v7221_v56 = vsel %vm344_vm0, %v17137_v40, 0.0  ;;  %v17141_v52 = vpop.eup %14219 }
 0x8d5   : > { %7222 = vadd.xlane.f32.xlu0 %v7221_v56  ;;  %v7200_v44 = vsel %vm344_vm0, %v17141_v52, 0.0 }
 0x8d7   : > { %v17145_v5 = vpop.eup %14221  ;;  %7195 = vadd.xlane.f32.xlu1 %v7194_v38  ;;  %v7164_v38 = vmul.f32 1.442695, %v7109_v48 }
 0x8d8   : > { %v7227_v32 = vsel %vm344_vm0, %v17145_v5, 0.0  ;;  %v17151_v27 = vpop.eup %14223 }
 0x8d9   : > { %7228 = vadd.xlane.f32.xlu0 %v7227_v32  ;;  %v7206_v53 = vsel %vm344_vm0, %v17151_v27, 0.0  ;;  %v17155_v10 = vpop.eup %14225 }
 0x8da   : > { %v7212_v47 = vsel %vm344_vm0, %v17155_v10, 0.0 }
 0x8db   : > { %7201 = vadd.xlane.f32.xlu1 %v7200_v44 }
 0x8de   : > { %v7028_v4 = vpop.xlane.xlu1 %7027 }
 0x8df   : > { %v7098_v6 = vsub.f32 %v17009_v45, %v7028_v4  ;;  %7207 = vadd.xlane.f32.xlu1 %v7206_v53  ;;  %v13417_v53 = vpop.f32.mrf.mxu0 }
 0x8e1   : > { %v7142_v55 = vmul.f32 1.442695, %v7098_v6 }
 0x8e2   : > { %v7034_v63 = vpop.xlane.xlu1 %7033 }
 0x8e3   : > { %14227 = vpow2.f32 %v7142_v55  ;;  %v7100_v14 = vsub.f32 %v17012_v28, %v7034_v63  ;;  %7213 = vadd.xlane.f32.xlu1 %v7212_v47  ;;  %v7107_v28 = vsub.f32 %v16997_v35, %v7055_v39  ;;  %v6608_v63 = vpop.f32.mrf.mxu0  ;;  %v17206_v47 = vadd.f32 %v13417_v53, %v16879_v2 }
 0x8e5   : > { %v7146_v61 = vmul.f32 1.442695, %v7100_v14  ;;  %v7160_v12 = vmul.f32 1.442695, %v7107_v28 }
 0x8e6   : > { %v7052_v8 = vpop.xlane.xlu1 %7051 }
 0x8e7   : > { %14229 = vpow2.f32 %v7146_v61  ;;  %v7106_v62 = vsub.f32 %v17017_v22, %v7052_v8  ;;  %v13420_v8 = vpop.f32.mrf.mxu0 }
 0x8e9   : > { %v7158_v46 = vmul.f32 1.442695, %v7106_v62  ;;  %v17211_v62 = vadd.f32 %v13420_v8, %v16900_v30 }
 0x8ea   : > { %v7058_v54 = vpop.xlane.xlu1 %7057 }
 0x8eb   : > { %14231 = vpow2.f32 %v7158_v46  ;;  %v7108_v43 = vsub.f32 %v17023_v20, %v7058_v54  ;;  %v7041_v46 = vsel %vm344_vm0, %v17206_v47, -inf }
 0x8ec   : > { %14233 = vpow2.f32 %v7160_v12 }
 0x8ed   : > { %v7162_v16 = vmul.f32 1.442695, %v7108_v43  ;;  %v14488_v43 = vld [vmem:[#allocation2 + $0x70] sm:$0xff] }
 0x8ee   : > { %v17182_v13 = vpop.permute.xlu1 %7453 }
 0x8ef   : > { %7564 = vrot.lane.b32.xlu0 %v14484_v19, %s14571_s30  ;;  %14235 = vpow2.f32 %v7162_v16 }
 0x8f0   : > { %v17163_v45 = vpop.eup %14227  ;;  %14237 = vpow2.f32 %v7164_v38 }
 0x8f1   : > { %v7218_v17 = vsel %vm344_vm0, %v17163_v45, 0.0 }
 0x8f2   : > { %7219 = vadd.xlane.f32.xlu1 %v7218_v17  ;;  %v7047_v17 = vsel %vm344_vm0, %v17211_v62, -inf }
 0x8f4   : > { %v17167_v57 = vpop.eup %14229 }
 0x8f5   : > { %v7224_v23 = vsel %vm344_vm0, %v17167_v57, 0.0 }
 0x8f6   : > { %7225 = vadd.xlane.f32.xlu1 %v7224_v23 }
 0x8f8   : > { %v17172_v22 = vpop.eup %14231 }
 0x8f9   : > { %v7242_v37 = vsel %vm344_vm0, %v17172_v22, 0.0  ;;  %v17176_v9 = vpop.eup %14233 }
 0x8fa   : > { %7243 = vadd.xlane.f32.xlu1 %v7242_v37  ;;  %v7245_v35 = vsel %vm344_vm0, %v17176_v9, 0.0 }
 0x8fc   : > { %v17192_v20 = vpop.eup %14235 }
 0x8fd   : > { %v7248_v32 = vsel %vm344_vm0, %v17192_v20, 0.0  ;;  %v17202_v55 = vpop.eup %14237 }
 0x8fe   : > { %v7251_v61 = vsel %vm344_vm0, %v17202_v55, 0.0 }
 0x902   : > { %v17194_v56 = vpop.xlane.xlu0 %7078 }
 0x906   : > { %v17198_v44 = vpop.xlane.xlu0 %7084 }
 0x90a   : > { %v17200_v4 = vpop.permute.xlu0 %7451 }
 0x90b   : > { %7562 = vrot.lane.b32.xlu1 %v14485_v15, %s14571_s30 }
 0x90e   : > { %7246 = vadd.xlane.f32.xlu0 %v7245_v35  ;;  %v17224_v35 = vadd.f32 %v6608_v63, %v16892_v42 }
 0x910   : > { %v7038_v25 = vsel %vm344_vm0, %v17224_v35, -inf }
 0x91f   : > { %v17184_v58 = vpop.xlane.xlu1 %7075 }
 0x923   : > { %v17186_v7 = vpop.xlane.xlu1 %7081 }
 0x924   : > { %7560 = vrot.lane.b32.xlu0 %v14486_v0, %s14571_s30 }
 0x927   : > { %v7567_v1 = vpop.permute.xlu1 %7566 }
 0x928   : > { %13491 = vmatprep.subr.mxu1 %v7567_v1 }
 0x929   : > { %13492 = vmatpush3.msra.mxu1 %v7567_v1 }
 0x92f   : > { %7249 = vadd.xlane.f32.xlu1 %v7248_v32 }
 0x93b   : > { %v7187_v6 = vpop.xlane.xlu0 %7186 }
 0x93c   : > { %14239 = vrcp.f32 %v7187_v6 }
 0x93f   : > { %v7193_v14 = vpop.xlane.xlu0 %7192 }
 0x940   : > { %7675 = vrot.lane.b32.xlu1 %v14487_v11, %s14571_s30 }
 0x943   : > { %7252 = vadd.xlane.f32.xlu0 %v7251_v61  ;;  %v7199_v19 = vpop.xlane.xlu0 %7198 }
 0x947   : > { %7042 = vmax.xlane.f32.xlu0 %v7041_v46  ;;  %v7205_v39 = vpop.xlane.xlu0 %7204 }
 0x949   : > { %v14240_v1 = vpop.eup %14239 }
 0x94a   : > { %v7311_v53 = vmul.f32 %v14240_v1, %v17092_v3 }
 0x94b   : > { %7048 = vmax.xlane.f32.xlu0 %v7047_v17  ;;  %v17217_v28 = vpop.xlane.xlu0 %7210  ;;  %v14489_v17 = vld [vmem:[#allocation2 + $0x68] sm:$0xff] }
 0x94f   : > { %v17219_v12 = vpop.xlane.xlu0 %7216 }
 0x958   : > { %v7184_v23 = vpop.xlane.xlu1 %7183 }
 0x959   : > { %14241 = vrcp.f32 %v7184_v23 }
 0x95a   : > { %14243 = vrcp.f32 %v7193_v14 }
 0x95c   : > { %v7190_v37 = vpop.xlane.xlu1 %7189 }
 0x95d   : > { %14245 = vrcp.f32 %v7190_v37 }
 0x95e   : > { %v17221_v15 = vpop.xlane.xlu0 %7222  ;;  %14247 = vrcp.f32 %v7199_v19 }
 0x960   : > { %v7196_v54 = vpop.xlane.xlu1 %7195 }
 0x961   : > { %14249 = vrcp.f32 %v7196_v54  ;;  %7673 = vrot.lane.b32.xlu0 %v14488_v43, %s14571_s30 }
 0x962   : > { %v17227_v16 = vpop.xlane.xlu0 %7228  ;;  %14251 = vrcp.f32 %v7205_v39 }
 0x964   : > { %7039 = vmax.xlane.f32.xlu1 %v7038_v25  ;;  %v7202_v0 = vpop.xlane.xlu1 %7201 }
 0x965   : > { %14253 = vrcp.f32 %v7202_v0 }
 0x966   : > { %v14242_v48 = vpop.eup %14241  ;;  %v7565_v38 = vpop.permute.xlu0 %7564 }
 0x967   : > { %v7310_v32 = vmul.f32 %v14242_v48, %v17127_v34  ;;  %13493 = vmatprep.subr.mxu1 %v7565_v38  ;;  %v14244_v63 = vpop.eup %14243 }
 0x968   : > { %v7208_v6 = vpop.xlane.xlu1 %7207  ;;  %13494 = vmatpush3.msra.mxu1 %v7565_v38  ;;  %v7313_v34 = vmul.f32 %v14244_v63, %v17097_v33 }
 0x969   : > { %14255 = vrcp.f32 %v7208_v6  ;;  %13471 = vmatprep.mubr.msk.f32.mxu0 %vm344_vm0, %v7310_v32  ;;  %v14490_v6 = vld [vmem:[#allocation2 + $0x60] sm:$0xff] }
 0x96a   : > { %v14246_v11 = vpop.eup %14245  ;;  %13472 = vmatmul.mubr.msk.f32.vlgmr.msra.gmra.mxu0 %vm344_vm0, %v7311_v53 }
 0x96b   : > { %13478 = vmatpush3.msra.mxu0 %v17090_v31  ;;  %v7312_v14 = vmul.f32 %v14246_v11, %v17131_v59  ;;  %v14248_v61 = vpop.eup %14247 }
 0x96c   : > { %13479 = vmatprep.subr.mxu0 %v17189_v49  ;;  %v7315_v59 = vmul.f32 %v14248_v61, %v17101_v21 }
 0x96d   : > { %13480 = vmatpush3.msra.mxu0 %v17189_v49  ;;  %13474 = vmatprep.mubr.msk.f32.mxu0 %vm344_vm0, %v7312_v14  ;;  %v6618_v49 = vpop.f32.mrf.mxu0 }
 0x96e   : > { %v14250_v3 = vpop.eup %14249  ;;  %13481 = vmatprep.subr.mxu0 %v17182_v13  ;;  %13475 = vmatmul.mubr.msk.f32.gmra.mxu0 %vm344_vm0, %v7313_v34 }
 0x96f   : > { %13482 = vmatpush3.msra.mxu0 %v17182_v13  ;;  %v7314_v31 = vmul.f32 %v14250_v3, %v17133_v29  ;;  %v14252_v8 = vpop.eup %14251  ;;  %v13445_v19 = vpop.f32.mrf.mxu0 }
 0x970   : > { %13483 = vmatprep.subr.mxu0 %v17200_v4  ;;  %v7317_v13 = vmul.f32 %v14252_v8, %v17107_v60  ;;  %v7214_v29 = vpop.xlane.xlu1 %7213  ;;  %v17258_v23 = vadd.f32 %v13445_v19, %v16879_v2 }
 0x971   : > { %13484 = vmatpush3.msra.mxu0 %v17200_v4  ;;  %13485 = vmatprep.mubr.msk.f32.mxu0 %vm344_vm0, %v7314_v31  ;;  %v6850_v39 = vpop.f32.mrf.mxu0 }
 0x972   : > { %v14254_v33 = vpop.eup %14253  ;;  %13486 = vmatmul.mubr.msk.f32.vlgmr.msra.gmra.mxu0 %vm344_vm0, %v7315_v59  ;;  %v7065_v43 = vsel %vm344_vm0, %v17258_v23, -inf  ;;  %v17281_v38 = vadd.f32 %v6850_v39, %v16892_v42 }
 0x973   : > { %v7316_v46 = vmul.f32 %v14254_v33, %v17141_v52  ;;  %v13448_v37 = vpop.f32.mrf.mxu0 }
 0x974   : > { %v17261_v60 = vadd.f32 %v13448_v37, %v16900_v30  ;;  %v17276_v30 = vadd.f32 %v6618_v49, %v16922_v51  ;;  %v7062_v42 = vsel %vm344_vm0, %v17281_v38, -inf }
 0x975   : > { %7671 = vrot.lane.b32.xlu1 %v14489_v17, %s14571_s30  ;;  %13488 = vmatprep.mubr.msk.f32.mxu0 %vm344_vm0, %v7316_v46 }
 0x976   : > { %v14256_v21 = vpop.eup %14255  ;;  %13489 = vmatmul.mubr.msk.f32.gmra.mxu0 %vm344_vm0, %v7317_v13  ;;  %v7044_v32 = vsel %vm344_vm0, %v17276_v30, -inf }
 0x977   : > { %v7318_v4 = vmul.f32 %v14256_v21, %v17151_v27  ;;  %v7071_v27 = vsel %vm344_vm0, %v17261_v60, -inf }
 0x979   : > { %13499 = vmatprep.mubr.msk.f32.mxu1 %vm344_vm0, %v7318_v4 }
 0x97b   : > { %v7220_v52 = vpop.xlane.xlu1 %7219 }
 0x97c   : > { %14257 = vrcp.f32 %v7220_v52 }
 0x97d   : > { %14259 = vrcp.f32 %v17217_v28 }
 0x97e   : > { %14261 = vrcp.f32 %v7214_v29 }
 0x97f   : > { %v17263_v54 = vpop.xlane.xlu1 %7225  ;;  %14263 = vrcp.f32 %v17219_v12 }
 0x980   : > { %7066 = vmax.xlane.f32.xlu0 %v7065_v43 }
 0x983   : > { %v17267_v25 = vpop.xlane.xlu1 %7243 }
 0x984   : > { %7072 = vmax.xlane.f32.xlu0 %v7071_v27 }
 0x987   : > { %v7563_v2 = vpop.permute.xlu1 %7562 }
 0x988   : > { %13495 = vmatprep.subr.mxu1 %v7563_v2 }
 0x989   : > { %v14258_v0 = vpop.eup %14257  ;;  %13496 = vmatpush3.msra.mxu1 %v7563_v2 }
 0x98a   : > { %v7322_v1 = vmul.f32 %v14258_v0, %v17163_v45  ;;  %v14260_v53 = vpop.eup %14259  ;;  %v6860_v45 = vpop.f32.mrf.mxu0 }
 0x98b   : > { %v14262_v28 = vpop.eup %14261  ;;  %v17287_v12 = vadd.f32 %v6860_v45, %v16922_v51  ;;  %v7319_v11 = vmul.f32 %v14260_v53, %v17114_v26  ;;  %v14491_v26 = vld [vmem:[#allocation2 + $0x98] sm:$0xff] }
 0x98c   : > { %13513 = vmatprep.mubr.msk.f32.mxu0 %vm344_vm0, %v7322_v1  ;;  %v14264_v14 = vpop.eup %14263  ;;  %v7320_v34 = vmul.f32 %v14262_v28, %v17155_v10 }
 0x98d   : > { %v7068_v61 = vsel %vm344_vm0, %v17287_v12, -inf  ;;  %v7321_v51 = vmul.f32 %v14264_v14, %v17119_v50  ;;  %v7114_v14 = vsub.f32 %v17066_v24, %v17184_v58 }
 0x997   : > { %v17278_v48 = vpop.xlane.xlu0 %7246 }
 0x999   : > { %7045 = vmax.xlane.f32.xlu1 %v7044_v32 }
 0x99a   : > { %7669 = vrot.lane.b32.xlu0 %v14490_v6, %s14571_s30 }
 0x99b   : > { %v7561_v63 = vpop.permute.xlu0 %7560 }
 0x99c   : > { %13497 = vmatprep.subr.mxu1 %v7561_v63 }
 0x99d   : > { %7063 = vmax.xlane.f32.xlu1 %v7062_v42  ;;  %13498 = vmatpush3.msra.mxu1 %v7561_v63 }
 0x99e   : > { %13500 = vmatmul.mubr.msk.f32.vlgmr.msra.gmra.mxu1 %vm344_vm0, %v7319_v11 }
 0x99f   : > { %13502 = vmatprep.mubr.msk.f32.mxu1 %vm344_vm0, %v7320_v34 }
 0x9a1   : > { %7069 = vmax.xlane.f32.xlu1 %v7068_v61 }
 0x9a2   : > { %13503 = vmatmul.mubr.msk.f32.gmra.mxu1 %vm344_vm0, %v7321_v51 }
 0x9b2   : > { %7784 = vrot.lane.b32.xlu1 %v14491_v26, %s14571_s30  ;;  %v7174_v26 = vmul.f32 1.442695, %v7114_v14  ;;  %v8635_v14 = vld [vmem:[#allocation2 + $0x18] sm:$0xff] }
 0x9b8   : > { %v17300_v3 = vpop.xlane.xlu1 %7249 }
 0x9bc   : > { %v7676_v31 = vpop.permute.xlu1 %7675 }
 0x9bd   : > { %13505 = vmatprep.subr.mxu0 %v7676_v31 }
 0x9be   : > { %13506 = vmatpush3.msra.mxu0 %v7676_v31 }
 0x9cc   : > { %v17302_v10 = vpop.xlane.xlu0 %7252 }
 0x9d0   : > { %v7043_v59 = vpop.xlane.xlu0 %7042 }
 0x9d1   : > { %v7103_v8 = vsub.f32 %v17206_v47, %v7043_v59 }
 0x9d3   : > { %v7152_v33 = vmul.f32 1.442695, %v7103_v8  ;;  %v14492_v8 = vld [vmem:[#allocation2 + $0x90] sm:$0xff] }
 0x9d4   : > { %v7049_v49 = vpop.xlane.xlu0 %7048 }
 0x9d5   : > { %14265 = vpow2.f32 %v7152_v33  ;;  %v7105_v50 = vsub.f32 %v17211_v62, %v7049_v49  ;;  %v7115_v33 = vsub.f32 %v17039_v36, %v17194_v56  ;;  %v7116_v56 = vsub.f32 %v17072_v41, %v17186_v7 }
 0x9d7   : > { %v7156_v46 = vmul.f32 1.442695, %v7105_v50 }
 0x9d8   : > { %v7674_v19 = vpop.permute.xlu0 %7673 }
 0x9d9   : > { %14267 = vpow2.f32 %v7156_v46  ;;  %13507 = vmatprep.subr.mxu0 %v7674_v19  ;;  %v7176_v46 = vmul.f32 1.442695, %v7115_v33  ;;  %v8647_v33 = vld [vmem:[#allocation2 + $0x78] sm:$0xff] }
 0x9da   : > { %13508 = vmatpush3.msra.mxu0 %v7674_v19 }
 0x9e2   : > { %v17306_v13 = vpop.eup %14265 }
 0x9e3   : > { %v7233_v17 = vsel %vm344_vm0, %v17306_v13, 0.0 }
 0x9e4   : > { %7234 = vadd.xlane.f32.xlu0 %v7233_v17 }
 0x9e6   : > { %v17310_v21 = vpop.eup %14267 }
 0x9e7   : > { %v7239_v47 = vsel %vm344_vm0, %v17310_v21, 0.0 }
 0x9e8   : > { %7240 = vadd.xlane.f32.xlu0 %v7239_v47  ;;  %v14493_v47 = vld [vmem:[#allocation2 + $0x88] sm:$0xff] }
 0x9ed   : > { %v7040_v29 = vpop.xlane.xlu1 %7039 }
 0x9ee   : > { %v7102_v62 = vsub.f32 %v17224_v35, %v7040_v29  ;;  %v7178_v29 = vmul.f32 1.442695, %v7116_v56  ;;  %v8650_v56 = vld [vmem:[#allocation2 + $0x90] sm:$0xff] }
 0x9f0   : > { %v7150_v4 = vmul.f32 1.442695, %v7102_v62  ;;  %v14494_v62 = vld [vmem:[#allocation2 + $0x80] sm:$0xff] }
 0x9f1   : > { %v7672_v39 = vpop.permute.xlu1 %7671 }
 0x9f2   : > { %14269 = vpow2.f32 %v7150_v4  ;;  %13509 = vmatprep.subr.mxu0 %v7672_v39  ;;  %v7117_v4 = vsub.f32 %v17044_v18, %v17198_v44  ;;  %v14496_v18 = vld [vmem:[#allocation2 + $0xa8] sm:$0xff]  ;;  %v14497_v44 = vld [vmem:[#allocation2 + $0xa0] sm:$0xff] }
 0x9f3   : > { %13510 = vmatpush3.msra.mxu0 %v7672_v39  ;;  %14271 = vrcp.f32 %v17221_v15 }
 0x9f4   : > { %14273 = vrcp.f32 %v17263_v54 }
 0x9f5   : > { %14275 = vrcp.f32 %v17227_v16 }
 0x9f6   : > { %14277 = vrcp.f32 %v17267_v25 }
 0x9ff   : > { %v17315_v52 = vpop.eup %14269 }
 0xa00   : > { %v7230_v37 = vsel %vm344_vm0, %v17315_v52, 0.0  ;;  %v14272_v1 = vpop.eup %14271 }
 0xa01   : > { %7231 = vadd.xlane.f32.xlu1 %v7230_v37  ;;  %v14274_v32 = vpop.eup %14273  ;;  %v7323_v15 = vmul.f32 %v14272_v1, %v17137_v40  ;;  %v7180_v37 = vmul.f32 1.442695, %v7117_v4  ;;  %v14499_v1 = vld [vmem:[#allocation2 + $0xc0] sm:$0xff] }
 0xa02   : > { %v14276_v54 = vpop.eup %14275  ;;  %v7324_v16 = vmul.f32 %v14274_v32, %v17167_v57 }
 0xa03   : > { %v14278_v25 = vpop.eup %14277 }
 0xa09   : > { %v7067_v35 = vpop.xlane.xlu0 %7066 }
 0xa0a   : > { %v7111_v43 = vsub.f32 %v17258_v23, %v7067_v35  ;;  %v7325_v23 = vmul.f32 %v14276_v54, %v17145_v5  ;;  %v14502_v54 = vld [vmem:[#allocation2 + $0xb0] sm:$0xff] }
 0xa0c   : > { %v7168_v27 = vmul.f32 1.442695, %v7111_v43 }
 0xa0d   : > { %v7073_v2 = vpop.xlane.xlu0 %7072 }
 0xa0e   : > { %14279 = vpow2.f32 %v7168_v27  ;;  %v7113_v0 = vsub.f32 %v17261_v60, %v7073_v2  ;;  %v7330_v60 = vmul.f32 %v14278_v25, %v17172_v22  ;;  %v14495_v27 = vld [vmem:[#allocation2 + $0xb8] sm:$0xff]  ;;  %v14498_v2 = vld [vmem:[#allocation2 + $0xd0] sm:$0xff] }
 0xa0f   : > { %v8634_v25 = vld [vmem:[#allocation2 + $0x10] sm:$0xff] }
 0xa10   : > { %v7172_v53 = vmul.f32 1.442695, %v7113_v0 }
 0xa11   : > { %v7670_v45 = vpop.permute.xlu0 %7669 }
 0xa12   : > { %14281 = vpow2.f32 %v7172_v53  ;;  %13511 = vmatprep.subr.mxu0 %v7670_v45 }
 0xa13   : > { %13512 = vmatpush3.msra.mxu0 %v7670_v45  ;;  %v14500_v45 = vld [vmem:[#allocation2 + $0xf0] sm:$0xff] }
 0xa14   : > { %13514 = vmatmul.mubr.msk.f32.vlgmr.msra.gmra.mxu0 %vm344_vm0, %v7323_v15  ;;  %v14501_v15 = vld [vmem:[#allocation2 + $0xe0] sm:$0xff] }
 0xa15   : > { %13516 = vmatprep.mubr.msk.f32.mxu0 %vm344_vm0, %v7324_v16 }
 0xa18   : > { %13517 = vmatmul.mubr.msk.f32.gmra.mxu0 %vm344_vm0, %v7325_v23  ;;  %v14503_v23 = vld [vmem:[#allocation2 + $0xd8] sm:$0xff] }
 0xa19   : > { %13541 = vmatprep.mubr.msk.f32.mxu0 %vm344_vm0, %v7330_v60  ;;  %v8632_v60 = vld [vmem:[#allocation2] sm:$0xff] }
 0xa1b   : > { %v17333_v40 = vpop.eup %14279 }
 0xa1c   : > { %v7257_v28 = vsel %vm344_vm0, %v17333_v40, 0.0 }
 0xa1d   : > { %7258 = vadd.xlane.f32.xlu0 %v7257_v28  ;;  %v14504_v28 = vld [vmem:[#allocation2 + $0xc8] sm:$0xff] }
 0xa1f   : > { %v17337_v57 = vpop.eup %14281 }
 0xa20   : > { %v7263_v6 = vsel %vm344_vm0, %v17337_v57, 0.0 }
 0xa21   : > { %7264 = vadd.xlane.f32.xlu0 %v7263_v6 }
 0xa22   : > { %v7046_v63 = vpop.xlane.xlu1 %7045 }
 0xa23   : > { %v7104_v5 = vsub.f32 %v17276_v30, %v7046_v63  ;;  %v8639_v63 = vld [vmem:[#allocation2 + $0x38] sm:$0xff] }
 0xa25   : > { %v7154_v22 = vmul.f32 1.442695, %v7104_v5  ;;  %v14505_v5 = vld [vmem:[#allocation2 + $0xf8] sm:$0xff] }
 0xa26   : > { %v7064_v11 = vpop.xlane.xlu1 %7063 }
 0xa27   : > { %14283 = vpow2.f32 %v7154_v22  ;;  %v7110_v42 = vsub.f32 %v17281_v38, %v7064_v11  ;;  %v8638_v11 = vld [vmem:[#allocation2 + $0x30] sm:$0xff] }
 0xa29   : > { %v7166_v34 = vmul.f32 1.442695, %v7110_v42  ;;  %v14506_v42 = vld [vmem:[#allocation2 + $0xe8] sm:$0xff] }
 0xa2a   : > { %v7070_v61 = vpop.xlane.xlu1 %7069 }
 0xa2b   : > { %14285 = vpow2.f32 %v7166_v34  ;;  %v7112_v51 = vsub.f32 %v17287_v12, %v7070_v61  ;;  %v8633_v34 = vld [vmem:[#allocation2 + $0x8] sm:$0xff]  ;;  %v8643_v61 = vld [vmem:[#allocation2 + $0x58] sm:$0xff] }
 0xa2d   : > { %v7170_v31 = vmul.f32 1.442695, %v7112_v51 }
 0xa2e   : > { %v7785_v59 = vpop.permute.xlu1 %7784 }
 0xa2f   : > { %14287 = vpow2.f32 %v7170_v31  ;;  %13519 = vmatprep.subr.mxu1 %v7785_v59 }
 0xa30   : > { %13520 = vmatpush3.msra.mxu1 %v7785_v59  ;;  %14289 = vpow2.f32 %v7174_v26  ;;  %v8642_v26 = vld [vmem:[#allocation2 + $0x50] sm:$0xff]  ;;  %v8637_v59 = vld [vmem:[#allocation2 + $0x28] sm:$0xff] }
 0xa31   : > { %14291 = vpow2.f32 %v7176_v46  ;;  %v8646_v46 = vld [vmem:[#allocation2 + $0x70] sm:$0xff] }
 0xa32   : > { %14293 = vpow2.f32 %v7178_v29  ;;  %v8645_v29 = vld [vmem:[#allocation2 + $0x68] sm:$0xff] }
 0xa33   : > { %14295 = vpow2.f32 %v7180_v37 }
 0xa34   : > { %v17346_v30 = vpop.eup %14283 }
 0xa35   : > { %v7236_v38 = vsel %vm344_vm0, %v17346_v30, 0.0 }
 0xa36   : > { %7237 = vadd.xlane.f32.xlu1 %v7236_v38 }
 0xa37   : > { %7782 = vrot.lane.b32.xlu0 %v14492_v8, %s14571_s30  ;;  %v8636_v8 = vld [vmem:[#allocation2 + $0x20] sm:$0xff] }
 0xa38   : > { %v17351_v24 = vpop.eup %14285 }
 0xa39   : > { %v7254_v58 = vsel %vm344_vm0, %v17351_v24, 0.0 }
 0xa3a   : > { %7255 = vadd.xlane.f32.xlu1 %v7254_v58 }
 0xa3c   : > { %v17355_v12 = vpop.eup %14287 }
 0xa3d   : > { %v7260_v49 = vsel %vm344_vm0, %v17355_v12, 0.0  ;;  %v17361_v50 = vpop.eup %14289 }
 0xa3e   : > { %7261 = vadd.xlane.f32.xlu1 %v7260_v49  ;;  %v7266_v19 = vsel %vm344_vm0, %v17361_v50, 0.0  ;;  %v17365_v17 = vpop.eup %14291 }
 0xa3f   : > { %v7269_v36 = vsel %vm344_vm0, %v17365_v17, 0.0  ;;  %v17375_v39 = vpop.eup %14293 }
 0xa40   : > { %v7272_v35 = vsel %vm344_vm0, %v17375_v39, 0.0  ;;  %v17379_v43 = vpop.eup %14295 }
 0xa41   : > { %v7275_v7 = vsel %vm344_vm0, %v17379_v43, 0.0 }
 0xa42   : > { %7267 = vadd.xlane.f32.xlu1 %v7266_v19  ;;  %v8651_v19 = vld [vmem:[#allocation2 + $0x98] sm:$0xff] }
 0xa53   : > { %7780 = vrot.lane.b32.xlu1 %v14493_v47, %s14571_s30  ;;  %v8641_v47 = vld [vmem:[#allocation2 + $0x48] sm:$0xff] }
 0xa56   : > { %7270 = vadd.xlane.f32.xlu0 %v7269_v36  ;;  %v8640_v36 = vld [vmem:[#allocation2 + $0x40] sm:$0xff] }
 0xa6c   : > { %7778 = vrot.lane.b32.xlu0 %v14494_v62, %s14571_s30 }
 0xa6d   : > { %v7235_v53 = vpop.xlane.xlu0 %7234 }
 0xa71   : > { %v7241_v16 = vpop.xlane.xlu0 %7240 }
 0xa77   : > { %7273 = vadd.xlane.f32.xlu1 %v7272_v35  ;;  %v8655_v35 = vld [vmem:[#allocation2 + $0xb8] sm:$0xff] }
 0xa88   : > { %7893 = vrot.lane.b32.xlu1 %v14495_v27, %s14571_s30 }
 0xa8a   : > { %v7232_v41 = vpop.xlane.xlu1 %7231 }
 0xa8b   : > { %14297 = vrcp.f32 %v7232_v41  ;;  %7276 = vadd.xlane.f32.xlu0 %v7275_v7 }
 0xa8c   : > { %7889 = vrot.lane.b32.xlu1 %v14496_v18, %s14571_s30  ;;  %14299 = vrcp.f32 %v7235_v53  ;;  %v8653_v53 = vld [vmem:[#allocation2 + $0xa8] sm:$0xff] }
 0xa90   : > { %7887 = vrot.lane.b32.xlu1 %v14497_v44, %s14571_s30 }
 0xa94   : > { %8000 = vrot.lane.b32.xlu1 %v14498_v2, %s14571_s30 }
 0xa98   : > { %v14298_v0 = vpop.eup %14297  ;;  %7996 = vrot.lane.b32.xlu1 %v14499_v1, %s14571_s30  ;;  %v8649_v1 = vld [vmem:[#allocation2 + $0x88] sm:$0xff] }
 0xa99   : > { %v7326_v32 = vmul.f32 %v14298_v0, %v17315_v52  ;;  %v14300_v4 = vpop.eup %14299  ;;  %v8654_v0 = vld [vmem:[#allocation2 + $0xb0] sm:$0xff] }
 0xa9a   : > { %v7327_v41 = vmul.f32 %v14300_v4, %v17306_v13 }
 0xa9b   : > { %13527 = vmatprep.mubr.msk.f32.mxu1 %vm344_vm0, %v7326_v32  ;;  %v8648_v32 = vld [vmem:[#allocation2 + $0x80] sm:$0xff] }
 0xa9c   : > { %8109 = vrot.lane.b32.xlu1 %v14500_v45, %s14571_s30 }
 0xaa0   : > { %8105 = vrot.lane.b32.xlu1 %v14501_v15, %s14571_s30  ;;  %v8663_v15 = vld [vmem:[#allocation2 + $0xf8] sm:$0xff] }
 0xaa1   : > { %7891 = vrot.lane.b32.xlu0 %v14502_v54, %s14571_s30 }
 0xaa4   : > { %8693 = vrot.lane.b32.xlu1 %v8634_v25, %s14572_s16 }
 0xaa5   : > { %8002 = vrot.lane.b32.xlu0 %v14503_v23, %s14571_s30 }
 0xaa6   : > { %v17395_v52 = vpop.xlane.xlu0 %7258 }
 0xaa8   : > { %8689 = vrot.lane.b32.xlu1 %v8632_v60, %s14572_s16 }
 0xaa9   : > { %7998 = vrot.lane.b32.xlu0 %v14504_v28, %s14571_s30  ;;  %v8657_v28 = vld [vmem:[#allocation2 + $0xc8] sm:$0xff] }
 0xaaa   : > { %v17399_v6 = vpop.xlane.xlu0 %7264 }
 0xaac   : > { %8816 = vrot.lane.b32.xlu1 %v8639_v63, %s14572_s16 }
 0xaad   : > { %8111 = vrot.lane.b32.xlu0 %v14505_v5, %s14571_s30 }
 0xaae   : > { %v7783_v22 = vpop.permute.xlu0 %7782 }
 0xaaf   : > { %13521 = vmatprep.subr.mxu1 %v7783_v22 }
 0xab0   : > { %8814 = vrot.lane.b32.xlu1 %v8638_v11, %s14572_s16  ;;  %13522 = vmatpush3.msra.mxu1 %v7783_v22 }
 0xab1   : > { %8107 = vrot.lane.b32.xlu0 %v14506_v42, %s14571_s30  ;;  %v8661_v42 = vld [vmem:[#allocation2 + $0xe8] sm:$0xff] }
 0xab4   : > { %8685 = vrot.lane.b32.xlu1 %v8634_v25, %s14573_s17  ;;  %v17466_v25 = vld [vmem:[#allocation2 + $0xf0] sm:$0xff] }
 0xab5   : > { %8695 = vrot.lane.b32.xlu0 %v8635_v14, %s14572_s16 }
 0xab8   : > { %8687 = vrot.lane.b32.xlu1 %v8635_v14, %s14573_s17 }
 0xab9   : > { %8691 = vrot.lane.b32.xlu0 %v8633_v34, %s14572_s16 }
 0xabc   : > { %8937 = vrot.lane.b32.xlu1 %v8643_v61, %s14572_s16 }
 0xabd   : > { %8681 = vrot.lane.b32.xlu0 %v8632_v60, %s14573_s17  ;;  %v8652_v60 = vld [vmem:[#allocation2 + $0xa0] sm:$0xff] }
 0xabf   : > { %v7238_v51 = vpop.xlane.xlu1 %7237 }
 0xac0   : > { %8935 = vrot.lane.b32.xlu1 %v8642_v26, %s14572_s16  ;;  %14301 = vrcp.f32 %v7238_v51 }
 0xac1   : > { %8683 = vrot.lane.b32.xlu0 %v8633_v34, %s14573_s17  ;;  %14303 = vrcp.f32 %v7241_v16 }
 0xac3   : > { %v7256_v31 = vpop.xlane.xlu1 %7255 }
 0xac4   : > { %8806 = vrot.lane.b32.xlu1 %v8638_v11, %s14573_s17  ;;  %14305 = vrcp.f32 %v7256_v31  ;;  %v17489_v11 = vpop.f32.mrf.mxu0 }
 0xac5   : > { %8812 = vrot.lane.b32.xlu0 %v8637_v59, %s14572_s16  ;;  %14307 = vrcp.f32 %v17278_v48 }
 0xac6   : > { %14309 = vrcp.f32 %v17300_v3  ;;  %v17481_v3 = vld [vmem:[#allocation2 + $0xe0] sm:$0xff] }
 0xac7   : > { %v17415_v38 = vpop.xlane.xlu1 %7261  ;;  %14311 = vrcp.f32 %v17302_v10 }
 0xac8   : > { %8808 = vrot.lane.b32.xlu1 %v8639_v63, %s14573_s17 }
 0xac9   : > { %8810 = vrot.lane.b32.xlu0 %v8636_v8, %s14572_s16 }
 0xacb   : > { %v17419_v58 = vpop.xlane.xlu1 %7267 }
 0xacc   : > { %9058 = vrot.lane.b32.xlu1 %v8647_v33, %s14572_s16  ;;  %14313 = vrcp.f32 %v17419_v58 }
 0xacd   : > { %8802 = vrot.lane.b32.xlu0 %v8636_v8, %s14573_s17  ;;  %v14302_v37 = vpop.eup %14301  ;;  %14315 = vrcp.f32 %v17395_v52 }
 0xace   : > { %v14304_v7 = vpop.eup %14303  ;;  %v7328_v18 = vmul.f32 %v14302_v37, %v17346_v30  ;;  %v8644_v30 = vld [vmem:[#allocation2 + $0x60] sm:$0xff]  ;;  %14317 = vrcp.f32 %v17415_v38 }
 0xacf   : > { %v7781_v49 = vpop.permute.xlu1 %7780  ;;  %v7329_v2 = vmul.f32 %v14304_v7, %v17310_v21  ;;  %v17451_v21 = vld [vmem:[#allocation2 + $0xd8] sm:$0xff]  ;;  %14319 = vrcp.f32 %v17399_v6 }
 0xad0   : > { %9056 = vrot.lane.b32.xlu1 %v8646_v46, %s14572_s16  ;;  %13523 = vmatprep.subr.mxu1 %v7781_v49 }
 0xad1   : > { %13524 = vmatpush3.msra.mxu1 %v7781_v49  ;;  %8804 = vrot.lane.b32.xlu0 %v8637_v59, %s14573_s17  ;;  %v14306_v44 = vpop.eup %14305  ;;  %v7432_v59 = vpop.f32.mrf.mxu0 }
 0xad2   : > { %v7334_v13 = vmul.f32 %v14306_v44, %v17351_v24  ;;  %v8658_v24 = vld [vmem:[#allocation2 + $0xd0] sm:$0xff]  ;;  %v14308_v52 = vpop.eup %14307 }
 0xad3   : > { %v14310_v14 = vpop.eup %14309  ;;  %v7331_v51 = vmul.f32 %v14308_v52, %v17176_v9 }
 0xad4   : > { %9179 = vrot.lane.b32.xlu1 %v8651_v19, %s14572_s16  ;;  %v7332_v38 = vmul.f32 %v14310_v14, %v17192_v20  ;;  %v13476_v20 = vpop.f32.mrf.mxu0 }
 0xad5   : > { %8933 = vrot.lane.b32.xlu0 %v8641_v47, %s14572_s16 }
 0xad8   : > { %8929 = vrot.lane.b32.xlu1 %v8643_v61, %s14573_s17  ;;  %v8656_v61 = vld [vmem:[#allocation2 + $0xc0] sm:$0xff] }
 0xad9   : > { %8931 = vrot.lane.b32.xlu0 %v8640_v36, %s14572_s16 }
 0xadc   : > { %9177 = vrot.lane.b32.xlu1 %v8650_v56, %s14572_s16 }
 0xadd   : > { %8923 = vrot.lane.b32.xlu0 %v8640_v36, %s14573_s17 }
 0xadf   : > { %v17431_v62 = vpop.xlane.xlu0 %7270 }
 0xae0   : > { %9046 = vrot.lane.b32.xlu1 %v8645_v29, %s14573_s17  ;;  %14321 = vrcp.f32 %v17431_v62 }
 0xae1   : > { %8925 = vrot.lane.b32.xlu0 %v8641_v47, %s14573_s17 }
 0xae3   : > { %v7779_v27 = vpop.permute.xlu0 %7778 }
 0xae4   : > { %9300 = vrot.lane.b32.xlu1 %v8655_v35, %s14572_s16  ;;  %13525 = vmatprep.subr.mxu1 %v7779_v27 }
 0xae5   : > { %9054 = vrot.lane.b32.xlu0 %v8645_v29, %s14572_s16  ;;  %13526 = vmatpush3.msra.mxu1 %v7779_v27 }
 0xae6   : > { %13528 = vmatmul.mubr.msk.f32.vlgmr.msra.gmra.mxu1 %vm344_vm0, %v7327_v41 }
 0xae7   : > { %13530 = vmatprep.mubr.msk.f32.mxu1 %vm344_vm0, %v7328_v18 }
 0xae8   : > { %9050 = vrot.lane.b32.xlu1 %v8647_v33, %s14573_s17 }
 0xae9   : > { %8927 = vrot.lane.b32.xlu0 %v8642_v26, %s14573_s17  ;;  %v14312_v26 = vpop.eup %14311 }
 0xaea   : > { %13531 = vmatmul.mubr.msk.f32.gmra.mxu1 %vm344_vm0, %v7329_v2  ;;  %v14314_v31 = vpop.eup %14313  ;;  %v7333_v33 = vmul.f32 %v14312_v26, %v17202_v55 }
 0xaeb   : > { %13555 = vmatprep.mubr.msk.f32.mxu1 %vm344_vm0, %v7334_v13  ;;  %v14316_v58 = vpop.eup %14315 }
 0xaec   : > { %9298 = vrot.lane.b32.xlu1 %v8654_v0, %s14572_s16  ;;  %v14318_v49 = vpop.eup %14317 }
 0xaed   : > { %9052 = vrot.lane.b32.xlu0 %v8644_v30, %s14572_s16  ;;  %v7336_v55 = vmul.f32 %v14318_v49, %v17355_v12 }
 0xaf0   : > { %9167 = vrot.lane.b32.xlu1 %v8649_v1, %s14573_s17 }
 0xaf1   : > { %9044 = vrot.lane.b32.xlu0 %v8644_v30, %s14573_s17 }
 0xaf4   : > { %9421 = vrot.lane.b32.xlu1 %v17451_v21, %s14572_s16 }
 0xaf5   : > { %9175 = vrot.lane.b32.xlu0 %v8649_v1, %s14572_s16 }
 0xaf8   : > { %9171 = vrot.lane.b32.xlu1 %v8651_v19, %s14573_s17  ;;  %v7335_v19 = vmul.f32 %v14316_v58, %v17333_v40  ;;  %v7442_v40 = vpop.f32.mrf.mxu0 }
 0xaf9   : > { %9048 = vrot.lane.b32.xlu0 %v8646_v46, %s14573_s17  ;;  %v7338_v46 = vmul.f32 %v14314_v31, %v17361_v50  ;;  %v8246_v50 = vld [vmem:[%s18446_s2 + $0x10] sm:$0xff] }
 0xafc   : > { %9419 = vrot.lane.b32.xlu1 %v8658_v24, %s14572_s16 }
 0xafd   : > { %9173 = vrot.lane.b32.xlu0 %v8648_v32, %s14572_s16 }
 0xb00   : > { %9288 = vrot.lane.b32.xlu1 %v8653_v53, %s14573_s17  ;;  %v7274_v45 = vpop.xlane.xlu1 %7273 }
 0xb01   : > { %9165 = vrot.lane.b32.xlu0 %v8648_v32, %s14573_s17  ;;  %14323 = vrcp.f32 %v7274_v45 }
 0xb04   : > { %9542 = vrot.lane.b32.xlu1 %v8663_v15, %s14572_s16  ;;  %v7894_v54 = vpop.permute.xlu1 %7893 }
 0xb05   : > { %13533 = vmatprep.subr.mxu0 %v7894_v54  ;;  %9296 = vrot.lane.b32.xlu0 %v8653_v53, %s14572_s16 }
 0xb06   : > { %13534 = vmatpush3.msra.mxu0 %v7894_v54 }
 0xb08   : > { %9292 = vrot.lane.b32.xlu1 %v8655_v35, %s14573_s17  ;;  %v7890_v16 = vpop.permute.xlu1 %7889  ;;  %v13487_v35 = vpop.f32.mrf.mxu0 }
 0xb09   : > { %9169 = vrot.lane.b32.xlu0 %v8650_v56, %s14573_s17  ;;  %v14320_v56 = vpop.eup %14319 }
 0xb0a   : > { %v7337_v4 = vmul.f32 %v14320_v56, %v17337_v57  ;;  %v14322_v12 = vpop.eup %14321  ;;  %v7541_v44 = vpop.f32.mrf.mxu0 }
 0xb0b   : > { %v7339_v57 = vmul.f32 %v14322_v12, %v17365_v17 }
 0xb0c   : > { %9540 = vrot.lane.b32.xlu1 %v17466_v25, %s14572_s16  ;;  %v7888_v23 = vpop.permute.xlu1 %7887 }
 0xb0d   : > { %9294 = vrot.lane.b32.xlu0 %v8652_v60, %s14572_s16 }
 0xb0e   : > { %v14324_v37 = vpop.eup %14323 }
 0xb0f   : > { %v7340_v18 = vmul.f32 %v14324_v37, %v17375_v39  ;;  %v13490_v39 = vpop.f32.mrf.mxu0 }
 0xb10   : > { %9409 = vrot.lane.b32.xlu1 %v8657_v28, %s14573_s17  ;;  %v8001_v63 = vpop.permute.xlu1 %8000 }
 0xb11   : > { %9286 = vrot.lane.b32.xlu0 %v8652_v60, %s14573_s17 }
 0xb14   : > { %9411 = vrot.lane.b32.xlu1 %v8658_v24, %s14573_s17  ;;  %v7997_v5 = vpop.permute.xlu1 %7996  ;;  %v7277_v48 = vpop.xlane.xlu0 %7276 }
 0xb15   : > { %9417 = vrot.lane.b32.xlu0 %v8657_v28, %s14572_s16  ;;  %14325 = vrcp.f32 %v7277_v48 }
 0xb18   : > { %9536 = vrot.lane.b32.xlu1 %v17481_v3, %s14572_s16  ;;  %v17486_v10 = vpop.permute.xlu1 %8109  ;;  %v7892_v22 = vpop.permute.xlu0 %7891 }
 0xb19   : > { %9290 = vrot.lane.b32.xlu0 %v8654_v0, %s14573_s17  ;;  %13535 = vmatprep.subr.mxu0 %v7892_v22  ;;  %v13501_v0 = vpop.f32.mrf.mxu1 }
 0xb1a   : > { %13536 = vmatpush3.msra.mxu0 %v7892_v22 }
 0xb1b   : > { %13537 = vmatprep.subr.mxu0 %v7890_v16 }
 0xb1c   : > { %9530 = vrot.lane.b32.xlu1 %v8661_v42, %s14573_s17  ;;  %v17492_v34 = vpop.permute.xlu1 %8105  ;;  %v8003_v6 = vpop.permute.xlu0 %8002  ;;  %13538 = vmatpush3.msra.mxu0 %v7890_v16 }
 0xb1d   : > { %9415 = vrot.lane.b32.xlu0 %v8656_v61, %s14572_s16  ;;  %13539 = vmatprep.subr.mxu0 %v7888_v23 }
 0xb1e   : > { %13547 = vmatprep.subr.mxu1 %v8003_v6  ;;  %13540 = vmatpush3.msra.mxu0 %v7888_v23 }
 0xb1f   : > { %13548 = vmatpush3.msra.mxu1 %v8003_v6  ;;  %13542 = vmatmul.mubr.msk.f32.vlgmr.msra.gmra.mxu0 %vm344_vm0, %v7331_v51 }
 0xb20   : > { %9534 = vrot.lane.b32.xlu1 %v8663_v15, %s14573_s17  ;;  %v17500_v8 = vpop.permute.xlu1 %8693  ;;  %13549 = vmatprep.subr.mxu1 %v8001_v63  ;;  %v7999_v9 = vpop.permute.xlu0 %7998 }
 0xb21   : > { %13544 = vmatprep.mubr.msk.f32.mxu0 %vm344_vm0, %v7332_v38  ;;  %13550 = vmatpush3.msra.mxu1 %v8001_v63 }
 0xb22   : > { %9407 = vrot.lane.b32.xlu0 %v8656_v61, %s14573_s17  ;;  %13551 = vmatprep.subr.mxu1 %v7999_v9  ;;  %v14326_v7 = vpop.eup %14325 }
 0xb23   : > { %13552 = vmatpush3.msra.mxu1 %v7999_v9  ;;  %13545 = vmatmul.mubr.msk.f32.gmra.mxu0 %vm344_vm0, %v7333_v33  ;;  %v7341_v13 = vmul.f32 %v14326_v7, %v17379_v43  ;;  %v7551_v43 = vpop.f32.mrf.mxu0 }
 0xb24   : > { %v17508_v47 = vpop.permute.xlu1 %8689  ;;  %13553 = vmatprep.subr.mxu1 %v7997_v5  ;;  %v8112_v36 = vpop.permute.xlu0 %8111  ;;  %13569 = vmatprep.mubr.msk.f32.mxu0 %vm344_vm0, %v7338_v46 }
 0xb25   : > { %13554 = vmatpush3.msra.mxu1 %v7997_v5  ;;  %13561 = vmatprep.subr.mxu0 %v8112_v36  ;;  %v13515_v45 = vpop.f32.mrf.mxu0 }
 0xb26   : > { %9538 = vrot.lane.b32.xlu0 %v8661_v42, %s14572_s16  ;;  %13556 = vmatmul.mubr.msk.f32.vlgmr.msra.gmra.mxu1 %vm344_vm0, %v7335_v19  ;;  %s18309_s16 = scalar_lea.vmem %s18450_s6, %s12064_s9 }
 0xb27   : > { %13558 = vmatprep.mubr.msk.f32.mxu1 %vm344_vm0, %v7336_v55  ;;  %13562 = vmatpush3.msra.mxu0 %v8112_v36 }
 0xb28   : > { %v17518_v29 = vpop.permute.xlu1 %8816  ;;  %13563 = vmatprep.subr.mxu0 %v17486_v10  ;;  %v8108_v62 = vpop.permute.xlu0 %8107  ;;  %13575 = vmatprep.subr.mxu1 %v8246_v50 }
 0xb29   : > { %13564 = vmatpush3.msra.mxu0 %v17486_v10  ;;  %13576 = vmatpush3.msra.mxu1 %v8246_v50 }
 0xb2a   : > { %9413 = vrot.lane.b32.xlu0 %v17451_v21, %s14573_s17  ;;  %13559 = vmatmul.mubr.msk.f32.gmra.mxu1 %vm344_vm0, %v7337_v4  ;;  %v7650_v21 = vpop.f32.mrf.mxu1 }
 0xb2b   : > { %13565 = vmatprep.subr.mxu0 %v8108_v62  ;;  %13577 = vmatprep.mubr.msk.f32.mxu1 %vm787_vm2, %v7432_v59 }
 0xb2c   : > { %13566 = vmatpush3.msra.mxu0 %v8108_v62  ;;  %v8815_v27 = vpop.permute.xlu1 %8814  ;;  %v8696_v41 = vpop.permute.xlu0 %8695 }
 0xb2d   : > { %13567 = vmatprep.subr.mxu0 %v17492_v34  ;;  %v13504_v53 = vpop.f32.mrf.mxu1 }
 0xb2e   : > { %13568 = vmatpush3.msra.mxu0 %v17492_v34  ;;  %9528 = vrot.lane.b32.xlu0 %v17481_v3, %s14573_s17 }
 0xb2f   : > { %13570 = vmatmul.mubr.msk.f32.vlgmr.msra.gmra.mxu0 %vm344_vm0, %v7339_v57  ;;  %13578 = vmatmul.mubr.msk.f32.vlgmr.msra.gmra.mxu1 %vm787_vm2, %v17489_v11  ;;  %v7660_v16 = vpop.f32.mrf.mxu1 }
 0xb30   : > { %13625 = vmatprep.subr.msk.mxu0 %vm787_vm2, %v8696_v41  ;;  %13572 = vmatprep.mubr.msk.f32.mxu0 %vm344_vm0, %v7340_v18  ;;  %v8686_v17 = vpop.permute.xlu1 %8685  ;;  %v8692_v2 = vpop.permute.xlu0 %8691 }
 0xb31   : > { %13580 = vmatprep.mubr.msk.f32.mxu1 %vm787_vm2, %v7442_v40  ;;  %13626 = vmatpush3.xpose.msk.msra.mxu0 %vm787_vm2, %v8696_v41 }
 0xb32   : > { %13627 = vmatprep.subr.msk.mxu0 %vm787_vm2, %v17500_v8  ;;  %9532 = vrot.lane.b32.xlu0 %v17466_v25, %s14573_s17  ;;  %v7759_v25 = vpop.f32.mrf.mxu0 }
 0xb33   : > { %13573 = vmatmul.mubr.msk.f32.gmra.mxu0 %vm344_vm0, %v7341_v13  ;;  %13581 = vmatmul.mubr.msk.f32.gmra.mxu1 %vm787_vm2, %v13476_v20 }
 0xb34   : > { %13583 = vmatprep.mubr.msk.f32.mxu1 %vm787_vm2, %v7541_v44  ;;  %v8688_v30 = vpop.permute.xlu1 %8687  ;;  %v8682_v1 = vpop.permute.xlu0 %8681 }
 0xb35   : > { %13628 = vmatpush3.xpose.msk.msra.mxu0 %vm787_vm2, %v17500_v8  ;;  %13633 = vmatprep.mubr.msk.f32.mxu0 %vm787_vm2, %v8682_v1  ;;  %v13518_v28 = vpop.f32.mrf.mxu0 }
 0xb36   : > { %13629 = vmatprep.subr.msk.mxu0 %vm787_vm2, %v8692_v2 }
 0xb37   : > { %13584 = vmatmul.mubr.msk.f32.gmra.mxu1 %vm787_vm2, %v13487_v35  ;;  %v7769_v48 = vpop.f32.mrf.mxu0 }
 0xb38   : > { %13586 = vmatprep.mubr.msk.f32.mxu1 %vm787_vm2, %v7551_v43  ;;  %v8938_v24 = vpop.permute.xlu1 %8937  ;;  %v8684_v32 = vpop.permute.xlu0 %8683 }
 0xb39   : > { %13630 = vmatpush3.xpose.msk.msra.mxu0 %vm787_vm2, %v8692_v2 }
 0xb3a   : > { %13631 = vmatprep.subr.msk.mxu0 %vm787_vm2, %v17508_v47 }
 0xb3b   : > { %13587 = vmatmul.mubr.msk.f32.gmra.mxu1 %vm787_vm2, %v13490_v39 }
 0xb3c   : > { %13589 = vmatprep.mubr.msk.f32.mxu1 %vm787_vm2, %v7650_v21  ;;  %v8936_v15 = vpop.permute.xlu1 %8935  ;;  %v8813_v54 = vpop.permute.xlu0 %8812 }
 0xb3d   : > { %13632 = vmatpush3.xpose.msk.msra.mxu0 %vm787_vm2, %v17508_v47 }
 0xb3e   : > { %13639 = vmatprep.subr.msk.mxu0 %vm787_vm2, %v17518_v29 }
 0xb3f   : > { %13590 = vmatmul.mubr.msk.f32.gmra.mxu1 %vm787_vm2, %v13501_v0 }
 0xb40   : > { %13634 = vmatmul.mubr.msk.f32.vlgmr.msra.gmra.mxu0 %vm787_vm2, %v8684_v32  ;;  %13592 = vmatprep.mubr.msk.f32.mxu1 %vm787_vm2, %v7660_v16  ;;  %v8807_v23 = vpop.permute.xlu1 %8806  ;;  %v8811_v60 = vpop.permute.xlu0 %8810 }
 0xb41   : > { %13636 = vmatprep.mubr.msk.f32.mxu0 %vm787_vm2, %v8686_v17  ;;  %13640 = vmatpush3.xpose.msk.msra.mxu0 %vm787_vm2, %v17518_v29 }
 0xb42   : > { %13641 = vmatprep.subr.msk.mxu0 %vm787_vm2, %v8815_v27 }
 0xb43   : > { %13593 = vmatmul.mubr.msk.f32.gmra.mxu1 %vm787_vm2, %v13504_v53 }
 0xb44   : > { %13637 = vmatmul.mubr.msk.f32.gmra.mxu0 %vm787_vm2, %v8688_v30  ;;  %13595 = vmatprep.mubr.msk.f32.mxu1 %vm787_vm2, %v7759_v25  ;;  %v8809_v63 = vpop.permute.xlu1 %8808  ;;  %v8803_v5 = vpop.permute.xlu0 %8802 }
 0xb45   : > { %13642 = vmatpush3.xpose.msk.msra.mxu0 %vm787_vm2, %v8815_v27  ;;  %13647 = vmatprep.mubr.msk.f32.mxu0 %vm787_vm2, %v8803_v5 }
 0xb46   : > { %13643 = vmatprep.subr.msk.mxu0 %vm787_vm2, %v8813_v54 }
 0xb47   : > { %13596 = vmatmul.mubr.msk.f32.gmra.mxu1 %vm787_vm2, %v13515_v45 }
 0xb48   : > { %13598 = vmatprep.mubr.msk.f32.mxu1 %vm787_vm2, %v7769_v48  ;;  %v9059_v3 = vpop.permute.xlu1 %9058  ;;  %v8805_v10 = vpop.permute.xlu0 %8804 }
 0xb49   : > { %13644 = vmatpush3.xpose.msk.msra.mxu0 %vm787_vm2, %v8813_v54 }
 0xb4a   : > { %13645 = vmatprep.subr.msk.mxu0 %vm787_vm2, %v8811_v60 }
 0xb4b   : > { %13599 = vmatmul.mubr.msk.f32.gmra.mxu1 %vm787_vm2, %v13518_v28  ;;  %v8215_v28 = vld [vmem:[#allocation3 + $0x8] sm:$0xff] }
 0xb4c   : > { %v9057_v22 = vpop.permute.xlu1 %9056  ;;  %v8934_v52 = vpop.permute.xlu0 %8933 }
 0xb4d   : > { %13646 = vmatpush3.xpose.msk.msra.mxu0 %vm787_vm2, %v8811_v60 }
 0xb4e   : > { %13653 = vmatprep.subr.msk.mxu0 %vm787_vm2, %v8938_v24 }
 0xb50   : > { %13648 = vmatmul.mubr.msk.f32.vlgmr.msra.gmra.mxu0 %vm787_vm2, %v8805_v10  ;;  %v9180_v11 = vpop.permute.xlu1 %9179  ;;  %v8932_v42 = vpop.permute.xlu0 %8931 }
 0xb51   : > { %13650 = vmatprep.mubr.msk.f32.mxu0 %vm787_vm2, %v8807_v23  ;;  %13654 = vmatpush3.xpose.msk.msra.mxu0 %vm787_vm2, %v8938_v24 }
 0xb52   : > { %13655 = vmatprep.subr.msk.mxu0 %vm787_vm2, %v8936_v15  ;;  %13681 = vmatprep.subr.msk.mxu1 %vm787_vm2, %v9180_v11 }
 0xb53   : > { %13682 = vmatpush3.xpose.msk.msra.mxu1 %vm787_vm2, %v9180_v11  ;;  %v8217_v11 = vld [vmem:[#allocation3 + $0x18] sm:$0xff] }
 0xb54   : > { %13651 = vmatmul.mubr.msk.f32.gmra.mxu0 %vm787_vm2, %v8809_v63  ;;  %v8930_v14 = vpop.permute.xlu1 %8929  ;;  %v8924_v34 = vpop.permute.xlu0 %8923 }
 0xb55   : > { %13656 = vmatpush3.xpose.msk.msra.mxu0 %vm787_vm2, %v8936_v15  ;;  %13661 = vmatprep.mubr.msk.f32.mxu0 %vm787_vm2, %v8924_v34 }
 0xb56   : > { %13657 = vmatprep.subr.msk.mxu0 %vm787_vm2, %v8934_v52 }
 0xb58   : > { %v9178_v6 = vpop.permute.xlu1 %9177  ;;  %v8926_v61 = vpop.permute.xlu0 %8925 }
 0xb59   : > { %13658 = vmatpush3.xpose.msk.msra.mxu0 %vm787_vm2, %v8934_v52  ;;  %13683 = vmatprep.subr.msk.mxu1 %vm787_vm2, %v9178_v6 }
 0xb5a   : > { %13659 = vmatprep.subr.msk.mxu0 %vm787_vm2, %v8932_v42  ;;  %13684 = vmatpush3.xpose.msk.msra.mxu1 %vm787_vm2, %v9178_v6  ;;  %v8216_v6 = vld [vmem:[#allocation3 + $0x10] sm:$0xff] }
 0xb5c   : > { %v9047_v51 = vpop.permute.xlu1 %9046  ;;  %v9055_v26 = vpop.permute.xlu0 %9054 }
 0xb5d   : > { %13660 = vmatpush3.xpose.msk.msra.mxu0 %vm787_vm2, %v8932_v42 }
 0xb5e   : > { %13667 = vmatprep.subr.msk.mxu0 %vm787_vm2, %v9059_v3 }
 0xb60   : > { %13662 = vmatmul.mubr.msk.f32.vlgmr.msra.gmra.mxu0 %vm787_vm2, %v8926_v61  ;;  %v9301_v31 = vpop.permute.xlu1 %9300  ;;  %v8928_v59 = vpop.permute.xlu0 %8927 }
 0xb61   : > { %13668 = vmatpush3.xpose.msk.msra.mxu0 %vm787_vm2, %v9059_v3  ;;  %13664 = vmatprep.mubr.msk.f32.mxu0 %vm787_vm2, %v8928_v59  ;;  %v8214_v3 = vld [vmem:[#allocation3] sm:$0xff] }
 0xb62   : > { %13669 = vmatprep.subr.msk.mxu0 %vm787_vm2, %v9057_v22 }
 0xb64   : > { %13665 = vmatmul.mubr.msk.f32.gmra.mxu0 %vm787_vm2, %v8930_v14  ;;  %v9051_v38 = vpop.permute.xlu1 %9050  ;;  %v9053_v8 = vpop.permute.xlu0 %9052 }
 0xb65   : > { %13670 = vmatpush3.xpose.msk.msra.mxu0 %vm787_vm2, %v9057_v22 }
 0xb66   : > { %13671 = vmatprep.subr.msk.mxu0 %vm787_vm2, %v9055_v26 }
 0xb68   : > { %v9299_v9 = vpop.permute.xlu1 %9298  ;;  %v9045_v58 = vpop.permute.xlu0 %9044 }
 0xb69   : > { %13672 = vmatpush3.xpose.msk.msra.mxu0 %vm787_vm2, %v9055_v26  ;;  %13675 = vmatprep.mubr.msk.f32.mxu0 %vm787_vm2, %v9045_v58  ;;  %v8219_v26 = vld [vmem:[#allocation3 + $0x28] sm:$0xff] }
 0xb6a   : > { %13673 = vmatprep.subr.msk.mxu0 %vm787_vm2, %v9053_v8  ;;  %v11930_v58 = vld [vmem:[%s18448_s4 + $0x68] sm:$0xff] }
 0xb6c   : > { %v17609_v33 = vpop.permute.xlu1 %9167  ;;  %v9176_v49 = vpop.permute.xlu0 %9175 }
 0xb6d   : > { %13674 = vmatpush3.xpose.msk.msra.mxu0 %vm787_vm2, %v9053_v8  ;;  %13685 = vmatprep.subr.msk.mxu1 %vm787_vm2, %v9176_v49 }
 0xb6e   : > { %13695 = vmatprep.subr.msk.mxu0 %vm787_vm2, %v9301_v31  ;;  %13686 = vmatpush3.xpose.msk.msra.mxu1 %vm787_vm2, %v9176_v49  ;;  %v8670_v49 = vld [vmem:[%s15118_s20 + $0x8] sm:$0xff] }
 0xb70   : > { %13676 = vmatmul.mubr.msk.f32.vlgmr.msra.gmra.mxu0 %vm787_vm2, %v9047_v51  ;;  %v17616_v46 = vpop.permute.xlu1 %9421  ;;  %v9049_v20 = vpop.permute.xlu0 %9048 }
 0xb71   : > { %13696 = vmatpush3.xpose.msk.msra.mxu0 %vm787_vm2, %v9301_v31  ;;  %13678 = vmatprep.mubr.msk.f32.mxu0 %vm787_vm2, %v9049_v20  ;;  %v8221_v20 = vld [vmem:[#allocation3 + $0x38] sm:$0xff] }
 0xb72   : > { %13697 = vmatprep.subr.msk.mxu0 %vm787_vm2, %v9299_v9 }
 0xb74   : > { %13679 = vmatmul.mubr.msk.f32.gmra.mxu0 %vm787_vm2, %v9051_v38  ;;  %v17622_v19 = vpop.permute.xlu1 %9171  ;;  %v9174_v47 = vpop.permute.xlu0 %9173  ;;  %v8218_v38 = vld [vmem:[#allocation3 + $0x20] sm:$0xff] }
 0xb75   : > { %13698 = vmatpush3.xpose.msk.msra.mxu0 %vm787_vm2, %v9299_v9  ;;  %13687 = vmatprep.subr.msk.mxu1 %vm787_vm2, %v9174_v47 }
 0xb76   : > { %13688 = vmatpush3.xpose.msk.msra.mxu1 %vm787_vm2, %v9174_v47 }
 0xb77   : > { %13709 = vmatprep.subr.msk.mxu1 %vm787_vm2, %v17616_v46 }
 0xb78   : > { %v17629_v36 = vpop.permute.xlu1 %9419  ;;  %v17631_v56 = vpop.permute.xlu0 %9165 }
 0xb7c   : > { %v9289_v55 = vpop.permute.xlu1 %9288  ;;  %v9297_v50 = vpop.permute.xlu0 %9296 }
 0xb7d   : > { %13699 = vmatprep.subr.msk.mxu0 %vm787_vm2, %v9297_v50 }
 0xb7e   : > { %13700 = vmatpush3.xpose.msk.msra.mxu0 %vm787_vm2, %v9297_v50  ;;  %v8669_v50 = vld [vmem:[%s15118_s20] sm:$0xff] }
 0xb80   : > { %v9543_v40 = vpop.permute.xlu1 %9542  ;;  %v17635_v29 = vpop.permute.xlu0 %9169 }
 0xb84   : > { %v9295_v62 = vpop.permute.xlu0 %9294  ;;  %v9293_v4 = vpop.permute.xlu1 %9292 }
 0xb85   : > { %13701 = vmatprep.subr.msk.mxu0 %vm787_vm2, %v9295_v62 }
 0xb86   : > { %13702 = vmatpush3.xpose.msk.msra.mxu0 %vm787_vm2, %v9295_v62 }
 0xb87   : > { %13723 = vmatprep.subr.msk.mxu0 %vm787_vm2, %v9543_v40 }
 0xb88   : > { %v9287_v12 = vpop.permute.xlu0 %9286  ;;  %v9541_v37 = vpop.permute.xlu1 %9540 }
 0xb89   : > { %13703 = vmatprep.mubr.msk.f32.mxu0 %vm787_vm2, %v9287_v12 }
 0xb8a   : > { %13704 = vmatmul.mubr.msk.f32.vlgmr.msra.gmra.mxu0 %vm787_vm2, %v9289_v55 }
 0xb8b   : > { %13724 = vmatpush3.xpose.msk.msra.mxu0 %vm787_vm2, %v9543_v40  ;;  %v8220_v40 = vld [vmem:[#allocation3 + $0x30] sm:$0xff] }
 0xb8c   : > { %13725 = vmatprep.subr.msk.mxu0 %vm787_vm2, %v9541_v37  ;;  %v17644_v35 = vpop.permute.xlu0 %9417  ;;  %v17647_v41 = vpop.permute.xlu1 %9409 }
 0xb8f   : > { %13726 = vmatpush3.xpose.msk.msra.mxu0 %vm787_vm2, %v9541_v37 }
 0xb90   : > { %v9291_v27 = vpop.permute.xlu0 %9290  ;;  %v17653_v7 = vpop.permute.xlu1 %9411 }
 0xb91   : > { %13706 = vmatprep.mubr.msk.f32.mxu0 %vm787_vm2, %v9291_v27 }
 0xb92   : > { %13707 = vmatmul.mubr.msk.f32.gmra.mxu0 %vm787_vm2, %v9293_v4 }
 0xb94   : > { %v17651_v57 = vpop.permute.xlu0 %9415  ;;  %v9537_v17 = vpop.permute.xlu1 %9536 }
 0xb98   : > { %v17655_v18 = vpop.permute.xlu0 %9407  ;;  %v9531_v13 = vpop.permute.xlu1 %9530 }
 0xb9c   : > { %v9539_v44 = vpop.permute.xlu0 %9538  ;;  %v9535_v43 = vpop.permute.xlu1 %9534 }
 0xb9d   : > { %13727 = vmatprep.subr.msk.mxu0 %vm787_vm2, %v9539_v44 }
 0xb9e   : > { %13728 = vmatpush3.xpose.msk.msra.mxu0 %vm787_vm2, %v9539_v44  ;;  %v11931_v44 = vld [vmem:[%s18448_s4 + $0x70] sm:$0xff] }
 0xb9f   : > { %13729 = vmatprep.subr.msk.mxu0 %vm787_vm2, %v9537_v17 }
 0xba0   : > { %v17660_v2 = vpop.permute.xlu0 %9413 }
 0xba2   : > { %13730 = vmatpush3.xpose.msk.msra.mxu0 %vm787_vm2, %v9537_v17  ;;  %v8671_v17 = vld [vmem:[%s15118_s20 + $0x10] sm:$0xff] }
 0xba4   : > { %v9529_v39 = vpop.permute.xlu0 %9528 }
 0xba5   : > { %13731 = vmatprep.mubr.msk.f32.mxu0 %vm787_vm2, %v9529_v39 }
 0xba6   : > { %v13529_v0 = vpop.f32.mrf.mxu1  ;;  %13732 = vmatmul.mubr.msk.f32.vlgmr.msra.gmra.mxu0 %vm787_vm2, %v9531_v13 }
 0xba8   : > { %v9533_v30 = vpop.permute.xlu0 %9532  ;;  %v7868_v1 = vpop.f32.mrf.mxu1 }
 0xba9   : > { %13601 = vmatprep.mubr.msk.f32.mxu1 %vm787_vm2, %v7868_v1  ;;  %13734 = vmatprep.mubr.msk.f32.mxu0 %vm787_vm2, %v9533_v30  ;;  %v8672_v30 = vld [vmem:[%s15118_s20 + $0x18] sm:$0xff]  ;;  %s14574_s20 = smov 40  }
 0xbaa   : > { %v13532_v21 = vpop.f32.mrf.mxu1  ;;  %13602 = vmatmul.mubr.msk.f32.gmra.mxu1 %vm787_vm2, %v13529_v0  ;;  %13735 = vmatmul.mubr.msk.f32.gmra.mxu0 %vm787_vm2, %v9535_v43  ;;  %v8225_v43 = vld [vmem:[#allocation3 + $0x58] sm:$0xff] }
 0xbac   : > { %v7878_v24 = vpop.f32.mrf.mxu1 }
 0xbad   : > { %13604 = vmatprep.mubr.msk.f32.mxu1 %vm787_vm2, %v7878_v24 }
 0xbae   : > { %13605 = vmatmul.mubr.msk.f32.gmra.mxu1 %vm787_vm2, %v13532_v21 }
 0xbdf   : > { %v13543_v32 = vpop.f32.mrf.mxu0 }
 0xbe1   : > { %v7977_v53 = vpop.f32.mrf.mxu0 }
 0xbe2   : > { %13607 = vmatprep.mubr.msk.f32.mxu1 %vm787_vm2, %v7977_v53 }
 0xbe3   : > { %v13546_v45 = vpop.f32.mrf.mxu0  ;;  %13608 = vmatmul.mubr.msk.f32.gmra.mxu1 %vm787_vm2, %v13543_v32  ;;  %v17738_v32 = vadd.f32 %v11931_v44, %v8671_v17 }
 0xbe5   : > { %v7987_v15 = vpop.f32.mrf.mxu0 }
 0xbe6   : > { %v13557_v54 = vpop.f32.mrf.mxu1  ;;  %13610 = vmatprep.mubr.msk.f32.mxu1 %vm787_vm2, %v7987_v15 }
 0xbe7   : > { %13611 = vmatmul.mubr.msk.f32.gmra.mxu1 %vm787_vm2, %v13546_v45 }
 0xbe8   : > { %v8086_v16 = vpop.f32.mrf.mxu1 }
 0xbe9   : > { %13613 = vmatprep.mubr.msk.f32.mxu1 %vm787_vm2, %v8086_v16 }
 0xbea   : > { %v13560_v25 = vpop.f32.mrf.mxu1 }
 0xbeb   : > { %13614 = vmatmul.mubr.msk.f32.gmra.mxu1 %vm787_vm2, %v13557_v54  ;;  %v8224_v54 = vld [vmem:[#allocation3 + $0x50] sm:$0xff] }
 0xbec   : > { %v8096_v23 = vpop.f32.mrf.mxu1 }
 0xbed   : > { %13616 = vmatprep.mubr.msk.f32.mxu1 %vm787_vm2, %v8096_v23 }
 0xbef   : > { %v13571_v60 = vpop.f32.mrf.mxu0  ;;  %v13579_v63 = vpop.f32.mrf.mxu1  ;;  %13617 = vmatmul.mubr.msk.f32.gmra.mxu1 %vm787_vm2, %v13560_v25 }
 0xbf0   : > { %v8569_v5 = vadd.f32 %v13579_v63, %v8215_v28  ;;  %v8227_v63 = vld [vmem:[#allocation3 + $0x68] sm:$0xff] }
 0xbf1   : > { %v8195_v48 = vpop.f32.mrf.mxu0  ;;  %v8409_v10 = vpop.f32.mrf.mxu1 }
 0xbf2   : > { %8601 = vst.msk [vmem:[#allocation3 + $0x8] sm:$0xff] %vm344_vm0, %v8569_v5  ;;  %v8568_v22 = vadd.f32 %v8409_v10, %v8214_v3  ;;  %13619 = vmatprep.mubr.msk.f32.mxu1 %vm787_vm2, %v8195_v48  ;;  %v8226_v3 = vld [vmem:[#allocation3 + $0x60] sm:$0xff] }
 0xbf3   : > { %v13574_v52 = vpop.f32.mrf.mxu0  ;;  %v13582_v42 = vpop.f32.mrf.mxu1  ;;  %13620 = vmatmul.mubr.msk.f32.gmra.mxu1 %vm787_vm2, %v13571_v60 }
 0xbf4   : > { %8600 = vst.msk [vmem:[#allocation3] sm:$0xff] %vm344_vm0, %v8568_v22  ;;  %v8571_v14 = vadd.f32 %v13582_v42, %v8217_v11  ;;  %v8229_v11 = vld [vmem:[#allocation3 + $0x78] sm:$0xff] }
 0xbf5   : > { %v8205_v34 = vpop.f32.mrf.mxu0  ;;  %v8419_v61 = vpop.f32.mrf.mxu1 }
 0xbf6   : > { %8603 = vst.msk [vmem:[#allocation3 + $0x18] sm:$0xff] %vm344_vm0, %v8571_v14  ;;  %v8570_v51 = vadd.f32 %v8419_v61, %v8216_v6  ;;  %13622 = vmatprep.mubr.msk.f32.mxu1 %vm787_vm2, %v8205_v34  ;;  %v8228_v14 = vld [vmem:[#allocation3 + $0x70] sm:$0xff] }
 0xbf7   : > { %v13585_v31 = vpop.f32.mrf.mxu1  ;;  %13623 = vmatmul.mubr.msk.f32.gmra.mxu1 %vm787_vm2, %v13574_v52 }
 0xbf8   : > { %8602 = vst.msk [vmem:[#allocation3 + $0x10] sm:$0xff] %vm344_vm0, %v8570_v51  ;;  %v8573_v59 = vadd.f32 %v13585_v31, %v8219_v26  ;;  %13689 = vmatprep.mubr.msk.f32.mxu1 %vm787_vm2, %v17631_v56  ;;  %v11929_v56 = vld [vmem:[%s18448_s4 + $0x60] sm:$0xff] }
 0xbf9   : > { %v8429_v8 = vpop.f32.mrf.mxu1  ;;  %v17710_v37 = vadd.f32 %v11929_v56, %v8669_v50 }
 0xbfa   : > { %8605 = vst.msk [vmem:[#allocation3 + $0x28] sm:$0xff] %vm344_vm0, %v8573_v59  ;;  %v8572_v9 = vadd.f32 %v8429_v8, %v8218_v38 }
 0xbfb   : > { %v13588_v47 = vpop.f32.mrf.mxu1  ;;  %13690 = vmatmul.mubr.msk.f32.vlgmr.msra.gmra.mxu1 %vm787_vm2, %v17609_v33  ;;  %v17707_v33 = vadd.f32 %v11930_v58, %v8670_v49 }
 0xbfc   : > { %8604 = vst.msk [vmem:[#allocation3 + $0x20] sm:$0xff] %vm344_vm0, %v8572_v9  ;;  %v8575_v55 = vadd.f32 %v13588_v47, %v8221_v20  ;;  %13710 = vmatpush3.xpose.msk.msra.mxu1 %vm787_vm2, %v17616_v46  ;;  %13692 = vmatprep.mubr.msk.f32.mxu1 %vm787_vm2, %v17635_v29  ;;  %v8223_v46 = vld [vmem:[#allocation3 + $0x48] sm:$0xff] }
 0xbfd   : > { %v8439_v62 = vpop.f32.mrf.mxu1  ;;  %13711 = vmatprep.subr.msk.mxu1 %vm787_vm2, %v17629_v36 }
 0xbfe   : > { %8607 = vst.msk [vmem:[#allocation3 + $0x38] sm:$0xff] %vm344_vm0, %v8575_v55  ;;  %v8574_v4 = vadd.f32 %v8439_v62, %v8220_v40 }
 0xbff   : > { %v13591_v12 = vpop.f32.mrf.mxu1  ;;  %13693 = vmatmul.mubr.msk.f32.gmra.mxu1 %vm787_vm2, %v17622_v19  ;;  %v8222_v19 = vld [vmem:[#allocation3 + $0x40] sm:$0xff] }
 0xc00   : > { %8606 = vst.msk [vmem:[#allocation3 + $0x30] sm:$0xff] %vm344_vm0, %v8574_v4  ;;  %v8577_v29 = vadd.f32 %v13591_v12, %v8223_v46  ;;  %v13635_v27 = vpop.f32.mrf.mxu0  ;;  %13712 = vmatpush3.xpose.msk.msra.mxu1 %vm787_vm2, %v17629_v36  ;;  %13717 = vmatprep.mubr.msk.f32.mxu1 %vm787_vm2, %v17655_v18  ;;  %v11932_v18 = vld [vmem:[%s18448_s4 + $0x78] sm:$0xff] }
 0xc01   : > { %v17724_v13 = vadd.f32 %v13635_v27, %v17707_v33  ;;  %v8449_v39 = vpop.f32.mrf.mxu1  ;;  %13713 = vmatprep.subr.msk.mxu1 %vm787_vm2, %v17644_v35  ;;  %v17743_v15 = vadd.f32 %v11932_v18, %v8672_v30 }
 0xc02   : > { %8609 = vst.msk [vmem:[#allocation3 + $0x48] sm:$0xff] %vm344_vm0, %v8577_v29  ;;  %v8576_v0 = vadd.f32 %v8449_v39, %v8222_v19  ;;  %v8779_v36 = vpop.f32.mrf.mxu0 }
 0xc03   : > { %v17734_v1 = vadd.f32 %v8779_v36, %v17710_v37  ;;  %v13594_v21 = vpop.f32.mrf.mxu1  ;;  %v9648_v24 = vsel %vm344_vm0, %v17724_v13, -inf }
 0xc04   : > { %8608 = vst.msk [vmem:[#allocation3 + $0x40] sm:$0xff] %vm344_vm0, %v8576_v0  ;;  %v8579_v53 = vadd.f32 %v13594_v21, %v8225_v43  ;;  %9649 = vmax.xlane.f32.xlu1 %v9648_v24  ;;  %v13638_v45 = vpop.f32.mrf.mxu0  ;;  %13714 = vmatpush3.xpose.msk.msra.mxu1 %vm787_vm2, %v17644_v35 }
 0xc05   : > { %v8459_v16 = vpop.f32.mrf.mxu1  ;;  %v9645_v25 = vsel %vm344_vm0, %v17734_v1, -inf  ;;  %13715 = vmatprep.subr.msk.mxu1 %vm787_vm2, %v17651_v57  ;;  %v17757_v48 = vadd.f32 %v13638_v45, %v17743_v15 }
 0xc06   : > { %8611 = vst.msk [vmem:[#allocation3 + $0x58] sm:$0xff] %vm344_vm0, %v8579_v53  ;;  %v8578_v23 = vadd.f32 %v8459_v16, %v8224_v54  ;;  %9646 = vmax.xlane.f32.xlu0 %v9645_v25  ;;  %v8789_v60 = vpop.f32.mrf.mxu0 }
 0xc07   : > { %v17751_v28 = vadd.f32 %v8789_v60, %v17738_v32  ;;  %v13597_v35 = vpop.f32.mrf.mxu1  ;;  %v9654_v6 = vsel %vm344_vm0, %v17757_v48, -inf }
 0xc08   : > { %8610 = vst.msk [vmem:[#allocation3 + $0x50] sm:$0xff] %vm344_vm0, %v8578_v23  ;;  %v8581_v5 = vadd.f32 %v13597_v35, %v8227_v63  ;;  %13716 = vmatpush3.xpose.msk.msra.mxu1 %vm787_vm2, %v17651_v57 }
 0xc09   : > { %v8469_v10 = vpop.f32.mrf.mxu1  ;;  %v9651_v22 = vsel %vm344_vm0, %v17751_v28, -inf }
 0xc0a   : > { %8613 = vst.msk [vmem:[#allocation3 + $0x68] sm:$0xff] %vm344_vm0, %v8581_v5  ;;  %v8580_v52 = vadd.f32 %v8469_v10, %v8226_v3  ;;  %9652 = vmax.xlane.f32.xlu0 %v9651_v22 }
 0xc0b   : > { %v13600_v42 = vpop.f32.mrf.mxu1  ;;  %13718 = vmatmul.mubr.msk.f32.vlgmr.msra.gmra.mxu1 %vm787_vm2, %v17647_v41 }
 0xc0c   : > { %8612 = vst.msk [vmem:[#allocation3 + $0x60] sm:$0xff] %vm344_vm0, %v8580_v52  ;;  %v8583_v57 = vadd.f32 %v13600_v42, %v8229_v11  ;;  %13720 = vmatprep.mubr.msk.f32.mxu1 %vm787_vm2, %v17653_v7 }
 0xc0d   : > { %v8479_v34 = vpop.f32.mrf.mxu1 }
 0xc0e   : > { %8615 = vst.msk [vmem:[#allocation3 + $0x78] sm:$0xff] %vm344_vm0, %v8583_v57  ;;  %v8582_v61 = vadd.f32 %v8479_v34, %v8228_v14  ;;  %9655 = vmax.xlane.f32.xlu0 %v9654_v6  ;;  %v8231_v34 = vld [vmem:[#allocation3 + $0x88] sm:$0xff] }
 0xc0f   : > { %13721 = vmatmul.mubr.msk.f32.gmra.mxu1 %vm787_vm2, %v17660_v2 }
 0xc10   : > { %8614 = vst.msk [vmem:[#allocation3 + $0x70] sm:$0xff] %vm344_vm0, %v8582_v61  ;;  %v13649_v41 = vpop.f32.mrf.mxu0 }
 0xc11   : > { %v17774_v51 = vadd.f32 %v13649_v41, %v17707_v33 }
 0xc12   : > { %v8900_v26 = vpop.f32.mrf.mxu0 }
 0xc13   : > { %v17777_v7 = vadd.f32 %v8900_v26, %v17710_v37  ;;  %v9660_v31 = vsel %vm344_vm0, %v17774_v51, -inf }
 0xc14   : > { %9661 = vmax.xlane.f32.xlu0 %v9660_v31  ;;  %v13652_v59 = vpop.f32.mrf.mxu0 }
 0xc15   : > { %v17782_v38 = vadd.f32 %v13652_v59, %v17743_v15  ;;  %v9657_v2 = vsel %vm344_vm0, %v17777_v7, -inf  ;;  %v8230_v59 = vld [vmem:[#allocation3 + $0x80] sm:$0xff] }
 0xc16   : > { %9658 = vmax.xlane.f32.xlu1 %v9657_v2  ;;  %v8910_v8 = vpop.f32.mrf.mxu0 }
 0xc17   : > { %v17787_v9 = vadd.f32 %v8910_v8, %v17738_v32  ;;  %v9666_v58 = vsel %vm344_vm0, %v17782_v38, -inf }
 0xc18   : > { %9667 = vmax.xlane.f32.xlu0 %v9666_v58 }
 0xc19   : > { %v9663_v49 = vsel %vm344_vm0, %v17787_v9, -inf }
 0xc1a   : > { %9664 = vmax.xlane.f32.xlu1 %v9663_v49 }
 0xc20   : > { %v13663_v20 = vpop.f32.mrf.mxu0 }
 0xc21   : > { %v17794_v47 = vadd.f32 %v13663_v20, %v17707_v33 }
 0xc22   : > { %v9021_v55 = vpop.f32.mrf.mxu0 }
 0xc23   : > { %v17797_v56 = vadd.f32 %v9021_v55, %v17710_v37  ;;  %v9672_v50 = vsel %vm344_vm0, %v17794_v47, -inf  ;;  %v8233_v55 = vld [vmem:[#allocation3 + $0x98] sm:$0xff] }
 0xc24   : > { %9673 = vmax.xlane.f32.xlu0 %v9672_v50  ;;  %v13666_v40 = vpop.f32.mrf.mxu0 }
 0xc25   : > { %v17802_v62 = vadd.f32 %v13666_v40, %v17743_v15  ;;  %v9669_v4 = vsel %vm344_vm0, %v17797_v56, -inf }
 0xc26   : > { %9670 = vmax.xlane.f32.xlu1 %v9669_v4  ;;  %v9031_v46 = vpop.f32.mrf.mxu0 }
 0xc27   : > { %v17807_v12 = vadd.f32 %v9031_v46, %v17738_v32  ;;  %v9678_v29 = vsel %vm344_vm0, %v17802_v62, -inf  ;;  %v8232_v46 = vld [vmem:[#allocation3 + $0x90] sm:$0xff] }
 0xc28   : > { %9679 = vmax.xlane.f32.xlu0 %v9678_v29 }
 0xc29   : > { %v9675_v27 = vsel %vm344_vm0, %v17807_v12, -inf }
 0xc2a   : > { %9676 = vmax.xlane.f32.xlu1 %v9675_v27 }
 0xc30   : > { %v13677_v44 = vpop.f32.mrf.mxu0 }
 0xc31   : > { %v17814_v17 = vadd.f32 %v13677_v44, %v17707_v33 }
 0xc32   : > { %v9142_v19 = vpop.f32.mrf.mxu0 }
 0xc33   : > { %v17817_v39 = vadd.f32 %v9142_v19, %v17710_v37  ;;  %v9684_v0 = vsel %vm344_vm0, %v17814_v17, -inf }
 0xc34   : > { %9685 = vmax.xlane.f32.xlu0 %v9684_v0  ;;  %v13680_v36 = vpop.f32.mrf.mxu0 }
 0xc35   : > { %v17822_v18 = vadd.f32 %v13680_v36, %v17743_v15  ;;  %v9681_v30 = vsel %vm344_vm0, %v17817_v39, -inf }
 0xc36   : > { %9682 = vmax.xlane.f32.xlu1 %v9681_v30  ;;  %v9152_v43 = vpop.f32.mrf.mxu0 }
 0xc37   : > { %v17827_v21 = vadd.f32 %v9152_v43, %v17738_v32  ;;  %v9690_v24 = vsel %vm344_vm0, %v17822_v18, -inf }
 0xc38   : > { %9691 = vmax.xlane.f32.xlu0 %v9690_v24 }
 0xc39   : > { %v9687_v53 = vsel %vm344_vm0, %v17827_v21, -inf }
 0xc3a   : > { %9688 = vmax.xlane.f32.xlu1 %v9687_v53 }
 0xc4a   : > { %v13705_v45 = vpop.f32.mrf.mxu0 }
 0xc4b   : > { %v17834_v54 = vadd.f32 %v13705_v45, %v17707_v33 }
 0xc4c   : > { %v9384_v16 = vpop.f32.mrf.mxu0 }
 0xc4d   : > { %v17837_v25 = vadd.f32 %v9384_v16, %v17710_v37  ;;  %v9708_v23 = vsel %vm344_vm0, %v17834_v54, -inf }
 0xc4e   : > { %9709 = vmax.xlane.f32.xlu0 %v9708_v23 }
 0xc4f   : > { %v9705_v60 = vsel %vm344_vm0, %v17837_v25, -inf }
 0xc50   : > { %9706 = vmax.xlane.f32.xlu1 %v9705_v60 }
 0xc52   : > { %v13708_v63 = vpop.f32.mrf.mxu0 }
 0xc53   : > { %v17844_v35 = vadd.f32 %v13708_v63, %v17743_v15 }
 0xc54   : > { %v9394_v5 = vpop.f32.mrf.mxu0 }
 0xc55   : > { %v17847_v3 = vadd.f32 %v9394_v5, %v17738_v32  ;;  %v9714_v10 = vsel %vm344_vm0, %v17844_v35, -inf }
 0xc56   : > { %9715 = vmax.xlane.f32.xlu0 %v9714_v10 }
 0xc57   : > { %v9711_v22 = vsel %vm344_vm0, %v17847_v3, -inf }
 0xc58   : > { %9712 = vmax.xlane.f32.xlu1 %v9711_v22 }
 0xc66   : > { %v13733_v52 = vpop.f32.mrf.mxu0 }
 0xc67   : > { %v17854_v11 = vadd.f32 %v13733_v52, %v17707_v33 }
 0xc68   : > { %v9626_v42 = vpop.f32.mrf.mxu0 }
 0xc69   : > { %v17857_v57 = vadd.f32 %v9626_v42, %v17710_v37  ;;  %v9732_v14 = vsel %vm344_vm0, %v17854_v11, -inf }
 0xc6a   : > { %v13603_v6 = vpop.f32.mrf.mxu1  ;;  %9733 = vmax.xlane.f32.xlu0 %v9732_v14  ;;  %v13736_v61 = vpop.f32.mrf.mxu0 }
 0xc6b   : > { %v8585_v41 = vadd.f32 %v13603_v6, %v8231_v34  ;;  %v17862_v26 = vadd.f32 %v13736_v61, %v17743_v15  ;;  %v9729_v31 = vsel %vm344_vm0, %v17857_v57, -inf  ;;  %v8235_v6 = vld [vmem:[#allocation3 + $0xa8] sm:$0xff] }
 0xc6c   : > { %v8489_v2 = vpop.f32.mrf.mxu1  ;;  %9730 = vmax.xlane.f32.xlu1 %v9729_v31  ;;  %v9636_v8 = vpop.f32.mrf.mxu0 }
 0xc6d   : > { %8617 = vst.msk [vmem:[#allocation3 + $0x88] sm:$0xff] %vm344_vm0, %v8585_v41  ;;  %v8584_v58 = vadd.f32 %v8489_v2, %v8230_v59  ;;  %v17868_v49 = vadd.f32 %v9636_v8, %v17738_v32  ;;  %v9738_v20 = vsel %vm344_vm0, %v17862_v26, -inf  ;;  %v8234_v2 = vld [vmem:[#allocation3 + $0xa0] sm:$0xff] }
 0xc6e   : > { %v13606_v50 = vpop.f32.mrf.mxu1  ;;  %9739 = vmax.xlane.f32.xlu0 %v9738_v20 }
 0xc6f   : > { %8616 = vst.msk [vmem:[#allocation3 + $0x80] sm:$0xff] %vm344_vm0, %v8584_v58  ;;  %v8587_v40 = vadd.f32 %v13606_v50, %v8233_v55  ;;  %v9735_v4 = vsel %vm344_vm0, %v17868_v49, -inf  ;;  %v8237_v55 = vld [vmem:[#allocation3 + $0xb8] sm:$0xff] }
 0xc70   : > { %v8499_v29 = vpop.f32.mrf.mxu1  ;;  %9736 = vmax.xlane.f32.xlu1 %v9735_v4  ;;  %v8236_v4 = vld [vmem:[#allocation3 + $0xb0] sm:$0xff] }
 0xc71   : > { %8619 = vst.msk [vmem:[#allocation3 + $0x98] sm:$0xff] %vm344_vm0, %v8587_v40  ;;  %v8586_v27 = vadd.f32 %v8499_v29, %v8232_v46 }
 0xc73   : > { %8618 = vst.msk [vmem:[#allocation3 + $0x90] sm:$0xff] %vm344_vm0, %v8586_v27 }
 0xc8d   : > { %v9650_v44 = vpop.xlane.xlu1 %9649 }
 0xc8e   : > { %v9742_v19 = vsub.f32 %v17724_v13, %v9650_v44  ;;  %v8239_v44 = vld [vmem:[#allocation3 + $0xc8] sm:$0xff] }
 0xc8f   : > { %v9647_v0 = vpop.xlane.xlu0 %9646 }
 0xc90   : > { %v9775_v36 = vmul.f32 1.442695, %v9742_v19  ;;  %v9741_v30 = vsub.f32 %v17734_v1, %v9647_v0 }
 0xc92   : > { %14327 = vpow2.f32 %v9775_v36  ;;  %v9773_v43 = vmul.f32 1.442695, %v9741_v30  ;;  %v8238_v30 = vld [vmem:[#allocation3 + $0xc0] sm:$0xff] }
 0xc93   : > { %v9653_v24 = vpop.xlane.xlu0 %9652 }
 0xc94   : > { %14329 = vpow2.f32 %v9773_v43  ;;  %v9743_v53 = vsub.f32 %v17751_v28, %v9653_v24 }
 0xc96   : > { %v9777_v45 = vmul.f32 1.442695, %v9743_v53 }
 0xc97   : > { %v9656_v16 = vpop.xlane.xlu0 %9655 }
 0xc98   : > { %14331 = vpow2.f32 %v9777_v45  ;;  %v9744_v23 = vsub.f32 %v17757_v48, %v9656_v16 }
 0xc9a   : > { %v9779_v60 = vmul.f32 1.442695, %v9744_v23  ;;  %v8241_v23 = vld [vmem:[#allocation3 + $0xd8] sm:$0xff] }
 0xc9c   : > { %14333 = vpow2.f32 %v9779_v60 }
 0xc9d   : > { %v9662_v63 = vpop.xlane.xlu0 %9661 }
 0xc9e   : > { %v9746_v13 = vsub.f32 %v17774_v51, %v9662_v63 }
 0xc9f   : > { %v17882_v5 = vpop.eup %14327  ;;  %v9659_v10 = vpop.xlane.xlu1 %9658 }
 0xca0   : > { %v9783_v1 = vmul.f32 1.442695, %v9746_v13  ;;  %v9745_v22 = vsub.f32 %v17777_v7, %v9659_v10  ;;  %v9840_v52 = vsel %vm344_vm0, %v17882_v5, 0.0 }
 0xca1   : > { %v17887_v28 = vpop.eup %14329  ;;  %v9668_v42 = vpop.xlane.xlu0 %9667  ;;  %9841 = vadd.xlane.f32.xlu0 %v9840_v52 }
 0xca2   : > { %14335 = vpow2.f32 %v9783_v1  ;;  %v9781_v48 = vmul.f32 1.442695, %v9745_v22  ;;  %v9748_v14 = vsub.f32 %v17782_v38, %v9668_v42  ;;  %v9837_v51 = vsel %vm344_vm0, %v17887_v28, 0.0 }
 0xca3   : > { %9838 = vadd.xlane.f32.xlu1 %v9837_v51  ;;  %v9665_v34 = vpop.xlane.xlu1 %9664  ;;  %v13609_v61 = vpop.f32.mrf.mxu1 }
 0xca4   : > { %14337 = vpow2.f32 %v9781_v48  ;;  %v9787_v7 = vmul.f32 1.442695, %v9748_v14  ;;  %v9747_v41 = vsub.f32 %v17787_v9, %v9665_v34  ;;  %v8589_v31 = vadd.f32 %v13609_v61, %v8235_v6  ;;  %v8240_v14 = vld [vmem:[#allocation3 + $0xd0] sm:$0xff] }
 0xca5   : > { %v17893_v59 = vpop.eup %14331  ;;  %v8509_v8 = vpop.f32.mrf.mxu1 }
 0xca6   : > { %14339 = vpow2.f32 %v9787_v7  ;;  %v9785_v58 = vmul.f32 1.442695, %v9747_v41  ;;  %8621 = vst.msk [vmem:[#allocation3 + $0xa8] sm:$0xff] %vm344_vm0, %v8589_v31  ;;  %v9843_v38 = vsel %vm344_vm0, %v17893_v59, 0.0  ;;  %v8588_v20 = vadd.f32 %v8509_v8, %v8234_v2  ;;  %v8243_v2 = vld [vmem:[#allocation3 + $0xe8] sm:$0xff] }
 0xca7   : > { %9844 = vadd.xlane.f32.xlu1 %v9843_v38  ;;  %v13612_v50 = vpop.f32.mrf.mxu1 }
 0xca8   : > { %14341 = vpow2.f32 %v9785_v58  ;;  %8620 = vst.msk [vmem:[#allocation3 + $0xa0] sm:$0xff] %vm344_vm0, %v8588_v20  ;;  %v8591_v9 = vadd.f32 %v13612_v50, %v8237_v55  ;;  %v8242_v58 = vld [vmem:[#allocation3 + $0xe0] sm:$0xff] }
 0xca9   : > { %v17899_v40 = vpop.eup %14333  ;;  %v8519_v46 = vpop.f32.mrf.mxu1 }
 0xcaa   : > { %8623 = vst.msk [vmem:[#allocation3 + $0xb8] sm:$0xff] %vm344_vm0, %v8591_v9  ;;  %v9846_v29 = vsel %vm344_vm0, %v17899_v40, 0.0  ;;  %v8590_v27 = vadd.f32 %v8519_v46, %v8236_v4  ;;  %v8244_v46 = vld [vmem:[#allocation3 + $0xf0] sm:$0xff] }
 0xcab   : > { %9847 = vadd.xlane.f32.xlu0 %v9846_v29  ;;  %v13615_v19 = vpop.f32.mrf.mxu1 }
 0xcac   : > { %8622 = vst.msk [vmem:[#allocation3 + $0xb0] sm:$0xff] %vm344_vm0, %v8590_v27  ;;  %v8593_v0 = vadd.f32 %v13615_v19, %v8239_v44 }
 0xcad   : > { %v9674_v36 = vpop.xlane.xlu0 %9673  ;;  %v8529_v43 = vpop.f32.mrf.mxu1 }
 0xcae   : > { %v9750_v24 = vsub.f32 %v17794_v47, %v9674_v36  ;;  %8625 = vst.msk [vmem:[#allocation3 + $0xc8] sm:$0xff] %vm344_vm0, %v8593_v0  ;;  %v8592_v53 = vadd.f32 %v8529_v43, %v8238_v30 }
 0xcaf   : > { %v17907_v45 = vpop.eup %14335  ;;  %v9671_v16 = vpop.xlane.xlu1 %9670 }
 0xcb0   : > { %v13618_v60 = vpop.f32.mrf.mxu1  ;;  %v9791_v63 = vmul.f32 1.442695, %v9750_v24  ;;  %v9749_v13 = vsub.f32 %v17797_v56, %v9671_v16  ;;  %8624 = vst.msk [vmem:[#allocation3 + $0xc0] sm:$0xff] %vm344_vm0, %v8592_v53  ;;  %v9852_v10 = vsel %vm344_vm0, %v17907_v45, 0.0  ;;  %v14507_v16 = vld [vmem:[#allocation2 + $0x18] sm:$0xff] }
 0xcb1   : > { %v8595_v1 = vadd.f32 %v13618_v60, %v8241_v23  ;;  %v17913_v22 = vpop.eup %14337  ;;  %9853 = vadd.xlane.f32.xlu0 %v9852_v10  ;;  %v9680_v47 = vpop.xlane.xlu0 %9679  ;;  %v14508_v23 = vld [vmem:[#allocation2 + $0x10] sm:$0xff] }
 0xcb2   : > { %v8539_v52 = vpop.f32.mrf.mxu1  ;;  %14343 = vpow2.f32 %v9791_v63  ;;  %v9789_v42 = vmul.f32 1.442695, %v9749_v13  ;;  %v9752_v48 = vsub.f32 %v17802_v62, %v9680_v47  ;;  %v9849_v56 = vsel %vm344_vm0, %v17913_v22, 0.0 }
 0xcb3   : > { %8627 = vst.msk [vmem:[#allocation3 + $0xd8] sm:$0xff] %vm344_vm0, %v8595_v1  ;;  %v17919_v51 = vpop.eup %14339  ;;  %9850 = vadd.xlane.f32.xlu1 %v9849_v56  ;;  %v8594_v34 = vadd.f32 %v8539_v52, %v8240_v14  ;;  %v9677_v6 = vpop.xlane.xlu1 %9676  ;;  %v14509_v14 = vld [vmem:[#allocation2 + $0x8] sm:$0xff] }
 0xcb4   : > { %v13621_v61 = vpop.f32.mrf.mxu1  ;;  %14345 = vpow2.f32 %v9789_v42  ;;  %v9795_v7 = vmul.f32 1.442695, %v9752_v48  ;;  %v9751_v41 = vsub.f32 %v17807_v12, %v9677_v6  ;;  %v9858_v31 = vsel %vm344_vm0, %v17919_v51, 0.0  ;;  %v8245_v12 = vld [vmem:[#allocation3 + $0xf8] sm:$0xff] }
 0xcb5   : > { %v17924_v8 = vpop.eup %14341  ;;  %8626 = vst.msk [vmem:[#allocation3 + $0xd0] sm:$0xff] %vm344_vm0, %v8594_v34  ;;  %9859 = vadd.xlane.f32.xlu0 %v9858_v31  ;;  %v8597_v62 = vadd.f32 %v13621_v61, %v8243_v2 }
 0xcb6   : > { %v8549_v38 = vpop.f32.mrf.mxu1  ;;  %14347 = vpow2.f32 %v9795_v7  ;;  %v9793_v20 = vmul.f32 1.442695, %v9751_v41  ;;  %v9855_v55 = vsel %vm344_vm0, %v17924_v8, 0.0 }
 0xcb7   : > { %v8596_v50 = vadd.f32 %v8549_v38, %v8242_v58  ;;  %8629 = vst.msk [vmem:[#allocation3 + $0xe8] sm:$0xff] %vm344_vm0, %v8597_v62  ;;  %9856 = vadd.xlane.f32.xlu1 %v9855_v55 }
 0xcb8   : > { %v13624_v9 = vpop.f32.mrf.mxu1  ;;  %14349 = vpow2.f32 %v9793_v20 }
 0xcb9   : > { %8628 = vst.msk [vmem:[#allocation3 + $0xe0] sm:$0xff] %vm344_vm0, %v8596_v50  ;;  %v8599_v4 = vadd.f32 %v13624_v9, %v8245_v12 }
 0xcba   : > { %v8559_v29 = vpop.f32.mrf.mxu1 }
 0xcbb   : > { %8631 = vst.msk [vmem:[#allocation3 + $0xf8] sm:$0xff] %vm344_vm0, %v8599_v4  ;;  %v8598_v27 = vadd.f32 %v8559_v29, %v8244_v46 }
 0xcbd   : > { %8630 = vst.msk [vmem:[#allocation3 + $0xf0] sm:$0xff] %vm344_vm0, %v8598_v27  ;;  %v9686_v60 = vpop.xlane.xlu0 %9685 }
 0xcbe   : > { %v9754_v13 = vsub.f32 %v17814_v17, %v9686_v60  ;;  %v14510_v17 = vld [vmem:[#allocation2] sm:$0xff] }
 0xcbf   : > { %v17933_v44 = vpop.eup %14343  ;;  %v9683_v63 = vpop.xlane.xlu1 %9682 }
 0xcc0   : > { %v9864_v19 = vsel %vm344_vm0, %v17933_v44, 0.0  ;;  %v9753_v10 = vsub.f32 %v17817_v39, %v9683_v63  ;;  %v9799_v1 = vmul.f32 1.442695, %v9754_v13  ;;  %v14513_v63 = vld [vmem:[#allocation2 + $0x28] sm:$0xff]  ;;  %v14514_v13 = vld [vmem:[#allocation2 + $0x20] sm:$0xff] }
 0xcc1   : > { %v17937_v0 = vpop.eup %14345  ;;  %9865 = vadd.xlane.f32.xlu0 %v9864_v19  ;;  %v9692_v39 = vpop.xlane.xlu0 %9691 }
 0xcc2   : > { %v9861_v36 = vsel %vm344_vm0, %v17937_v0, 0.0  ;;  %v9797_v47 = vmul.f32 1.442695, %v9753_v10  ;;  %14351 = vpow2.f32 %v9799_v1  ;;  %v9756_v6 = vsub.f32 %v17822_v18, %v9692_v39  ;;  %v14515_v1 = vld [vmem:[#allocation2 + $0x58] sm:$0xff] }
 0xcc3   : > { %v17941_v30 = vpop.eup %14347  ;;  %9862 = vadd.xlane.f32.xlu1 %v9861_v36  ;;  %v9689_v34 = vpop.xlane.xlu1 %9688 }
 0xcc4   : > { %v9870_v43 = vsel %vm344_vm0, %v17941_v30, 0.0  ;;  %14353 = vpow2.f32 %v9797_v47  ;;  %v9755_v61 = vsub.f32 %v17827_v21, %v9689_v34  ;;  %v9803_v7 = vmul.f32 1.442695, %v9756_v6 }
 0xcc5   : > { %v17945_v24 = vpop.eup %14349  ;;  %9871 = vadd.xlane.f32.xlu0 %v9870_v43 }
 0xcc6   : > { %v9867_v53 = vsel %vm344_vm0, %v17945_v24, 0.0  ;;  %v9801_v31 = vmul.f32 1.442695, %v9755_v61  ;;  %14355 = vpow2.f32 %v9803_v7 }
 0xcc7   : > { %9868 = vadd.xlane.f32.xlu1 %v9867_v53 }
 0xcc8   : > { %14357 = vpow2.f32 %v9801_v31 }
 0xccf   : > { %v17953_v52 = vpop.eup %14351 }
 0xcd0   : > { %v9876_v48 = vsel %vm344_vm0, %v17953_v52, 0.0 }
 0xcd1   : > { %v17955_v42 = vpop.eup %14353 }
 0xcd2   : > { %v9873_v56 = vsel %vm344_vm0, %v17955_v42, 0.0 }
 0xcd3   : > { %v17973_v55 = vpop.eup %14355 }
 0xcd4   : > { %v9882_v12 = vsel %vm344_vm0, %v17973_v55, 0.0 }
 0xcd5   : > { %v17975_v18 = vpop.eup %14357 }
 0xcd6   : > { %v9879_v9 = vsel %vm344_vm0, %v17975_v18, 0.0 }
 0xcd7   : > { %v9710_v58 = vpop.xlane.xlu0 %9709 }
 0xcd8   : > { %10003 = vrot.lane.b32.xlu1 %v14507_v16, %s14574_s20  ;;  %v14511_v16 = vld [vmem:[#allocation2 + $0x38] sm:$0xff]  ;;  %v9762_v7 = vsub.f32 %v17834_v54, %v9710_v58 }
 0xcd9   : > { %v9707_v41 = vpop.xlane.xlu1 %9706 }
 0xcda   : > { %v9761_v39 = vsub.f32 %v17837_v25, %v9707_v41 }
 0xcdb   : > { %10001 = vrot.lane.b32.xlu0 %v14508_v23, %s14574_s20  ;;  %v14512_v23 = vld [vmem:[#allocation2 + $0x30] sm:$0xff] }
 0xcdc   : > { %v9813_v6 = vmul.f32 1.442695, %v9761_v39 }
 0xcdf   : > { %v17971_v20 = vpop.xlane.xlu0 %9715 }
 0xce1   : > { %v17965_v2 = vpop.xlane.xlu1 %9712 }
 0xcf3   : > { %v17977_v21 = vpop.xlane.xlu0 %9733 }
 0xcf5   : > { %v17967_v62 = vpop.xlane.xlu1 %9730 }
 0xcf7   : > { %v17983_v4 = vpop.xlane.xlu0 %9739 }
 0xcf9   : > { %v17969_v38 = vpop.xlane.xlu1 %9736 }
 0xcfa   : > { %9877 = vadd.xlane.f32.xlu0 %v9876_v48  ;;  %v14516_v48 = vld [vmem:[#allocation2 + $0x50] sm:$0xff] }
 0xcfc   : > { %9874 = vadd.xlane.f32.xlu1 %v9873_v56 }
 0xd0d   : > { %9999 = vrot.lane.b32.xlu1 %v14509_v14, %s14574_s20 }
 0xd10   : > { %9997 = vrot.lane.b32.xlu0 %v14510_v17, %s14574_s20 }
 0xd2a   : > { %v17985_v46 = vpop.xlane.xlu0 %9841 }
 0xd2c   : > { %v9839_v50 = vpop.xlane.xlu1 %9838 }
 0xd2d   : > { %14359 = vrcp.f32 %v9839_v50  ;;  %v13691_v50 = vpop.f32.mrf.mxu1 }
 0xd2e   : > { %v18018_v25 = vadd.f32 %v13691_v50, %v17707_v33  ;;  %v14517_v50 = vld [vmem:[#allocation2 + $0x48] sm:$0xff] }
 0xd2f   : > { %9883 = vadd.xlane.f32.xlu0 %v9882_v12  ;;  %v9815_v12 = vmul.f32 1.442695, %v9762_v7 }
 0xd30   : > { %v17991_v36 = vpop.xlane.xlu1 %9844  ;;  %v9696_v54 = vsel %vm344_vm0, %v18018_v25, -inf }
 0xd31   : > { %9880 = vadd.xlane.f32.xlu1 %v9879_v9  ;;  %v9263_v9 = vpop.f32.mrf.mxu1 }
 0xd32   : > { %v18028_v58 = vadd.f32 %v9263_v9, %v17710_v37 }
 0xd34   : > { %v17988_v19 = vpop.xlane.xlu0 %9847 }
 0xd3a   : > { %v14360_v29 = vpop.eup %14359  ;;  %v17993_v43 = vpop.xlane.xlu0 %9853 }
 0xd3b   : > { %v9965_v27 = vmul.f32 %v14360_v29, %v17887_v28  ;;  %v13694_v29 = vpop.f32.mrf.mxu1 }
 0xd3c   : > { %v17995_v53 = vpop.xlane.xlu1 %9850 }
 0xd3d   : > { %13745 = vmatprep.mubr.msk.f32.mxu1 %vm344_vm0, %v9965_v27  ;;  %v9273_v27 = vpop.f32.mrf.mxu1 }
 0xd3e   : > { %v17999_v60 = vpop.xlane.xlu0 %9859 }
 0xd40   : > { %v18002_v28 = vpop.xlane.xlu1 %9856 }
 0xd42   : > { %10112 = vrot.lane.b32.xlu1 %v14511_v16, %s14574_s20  ;;  %v18023_v16 = vadd.f32 %v13694_v29, %v17743_v15 }
 0xd45   : > { %10110 = vrot.lane.b32.xlu0 %v14512_v23, %s14574_s20 }
 0xd46   : > { %10108 = vrot.lane.b32.xlu1 %v14513_v63, %s14574_s20  ;;  %v9702_v63 = vsel %vm344_vm0, %v18023_v16, -inf }
 0xd49   : > { %10106 = vrot.lane.b32.xlu0 %v14514_v13, %s14574_s20 }
 0xd4a   : > { %v18005_v10 = vpop.xlane.xlu0 %9865  ;;  %10221 = vrot.lane.b32.xlu1 %v14515_v1, %s14574_s20 }
 0xd4c   : > { %v9863_v47 = vpop.xlane.xlu1 %9862 }
 0xd4d   : > { %14361 = vrcp.f32 %v9863_v47  ;;  %10219 = vrot.lane.b32.xlu0 %v14516_v48, %s14574_s20  ;;  %v18037_v47 = vadd.f32 %v9273_v27, %v17738_v32  ;;  %v9693_v48 = vsel %vm344_vm0, %v18028_v58, -inf }
 0xd4e   : > { %v18009_v56 = vpop.xlane.xlu0 %9871  ;;  %14363 = vpow2.f32 %v9813_v6 }
 0xd4f   : > { %14365 = vpow2.f32 %v9815_v12  ;;  %v9699_v6 = vsel %vm344_vm0, %v18037_v47, -inf }
 0xd50   : > { %v18011_v14 = vpop.xlane.xlu1 %9868  ;;  %14367 = vrcp.f32 %v17985_v46 }
 0xd51   : > { %14369 = vrcp.f32 %v17991_v36 }
 0xd52   : > { %v10002_v34 = vpop.permute.xlu0 %10001  ;;  %14371 = vrcp.f32 %v17988_v19 }
 0xd53   : > { %14373 = vrcp.f32 %v17995_v53 }
 0xd54   : > { %v10004_v17 = vpop.permute.xlu1 %10003 }
 0xd55   : > { %13737 = vmatprep.subr.mxu1 %v10004_v17 }
 0xd56   : > { %13738 = vmatpush3.msra.mxu1 %v10004_v17 }
 0xd57   : > { %13739 = vmatprep.subr.mxu1 %v10002_v34 }
 0xd58   : > { %13740 = vmatpush3.msra.mxu1 %v10002_v34 }
 0xd5a   : > { %v14362_v61 = vpop.eup %14361 }
 0xd5b   : > { %v9973_v31 = vmul.f32 %v14362_v61, %v17937_v0  ;;  %v18020_v41 = vpop.eup %14363  ;;  %v13719_v0 = vpop.f32.mrf.mxu1 }
 0xd5c   : > { %v9897_v23 = vsel %vm344_vm0, %v18020_v41, 0.0  ;;  %v18034_v13 = vpop.eup %14365  ;;  %v18042_v17 = vadd.f32 %v13719_v0, %v17707_v33 }
 0xd5d   : > { %13773 = vmatprep.mubr.msk.f32.mxu0 %vm344_vm0, %v9973_v31  ;;  %v9505_v1 = vpop.f32.mrf.mxu1  ;;  %v9900_v39 = vsel %vm344_vm0, %v18034_v13, 0.0  ;;  %v14368_v12 = vpop.eup %14367 }
 0xd5e   : > { %v9720_v7 = vsel %vm344_vm0, %v18042_v17, -inf  ;;  %v14370_v29 = vpop.eup %14369  ;;  %v9966_v46 = vmul.f32 %v14368_v12, %v17882_v5  ;;  %v9764_v5 = vsub.f32 %v17844_v35, %v17971_v20 }
 0xd5f   : > { %v13722_v34 = vpop.f32.mrf.mxu1  ;;  %v14372_v36 = vpop.eup %14371  ;;  %v9967_v19 = vmul.f32 %v14370_v29, %v17893_v59  ;;  %v9763_v59 = vsub.f32 %v17847_v3, %v17965_v2 }
 0xd60   : > { %v18049_v61 = vadd.f32 %v13722_v34, %v17743_v15  ;;  %v14374_v53 = vpop.eup %14373 }
 0xd61   : > { %v9969_v0 = vmul.f32 %v14374_v53, %v17913_v22  ;;  %v9515_v22 = vpop.f32.mrf.mxu1 }
 0xd62   : > { %v9726_v33 = vsel %vm344_vm0, %v18049_v61, -inf }
 0xd6c   : > { %9697 = vmax.xlane.f32.xlu0 %v9696_v54  ;;  %v9968_v54 = vmul.f32 %v14372_v36, %v17899_v40  ;;  %v18076_v40 = vadd.f32 %v9505_v1, %v17710_v37 }
 0xd6e   : > { %9898 = vadd.xlane.f32.xlu1 %v9897_v23  ;;  %v14518_v23 = vld [vmem:[#allocation2 + $0x40] sm:$0xff]  ;;  %v9717_v34 = vsel %vm344_vm0, %v18076_v40, -inf }
 0xd70   : > { %9703 = vmax.xlane.f32.xlu0 %v9702_v63  ;;  %v9819_v63 = vmul.f32 1.442695, %v9764_v5 }
 0xd72   : > { %9694 = vmax.xlane.f32.xlu1 %v9693_v48  ;;  %v9817_v48 = vmul.f32 1.442695, %v9763_v59  ;;  %14375 = vpow2.f32 %v9819_v63 }
 0xd74   : > { %9901 = vadd.xlane.f32.xlu0 %v9900_v39  ;;  %14377 = vpow2.f32 %v9817_v48  ;;  %v18079_v39 = vadd.f32 %v9515_v22, %v17738_v32 }
 0xd75   : > { %14379 = vrcp.f32 %v17993_v43  ;;  %v14519_v43 = vld [vmem:[#allocation2 + $0x78] sm:$0xff] }
 0xd76   : > { %9700 = vmax.xlane.f32.xlu1 %v9699_v6  ;;  %v9723_v35 = vsel %vm344_vm0, %v18079_v39, -inf  ;;  %14381 = vrcp.f32 %v18002_v28 }
 0xd77   : > { %14383 = vrcp.f32 %v17999_v60 }
 0xd78   : > { %9721 = vmax.xlane.f32.xlu0 %v9720_v7 }
 0xd7c   : > { %9727 = vmax.xlane.f32.xlu0 %v9726_v33 }
 0xd7f   : > { %v18083_v6 = vpop.eup %14375 }
 0xd80   : > { %v9906_v37 = vsel %vm344_vm0, %v18083_v6, 0.0 }
 0xd81   : > { %v18087_v3 = vpop.eup %14377 }
 0xd82   : > { %v9903_v32 = vsel %vm344_vm0, %v18087_v3, 0.0  ;;  %v14380_v33 = vpop.eup %14379 }
 0xd83   : > { %v18059_v31 = vpop.xlane.xlu0 %9877  ;;  %v14382_v12 = vpop.eup %14381  ;;  %v9970_v60 = vmul.f32 %v14380_v33, %v17907_v45 }
 0xd84   : > { %v14384_v28 = vpop.eup %14383  ;;  %v9971_v29 = vmul.f32 %v14382_v12, %v17924_v8 }
 0xd85   : > { %v9875_v15 = vpop.xlane.xlu1 %9874 }
 0xd86   : > { %14385 = vrcp.f32 %v9875_v15 }
 0xd87   : > { %10217 = vrot.lane.b32.xlu1 %v14517_v50, %s14574_s20  ;;  %v9998_v27 = vpop.permute.xlu0 %9997  ;;  %14387 = vrcp.f32 %v18005_v10 }
 0xd89   : > { %v10000_v9 = vpop.permute.xlu1 %9999 }
 0xd8a   : > { %13741 = vmatprep.subr.mxu1 %v10000_v9 }
 0xd8b   : > { %13742 = vmatpush3.msra.mxu1 %v10000_v9 }
 0xd8c   : > { %13743 = vmatprep.subr.mxu1 %v9998_v27 }
 0xd8d   : > { %13744 = vmatpush3.msra.mxu1 %v9998_v27 }
 0xd8e   : > { %13746 = vmatmul.mubr.msk.f32.vlgmr.msra.gmra.mxu1 %vm344_vm0, %v9966_v46  ;;  %v14520_v46 = vld [vmem:[#allocation2 + $0x70] sm:$0xff] }
 0xd8f   : > { %13748 = vmatprep.mubr.msk.f32.mxu1 %vm344_vm0, %v9967_v19  ;;  %v9972_v19 = vmul.f32 %v14384_v28, %v17919_v51 }
 0xd92   : > { %10215 = vrot.lane.b32.xlu0 %v14518_v23, %s14574_s20  ;;  %13749 = vmatmul.mubr.msk.f32.gmra.mxu1 %vm344_vm0, %v9968_v54 }
 0xd93   : > { %13759 = vmatprep.mubr.msk.f32.mxu1 %vm344_vm0, %v9969_v0  ;;  %v14386_v27 = vpop.eup %14385 }
 0xd94   : > { %v9977_v45 = vmul.f32 %v14386_v27, %v17955_v42 }
 0xdab   : > { %9718 = vmax.xlane.f32.xlu1 %v9717_v34 }
 0xdaf   : > { %9724 = vmax.xlane.f32.xlu1 %v9723_v35 }
 0xdb1   : > { %9907 = vadd.xlane.f32.xlu0 %v9906_v37 }
 0xdb3   : > { %9904 = vadd.xlane.f32.xlu1 %v9903_v32 }
 0xdb8   : > { %v18095_v2 = vpop.xlane.xlu0 %9883 }
 0xdba   : > { %v18098_v20 = vpop.xlane.xlu1 %9880 }
 0xdbc   : > { %v10111_v1 = vpop.permute.xlu0 %10110 }
 0xdbe   : > { %v10113_v7 = vpop.permute.xlu1 %10112 }
 0xdbf   : > { %13751 = vmatprep.subr.mxu1 %v10113_v7 }
 0xdc0   : > { %13752 = vmatpush3.msra.mxu1 %v10113_v7  ;;  %v10107_v9 = vpop.permute.xlu0 %10106 }
 0xdc1   : > { %13753 = vmatprep.subr.mxu1 %v10111_v1 }
 0xdc2   : > { %13754 = vmatpush3.msra.mxu1 %v10111_v1  ;;  %v10109_v50 = vpop.permute.xlu1 %10108 }
 0xdc3   : > { %13755 = vmatprep.subr.mxu1 %v10109_v50 }
 0xdc4   : > { %10330 = vrot.lane.b32.xlu1 %v14519_v43, %s14574_s20  ;;  %13756 = vmatpush3.msra.mxu1 %v10109_v50  ;;  %v10220_v36 = vpop.permute.xlu0 %10219 }
 0xdc5   : > { %13757 = vmatprep.subr.mxu1 %v10107_v9 }
 0xdc6   : > { %13758 = vmatpush3.msra.mxu1 %v10107_v9  ;;  %v10222_v15 = vpop.permute.xlu1 %10221 }
 0xdc7   : > { %10328 = vrot.lane.b32.xlu0 %v14520_v46, %s14574_s20  ;;  %13760 = vmatmul.mubr.msk.f32.vlgmr.msra.gmra.mxu1 %vm344_vm0, %v9970_v60 }
 0xdc8   : > { %13765 = vmatprep.subr.mxu0 %v10222_v15  ;;  %13762 = vmatprep.mubr.msk.f32.mxu1 %vm344_vm0, %v9971_v29  ;;  %v14521_v29 = vld [vmem:[#allocation2 + $0x60] sm:$0xff] }
 0xdc9   : > { %13766 = vmatpush3.msra.mxu0 %v10222_v15 }
 0xdca   : > { %13767 = vmatprep.subr.mxu0 %v10220_v36 }
 0xdcb   : > { %13768 = vmatpush3.msra.mxu0 %v10220_v36  ;;  %13763 = vmatmul.mubr.msk.f32.gmra.mxu1 %vm344_vm0, %v9972_v19 }
 0xdcc   : > { %13787 = vmatprep.mubr.msk.f32.mxu1 %vm344_vm0, %v9977_v45 }
 0xdf5   : > { %v9698_v8 = vpop.xlane.xlu0 %9697 }
 0xdf6   : > { %v9758_v53 = vsub.f32 %v18018_v25, %v9698_v8 }
 0xdf7   : > { %v18111_v54 = vpop.xlane.xlu1 %9898 }
 0xdf8   : > { %v9807_v0 = vmul.f32 1.442695, %v9758_v53 }
 0xdf9   : > { %v9704_v23 = vpop.xlane.xlu0 %9703 }
 0xdfa   : > { %14389 = vpow2.f32 %v9807_v0  ;;  %v9760_v51 = vsub.f32 %v18023_v16, %v9704_v23 }
 0xdfb   : > { %14391 = vrcp.f32 %v18011_v14  ;;  %v9695_v42 = vpop.xlane.xlu1 %9694 }
 0xdfc   : > { %v9811_v5 = vmul.f32 1.442695, %v9760_v51  ;;  %v9757_v59 = vsub.f32 %v18028_v58, %v9695_v42  ;;  %14393 = vrcp.f32 %v18009_v56  ;;  %v14388_v58 = vpop.eup %14387 }
 0xdfd   : > { %v18118_v63 = vpop.xlane.xlu0 %9901  ;;  %v9974_v33 = vmul.f32 %v14388_v58, %v17933_v44  ;;  %v9772_v58 = vsub.f32 %v17862_v26, %v17983_v4 }
 0xdfe   : > { %14395 = vpow2.f32 %v9811_v5  ;;  %v9805_v25 = vmul.f32 1.442695, %v9757_v59  ;;  %v14522_v5 = vld [vmem:[#allocation2 + $0x68] sm:$0xff]  ;;  %v14523_v59 = vld [vmem:[#allocation2 + $0x90] sm:$0xff] }
 0xdff   : > { %v9701_v48 = vpop.xlane.xlu1 %9700 }
 0xe00   : > { %14397 = vpow2.f32 %v9805_v25  ;;  %v9759_v10 = vsub.f32 %v18037_v47, %v9701_v48  ;;  %v9770_v48 = vsub.f32 %v17854_v11, %v17977_v21  ;;  %v14525_v11 = vld [vmem:[#allocation2 + $0x80] sm:$0xff] }
 0xe01   : > { %v9722_v22 = vpop.xlane.xlu0 %9721 }
 0xe02   : > { %v9809_v34 = vmul.f32 1.442695, %v9759_v10  ;;  %v9766_v16 = vsub.f32 %v18042_v17, %v9722_v22  ;;  %v9831_v22 = vmul.f32 1.442695, %v9770_v48 }
 0xe03   : > { %v10218_v35 = vpop.permute.xlu1 %10217 }
 0xe04   : > { %14399 = vpow2.f32 %v9809_v34  ;;  %v9823_v14 = vmul.f32 1.442695, %v9766_v16  ;;  %13769 = vmatprep.subr.mxu0 %v10218_v35 }
 0xe05   : > { %v9728_v37 = vpop.xlane.xlu0 %9727  ;;  %13770 = vmatpush3.msra.mxu0 %v10218_v35 }
 0xe06   : > { %14401 = vpow2.f32 %v9823_v14 }
 0xe07   : > { %v18122_v56 = vpop.eup %14389 }
 0xe08   : > { %v14392_v32 = vpop.eup %14391  ;;  %v9888_v1 = vsel %vm344_vm0, %v18122_v56, 0.0 }
 0xe09   : > { %9889 = vadd.xlane.f32.xlu0 %v9888_v1  ;;  %v10216_v47 = vpop.permute.xlu0 %10215  ;;  %v14394_v7 = vpop.eup %14393  ;;  %v9975_v50 = vmul.f32 %v14392_v32, %v17945_v24  ;;  %v9835_v1 = vmul.f32 1.442695, %v9772_v58 }
 0xe0a   : > { %13771 = vmatprep.subr.mxu0 %v10216_v47  ;;  %v9976_v44 = vmul.f32 %v14394_v7, %v17941_v30  ;;  %v9768_v30 = vsub.f32 %v18049_v61, %v9728_v37  ;;  %v9769_v37 = vsub.f32 %v17857_v57, %v17967_v62  ;;  %v14526_v62 = vld [vmem:[#allocation2 + $0x88] sm:$0xff] }
 0xe0b   : > { %v18127_v17 = vpop.eup %14395  ;;  %13772 = vmatpush3.msra.mxu0 %v10216_v47 }
 0xe0c   : > { %13774 = vmatmul.mubr.msk.f32.vlgmr.msra.gmra.mxu0 %vm344_vm0, %v9974_v33  ;;  %v9894_v12 = vsel %vm344_vm0, %v18127_v17, 0.0  ;;  %v9827_v27 = vmul.f32 1.442695, %v9768_v30  ;;  %v9829_v32 = vmul.f32 1.442695, %v9769_v37 }
 0xe0d   : > { %v18133_v9 = vpop.eup %14397  ;;  %9895 = vadd.xlane.f32.xlu0 %v9894_v12  ;;  %13776 = vmatprep.mubr.msk.f32.mxu0 %vm344_vm0, %v9975_v50  ;;  %v14527_v12 = vld [vmem:[#allocation2 + $0xb0] sm:$0xff] }
 0xe0e   : > { %v9885_v43 = vsel %vm344_vm0, %v18133_v9, 0.0  ;;  %14403 = vpow2.f32 %v9827_v27 }
 0xe0f   : > { %9886 = vadd.xlane.f32.xlu1 %v9885_v43 }
 0xe10   : > { %13777 = vmatmul.mubr.msk.f32.gmra.mxu0 %vm344_vm0, %v9976_v44  ;;  %v9771_v44 = vsub.f32 %v17868_v49, %v17969_v38 }
 0xe11   : > { %v18140_v60 = vpop.eup %14399 }
 0xe12   : > { %v9891_v24 = vsel %vm344_vm0, %v18140_v60, 0.0 }
 0xe13   : > { %v18144_v28 = vpop.eup %14401  ;;  %9892 = vadd.xlane.f32.xlu1 %v9891_v24  ;;  %v14528_v24 = vld [vmem:[#allocation2 + $0xd8] sm:$0xff] }
 0xe14   : > { %v9912_v15 = vsel %vm344_vm0, %v18144_v28, 0.0 }
 0xe15   : > { %9913 = vadd.xlane.f32.xlu0 %v9912_v15 }
 0xe1b   : > { %v18155_v51 = vpop.eup %14403 }
 0xe1c   : > { %v9918_v42 = vsel %vm344_vm0, %v18155_v51, 0.0 }
 0xe2b   : > { %10324 = vrot.lane.b32.xlu0 %v14521_v29, %s14574_s20  ;;  %v9833_v29 = vmul.f32 1.442695, %v9771_v44 }
 0xe34   : > { %v9719_v46 = vpop.xlane.xlu1 %9718 }
 0xe35   : > { %v9765_v36 = vsub.f32 %v18076_v40, %v9719_v46 }
 0xe37   : > { %v9821_v19 = vmul.f32 1.442695, %v9765_v36 }
 0xe38   : > { %v9725_v45 = vpop.xlane.xlu1 %9724 }
 0xe39   : > { %14405 = vpow2.f32 %v9821_v19  ;;  %v9767_v25 = vsub.f32 %v18079_v39, %v9725_v45  ;;  %v14524_v39 = vld [vmem:[#allocation2 + $0x98] sm:$0xff]  ;;  %v14531_v45 = vld [vmem:[#allocation2 + $0xe8] sm:$0xff] }
 0xe3a   : > { %v18151_v8 = vpop.xlane.xlu0 %9907 }
 0xe3b   : > { %v9825_v10 = vmul.f32 1.442695, %v9767_v25  ;;  %v14536_v25 = vld [vmem:[#allocation2 + $0xc0] sm:$0xff] }
 0xe3c   : > { %v18153_v53 = vpop.xlane.xlu1 %9904 }
 0xe3d   : > { %14407 = vpow2.f32 %v9825_v10 }
 0xe3e   : > { %v10329_v23 = vpop.permute.xlu0 %10328  ;;  %14409 = vpow2.f32 %v9831_v22  ;;  %v14537_v22 = vld [vmem:[#allocation2 + $0xf0] sm:$0xff] }
 0xe40   : > { %v10331_v0 = vpop.permute.xlu1 %10330 }
 0xe41   : > { %13779 = vmatprep.subr.mxu1 %v10331_v0 }
 0xe42   : > { %13780 = vmatpush3.msra.mxu1 %v10331_v0 }
 0xe43   : > { %13781 = vmatprep.subr.mxu1 %v10329_v23 }
 0xe44   : > { %13782 = vmatpush3.msra.mxu1 %v10329_v23 }
 0xe46   : > { %v18157_v61 = vpop.eup %14405 }
 0xe47   : > { %v9909_v40 = vsel %vm344_vm0, %v18157_v61, 0.0 }
 0xe48   : > { %9910 = vadd.xlane.f32.xlu1 %v9909_v40  ;;  %v14532_v40 = vld [vmem:[#allocation2 + $0xb8] sm:$0xff] }
 0xe4a   : > { %9919 = vadd.xlane.f32.xlu0 %v9918_v42  ;;  %v18168_v34 = vpop.eup %14407  ;;  %v14533_v42 = vld [vmem:[#allocation2 + $0xa8] sm:$0xff] }
 0xe4b   : > { %v18170_v16 = vpop.eup %14409  ;;  %v9915_v35 = vsel %vm344_vm0, %v18168_v34, 0.0 }
 0xe4c   : > { %v9924_v14 = vsel %vm344_vm0, %v18170_v16, 0.0 }
 0xe59   : > { %10326 = vrot.lane.b32.xlu1 %v14522_v5, %s14574_s20  ;;  %v14534_v5 = vld [vmem:[#allocation2 + $0xa0] sm:$0xff] }
 0xe60   : > { %10437 = vrot.lane.b32.xlu0 %v14523_v59, %s14574_s20 }
 0xe7d   : > { %9916 = vadd.xlane.f32.xlu1 %v9915_v35  ;;  %v14538_v35 = vld [vmem:[#allocation2 + $0xe0] sm:$0xff] }
 0xe7f   : > { %9925 = vadd.xlane.f32.xlu0 %v9924_v14 }
 0xe8e   : > { %10439 = vrot.lane.b32.xlu1 %v14524_v39, %s14574_s20 }
 0xe92   : > { %v18193_v4 = vpop.xlane.xlu0 %9889 }
 0xe95   : > { %10433 = vrot.lane.b32.xlu0 %v14525_v11, %s14574_s20 }
 0xe98   : > { %v9887_v21 = vpop.xlane.xlu1 %9886 }
 0xe99   : > { %14411 = vrcp.f32 %v9887_v21 }
 0xe9a   : > { %14413 = vpow2.f32 %v9829_v32 }
 0xe9b   : > { %14415 = vpow2.f32 %v9835_v1 }
 0xe9c   : > { %14417 = vrcp.f32 %v18059_v31  ;;  %v9893_v43 = vpop.xlane.xlu1 %9892 }
 0xe9d   : > { %14419 = vrcp.f32 %v18098_v20  ;;  %v14529_v20 = vld [vmem:[#allocation2 + $0xc8] sm:$0xff] }
 0xe9e   : > { %14421 = vrcp.f32 %v18095_v2 }
 0xe9f   : > { %14423 = vrcp.f32 %v18111_v54  ;;  %v14530_v54 = vld [vmem:[#allocation2 + $0xf8] sm:$0xff] }
 0xea0   : > { %14425 = vpow2.f32 %v9833_v29 }
 0xea1   : > { %14427 = vrcp.f32 %v18193_v4 }
 0xea2   : > { %14429 = vrcp.f32 %v9893_v43 }
 0xea6   : > { %v14412_v47 = vpop.eup %14411 }
 0xea7   : > { %v9981_v7 = vmul.f32 %v14412_v47, %v18133_v9  ;;  %v18184_v33 = vpop.eup %14413  ;;  %v9896_v9 = vpop.xlane.xlu0 %9895 }
 0xea8   : > { %v18186_v50 = vpop.eup %14415  ;;  %v9921_v57 = vsel %vm344_vm0, %v18184_v33, 0.0  ;;  %14431 = vrcp.f32 %v9896_v9 }
 0xea9   : > { %13801 = vmatprep.mubr.msk.f32.mxu0 %vm344_vm0, %v9981_v7  ;;  %v9930_v26 = vsel %vm344_vm0, %v18186_v50, 0.0  ;;  %v14418_v30 = vpop.eup %14417 }
 0xeaa   : > { %v14420_v2 = vpop.eup %14419  ;;  %v9978_v49 = vmul.f32 %v14418_v30, %v17953_v52 }
 0xeab   : > { %v18203_v15 = vpop.xlane.xlu0 %9913  ;;  %v14422_v38 = vpop.eup %14421  ;;  %v9979_v36 = vmul.f32 %v14420_v2, %v17975_v18 }
 0xeac   : > { %v14424_v19 = vpop.eup %14423  ;;  %v9980_v0 = vmul.f32 %v14422_v38, %v17973_v55  ;;  %v14535_v55 = vld [vmem:[#allocation2 + $0xd0] sm:$0xff] }
 0xead   : > { %v9985_v23 = vmul.f32 %v14424_v19, %v18020_v41  ;;  %v18216_v52 = vpop.eup %14425 }
 0xeae   : > { %v9927_v18 = vsel %vm344_vm0, %v18216_v52, 0.0  ;;  %v14428_v37 = vpop.eup %14427 }
 0xeaf   : > { %v10325_v46 = vpop.permute.xlu0 %10324  ;;  %v14430_v32 = vpop.eup %14429  ;;  %v9982_v47 = vmul.f32 %v14428_v37, %v18122_v56 }
 0xeb2   : > { %9922 = vadd.xlane.f32.xlu1 %v9921_v57  ;;  %v9983_v57 = vmul.f32 %v14430_v32, %v18140_v60 }
 0xeb4   : > { %9931 = vadd.xlane.f32.xlu0 %v9930_v26 }
 0xeb5   : > { %v14432_v7 = vpop.eup %14431 }
 0xeb6   : > { %v9984_v4 = vmul.f32 %v14432_v7, %v18127_v17 }
 0xec3   : > { %10435 = vrot.lane.b32.xlu1 %v14526_v62, %s14574_s20 }
 0xeca   : > { %10546 = vrot.lane.b32.xlu0 %v14527_v12, %s14574_s20 }
 0xece   : > { %10657 = vrot.lane.b32.xlu0 %v14528_v24, %s14574_s20 }
 0xed1   : > { %v9911_v31 = vpop.xlane.xlu1 %9910 }
 0xed2   : > { %10653 = vrot.lane.b32.xlu0 %v14529_v20, %s14574_s20  ;;  %14433 = vrcp.f32 %v9911_v31 }
 0xed3   : > { %v9920_v41 = vpop.xlane.xlu0 %9919  ;;  %14435 = vrcp.f32 %v18118_v63 }
 0xed4   : > { %14437 = vrcp.f32 %v18153_v53 }
 0xed5   : > { %v10327_v27 = vpop.permute.xlu1 %10326  ;;  %14439 = vrcp.f32 %v18151_v8  ;;  %v13747_v8 = vpop.f32.mrf.mxu1 }
 0xed6   : > { %10766 = vrot.lane.b32.xlu0 %v14530_v54, %s14574_s20  ;;  %13783 = vmatprep.subr.mxu1 %v10327_v27  ;;  %v10901_v54 = vld [vmem:[%s18446_s2 + $0x18] sm:$0xff] }
 0xed7   : > { %13784 = vmatpush3.msra.mxu1 %v10327_v27  ;;  %v10438_v10 = vpop.permute.xlu0 %10437  ;;  %v10087_v20 = vpop.f32.mrf.mxu1 }
 0xed8   : > { %13785 = vmatprep.subr.mxu1 %v10325_v46 }
 0xed9   : > { %13786 = vmatpush3.msra.mxu1 %v10325_v46  ;;  %v13750_v46 = vpop.f32.mrf.mxu1 }
 0xeda   : > { %10762 = vrot.lane.b32.xlu0 %v14531_v45, %s14574_s20  ;;  %13788 = vmatmul.mubr.msk.f32.vlgmr.msra.gmra.mxu1 %vm344_vm0, %v9978_v49 }
 0xedb   : > { %13790 = vmatprep.mubr.msk.f32.mxu1 %vm344_vm0, %v9979_v36  ;;  %v10097_v36 = vpop.f32.mrf.mxu1 }
 0xede   : > { %13791 = vmatmul.mubr.msk.f32.gmra.mxu1 %vm344_vm0, %v9980_v0 }
 0xedf   : > { %13815 = vmatprep.mubr.msk.f32.mxu1 %vm344_vm0, %v9985_v23  ;;  %v14434_v26 = vpop.eup %14433  ;;  %v13761_v23 = vpop.f32.mrf.mxu1 }
 0xee0   : > { %v9989_v12 = vmul.f32 %v14434_v26, %v18157_v61  ;;  %v14436_v9 = vpop.eup %14435 }
 0xee1   : > { %v14438_v63 = vpop.eup %14437  ;;  %v9986_v43 = vmul.f32 %v14436_v9, %v18034_v13 }
 0xee2   : > { %v14440_v44 = vpop.eup %14439 }
 0xee3   : > { %v9988_v13 = vmul.f32 %v14440_v44, %v18083_v6  ;;  %v10871_v44 = vld [vmem:[#allocation3 + $0x10] sm:$0xff] }
 0xee7   : > { %9928 = vadd.xlane.f32.xlu1 %v9927_v18 }
 0xef8   : > { %10548 = vrot.lane.b32.xlu1 %v14532_v40, %s14574_s20 }
 0xefc   : > { %10544 = vrot.lane.b32.xlu1 %v14533_v42, %s14574_s20 }
 0xf00   : > { %10542 = vrot.lane.b32.xlu1 %v14534_v5, %s14574_s20 }
 0xf04   : > { %10655 = vrot.lane.b32.xlu1 %v14535_v55, %s14574_s20 }
 0xf06   : > { %v9917_v59 = vpop.xlane.xlu1 %9916 }
 0xf08   : > { %10651 = vrot.lane.b32.xlu1 %v14536_v25, %s14574_s20  ;;  %v9926_v14 = vpop.xlane.xlu0 %9925 }
 0xf0a   : > { %v10440_v48 = vpop.permute.xlu1 %10439 }
 0xf0b   : > { %13793 = vmatprep.subr.mxu0 %v10440_v48 }
 0xf0c   : > { %10764 = vrot.lane.b32.xlu1 %v14537_v22, %s14574_s20  ;;  %13794 = vmatpush3.msra.mxu0 %v10440_v48  ;;  %v10434_v39 = vpop.permute.xlu0 %10433 }
 0xf0d   : > { %13795 = vmatprep.subr.mxu0 %v10438_v10 }
 0xf0e   : > { %13796 = vmatpush3.msra.mxu0 %v10438_v10 }
 0xf10   : > { %10760 = vrot.lane.b32.xlu1 %v14538_v35, %s14574_s20 }
 0xf3b   : > { %v9923_v11 = vpop.xlane.xlu1 %9922 }
 0xf3c   : > { %14441 = vrcp.f32 %v9923_v11 }
 0xf3d   : > { %v9932_v21 = vpop.xlane.xlu0 %9931  ;;  %14443 = vrcp.f32 %v18203_v15  ;;  %v9987_v15 = vmul.f32 %v14438_v63, %v18087_v3  ;;  %v10872_v63 = vld [vmem:[#allocation3 + $0x18] sm:$0xff] }
 0xf3e   : > { %14445 = vrcp.f32 %v9917_v59 }
 0xf3f   : > { %v10436_v58 = vpop.permute.xlu1 %10435  ;;  %14447 = vrcp.f32 %v9920_v41  ;;  %v13775_v41 = vpop.f32.mrf.mxu0 }
 0xf40   : > { %13797 = vmatprep.subr.mxu0 %v10436_v58  ;;  %14449 = vrcp.f32 %v9926_v14 }
 0xf41   : > { %v10547_v1 = vpop.permute.xlu0 %10546  ;;  %13798 = vmatpush3.msra.mxu0 %v10436_v58 }
 0xf42   : > { %13799 = vmatprep.subr.mxu0 %v10434_v39 }
 0xf43   : > { %13800 = vmatpush3.msra.mxu0 %v10434_v39 }
 0xf44   : > { %13802 = vmatmul.mubr.msk.f32.vlgmr.msra.gmra.mxu0 %vm344_vm0, %v9982_v47 }
 0xf45   : > { %v10658_v62 = vpop.permute.xlu0 %10657  ;;  %13804 = vmatprep.mubr.msk.f32.mxu0 %vm344_vm0, %v9983_v57 }
 0xf46   : > { %13821 = vmatprep.subr.mxu0 %v10658_v62 }
 0xf47   : > { %13822 = vmatpush3.msra.mxu0 %v10658_v62  ;;  %v10870_v62 = vld [vmem:[#allocation3 + $0x8] sm:$0xff] }
 0xf48   : > { %13805 = vmatmul.mubr.msk.f32.gmra.mxu0 %vm344_vm0, %v9984_v4 }
 0xf49   : > { %13829 = vmatprep.mubr.msk.f32.mxu0 %vm344_vm0, %v9989_v12  ;;  %v10654_v17 = vpop.permute.xlu0 %10653  ;;  %v14442_v31 = vpop.eup %14441 }
 0xf4a   : > { %v14444_v30 = vpop.eup %14443  ;;  %v9993_v27 = vmul.f32 %v14442_v31, %v18184_v33  ;;  %v18300_v31 = vld [vmem:[%s18447_s3] ss:$0 sm:$0xff] }
 0xf4b   : > { %v14446_v2 = vpop.eup %14445  ;;  %v9990_v49 = vmul.f32 %v14444_v30, %v18144_v28 }
 0xf4c   : > { %v14448_v6 = vpop.eup %14447  ;;  %v9991_v33 = vmul.f32 %v14446_v2, %v18168_v34 }
 0xf4d   : > { %v10767_v24 = vpop.permute.xlu0 %10766  ;;  %v9992_v19 = vmul.f32 %v14448_v6, %v18155_v51  ;;  %v14450_v45 = vpop.eup %14449 }
 0xf4e   : > { %v9994_v18 = vmul.f32 %v14450_v45, %v18170_v16  ;;  %v10196_v51 = vpop.f32.mrf.mxu1 }
 0xf50   : > { %v13764_v55 = vpop.f32.mrf.mxu1 }
 0xf51   : > { %v10763_v0 = vpop.permute.xlu0 %10762 }
 0xf52   : > { %v10206_v16 = vpop.f32.mrf.mxu1 }
 0xf70   : > { %v9929_v56 = vpop.xlane.xlu1 %9928 }
 0xf71   : > { %14451 = vrcp.f32 %v9929_v56 }
 0xf72   : > { %14453 = vrcp.f32 %v9932_v21 }
 0xf74   : > { %v10549_v60 = vpop.permute.xlu1 %10548 }
 0xf75   : > { %13807 = vmatprep.subr.mxu1 %v10549_v60 }
 0xf76   : > { %13808 = vmatpush3.msra.mxu1 %v10549_v60  ;;  %v10869_v60 = vld [vmem:[#allocation3] sm:$0xff] }
 0xf77   : > { %13809 = vmatprep.subr.mxu1 %v10547_v1 }
 0xf78   : > { %13810 = vmatpush3.msra.mxu1 %v10547_v1  ;;  %v10545_v61 = vpop.permute.xlu1 %10544 }
 0xf79   : > { %13811 = vmatprep.subr.mxu1 %v10545_v61 }
 0xf7a   : > { %13812 = vmatpush3.msra.mxu1 %v10545_v61 }
 0xf7c   : > { %v10543_v53 = vpop.permute.xlu1 %10542 }
 0xf7d   : > { %13813 = vmatprep.subr.mxu1 %v10543_v53 }
 0xf7e   : > { %13814 = vmatpush3.msra.mxu1 %v10543_v53  ;;  %v14452_v28 = vpop.eup %14451 }
 0xf7f   : > { %13816 = vmatmul.mubr.msk.f32.vlgmr.msra.gmra.mxu1 %vm344_vm0, %v9986_v43  ;;  %13835 = vmatprep.subr.mxu1 %v10767_v24  ;;  %v14454_v40 = vpop.eup %14453  ;;  %v9995_v42 = vmul.f32 %v14452_v28, %v18216_v52  ;;  %v10305_v52 = vpop.f32.mrf.mxu0 }
 0xf80   : > { %13818 = vmatprep.mubr.msk.f32.mxu1 %vm344_vm0, %v9987_v15  ;;  %13836 = vmatpush3.msra.mxu1 %v10767_v24  ;;  %v10656_v29 = vpop.permute.xlu1 %10655  ;;  %v9996_v5 = vmul.f32 %v14454_v40, %v18186_v50 }
 0xf81   : > { %13823 = vmatprep.subr.mxu0 %v10656_v29  ;;  %v13778_v59 = vpop.f32.mrf.mxu0 }
 0xf82   : > { %13824 = vmatpush3.msra.mxu0 %v10656_v29  ;;  %v10874_v29 = vld [vmem:[#allocation3 + $0x28] sm:$0xff] }
 0xf83   : > { %13819 = vmatmul.mubr.msk.f32.gmra.mxu1 %vm344_vm0, %v9988_v13  ;;  %13825 = vmatprep.subr.mxu0 %v10654_v17  ;;  %v10315_v50 = vpop.f32.mrf.mxu0 }
 0xf84   : > { %13826 = vmatpush3.msra.mxu0 %v10654_v17  ;;  %13843 = vmatprep.mubr.msk.f32.mxu1 %vm344_vm0, %v9993_v27  ;;  %v10652_v3 = vpop.permute.xlu1 %10651  ;;  %v10873_v27 = vld [vmem:[#allocation3 + $0x20] sm:$0xff] }
 0xf85   : > { %13827 = vmatprep.subr.mxu0 %v10652_v3 }
 0xf86   : > { %13828 = vmatpush3.msra.mxu0 %v10652_v3 }
 0xf87   : > { %13830 = vmatmul.mubr.msk.f32.vlgmr.msra.gmra.mxu0 %vm344_vm0, %v9990_v49  ;;  %13849 = vmatprep.subr.mxu0 %v10901_v54  ;;  %v10876_v49 = vld [vmem:[#allocation3 + $0x38] sm:$0xff] }
 0xf88   : > { %13832 = vmatprep.mubr.msk.f32.mxu0 %vm344_vm0, %v9991_v33  ;;  %v10765_v38 = vpop.permute.xlu1 %10764  ;;  %13850 = vmatpush3.msra.mxu0 %v10901_v54 }
 0xf89   : > { %13837 = vmatprep.subr.mxu1 %v10765_v38 }
 0xf8a   : > { %13838 = vmatpush3.msra.mxu1 %v10765_v38 }
 0xf8b   : > { %13833 = vmatmul.mubr.msk.f32.gmra.mxu0 %vm344_vm0, %v9992_v19  ;;  %13839 = vmatprep.subr.mxu1 %v10763_v0  ;;  %v10875_v19 = vld [vmem:[#allocation3 + $0x30] sm:$0xff] }
 0xf8c   : > { %13840 = vmatpush3.msra.mxu1 %v10763_v0  ;;  %13851 = vmatprep.mubr.msk.f32.mxu0 %vm787_vm2, %v10087_v20  ;;  %v10761_v34 = vpop.permute.xlu1 %10760 }
 0xf8d   : > { %13841 = vmatprep.subr.mxu1 %v10761_v34 }
 0xf8e   : > { %13842 = vmatpush3.msra.mxu1 %v10761_v34  ;;  %v10878_v34 = vld [vmem:[#allocation3 + $0x48] sm:$0xff] }
 0xf8f   : > { %13844 = vmatmul.mubr.msk.f32.vlgmr.msra.gmra.mxu1 %vm344_vm0, %v9994_v18  ;;  %13852 = vmatmul.mubr.msk.f32.vlgmr.msra.gmra.mxu0 %vm787_vm2, %v13747_v8 }
 0xf90   : > { %13846 = vmatprep.mubr.msk.f32.mxu1 %vm344_vm0, %v9995_v42  ;;  %13854 = vmatprep.mubr.msk.f32.mxu0 %vm787_vm2, %v10097_v36 }
 0xf93   : > { %13847 = vmatmul.mubr.msk.f32.gmra.mxu1 %vm344_vm0, %v9996_v5  ;;  %13855 = vmatmul.mubr.msk.f32.gmra.mxu0 %vm787_vm2, %v13750_v46  ;;  %v10877_v5 = vld [vmem:[#allocation3 + $0x40] sm:$0xff] }
 0xf94   : > { %13857 = vmatprep.mubr.msk.f32.mxu0 %vm787_vm2, %v10196_v51 }
 0xf97   : > { %13858 = vmatmul.mubr.msk.f32.gmra.mxu0 %vm787_vm2, %v13761_v23 }
 0xf98   : > { %13860 = vmatprep.mubr.msk.f32.mxu0 %vm787_vm2, %v10206_v16 }
 0xf9a   : > { %v13789_v25 = vpop.f32.mrf.mxu1 }
 0xf9b   : > { %13861 = vmatmul.mubr.msk.f32.gmra.mxu0 %vm787_vm2, %v13764_v55 }
 0xf9c   : > { %13863 = vmatprep.mubr.msk.f32.mxu0 %vm787_vm2, %v10305_v52  ;;  %v10414_v48 = vpop.f32.mrf.mxu1 }
 0xf9e   : > { %v13792_v10 = vpop.f32.mrf.mxu1 }
 0xf9f   : > { %13864 = vmatmul.mubr.msk.f32.gmra.mxu0 %vm787_vm2, %v13775_v41 }
 0xfa0   : > { %13866 = vmatprep.mubr.msk.f32.mxu0 %vm787_vm2, %v10315_v50  ;;  %v10424_v22 = vpop.f32.mrf.mxu1 }
 0xfa3   : > { %13867 = vmatmul.mubr.msk.f32.gmra.mxu0 %vm787_vm2, %v13778_v59  ;;  %v10880_v59 = vld [vmem:[#allocation3 + $0x58] sm:$0xff] }
 0xfa4   : > { %13869 = vmatprep.mubr.msk.f32.mxu0 %vm787_vm2, %v10414_v48 }
 0xfa7   : > { %13870 = vmatmul.mubr.msk.f32.gmra.mxu0 %vm787_vm2, %v13789_v25 }
 0xfa8   : > { %13872 = vmatprep.mubr.msk.f32.mxu0 %vm787_vm2, %v10424_v22  ;;  %v10879_v22 = vld [vmem:[#allocation3 + $0x50] sm:$0xff] }
 0xfab   : > { %13873 = vmatmul.mubr.msk.f32.gmra.mxu0 %vm787_vm2, %v13792_v10 }
0x1004   : > { %v13803_v35 = vpop.f32.mrf.mxu0 }
0x1006   : > { %v10523_v14 = vpop.f32.mrf.mxu0 }
0x1007   : > { %13875 = vmatprep.mubr.msk.f32.mxu0 %vm787_vm2, %v10523_v14 }
0x1008   : > { %v13806_v39 = vpop.f32.mrf.mxu0  ;;  %13876 = vmatmul.mubr.msk.f32.gmra.mxu0 %vm787_vm2, %v13803_v35 }
0x100a   : > { %v10533_v11 = vpop.f32.mrf.mxu0 }
0x100b   : > { %13878 = vmatprep.mubr.msk.f32.mxu0 %vm787_vm2, %v10533_v11 }
0x100c   : > { %13879 = vmatmul.mubr.msk.f32.gmra.mxu0 %vm787_vm2, %v13806_v39 }
0x103f   : > { %v13817_v21 = vpop.f32.mrf.mxu1 }
0x1041   : > { %v10632_v37 = vpop.f32.mrf.mxu1 }
0x1042   : > { %13881 = vmatprep.mubr.msk.f32.mxu0 %vm787_vm2, %v10632_v37 }
0x1043   : > { %v13820_v58 = vpop.f32.mrf.mxu1  ;;  %13882 = vmatmul.mubr.msk.f32.gmra.mxu0 %vm787_vm2, %v13817_v21  ;;  %v10882_v21 = vld [vmem:[#allocation3 + $0x68] sm:$0xff] }
0x1045   : > { %v10642_v32 = vpop.f32.mrf.mxu1 }
0x1046   : > { %13884 = vmatprep.mubr.msk.f32.mxu0 %vm787_vm2, %v10642_v32 }
0x1047   : > { %v13831_v1 = vpop.f32.mrf.mxu0  ;;  %13885 = vmatmul.mubr.msk.f32.gmra.mxu0 %vm787_vm2, %v13820_v58 }
0x1049   : > { %v10741_v47 = vpop.f32.mrf.mxu0 }
0x104a   : > { %13887 = vmatprep.mubr.msk.f32.mxu0 %vm787_vm2, %v10741_v47  ;;  %v10881_v47 = vld [vmem:[#allocation3 + $0x60] sm:$0xff] }
0x104b   : > { %v13834_v7 = vpop.f32.mrf.mxu0  ;;  %13888 = vmatmul.mubr.msk.f32.gmra.mxu0 %vm787_vm2, %v13831_v1 }
0x104d   : > { %v10751_v57 = vpop.f32.mrf.mxu0 }
0x104e   : > { %13890 = vmatprep.mubr.msk.f32.mxu0 %vm787_vm2, %v10751_v57 }
0x104f   : > { %v13845_v26 = vpop.f32.mrf.mxu1  ;;  %v13853_v4 = vpop.f32.mrf.mxu0  ;;  %13891 = vmatmul.mubr.msk.f32.gmra.mxu0 %vm787_vm2, %v13834_v7 }
0x1050   : > { %v11224_v12 = vadd.f32 %v13853_v4, %v10870_v62  ;;  %v10884_v4 = vld [vmem:[#allocation3 + $0x78] sm:$0xff] }
0x1051   : > { %v10850_v56 = vpop.f32.mrf.mxu1  ;;  %v11064_v17 = vpop.f32.mrf.mxu0 }
0x1052   : > { %11256 = vst.msk [vmem:[#allocation3 + $0x8] sm:$0xff] %vm344_vm0, %v11224_v12  ;;  %v11223_v61 = vadd.f32 %v11064_v17, %v10869_v60  ;;  %13893 = vmatprep.mubr.msk.f32.mxu0 %vm787_vm2, %v10850_v56 }
0x1053   : > { %v13848_v9 = vpop.f32.mrf.mxu1  ;;  %v13856_v53 = vpop.f32.mrf.mxu0  ;;  %13894 = vmatmul.mubr.msk.f32.gmra.mxu0 %vm787_vm2, %v13845_v26 }
0x1054   : > { %11255 = vst.msk [vmem:[#allocation3] sm:$0xff] %vm344_vm0, %v11223_v61  ;;  %v11226_v43 = vadd.f32 %v13856_v53, %v10872_v63  ;;  %v10883_v61 = vld [vmem:[#allocation3 + $0x70] sm:$0xff] }
0x1055   : > { %v10860_v8 = vpop.f32.mrf.mxu1  ;;  %v11074_v24 = vpop.f32.mrf.mxu0 }
0x1056   : > { %11258 = vst.msk [vmem:[#allocation3 + $0x18] sm:$0xff] %vm344_vm0, %v11226_v43  ;;  %v11225_v15 = vadd.f32 %v11074_v24, %v10871_v44  ;;  %13896 = vmatprep.mubr.msk.f32.mxu0 %vm787_vm2, %v10860_v8 }
0x1057   : > { %v13859_v20 = vpop.f32.mrf.mxu0  ;;  %13897 = vmatmul.mubr.msk.f32.gmra.mxu0 %vm787_vm2, %v13848_v9 }
0x1058   : > { %11257 = vst.msk [vmem:[#allocation3 + $0x10] sm:$0xff] %vm344_vm0, %v11225_v15  ;;  %v11228_v13 = vadd.f32 %v13859_v20, %v10874_v29 }
0x1059   : > { %v11288_v30 = vld [vmem:[#allocation3 + $0x8] sm:$0xff]  ;;  %v11084_v2 = vpop.f32.mrf.mxu0 }
0x105a   : > { %v11327_v3 = vadd.f32 %v18300_v31, %v11288_v30  ;;  %11260 = vst.msk [vmem:[#allocation3 + $0x28] sm:$0xff] %vm344_vm0, %v11228_v13  ;;  %v11227_v54 = vadd.f32 %v11084_v2, %v10873_v27  ;;  %v10886_v2 = vld [vmem:[#allocation3 + $0x88] sm:$0xff] }
0x105b   : > { %v11287_v46 = vld [vmem:[#allocation3] sm:$0xff]  ;;  %v13862_v6 = vpop.f32.mrf.mxu0 }
0x105c   : > { %11359 = vst.msk [vmem:[%s18309_s16 + $0x8] sm:$0xff] %vm344_vm0, %v11327_v3  ;;  %v11326_v33 = vadd.f32 %v18300_v31, %v11287_v46  ;;  %11259 = vst.msk [vmem:[#allocation3 + $0x20] sm:$0xff] %vm344_vm0, %v11227_v54  ;;  %v11230_v38 = vadd.f32 %v13862_v6, %v10876_v49  ;;  %v10885_v46 = vld [vmem:[#allocation3 + $0x80] sm:$0xff] }
0x105d   : > { %v11290_v36 = vld [vmem:[#allocation3 + $0x18] sm:$0xff]  ;;  %v11094_v45 = vpop.f32.mrf.mxu0 }
0x105e   : > { %11358 = vst.msk [vmem:[%s18309_s16] sm:$0xff] %vm344_vm0, %v11326_v33  ;;  %v11329_v0 = vadd.f32 %v18300_v31, %v11290_v36  ;;  %11262 = vst.msk [vmem:[#allocation3 + $0x38] sm:$0xff] %vm344_vm0, %v11230_v38  ;;  %v11229_v28 = vadd.f32 %v11094_v45, %v10875_v19  ;;  %v10888_v33 = vld [vmem:[#allocation3 + $0x98] sm:$0xff]  ;;  %v10887_v19 = vld [vmem:[#allocation3 + $0x90] sm:$0xff] }
0x105f   : > { %v11289_v23 = vld [vmem:[#allocation3 + $0x10] sm:$0xff]  ;;  %v13865_v18 = vpop.f32.mrf.mxu0 }
0x1060   : > { %11361 = vst.msk [vmem:[%s18309_s16 + $0x18] sm:$0xff] %vm344_vm0, %v11329_v0  ;;  %v11328_v40 = vadd.f32 %v18300_v31, %v11289_v23  ;;  %11261 = vst.msk [vmem:[#allocation3 + $0x30] sm:$0xff] %vm344_vm0, %v11229_v28  ;;  %v11232_v42 = vadd.f32 %v13865_v18, %v10878_v34 }
0x1061   : > { %v11292_v51 = vld [vmem:[#allocation3 + $0x28] sm:$0xff]  ;;  %v11104_v55 = vpop.f32.mrf.mxu0 }
0x1062   : > { %11360 = vst.msk [vmem:[%s18309_s16 + $0x10] sm:$0xff] %vm344_vm0, %v11328_v40  ;;  %v11331_v41 = vadd.f32 %v18300_v31, %v11292_v51  ;;  %11264 = vst.msk [vmem:[#allocation3 + $0x48] sm:$0xff] %vm344_vm0, %v11232_v42  ;;  %v11231_v16 = vadd.f32 %v11104_v55, %v10877_v5  ;;  %v10890_v55 = vld [vmem:[#allocation3 + $0xa8] sm:$0xff] }
0x1063   : > { %v11291_v52 = vld [vmem:[#allocation3 + $0x20] sm:$0xff]  ;;  %v13868_v25 = vpop.f32.mrf.mxu0 }
0x1064   : > { %11363 = vst.msk [vmem:[%s18309_s16 + $0x28] sm:$0xff] %vm344_vm0, %v11331_v41  ;;  %v11330_v50 = vadd.f32 %v18300_v31, %v11291_v52  ;;  %11263 = vst.msk [vmem:[#allocation3 + $0x40] sm:$0xff] %vm344_vm0, %v11231_v16  ;;  %v11234_v48 = vadd.f32 %v13868_v25, %v10880_v59  ;;  %v10889_v52 = vld [vmem:[#allocation3 + $0xa0] sm:$0xff] }
0x1065   : > { %v11294_v10 = vld [vmem:[#allocation3 + $0x38] sm:$0xff]  ;;  %v11114_v35 = vpop.f32.mrf.mxu0 }
0x1066   : > { %11362 = vst.msk [vmem:[%s18309_s16 + $0x20] sm:$0xff] %vm344_vm0, %v11330_v50  ;;  %v11333_v14 = vadd.f32 %v18300_v31, %v11294_v10  ;;  %11266 = vst.msk [vmem:[#allocation3 + $0x58] sm:$0xff] %vm344_vm0, %v11234_v48  ;;  %v11233_v39 = vadd.f32 %v11114_v35, %v10879_v22  ;;  %v10892_v50 = vld [vmem:[#allocation3 + $0xb8] sm:$0xff]  ;;  %v10891_v22 = vld [vmem:[#allocation3 + $0xb0] sm:$0xff] }
0x1067   : > { %v11293_v11 = vld [vmem:[#allocation3 + $0x30] sm:$0xff]  ;;  %v13871_v37 = vpop.f32.mrf.mxu0 }
0x1068   : > { %11365 = vst.msk [vmem:[%s18309_s16 + $0x38] sm:$0xff] %vm344_vm0, %v11333_v14  ;;  %v11332_v58 = vadd.f32 %v18300_v31, %v11293_v11  ;;  %11265 = vst.msk [vmem:[#allocation3 + $0x50] sm:$0xff] %vm344_vm0, %v11233_v39  ;;  %v11236_v32 = vadd.f32 %v13871_v37, %v10882_v21  ;;  %v10894_v39 = vld [vmem:[#allocation3 + $0xc8] sm:$0xff] }
0x1069   : > { %v11296_v1 = vld [vmem:[#allocation3 + $0x48] sm:$0xff]  ;;  %v11124_v7 = vpop.f32.mrf.mxu0 }
0x106a   : > { %11364 = vst.msk [vmem:[%s18309_s16 + $0x30] sm:$0xff] %vm344_vm0, %v11332_v58  ;;  %v11335_v57 = vadd.f32 %v18300_v31, %v11296_v1  ;;  %11268 = vst.msk [vmem:[#allocation3 + $0x68] sm:$0xff] %vm344_vm0, %v11236_v32  ;;  %v11235_v26 = vadd.f32 %v11124_v7, %v10881_v47  ;;  %v10893_v58 = vld [vmem:[#allocation3 + $0xc0] sm:$0xff] }
0x106b   : > { %v11295_v62 = vld [vmem:[#allocation3 + $0x40] sm:$0xff]  ;;  %v13874_v12 = vpop.f32.mrf.mxu0 }
0x106c   : > { %11367 = vst.msk [vmem:[%s18309_s16 + $0x48] sm:$0xff] %vm344_vm0, %v11335_v57  ;;  %v11334_v56 = vadd.f32 %v18300_v31, %v11295_v62  ;;  %11267 = vst.msk [vmem:[#allocation3 + $0x60] sm:$0xff] %vm344_vm0, %v11235_v26  ;;  %v11238_v60 = vadd.f32 %v13874_v12, %v10884_v4  ;;  %v10896_v57 = vld [vmem:[#allocation3 + $0xd8] sm:$0xff] }
0x106d   : > { %v11298_v17 = vld [vmem:[#allocation3 + $0x58] sm:$0xff]  ;;  %v11134_v9 = vpop.f32.mrf.mxu0 }
0x106e   : > { %11366 = vst.msk [vmem:[%s18309_s16 + $0x40] sm:$0xff] %vm344_vm0, %v11334_v56  ;;  %v11337_v63 = vadd.f32 %v18300_v31, %v11298_v17  ;;  %11270 = vst.msk [vmem:[#allocation3 + $0x78] sm:$0xff] %vm344_vm0, %v11238_v60  ;;  %v11237_v53 = vadd.f32 %v11134_v9, %v10883_v61  ;;  %v10895_v56 = vld [vmem:[#allocation3 + $0xd0] sm:$0xff] }
0x106f   : > { %v11297_v43 = vld [vmem:[#allocation3 + $0x50] sm:$0xff] }
0x1070   : > { %11369 = vst.msk [vmem:[%s18309_s16 + $0x58] sm:$0xff] %vm344_vm0, %v11337_v63  ;;  %v11336_v8 = vadd.f32 %v18300_v31, %v11297_v43  ;;  %11269 = vst.msk [vmem:[#allocation3 + $0x70] sm:$0xff] %vm344_vm0, %v11237_v53  ;;  %v10898_v63 = vld [vmem:[#allocation3 + $0xe8] sm:$0xff] }
0x1071   : > { %v11300_v44 = vld [vmem:[#allocation3 + $0x68] sm:$0xff] }
0x1072   : > { %11368 = vst.msk [vmem:[%s18309_s16 + $0x50] sm:$0xff] %vm344_vm0, %v11336_v8  ;;  %v11339_v24 = vadd.f32 %v18300_v31, %v11300_v44 }
0x1073   : > { %v11299_v15 = vld [vmem:[#allocation3 + $0x60] sm:$0xff] }
0x1074   : > { %11371 = vst.msk [vmem:[%s18309_s16 + $0x68] sm:$0xff] %vm344_vm0, %v11339_v24  ;;  %v11338_v29 = vadd.f32 %v18300_v31, %v11299_v15  ;;  %v10897_v24 = vld [vmem:[#allocation3 + $0xe0] sm:$0xff] }
0x1075   : > { %v11302_v20 = vld [vmem:[#allocation3 + $0x78] sm:$0xff] }
0x1076   : > { %11370 = vst.msk [vmem:[%s18309_s16 + $0x60] sm:$0xff] %vm344_vm0, %v11338_v29  ;;  %v11341_v13 = vadd.f32 %v18300_v31, %v11302_v20 }
0x1077   : > { %v11301_v30 = vld [vmem:[#allocation3 + $0x70] sm:$0xff] }
0x1078   : > { %11373 = vst.msk [vmem:[%s18309_s16 + $0x78] sm:$0xff] %vm344_vm0, %v11341_v13  ;;  %v11340_v27 = vadd.f32 %v18300_v31, %v11301_v30  ;;  %v10900_v30 = vld [vmem:[#allocation3 + $0xf8] sm:$0xff] }
0x107a   : > { %11372 = vst.msk [vmem:[%s18309_s16 + $0x70] sm:$0xff] %vm344_vm0, %v11340_v27 }
0x10c8   : > { %v13877_v3 = vpop.f32.mrf.mxu0 }
0x10c9   : > { %v11240_v54 = vadd.f32 %v13877_v3, %v10886_v2 }
0x10ca   : > { %v11144_v49 = vpop.f32.mrf.mxu0 }
0x10cb   : > { %11272 = vst.msk [vmem:[#allocation3 + $0x88] sm:$0xff] %vm344_vm0, %v11240_v54  ;;  %v11239_v6 = vadd.f32 %v11144_v49, %v10885_v46  ;;  %v10899_v46 = vld [vmem:[#allocation3 + $0xf0] sm:$0xff] }
0x10cc   : > { %v13880_v38 = vpop.f32.mrf.mxu0 }
0x10cd   : > { %11271 = vst.msk [vmem:[#allocation3 + $0x80] sm:$0xff] %vm344_vm0, %v11239_v6  ;;  %v11242_v36 = vadd.f32 %v13880_v38, %v10888_v33 }
0x10ce   : > { %v11154_v45 = vpop.f32.mrf.mxu0 }
0x10cf   : > { %11274 = vst.msk [vmem:[#allocation3 + $0x98] sm:$0xff] %vm344_vm0, %v11242_v36  ;;  %v11241_v0 = vadd.f32 %v11154_v45, %v10887_v19 }
0x10d1   : > { %11273 = vst.msk [vmem:[#allocation3 + $0x90] sm:$0xff] %vm344_vm0, %v11241_v0 }
0x10d2   : > { %v11304_v28 = vld [vmem:[#allocation3 + $0x88] sm:$0xff] }
0x10d3   : > { %v11343_v23 = vadd.f32 %v18300_v31, %v11304_v28 }
0x10d4   : > { %v11303_v34 = vld [vmem:[#allocation3 + $0x80] sm:$0xff] }
0x10d5   : > { %11375 = vst.msk [vmem:[%s18309_s16 + $0x88] sm:$0xff] %vm344_vm0, %v11343_v23  ;;  %v11342_v18 = vadd.f32 %v18300_v31, %v11303_v34 }
0x10d6   : > { %v11306_v40 = vld [vmem:[#allocation3 + $0x98] sm:$0xff] }
0x10d7   : > { %11374 = vst.msk [vmem:[%s18309_s16 + $0x80] sm:$0xff] %vm344_vm0, %v11342_v18  ;;  %v11345_v42 = vadd.f32 %v18300_v31, %v11306_v40 }
0x10d8   : > { %v11305_v51 = vld [vmem:[#allocation3 + $0x90] sm:$0xff] }
0x10d9   : > { %11377 = vst.msk [vmem:[%s18309_s16 + $0x98] sm:$0xff] %vm344_vm0, %v11345_v42  ;;  %v11344_v5 = vadd.f32 %v18300_v31, %v11305_v51 }
0x10db   : > { %11376 = vst.msk [vmem:[%s18309_s16 + $0x90] sm:$0xff] %vm344_vm0, %v11344_v5 }
0x1103   : > { %v13883_v41 = vpop.f32.mrf.mxu0 }
0x1104   : > { %v11244_v16 = vadd.f32 %v13883_v41, %v10890_v55 }
0x1105   : > { %v11164_v59 = vpop.f32.mrf.mxu0 }
0x1106   : > { %11276 = vst.msk [vmem:[#allocation3 + $0xa8] sm:$0xff] %vm344_vm0, %v11244_v16  ;;  %v11243_v25 = vadd.f32 %v11164_v59, %v10889_v52 }
0x1107   : > { %v13886_v48 = vpop.f32.mrf.mxu0 }
0x1108   : > { %11275 = vst.msk [vmem:[#allocation3 + $0xa0] sm:$0xff] %vm344_vm0, %v11243_v25  ;;  %v11246_v10 = vadd.f32 %v13886_v48, %v10892_v50 }
0x1109   : > { %v11174_v35 = vpop.f32.mrf.mxu0 }
0x110a   : > { %11278 = vst.msk [vmem:[#allocation3 + $0xb8] sm:$0xff] %vm344_vm0, %v11246_v10  ;;  %v11245_v14 = vadd.f32 %v11174_v35, %v10891_v22 }
0x110b   : > { %v13889_v11 = vpop.f32.mrf.mxu0 }
0x110c   : > { %11277 = vst.msk [vmem:[#allocation3 + $0xb0] sm:$0xff] %vm344_vm0, %v11245_v14  ;;  %v11248_v21 = vadd.f32 %v13889_v11, %v10894_v39 }
0x110d   : > { %v11308_v37 = vld [vmem:[#allocation3 + $0xa8] sm:$0xff]  ;;  %v11184_v32 = vpop.f32.mrf.mxu0 }
0x110e   : > { %v11347_v1 = vadd.f32 %v18300_v31, %v11308_v37  ;;  %11280 = vst.msk [vmem:[#allocation3 + $0xc8] sm:$0xff] %vm344_vm0, %v11248_v21  ;;  %v11247_v47 = vadd.f32 %v11184_v32, %v10893_v58 }
0x110f   : > { %v11307_v7 = vld [vmem:[#allocation3 + $0xa0] sm:$0xff]  ;;  %v13892_v26 = vpop.f32.mrf.mxu0 }
0x1110   : > { %11379 = vst.msk [vmem:[%s18309_s16 + $0xa8] sm:$0xff] %vm344_vm0, %v11347_v1  ;;  %v11346_v62 = vadd.f32 %v18300_v31, %v11307_v7  ;;  %11279 = vst.msk [vmem:[#allocation3 + $0xc0] sm:$0xff] %vm344_vm0, %v11247_v47  ;;  %v11250_v4 = vadd.f32 %v13892_v26, %v10896_v57 }
0x1111   : > { %v11310_v12 = vld [vmem:[#allocation3 + $0xb8] sm:$0xff]  ;;  %v11194_v60 = vpop.f32.mrf.mxu0 }
0x1112   : > { %11378 = vst.msk [vmem:[%s18309_s16 + $0xa0] sm:$0xff] %vm344_vm0, %v11346_v62  ;;  %v11349_v17 = vadd.f32 %v18300_v31, %v11310_v12  ;;  %11282 = vst.msk [vmem:[#allocation3 + $0xd8] sm:$0xff] %vm344_vm0, %v11250_v4  ;;  %v11249_v61 = vadd.f32 %v11194_v60, %v10895_v56 }
0x1113   : > { %v11309_v9 = vld [vmem:[#allocation3 + $0xb0] sm:$0xff]  ;;  %v13895_v53 = vpop.f32.mrf.mxu0 }
0x1114   : > { %11381 = vst.msk [vmem:[%s18309_s16 + $0xb8] sm:$0xff] %vm344_vm0, %v11349_v17  ;;  %v11348_v43 = vadd.f32 %v18300_v31, %v11309_v9  ;;  %11281 = vst.msk [vmem:[#allocation3 + $0xd0] sm:$0xff] %vm344_vm0, %v11249_v61  ;;  %v11252_v8 = vadd.f32 %v13895_v53, %v10898_v63 }
0x1115   : > { %v11312_v44 = vld [vmem:[#allocation3 + $0xc8] sm:$0xff]  ;;  %v11204_v15 = vpop.f32.mrf.mxu0 }
0x1116   : > { %11380 = vst.msk [vmem:[%s18309_s16 + $0xb0] sm:$0xff] %vm344_vm0, %v11348_v43  ;;  %v11351_v29 = vadd.f32 %v18300_v31, %v11312_v44  ;;  %11284 = vst.msk [vmem:[#allocation3 + $0xe8] sm:$0xff] %vm344_vm0, %v11252_v8  ;;  %v11251_v20 = vadd.f32 %v11204_v15, %v10897_v24 }
0x1117   : > { %v11311_v13 = vld [vmem:[#allocation3 + $0xc0] sm:$0xff]  ;;  %v13898_v27 = vpop.f32.mrf.mxu0 }
0x1118   : > { %11383 = vst.msk [vmem:[%s18309_s16 + $0xc8] sm:$0xff] %vm344_vm0, %v11351_v29  ;;  %v11350_v2 = vadd.f32 %v18300_v31, %v11311_v13  ;;  %11283 = vst.msk [vmem:[#allocation3 + $0xe0] sm:$0xff] %vm344_vm0, %v11251_v20  ;;  %v11254_v3 = vadd.f32 %v13898_v27, %v10900_v30 }
0x1119   : > { %v11314_v54 = vld [vmem:[#allocation3 + $0xd8] sm:$0xff]  ;;  %v11214_v49 = vpop.f32.mrf.mxu0 }
0x111a   : > { %11382 = vst.msk [vmem:[%s18309_s16 + $0xc0] sm:$0xff] %vm344_vm0, %v11350_v2  ;;  %v11353_v6 = vadd.f32 %v18300_v31, %v11314_v54  ;;  %11286 = vst.msk [vmem:[#allocation3 + $0xf8] sm:$0xff] %vm344_vm0, %v11254_v3  ;;  %v11253_v33 = vadd.f32 %v11214_v49, %v10899_v46 }
0x111b   : > { %v11313_v38 = vld [vmem:[#allocation3 + $0xd0] sm:$0xff] }
0x111c   : > { %11385 = vst.msk [vmem:[%s18309_s16 + $0xd8] sm:$0xff] %vm344_vm0, %v11353_v6  ;;  %v11352_v36 = vadd.f32 %v18300_v31, %v11313_v38  ;;  %11285 = vst.msk [vmem:[#allocation3 + $0xf0] sm:$0xff] %vm344_vm0, %v11253_v33 }
0x111d   : > { %v11316_v19 = vld [vmem:[#allocation3 + $0xe8] sm:$0xff] }
0x111e   : > { %11384 = vst.msk [vmem:[%s18309_s16 + $0xd0] sm:$0xff] %vm344_vm0, %v11352_v36  ;;  %v11355_v45 = vadd.f32 %v18300_v31, %v11316_v19 }
0x111f   : > { %v11315_v0 = vld [vmem:[#allocation3 + $0xe0] sm:$0xff] }
0x1120   : > { %11387 = vst.msk [vmem:[%s18309_s16 + $0xe8] sm:$0xff] %vm344_vm0, %v11355_v45  ;;  %v11354_v28 = vadd.f32 %v18300_v31, %v11315_v0 }
0x1121   : > { %v11318_v23 = vld [vmem:[#allocation3 + $0xf8] sm:$0xff] }
0x1122   : > { %11386 = vst.msk [vmem:[%s18309_s16 + $0xe0] sm:$0xff] %vm344_vm0, %v11354_v28  ;;  %v11357_v34 = vadd.f32 %v18300_v31, %v11318_v23 }
0x1123   : > { %v11317_v18 = vld [vmem:[#allocation3 + $0xf0] sm:$0xff] }
0x1124   : > { %11389 = vst.msk [vmem:[%s18309_s16 + $0xf8] sm:$0xff] %vm344_vm0, %v11357_v34  ;;  %v11356_v40 = vadd.f32 %v18300_v31, %v11317_v18 }
0x1126   : > { %11388 = vst.msk [vmem:[%s18309_s16 + $0xf0] sm:$0xff] %vm344_vm0, %v11356_v40 }
0x1127 PF: > { %s16_s23 = sadd.s32 1, %s14561_s23   ;;  %s18526_s21 = smov %s14557_s22 }
0x1128   : > { %p13_p5 = scmp.ge.s32.totalorder %s16_s23, 6   ;;  %s18527_s22 = smov %s18529_s24 }
0x112a   :  { %15 = sbr.rel (!%p13_p5) target bundleno = 2 (0x2), region = 80 }

</bundles_post_ra>
